<compile_context>
chip_gen: v5e
topology: v5e:2x2
jax: 0.10.0
libtpu: 0.0.40
codegen_flags: <defaults>
</compile_context>

<pallas_src>
import jax
import jax.numpy as jnp
from jax.experimental import pallas as pl
from jax.experimental.pallas import tpu as pltpu

QMIN, QMAX = 0.0, 255.0
LANES = 128            # lane-dense padded output width for every matmul
TILE_M = 512           # rows per grid step for the matmul / fake-quant kernels


# ----------------------------- Pallas kernels ------------------------------ #

def _qmm_kernel(s_ref, x_ref, w_ref, o_ref):
    """Pass 1 of QConv2d/QLinear: fake-quant input, bf16 MXU matmul, rescale.

    s_ref : (3,) f32 SMEM  [1/si, zi, 1/(si*sw)]
    x_ref : (tm, K) f32 raw activations / im2col patches
    w_ref : (K, 128) bf16 quantized, lane-padded weight matrix (resident)
    """
    inv_si = s_ref[0]
    zi = s_ref[1]
    inv_si_sw = s_ref[2]
    # qi.quant(x)  (divide -> multiply; values are exact integers 0..255)
    xq = jnp.clip(jnp.round(x_ref[...] * inv_si + zi), QMIN, QMAX)
    # conv/linear as an MXU matmul; bf16 operands are exact for 0..255, f32 acc
    y = jnp.dot(xq.astype(jnp.bfloat16), w_ref[...],
                preferred_element_type=jnp.float32)
    # x / qi.scale / qw.scale
    o_ref[...] = y * inv_si_sw


def _make_fq_relu_hpool_kernel(ph):
    """Pass 2 for conv layers: qo fake-quant + ReLU fused with the vertical half
    of the 2x2 maxpool (pairwise max over image rows).  fake-quant+relu is
    monotone non-decreasing, so max-then-fq == fq-then-max exactly."""
    def kernel(s_ref, y_ref, o_ref):
        so = s_ref[0]
        zo = s_ref[1]
        inv_so = s_ref[2]
        for p in range(ph):                       # static unroll (ph = 13 or 5)
            m = jnp.maximum(y_ref[:, 2 * p], y_ref[:, 2 * p + 1])
            q = jnp.clip(jnp.round(m * inv_so + zo), QMIN, QMAX)
            o_ref[:, p] = jnp.maximum((q - zo) * so, 0.0)
    return kernel


def _fq_kernel(s_ref, y_ref, o_ref):
    """Pass 2 for the fc layer: plain output fake-quant qo.dequant(qo.quant(y))."""
    so = s_ref[0]
    zo = s_ref[1]
    inv_so = s_ref[2]
    q = jnp.clip(jnp.round(y_ref[...] * inv_so + zo), QMIN, QMAX)
    o_ref[...] = (q - zo) * so


# ------------------------------ kernel wrappers ----------------------------- #

def _compiler_params(n_grid_axes):
    return pltpu.CompilerParams(
        dimension_semantics=("parallel",) * n_grid_axes,
        vmem_limit_bytes=32 * 1024 * 1024,
    )


def _qmm(x2d, w_bf16, inv_si, zi, inv_si_sw):
    """M-tiled fused fake-quant matmul.  Returns a lane-dense (M, 128) f32 buffer."""
    M, K = x2d.shape
    Kw, NP = w_bf16.shape
    assert Kw == K and NP == LANES
    tm = min(TILE_M, M)
    scal = jnp.stack([inv_si, zi, inv_si_sw]).astype(jnp.float32)
    return pl.pallas_call(
        _qmm_kernel,
        out_shape=jax.ShapeDtypeStruct((M, NP), jnp.float32),
        grid_spec=pltpu.PrefetchScalarGridSpec(
            num_scalar_prefetch=0,
            grid=(pl.cdiv(M, tm),),
            in_specs=[
                pl.BlockSpec(memory_space=pltpu.MemorySpace.SMEM),
                pl.BlockSpec((tm, K), lambda i: (i, 0)),
                pl.BlockSpec((K, NP), lambda i: (0, 0)),   # weight stays resident
            ],
            out_specs=pl.BlockSpec((tm, NP), lambda i: (i, 0)),
        ),
        compiler_params=_compiler_params(1),
        cost_estimate=pl.CostEstimate(
            flops=2 * M * K * NP,
            transcendentals=0,
            bytes_accessed=M * K * 4 + K * NP * 2 + M * NP * 4,
        ),
    )(scal, x2d.astype(jnp.float32), w_bf16)


def _fq_relu_pool(y2d, b, oh, ow, so, zo):
    """qo fake-quant + ReLU + 2x2/2 maxpool (floor mode) on a conv's (M,128) output."""
    ph, pw = oh // 2, ow // 2
    y4 = y2d.reshape(b, oh, ow, LANES)
    bi = min(b, 8)                                   # images per grid step
    scal = jnp.stack([so, zo, 1.0 / so]).astype(jnp.float32)
    hp = pl.pallas_call(
        _make_fq_relu_hpool_kernel(ph),
        out_shape=jax.ShapeDtypeStruct((b, ph, ow, LANES), jnp.float32),
        grid_spec=pltpu.PrefetchScalarGridSpec(
            num_scalar_prefetch=0,
            grid=(pl.cdiv(b, bi),),
            in_specs=[
                pl.BlockSpec(memory_space=pltpu.MemorySpace.SMEM),
                pl.BlockSpec((bi, 2 * ph, ow, LANES), lambda i: (i, 0, 0, 0)),
            ],
            out_specs=pl.BlockSpec((bi, ph, ow, LANES), lambda i: (i, 0, 0, 0)),
        ),
        compiler_params=_compiler_params(1),
        cost_estimate=pl.CostEstimate(
            flops=10 * b * ph * ow * LANES,
            transcendentals=0,
            bytes_accessed=b * oh * ow * LANES * 4 + b * ph * ow * LANES * 4,
        ),
    )(scal, y4)
    # TODO(synk): horizontal pair-max stays in XLA (a strided max on the
    # already-halved tensor) rather than a strided sublane gather in-kernel.
    return jnp.maximum(hp[:, :, 0:2 * pw:2, :], hp[:, :, 1:2 * pw:2, :])


def _fq(y2d, so, zo):
    """Output fake-quant for the fc layer (tiled elementwise kernel)."""
    M, NP = y2d.shape
    tm = min(TILE_M, M)
    scal = jnp.stack([so, zo, 1.0 / so]).astype(jnp.float32)
    return pl.pallas_call(
        _fq_kernel,
        out_shape=jax.ShapeDtypeStruct((M, NP), jnp.float32),
        grid_spec=pltpu.PrefetchScalarGridSpec(
            num_scalar_prefetch=0,
            grid=(pl.cdiv(M, tm),),
            in_specs=[
                pl.BlockSpec(memory_space=pltpu.MemorySpace.SMEM),
                pl.BlockSpec((tm, NP), lambda i: (i, 0)),
            ],
            out_specs=pl.BlockSpec((tm, NP), lambda i: (i, 0)),
        ),
        compiler_params=_compiler_params(1),
    )(scal, y2d)


# ------------------------------ host-side glue ------------------------------ #

def _scale_zp(t):
    """Qparam.update: scale & zero_point from tensor min/max (zp not rounded,
    exactly like the reference; a constant tensor would give scale=0 -> NaN,
    also matching the reference)."""
    rmin = jnp.min(t)
    rmax = jnp.max(t)
    scale = (rmax - rmin) / (QMAX - QMIN)
    zp = QMIN - rmin / scale
    return scale.astype(jnp.float32), zp.astype(jnp.float32)


def _quant(t, scale, zp):
    """Qparam.quant (weights are quantized on the host; activations in-kernel)."""
    return jnp.clip(jnp.round(t / scale + zp), QMIN, QMAX)


def _pad_lanes(mat):
    """Pad the output (N) dim of a (K, N) weight matrix to 128 lanes."""
    k, n = mat.shape
    if n < LANES:
        mat = jnp.pad(mat, ((0, 0), (0, LANES - n)))
    return mat


def _im2col(x_nhwc, k=3):
    """3x3 valid-conv patches, column order = (kh, kw, ci)."""
    B, H, W, C = x_nhwc.shape
    OH, OW = H - k + 1, W - k + 1
    cols = [x_nhwc[:, kh:kh + OH, kw:kw + OW, :]
            for kh in range(k) for kw in range(k)]
    p = jnp.stack(cols, axis=3)                      # (B, OH, OW, k*k, C)
    return p.reshape(B * OH * OW, k * k * C), (OH, OW)


def _conv_w_to_mat(w_q):
    """(CO, CI, k, k) -> (k*k*CI, CO) matching the (kh, kw, ci) patch order."""
    return jnp.transpose(w_q, (2, 3, 1, 0)).reshape(-1, w_q.shape[0])


def _grouped_to_dense(w_q, groups):
    """Grouped (CO, CI/groups, k, k) quantized weight -> block-diagonal dense
    (k*k*CI, CO) matrix (zeros outside each group contribute nothing)."""
    CO, CIg, K, _ = w_q.shape
    CI = CIg * groups
    cpg_out = CO // groups
    wt = jnp.transpose(w_q, (2, 3, 1, 0)).astype(jnp.float32)   # (k,k,CIg,CO)
    dense = jnp.zeros((K, K, CI, CO), jnp.float32)
    co_idx = jnp.arange(CO)
    for ci_local in range(CIg):
        ci_g = (co_idx // cpg_out) * CIg + ci_local
        dense = dense.at[:, :, ci_g, co_idx].set(wt[:, :, ci_local, :])
    return dense.reshape(K * K * CI, CO)


def _qconv_layer(x_nhwc, w, n_out, groups=None):
    """One QConv2d (training path) followed by QReLU + QMaxPool2d(2,2)."""
    B = x_nhwc.shape[0]
    si, zi = _scale_zp(x_nhwc)                       # qi.update(x)
    sw, zw = _scale_zp(w)                            # qw.update(weight)
    wq = _quant(w, sw, zw)
    if groups is None:
        wmat = _conv_w_to_mat(wq)
    else:
        # TODO(synk): block-diagonal dense grouped weight does ~groups x
        # redundant MACs; harmless while the layer stays bandwidth-bound.
        wmat = _grouped_to_dense(wq, groups)
    wmat = _pad_lanes(wmat).astype(jnp.bfloat16)
    # TODO(synk): im2col still host-side; in-kernel patch formation would cut
    # the conv's input HBM traffic ~9x.
    p, (oh, ow) = _im2col(x_nhwc, 3)
    y = _qmm(p, wmat, 1.0 / si, zi, 1.0 / (si * sw))             # (B*oh*ow, 128)
    so, zo = _scale_zp(y[:, :n_out])                 # qo.update over real channels
    pooled = _fq_relu_pool(y, B, oh, ow, so, zo)     # (B, oh//2, ow//2, 128)
    return pooled[..., :n_out]


def net_forward(x_nchw, w1, w2, wf):
    B = x_nchw.shape[0]
    x = jnp.transpose(x_nchw, (0, 2, 3, 1))          # NHWC

    # conv1: QConv2d(Conv2d(1, 40, 3, bias=False)) + QReLU + QMaxPool2d(2,2)
    x = _qconv_layer(x, w1, 40)                      # (B, 13, 13, 40)
    # conv2: QConv2d(Conv2d(40, 40, 3, groups=20, bias=False)) + relu + pool
    x = _qconv_layer(x, w2, 40, groups=20)           # (B, 5, 5, 40)

    # x.view(-1, 5*5*40) in the original NCHW order
    xf = jnp.transpose(x, (0, 3, 1, 2)).reshape(B, 5 * 5 * 40)

    # fc: QLinear(Linear(1000, 10, bias=False)), training path
    si, zi = _scale_zp(xf)
    sw, zw = _scale_zp(wf)
    wfq = _quant(wf, sw, zw)
    wfm = _pad_lanes(jnp.transpose(wfq)).astype(jnp.bfloat16)    # (1000, 128)
    y = _qmm(xf, wfm, 1.0 / si, zi, 1.0 / (si * sw))             # (B, 128)
    so, zo = _scale_zp(y[:, :10])
    out = _fq(y, so, zo)[:, :10]
    return out


if __name__ == "__main__":
    key = jax.random.PRNGKey(0)
    k1, k2, k3, kx = jax.random.split(key, 4)

    # Deterministic synthetic parameters (shapes from Net.__init__).
    w1 = 0.10 * jax.random.normal(k1, (40, 1, 3, 3), jnp.float32)     # conv1
    w2 = 0.10 * jax.random.normal(k2, (40, 2, 3, 3), jnp.float32)     # conv2 (groups=20)
    wf = 0.05 * jax.random.normal(k3, (10, 5 * 5 * 40), jnp.float32)  # fc

    # The fc's 5*5*40 flatten implies a 28x28 single-channel input (MNIST-like).
    x = jax.random.normal(kx, (2, 1, 28, 28), jnp.float32)

    out = jax.jit(net_forward)(x, w1, w2, wf)
    out = jax.block_until_ready(out)

    assert out.shape == (2, 10), out.shape
    assert bool(jnp.all(jnp.isfinite(out)))
    print("KERNEL_OK")
</pallas_src>

<mosaic_0001>
module attributes {stable_mosaic.version = 11 : i64} {
  func.func @_qmm_kernel(%arg0: i32, %arg1: memref<3xf32, #tpu.memory_space<smem>>, %arg2: memref<512x9xf32, #tpu.memory_space<vmem>>, %arg3: memref<9x128xbf16, #tpu.memory_space<vmem>>, %arg4: memref<512x128xf32, #tpu.memory_space<vmem>>) attributes {dimension_semantics = [#tpu.dimension_semantics<parallel>], iteration_bounds = array<i64: 3>, scalar_prefetch = 0 : i64, scratch_operands = 0 : i64, tpu.core_type = #tpu.core_type<tc>, window_params = [{transform_indices = @transform_0, window_bounds = array<i64: 3>}, {transform_indices = @transform_1, window_bounds = array<i64: 512, 9>}, {pipeline_mode = #tpu.pipeline_mode<synchronous>, transform_indices = @transform_2, window_bounds = array<i64: 9, 128>}, {transform_indices = @transform_3, window_bounds = array<i64: 512, 128>}]} {
    %c0 = arith.constant 0 : index
    %0 = memref.load %arg1[%c0] : memref<3xf32, #tpu.memory_space<smem>>
    %c1 = arith.constant 1 : index
    %1 = memref.load %arg1[%c1] : memref<3xf32, #tpu.memory_space<smem>>
    %c2 = arith.constant 2 : index
    %2 = memref.load %arg1[%c2] : memref<3xf32, #tpu.memory_space<smem>>
    %c0_0 = arith.constant 0 : index
    %c0_1 = arith.constant 0 : index
    %3 = vector.load %arg2[%c0_0, %c0_1] : memref<512x9xf32, #tpu.memory_space<vmem>>, vector<512x9xf32>
    %4 = vector.broadcast %0 : f32 to vector<512x9xf32>
    %5 = arith.mulf %3, %4 : vector<512x9xf32>
    %6 = vector.broadcast %1 : f32 to vector<512x9xf32>
    %7 = arith.addf %5, %6 : vector<512x9xf32>
    %8 = math.roundeven %7 : vector<512x9xf32>
    %cst = arith.constant 0.000000e+00 : f32
    %cst_2 = arith.constant 2.550000e+02 : f32
    %9 = vector.broadcast %cst : f32 to vector<512x9xf32>
    %10 = arith.maximumf %9, %8 : vector<512x9xf32>
    %11 = vector.broadcast %cst_2 : f32 to vector<512x9xf32>
    %12 = arith.minimumf %11, %10 : vector<512x9xf32>
    %13 = arith.truncf %12 : vector<512x9xf32> to vector<512x9xbf16>
    %c0_3 = arith.constant 0 : index
    %c0_4 = arith.constant 0 : index
    %14 = vector.load %arg3[%c0_3, %c0_4] : memref<9x128xbf16, #tpu.memory_space<vmem>>, vector<9x128xbf16>
    %cst_5 = arith.constant dense<0.000000e+00> : vector<512x128xf32>
    %15 = tpu.matmul %13, %14, %cst_5 {dimension_numbers = #tpu.dot_dimension_numbers<[1], [0], [0], [1], [0, 0, 1, 1], [], []>} : vector<512x9xbf16>, vector<9x128xbf16>, vector<512x128xf32> -> vector<512x128xf32>
    %16 = vector.broadcast %2 : f32 to vector<512x128xf32>
    %17 = arith.mulf %15, %16 : vector<512x128xf32>
    %c0_6 = arith.constant 0 : index
    %c0_7 = arith.constant 0 : index
    %18 = vector.load %arg4[%c0_6, %c0_7] : memref<512x128xf32, #tpu.memory_space<vmem>>, vector<512x128xf32>
    tpu.vector_store %arg4[%c0_6, %c0_7], %17 {strides = array<i32>} : memref<512x128xf32, #tpu.memory_space<vmem>>, vector<512x128xf32>,
    return
  }
  func.func @transform_0(%arg0: i32) -> i32 {
    %c0_i32 = arith.constant 0 : i32
    %c0_i32_0 = arith.constant 0 : i32
    return %c0_i32 : i32
  }
  func.func @transform_1(%arg0: i32) -> (i32, i32) {
    %c0_i32 = arith.constant 0 : i32
    %c0_i32_0 = arith.constant 0 : i32
    return %arg0, %c0_i32 : i32, i32
  }
  func.func @transform_2(%arg0: i32) -> (i32, i32) {
    %c0_i32 = arith.constant 0 : i32
    %c0_i32_0 = arith.constant 0 : i32
    %c0_i32_1 = arith.constant 0 : i32
    return %c0_i32, %c0_i32_0 : i32, i32
  }
  func.func @transform_3(%arg0: i32) -> (i32, i32) {
    %c0_i32 = arith.constant 0 : i32
    %c0_i32_0 = arith.constant 0 : i32
    return %arg0, %c0_i32 : i32, i32
  }
}

module attributes {stable_mosaic.version = 11 : i64} {
  func.func @kernel(%arg0: i32, %arg1: memref<3xf32, #tpu.memory_space<smem>>, %arg2: memref<2x26x26x128xf32, #tpu.memory_space<vmem>>, %arg3: memref<2x13x26x128xf32, #tpu.memory_space<vmem>>) attributes {dimension_semantics = [#tpu.dimension_semantics<parallel>], iteration_bounds = array<i64: 1>, scalar_prefetch = 0 : i64, scratch_operands = 0 : i64, tpu.core_type = #tpu.core_type<tc>, window_params = [{transform_indices = @transform_0, window_bounds = array<i64: 3>}, {transform_indices = @transform_1, window_bounds = array<i64: 2, 26, 26, 128>}, {transform_indices = @transform_2, window_bounds = array<i64: 2, 13, 26, 128>}]} {
    %c0 = arith.constant 0 : index
    %0 = memref.load %arg1[%c0] : memref<3xf32, #tpu.memory_space<smem>>
    %c1 = arith.constant 1 : index
    %1 = memref.load %arg1[%c1] : memref<3xf32, #tpu.memory_space<smem>>
    %c2 = arith.constant 2 : index
    %2 = memref.load %arg1[%c2] : memref<3xf32, #tpu.memory_space<smem>>
    %c0_0 = arith.constant 0 : index
    %c0_1 = arith.constant 0 : index
    %c0_2 = arith.constant 0 : index
    %c0_3 = arith.constant 0 : index
    %3 = vector.load %arg2[%c0_0, %c0_1, %c0_2, %c0_3] : memref<2x26x26x128xf32, #tpu.memory_space<vmem>>, vector<2x1x26x128xf32>
    %4 = vector.shape_cast %3 : vector<2x1x26x128xf32> to vector<2x26x128xf32>
    %c0_4 = arith.constant 0 : index
    %c1_5 = arith.constant 1 : index
    %c0_6 = arith.constant 0 : index
    %c0_7 = arith.constant 0 : index
    %5 = vector.load %arg2[%c0_4, %c1_5, %c0_6, %c0_7] : memref<2x26x26x128xf32, #tpu.memory_space<vmem>>, vector<2x1x26x128xf32>
    %6 = vector.shape_cast %5 : vector<2x1x26x128xf32> to vector<2x26x128xf32>
    %7 = arith.maximumf %4, %6 : vector<2x26x128xf32>
    %8 = vector.broadcast %2 : f32 to vector<2x26x128xf32>
    %9 = arith.mulf %7, %8 : vector<2x26x128xf32>
    %10 = vector.broadcast %1 : f32 to vector<2x26x128xf32>
    %11 = arith.addf %9, %10 : vector<2x26x128xf32>
    %12 = math.roundeven %11 : vector<2x26x128xf32>
    %cst = arith.constant 0.000000e+00 : f32
    %cst_8 = arith.constant 2.550000e+02 : f32
    %13 = vector.broadcast %cst : f32 to vector<2x26x128xf32>
    %14 = arith.maximumf %13, %12 : vector<2x26x128xf32>
    %15 = vector.broadcast %cst_8 : f32 to vector<2x26x128xf32>
    %16 = arith.minimumf %15, %14 : vector<2x26x128xf32>
    %17 = vector.broadcast %1 : f32 to vector<2x26x128xf32>
    %18 = arith.subf %16, %17 : vector<2x26x128xf32>
    %19 = vector.broadcast %0 : f32 to vector<2x26x128xf32>
    %20 = arith.mulf %18, %19 : vector<2x26x128xf32>
    %cst_9 = arith.constant 0.000000e+00 : f32
    %21 = vector.broadcast %cst_9 : f32 to vector<2x26x128xf32>
    %22 = arith.maximumf %20, %21 : vector<2x26x128xf32>
    %c0_10 = arith.constant 0 : index
    %c0_11 = arith.constant 0 : index
    %c0_12 = arith.constant 0 : index
    %c0_13 = arith.constant 0 : index
    %23 = vector.load %arg3[%c0_10, %c0_11, %c0_12, %c0_13] : memref<2x13x26x128xf32, #tpu.memory_space<vmem>>, vector<2x1x26x128xf32>
    %24 = vector.shape_cast %23 : vector<2x1x26x128xf32> to vector<2x26x128xf32>
    %25 = vector.shape_cast %22 : vector<2x26x128xf32> to vector<2x1x26x128xf32>
    tpu.vector_store %arg3[%c0_10, %c0_11, %c0_12, %c0_13], %25 {strides = array<i32>} : memref<2x13x26x128xf32, #tpu.memory_space<vmem>>, vector<2x1x26x128xf32>,
    %c0_14 = arith.constant 0 : index
    %c2_15 = arith.constant 2 : index
    %c0_16 = arith.constant 0 : index
    %c0_17 = arith.constant 0 : index
    %26 = vector.load %arg2[%c0_14, %c2_15, %c0_16, %c0_17] : memref<2x26x26x128xf32, #tpu.memory_space<vmem>>, vector<2x1x26x128xf32>
    %27 = vector.shape_cast %26 : vector<2x1x26x128xf32> to vector<2x26x128xf32>
    %c0_18 = arith.constant 0 : index
    %c3 = arith.constant 3 : index
    %c0_19 = arith.constant 0 : index
    %c0_20 = arith.constant 0 : index
    %28 = vector.load %arg2[%c0_18, %c3, %c0_19, %c0_20] : memref<2x26x26x128xf32, #tpu.memory_space<vmem>>, vector<2x1x26x128xf32>
    %29 = vector.shape_cast %28 : vector<2x1x26x128xf32> to vector<2x26x128xf32>
    %30 = arith.maximumf %27, %29 : vector<2x26x128xf32>
    %31 = vector.broadcast %2 : f32 to vector<2x26x128xf32>
    %32 = arith.mulf %30, %31 : vector<2x26x128xf32>
    %33 = vector.broadcast %1 : f32 to vector<2x26x128xf32>
    %34 = arith.addf %32, %33 : vector<2x26x128xf32>
    %35 = math.roundeven %34 : vector<2x26x128xf32>
    %cst_21 = arith.constant 0.000000e+00 : f32
    %cst_22 = arith.constant 2.550000e+02 : f32
    %36 = vector.broadcast %cst_21 : f32 to vector<2x26x128xf32>
    %37 = arith.maximumf %36, %35 : vector<2x26x128xf32>
    %38 = vector.broadcast %cst_22 : f32 to vector<2x26x128xf32>
    %39 = arith.minimumf %38, %37 : vector<2x26x128xf32>
    %40 = vector.broadcast %1 : f32 to vector<2x26x128xf32>
    %41 = arith.subf %39, %40 : vector<2x26x128xf32>
    %42 = vector.broadcast %0 : f32 to vector<2x26x128xf32>
    %43 = arith.mulf %41, %42 : vector<2x26x128xf32>
    %cst_23 = arith.constant 0.000000e+00 : f32
    %44 = vector.broadcast %cst_23 : f32 to vector<2x26x128xf32>
    %45 = arith.maximumf %43, %44 : vector<2x26x128xf32>
    %c0_24 = arith.constant 0 : index
    %c1_25 = arith.constant 1 : index
    %c0_26 = arith.constant 0 : index
    %c0_27 = arith.constant 0 : index
    %46 = vector.load %arg3[%c0_24, %c1_25, %c0_26, %c0_27] : memref<2x13x26x128xf32, #tpu.memory_space<vmem>>, vector<2x1x26x128xf32>
    %47 = vector.shape_cast %46 : vector<2x1x26x128xf32> to vector<2x26x128xf32>
    %48 = vector.shape_cast %45 : vector<2x26x128xf32> to vector<2x1x26x128xf32>
    tpu.vector_store %arg3[%c0_24, %c1_25, %c0_26, %c0_27], %48 {strides = array<i32>} : memref<2x13x26x128xf32, #tpu.memory_space<vmem>>, vector<2x1x26x128xf32>,
    %c0_28 = arith.constant 0 : index
    %c4 = arith.constant 4 : index
    %c0_29 = arith.constant 0 : index
    %c0_30 = arith.constant 0 : index
    %49 = vector.load %arg2[%c0_28, %c4, %c0_29, %c0_30] : memref<2x26x26x128xf32, #tpu.memory_space<vmem>>, vector<2x1x26x128xf32>
    %50 = vector.shape_cast %49 : vector<2x1x26x128xf32> to vector<2x26x128xf32>
    %c0_31 = arith.constant 0 : index
    %c5 = arith.constant 5 : index
    %c0_32 = arith.constant 0 : index
    %c0_33 = arith.constant 0 : index
    %51 = vector.load %arg2[%c0_31, %c5, %c0_32, %c0_33] : memref<2x26x26x128xf32, #tpu.memory_space<vmem>>, vector<2x1x26x128xf32>
    %52 = vector.shape_cast %51 : vector<2x1x26x128xf32> to vector<2x26x128xf32>
    %53 = arith.maximumf %50, %52 : vector<2x26x128xf32>
    %54 = vector.broadcast %2 : f32 to vector<2x26x128xf32>
    %55 = arith.mulf %53, %54 : vector<2x26x128xf32>
    %56 = vector.broadcast %1 : f32 to vector<2x26x128xf32>
    %57 = arith.addf %55, %56 : vector<2x26x128xf32>
    %58 = math.roundeven %57 : vector<2x26x128xf32>
    %cst_34 = arith.constant 0.000000e+00 : f32
    %cst_35 = arith.constant 2.550000e+02 : f32
    %59 = vector.broadcast %cst_34 : f32 to vector<2x26x128xf32>
    %60 = arith.maximumf %59, %58 : vector<2x26x128xf32>
    %61 = vector.broadcast %cst_35 : f32 to vector<2x26x128xf32>
    %62 = arith.minimumf %61, %60 : vector<2x26x128xf32>
    %63 = vector.broadcast %1 : f32 to vector<2x26x128xf32>
    %64 = arith.subf %62, %63 : vector<2x26x128xf32>
    %65 = vector.broadcast %0 : f32 to vector<2x26x128xf32>
    %66 = arith.mulf %64, %65 : vector<2x26x128xf32>
    %cst_36 = arith.constant 0.000000e+00 : f32
    %67 = vector.broadcast %cst_36 : f32 to vector<2x26x128xf32>
    %68 = arith.maximumf %66, %67 : vector<2x26x128xf32>
    %c0_37 = arith.constant 0 : index
    %c2_38 = arith.constant 2 : index
    %c0_39 = arith.constant 0 : index
    %c0_40 = arith.constant 0 : index
    %69 = vector.load %arg3[%c0_37, %c2_38, %c0_39, %c0_40] : memref<2x13x26x128xf32, #tpu.memory_space<vmem>>, vector<2x1x26x128xf32>
    %70 = vector.shape_cast %69 : vector<2x1x26x128xf32> to vector<2x26x128xf32>
    %71 = vector.shape_cast %68 : vector<2x26x128xf32> to vector<2x1x26x128xf32>
    tpu.vector_store %arg3[%c0_37, %c2_38, %c0_39, %c0_40], %71 {strides = array<i32>} : memref<2x13x26x128xf32, #tpu.memory_space<vmem>>, vector<2x1x26x128xf32>,
    %c0_41 = arith.constant 0 : index
    %c6 = arith.constant 6 : index
    %c0_42 = arith.constant 0 : index
    %c0_43 = arith.constant 0 : index
    %72 = vector.load %arg2[%c0_41, %c6, %c0_42, %c0_43] : memref<2x26x26x128xf32, #tpu.memory_space<vmem>>, vector<2x1x26x128xf32>
    %73 = vector.shape_cast %72 : vector<2x1x26x128xf32> to vector<2x26x128xf32>
    %c0_44 = arith.constant 0 : index
    %c7 = arith.constant 7 : index
    %c0_45 = arith.constant 0 : index
    %c0_46 = arith.constant 0 : index
    %74 = vector.load %arg2[%c0_44, %c7, %c0_45, %c0_46] : memref<2x26x26x128xf32, #tpu.memory_space<vmem>>, vector<2x1x26x128xf32>
    %75 = vector.shape_cast %74 : vector<2x1x26x128xf32> to vector<2x26x128xf32>
    %76 = arith.maximumf %73, %75 : vector<2x26x128xf32>
    %77 = vector.broadcast %2 : f32 to vector<2x26x128xf32>
    %78 = arith.mulf %76, %77 : vector<2x26x128xf32>
    %79 = vector.broadcast %1 : f32 to vector<2x26x128xf32>
    %80 = arith.addf %78, %79 : vector<2x26x128xf32>
    %81 = math.roundeven %80 : vector<2x26x128xf32>
    %cst_47 = arith.constant 0.000000e+00 : f32
    %cst_48 = arith.constant 2.550000e+02 : f32
    %82 = vector.broadcast %cst_47 : f32 to vector<2x26x128xf32>
    %83 = arith.maximumf %82, %81 : vector<2x26x128xf32>
    %84 = vector.broadcast %cst_48 : f32 to vector<2x26x128xf32>
    %85 = arith.minimumf %84, %83 : vector<2x26x128xf32>
    %86 = vector.broadcast %1 : f32 to vector<2x26x128xf32>
    %87 = arith.subf %85, %86 : vector<2x26x128xf32>
    %88 = vector.broadcast %0 : f32 to vector<2x26x128xf32>
    %89 = arith.mulf %87, %88 : vector<2x26x128xf32>
    %cst_49 = arith.constant 0.000000e+00 : f32
    %90 = vector.broadcast %cst_49 : f32 to vector<2x26x128xf32>
    %91 = arith.maximumf %89, %90 : vector<2x26x128xf32>
    %c0_50 = arith.constant 0 : index
    %c3_51 = arith.constant 3 : index
    %c0_52 = arith.constant 0 : index
    %c0_53 = arith.constant 0 : index
    %92 = vector.load %arg3[%c0_50, %c3_51, %c0_52, %c0_53] : memref<2x13x26x128xf32, #tpu.memory_space<vmem>>, vector<2x1x26x128xf32>
    %93 = vector.shape_cast %92 : vector<2x1x26x128xf32> to vector<2x26x128xf32>
    %94 = vector.shape_cast %91 : vector<2x26x128xf32> to vector<2x1x26x128xf32>
    tpu.vector_store %arg3[%c0_50, %c3_51, %c0_52, %c0_53], %94 {strides = array<i32>} : memref<2x13x26x128xf32, #tpu.memory_space<vmem>>, vector<2x1x26x128xf32>,
    %c0_54 = arith.constant 0 : index
    %c8 = arith.constant 8 : index
    %c0_55 = arith.constant 0 : index
    %c0_56 = arith.constant 0 : index
    %95 = vector.load %arg2[%c0_54, %c8, %c0_55, %c0_56] : memref<2x26x26x128xf32, #tpu.memory_space<vmem>>, vector<2x1x26x128xf32>
    %96 = vector.shape_cast %95 : vector<2x1x26x128xf32> to vector<2x26x128xf32>
    %c0_57 = arith.constant 0 : index
    %c9 = arith.constant 9 : index
    %c0_58 = arith.constant 0 : index
    %c0_59 = arith.constant 0 : index
    %97 = vector.load %arg2[%c0_57, %c9, %c0_58, %c0_59] : memref<2x26x26x128xf32, #tpu.memory_space<vmem>>, vector<2x1x26x128xf32>
    %98 = vector.shape_cast %97 : vector<2x1x26x128xf32> to vector<2x26x128xf32>
    %99 = arith.maximumf %96, %98 : vector<2x26x128xf32>
    %100 = vector.broadcast %2 : f32 to vector<2x26x128xf32>
    %101 = arith.mulf %99, %100 : vector<2x26x128xf32>
    %102 = vector.broadcast %1 : f32 to vector<2x26x128xf32>
    %103 = arith.addf %101, %102 : vector<2x26x128xf32>
    %104 = math.roundeven %103 : vector<2x26x128xf32>
    %cst_60 = arith.constant 0.000000e+00 : f32
    %cst_61 = arith.constant 2.550000e+02 : f32
    %105 = vector.broadcast %cst_60 : f32 to vector<2x26x128xf32>
    %106 = arith.maximumf %105, %104 : vector<2x26x128xf32>
    %107 = vector.broadcast %cst_61 : f32 to vector<2x26x128xf32>
    %108 = arith.minimumf %107, %106 : vector<2x26x128xf32>
    %109 = vector.broadcast %1 : f32 to vector<2x26x128xf32>
    %110 = arith.subf %108, %109 : vector<2x26x128xf32>
    %111 = vector.broadcast %0 : f32 to vector<2x26x128xf32>
    %112 = arith.mulf %110, %111 : vector<2x26x128xf32>
    %cst_62 = arith.constant 0.000000e+00 : f32
    %113 = vector.broadcast %cst_62 : f32 to vector<2x26x128xf32>
    %114 = arith.maximumf %112, %113 : vector<2x26x128xf32>
    %c0_63 = arith.constant 0 : index
    %c4_64 = arith.constant 4 : index
    %c0_65 = arith.constant 0 : index
    %c0_66 = arith.constant 0 : index
    %115 = vector.load %arg3[%c0_63, %c4_64, %c0_65, %c0_66] : memref<2x13x26x128xf32, #tpu.memory_space<vmem>>, vector<2x1x26x128xf32>
    %116 = vector.shape_cast %115 : vector<2x1x26x128xf32> to vector<2x26x128xf32>
    %117 = vector.shape_cast %114 : vector<2x26x128xf32> to vector<2x1x26x128xf32>
    tpu.vector_store %arg3[%c0_63, %c4_64, %c0_65, %c0_66], %117 {strides = array<i32>} : memref<2x13x26x128xf32, #tpu.memory_space<vmem>>, vector<2x1x26x128xf32>,
    %c0_67 = arith.constant 0 : index
    %c10 = arith.constant 10 : index
    %c0_68 = arith.constant 0 : index
    %c0_69 = arith.constant 0 : index
    %118 = vector.load %arg2[%c0_67, %c10, %c0_68, %c0_69] : memref<2x26x26x128xf32, #tpu.memory_space<vmem>>, vector<2x1x26x128xf32>
    %119 = vector.shape_cast %118 : vector<2x1x26x128xf32> to vector<2x26x128xf32>
    %c0_70 = arith.constant 0 : index
    %c11 = arith.constant 11 : index
    %c0_71 = arith.constant 0 : index
    %c0_72 = arith.constant 0 : index
    %120 = vector.load %arg2[%c0_70, %c11, %c0_71, %c0_72] : memref<2x26x26x128xf32, #tpu.memory_space<vmem>>, vector<2x1x26x128xf32>
    %121 = vector.shape_cast %120 : vector<2x1x26x128xf32> to vector<2x26x128xf32>
    %122 = arith.maximumf %119, %121 : vector<2x26x128xf32>
    %123 = vector.broadcast %2 : f32 to vector<2x26x128xf32>
    %124 = arith.mulf %122, %123 : vector<2x26x128xf32>
    %125 = vector.broadcast %1 : f32 to vector<2x26x128xf32>
    %126 = arith.addf %124, %125 : vector<2x26x128xf32>
    %127 = math.roundeven %126 : vector<2x26x128xf32>
    %cst_73 = arith.constant 0.000000e+00 : f32
    %cst_74 = arith.constant 2.550000e+02 : f32
    %128 = vector.broadcast %cst_73 : f32 to vector<2x26x128xf32>
    %129 = arith.maximumf %128, %127 : vector<2x26x128xf32>
    %130 = vector.broadcast %cst_74 : f32 to vector<2x26x128xf32>
    %131 = arith.minimumf %130, %129 : vector<2x26x128xf32>
    %132 = vector.broadcast %1 : f32 to vector<2x26x128xf32>
    %133 = arith.subf %131, %132 : vector<2x26x128xf32>
    %134 = vector.broadcast %0 : f32 to vector<2x26x128xf32>
    %135 = arith.mulf %133, %134 : vector<2x26x128xf32>
    %cst_75 = arith.constant 0.000000e+00 : f32
    %136 = vector.broadcast %cst_75 : f32 to vector<2x26x128xf32>
    %137 = arith.maximumf %135, %136 : vector<2x26x128xf32>
    %c0_76 = arith.constant 0 : index
    %c5_77 = arith.constant 5 : index
    %c0_78 = arith.constant 0 : index
    %c0_79 = arith.constant 0 : index
    %138 = vector.load %arg3[%c0_76, %c5_77, %c0_78, %c0_79] : memref<2x13x26x128xf32, #tpu.memory_space<vmem>>, vector<2x1x26x128xf32>
    %139 = vector.shape_cast %138 : vector<2x1x26x128xf32> to vector<2x26x128xf32>
    %140 = vector.shape_cast %137 : vector<2x26x128xf32> to vector<2x1x26x128xf32>
    tpu.vector_store %arg3[%c0_76, %c5_77, %c0_78, %c0_79], %140 {strides = array<i32>} : memref<2x13x26x128xf32, #tpu.memory_space<vmem>>, vector<2x1x26x128xf32>,
    %c0_80 = arith.constant 0 : index
    %c12 = arith.constant 12 : index
    %c0_81 = arith.constant 0 : index
    %c0_82 = arith.constant 0 : index
    %141 = vector.load %arg2[%c0_80, %c12, %c0_81, %c0_82] : memref<2x26x26x128xf32, #tpu.memory_space<vmem>>, vector<2x1x26x128xf32>
    %142 = vector.shape_cast %141 : vector<2x1x26x128xf32> to vector<2x26x128xf32>
    %c0_83 = arith.constant 0 : index
    %c13 = arith.constant 13 : index
    %c0_84 = arith.constant 0 : index
    %c0_85 = arith.constant 0 : index
    %143 = vector.load %arg2[%c0_83, %c13, %c0_84, %c0_85] : memref<2x26x26x128xf32, #tpu.memory_space<vmem>>, vector<2x1x26x128xf32>
    %144 = vector.shape_cast %143 : vector<2x1x26x128xf32> to vector<2x26x128xf32>
    %145 = arith.maximumf %142, %144 : vector<2x26x128xf32>
    %146 = vector.broadcast %2 : f32 to vector<2x26x128xf32>
    %147 = arith.mulf %145, %146 : vector<2x26x128xf32>
    %148 = vector.broadcast %1 : f32 to vector<2x26x128xf32>
    %149 = arith.addf %147, %148 : vector<2x26x128xf32>
    %150 = math.roundeven %149 : vector<2x26x128xf32>
    %cst_86 = arith.constant 0.000000e+00 : f32
    %cst_87 = arith.constant 2.550000e+02 : f32
    %151 = vector.broadcast %cst_86 : f32 to vector<2x26x128xf32>
    %152 = arith.maximumf %151, %150 : vector<2x26x128xf32>
    %153 = vector.broadcast %cst_87 : f32 to vector<2x26x128xf32>
    %154 = arith.minimumf %153, %152 : vector<2x26x128xf32>
    %155 = vector.broadcast %1 : f32 to vector<2x26x128xf32>
    %156 = arith.subf %154, %155 : vector<2x26x128xf32>
    %157 = vector.broadcast %0 : f32 to vector<2x26x128xf32>
    %158 = arith.mulf %156, %157 : vector<2x26x128xf32>
    %cst_88 = arith.constant 0.000000e+00 : f32
    %159 = vector.broadcast %cst_88 : f32 to vector<2x26x128xf32>
    %160 = arith.maximumf %158, %159 : vector<2x26x128xf32>
    %c0_89 = arith.constant 0 : index
    %c6_90 = arith.constant 6 : index
    %c0_91 = arith.constant 0 : index
    %c0_92 = arith.constant 0 : index
    %161 = vector.load %arg3[%c0_89, %c6_90, %c0_91, %c0_92] : memref<2x13x26x128xf32, #tpu.memory_space<vmem>>, vector<2x1x26x128xf32>
    %162 = vector.shape_cast %161 : vector<2x1x26x128xf32> to vector<2x26x128xf32>
    %163 = vector.shape_cast %160 : vector<2x26x128xf32> to vector<2x1x26x128xf32>
    tpu.vector_store %arg3[%c0_89, %c6_90, %c0_91, %c0_92], %163 {strides = array<i32>} : memref<2x13x26x128xf32, #tpu.memory_space<vmem>>, vector<2x1x26x128xf32>,
    %c0_93 = arith.constant 0 : index
    %c14 = arith.constant 14 : index
    %c0_94 = arith.constant 0 : index
    %c0_95 = arith.constant 0 : index
    %164 = vector.load %arg2[%c0_93, %c14, %c0_94, %c0_95] : memref<2x26x26x128xf32, #tpu.memory_space<vmem>>, vector<2x1x26x128xf32>
    %165 = vector.shape_cast %164 : vector<2x1x26x128xf32> to vector<2x26x128xf32>
    %c0_96 = arith.constant 0 : index
    %c15 = arith.constant 15 : index
    %c0_97 = arith.constant 0 : index
    %c0_98 = arith.constant 0 : index
    %166 = vector.load %arg2[%c0_96, %c15, %c0_97, %c0_98] : memref<2x26x26x128xf32, #tpu.memory_space<vmem>>, vector<2x1x26x128xf32>
    %167 = vector.shape_cast %166 : vector<2x1x26x128xf32> to vector<2x26x128xf32>
    %168 = arith.maximumf %165, %167 : vector<2x26x128xf32>
    %169 = vector.broadcast %2 : f32 to vector<2x26x128xf32>
    %170 = arith.mulf %168, %169 : vector<2x26x128xf32>
    %171 = vector.broadcast %1 : f32 to vector<2x26x128xf32>
    %172 = arith.addf %170, %171 : vector<2x26x128xf32>
    %173 = math.roundeven %172 : vector<2x26x128xf32>
    %cst_99 = arith.constant 0.000000e+00 : f32
    %cst_100 = arith.constant 2.550000e+02 : f32
    %174 = vector.broadcast %cst_99 : f32 to vector<2x26x128xf32>
    %175 = arith.maximumf %174, %173 : vector<2x26x128xf32>
    %176 = vector.broadcast %cst_100 : f32 to vector<2x26x128xf32>
    %177 = arith.minimumf %176, %175 : vector<2x26x128xf32>
    %178 = vector.broadcast %1 : f32 to vector<2x26x128xf32>
    %179 = arith.subf %177, %178 : vector<2x26x128xf32>
    %180 = vector.broadcast %0 : f32 to vector<2x26x128xf32>
    %181 = arith.mulf %179, %180 : vector<2x26x128xf32>
    %cst_101 = arith.constant 0.000000e+00 : f32
    %182 = vector.broadcast %cst_101 : f32 to vector<2x26x128xf32>
    %183 = arith.maximumf %181, %182 : vector<2x26x128xf32>
    %c0_102 = arith.constant 0 : index
    %c7_103 = arith.constant 7 : index
    %c0_104 = arith.constant 0 : index
    %c0_105 = arith.constant 0 : index
    %184 = vector.load %arg3[%c0_102, %c7_103, %c0_104, %c0_105] : memref<2x13x26x128xf32, #tpu.memory_space<vmem>>, vector<2x1x26x128xf32>
    %185 = vector.shape_cast %184 : vector<2x1x26x128xf32> to vector<2x26x128xf32>
    %186 = vector.shape_cast %183 : vector<2x26x128xf32> to vector<2x1x26x128xf32>
    tpu.vector_store %arg3[%c0_102, %c7_103, %c0_104, %c0_105], %186 {strides = array<i32>} : memref<2x13x26x128xf32, #tpu.memory_space<vmem>>, vector<2x1x26x128xf32>,
    %c0_106 = arith.constant 0 : index
    %c16 = arith.constant 16 : index
    %c0_107 = arith.constant 0 : index
    %c0_108 = arith.constant 0 : index
    %187 = vector.load %arg2[%c0_106, %c16, %c0_107, %c0_108] : memref<2x26x26x128xf32, #tpu.memory_space<vmem>>, vector<2x1x26x128xf32>
    %188 = vector.shape_cast %187 : vector<2x1x26x128xf32> to vector<2x26x128xf32>
    %c0_109 = arith.constant 0 : index
    %c17 = arith.constant 17 : index
    %c0_110 = arith.constant 0 : index
    %c0_111 = arith.constant 0 : index
    %189 = vector.load %arg2[%c0_109, %c17, %c0_110, %c0_111] : memref<2x26x26x128xf32, #tpu.memory_space<vmem>>, vector<2x1x26x128xf32>
    %190 = vector.shape_cast %189 : vector<2x1x26x128xf32> to vector<2x26x128xf32>
    %191 = arith.maximumf %188, %190 : vector<2x26x128xf32>
    %192 = vector.broadcast %2 : f32 to vector<2x26x128xf32>
    %193 = arith.mulf %191, %192 : vector<2x26x128xf32>
    %194 = vector.broadcast %1 : f32 to vector<2x26x128xf32>
    %195 = arith.addf %193, %194 : vector<2x26x128xf32>
    %196 = math.roundeven %195 : vector<2x26x128xf32>
    %cst_112 = arith.constant 0.000000e+00 : f32
    %cst_113 = arith.constant 2.550000e+02 : f32
    %197 = vector.broadcast %cst_112 : f32 to vector<2x26x128xf32>
    %198 = arith.maximumf %197, %196 : vector<2x26x128xf32>
    %199 = vector.broadcast %cst_113 : f32 to vector<2x26x128xf32>
    %200 = arith.minimumf %199, %198 : vector<2x26x128xf32>
    %201 = vector.broadcast %1 : f32 to vector<2x26x128xf32>
    %202 = arith.subf %200, %201 : vector<2x26x128xf32>
    %203 = vector.broadcast %0 : f32 to vector<2x26x128xf32>
    %204 = arith.mulf %202, %203 : vector<2x26x128xf32>
    %cst_114 = arith.constant 0.000000e+00 : f32
    %205 = vector.broadcast %cst_114 : f32 to vector<2x26x128xf32>
    %206 = arith.maximumf %204, %205 : vector<2x26x128xf32>
    %c0_115 = arith.constant 0 : index
    %c8_116 = arith.constant 8 : index
    %c0_117 = arith.constant 0 : index
    %c0_118 = arith.constant 0 : index
    %207 = vector.load %arg3[%c0_115, %c8_116, %c0_117, %c0_118] : memref<2x13x26x128xf32, #tpu.memory_space<vmem>>, vector<2x1x26x128xf32>
    %208 = vector.shape_cast %207 : vector<2x1x26x128xf32> to vector<2x26x128xf32>
    %209 = vector.shape_cast %206 : vector<2x26x128xf32> to vector<2x1x26x128xf32>
    tpu.vector_store %arg3[%c0_115, %c8_116, %c0_117, %c0_118], %209 {strides = array<i32>} : memref<2x13x26x128xf32, #tpu.memory_space<vmem>>, vector<2x1x26x128xf32>,
    %c0_119 = arith.constant 0 : index
    %c18 = arith.constant 18 : index
    %c0_120 = arith.constant 0 : index
    %c0_121 = arith.constant 0 : index
    %210 = vector.load %arg2[%c0_119, %c18, %c0_120, %c0_121] : memref<2x26x26x128xf32, #tpu.memory_space<vmem>>, vector<2x1x26x128xf32>
    %211 = vector.shape_cast %210 : vector<2x1x26x128xf32> to vector<2x26x128xf32>
    %c0_122 = arith.constant 0 : index
    %c19 = arith.constant 19 : index
    %c0_123 = arith.constant 0 : index
    %c0_124 = arith.constant 0 : index
    %212 = vector.load %arg2[%c0_122, %c19, %c0_123, %c0_124] : memref<2x26x26x128xf32, #tpu.memory_space<vmem>>, vector<2x1x26x128xf32>
    %213 = vector.shape_cast %212 : vector<2x1x26x128xf32> to vector<2x26x128xf32>
    %214 = arith.maximumf %211, %213 : vector<2x26x128xf32>
    %215 = vector.broadcast %2 : f32 to vector<2x26x128xf32>
    %216 = arith.mulf %214, %215 : vector<2x26x128xf32>
    %217 = vector.broadcast %1 : f32 to vector<2x26x128xf32>
    %218 = arith.addf %216, %217 : vector<2x26x128xf32>
    %219 = math.roundeven %218 : vector<2x26x128xf32>
    %cst_125 = arith.constant 0.000000e+00 : f32
    %cst_126 = arith.constant 2.550000e+02 : f32
    %220 = vector.broadcast %cst_125 : f32 to vector<2x26x128xf32>
    %221 = arith.maximumf %220, %219 : vector<2x26x128xf32>
    %222 = vector.broadcast %cst_126 : f32 to vector<2x26x128xf32>
    %223 = arith.minimumf %222, %221 : vector<2x26x128xf32>
    %224 = vector.broadcast %1 : f32 to vector<2x26x128xf32>
    %225 = arith.subf %223, %224 : vector<2x26x128xf32>
    %226 = vector.broadcast %0 : f32 to vector<2x26x128xf32>
    %227 = arith.mulf %225, %226 : vector<2x26x128xf32>
    %cst_127 = arith.constant 0.000000e+00 : f32
    %228 = vector.broadcast %cst_127 : f32 to vector<2x26x128xf32>
    %229 = arith.maximumf %227, %228 : vector<2x26x128xf32>
    %c0_128 = arith.constant 0 : index
    %c9_129 = arith.constant 9 : index
    %c0_130 = arith.constant 0 : index
    %c0_131 = arith.constant 0 : index
    %230 = vector.load %arg3[%c0_128, %c9_129, %c0_130, %c0_131] : memref<2x13x26x128xf32, #tpu.memory_space<vmem>>, vector<2x1x26x128xf32>
    %231 = vector.shape_cast %230 : vector<2x1x26x128xf32> to vector<2x26x128xf32>
    %232 = vector.shape_cast %229 : vector<2x26x128xf32> to vector<2x1x26x128xf32>
    tpu.vector_store %arg3[%c0_128, %c9_129, %c0_130, %c0_131], %232 {strides = array<i32>} : memref<2x13x26x128xf32, #tpu.memory_space<vmem>>, vector<2x1x26x128xf32>,
    %c0_132 = arith.constant 0 : index
    %c20 = arith.constant 20 : index
    %c0_133 = arith.constant 0 : index
    %c0_134 = arith.constant 0 : index
    %233 = vector.load %arg2[%c0_132, %c20, %c0_133, %c0_134] : memref<2x26x26x128xf32, #tpu.memory_space<vmem>>, vector<2x1x26x128xf32>
    %234 = vector.shape_cast %233 : vector<2x1x26x128xf32> to vector<2x26x128xf32>
    %c0_135 = arith.constant 0 : index
    %c21 = arith.constant 21 : index
    %c0_136 = arith.constant 0 : index
    %c0_137 = arith.constant 0 : index
    %235 = vector.load %arg2[%c0_135, %c21, %c0_136, %c0_137] : memref<2x26x26x128xf32, #tpu.memory_space<vmem>>, vector<2x1x26x128xf32>
    %236 = vector.shape_cast %235 : vector<2x1x26x128xf32> to vector<2x26x128xf32>
    %237 = arith.maximumf %234, %236 : vector<2x26x128xf32>
    %238 = vector.broadcast %2 : f32 to vector<2x26x128xf32>
    %239 = arith.mulf %237, %238 : vector<2x26x128xf32>
    %240 = vector.broadcast %1 : f32 to vector<2x26x128xf32>
    %241 = arith.addf %239, %240 : vector<2x26x128xf32>
    %242 = math.roundeven %241 : vector<2x26x128xf32>
    %cst_138 = arith.constant 0.000000e+00 : f32
    %cst_139 = arith.constant 2.550000e+02 : f32
    %243 = vector.broadcast %cst_138 : f32 to vector<2x26x128xf32>
    %244 = arith.maximumf %243, %242 : vector<2x26x128xf32>
    %245 = vector.broadcast %cst_139 : f32 to vector<2x26x128xf32>
    %246 = arith.minimumf %245, %244 : vector<2x26x128xf32>
    %247 = vector.broadcast %1 : f32 to vector<2x26x128xf32>
    %248 = arith.subf %246, %247 : vector<2x26x128xf32>
    %249 = vector.broadcast %0 : f32 to vector<2x26x128xf32>
    %250 = arith.mulf %248, %249 : vector<2x26x128xf32>
    %cst_140 = arith.constant 0.000000e+00 : f32
    %251 = vector.broadcast %cst_140 : f32 to vector<2x26x128xf32>
    %252 = arith.maximumf %250, %251 : vector<2x26x128xf32>
    %c0_141 = arith.constant 0 : index
    %c10_142 = arith.constant 10 : index
    %c0_143 = arith.constant 0 : index
    %c0_144 = arith.constant 0 : index
    %253 = vector.load %arg3[%c0_141, %c10_142, %c0_143, %c0_144] : memref<2x13x26x128xf32, #tpu.memory_space<vmem>>, vector<2x1x26x128xf32>
    %254 = vector.shape_cast %253 : vector<2x1x26x128xf32> to vector<2x26x128xf32>
    %255 = vector.shape_cast %252 : vector<2x26x128xf32> to vector<2x1x26x128xf32>
    tpu.vector_store %arg3[%c0_141, %c10_142, %c0_143, %c0_144], %255 {strides = array<i32>} : memref<2x13x26x128xf32, #tpu.memory_space<vmem>>, vector<2x1x26x128xf32>,
    %c0_145 = arith.constant 0 : index
    %c22 = arith.constant 22 : index
    %c0_146 = arith.constant 0 : index
    %c0_147 = arith.constant 0 : index
    %256 = vector.load %arg2[%c0_145, %c22, %c0_146, %c0_147] : memref<2x26x26x128xf32, #tpu.memory_space<vmem>>, vector<2x1x26x128xf32>
    %257 = vector.shape_cast %256 : vector<2x1x26x128xf32> to vector<2x26x128xf32>
    %c0_148 = arith.constant 0 : index
    %c23 = arith.constant 23 : index
    %c0_149 = arith.constant 0 : index
    %c0_150 = arith.constant 0 : index
    %258 = vector.load %arg2[%c0_148, %c23, %c0_149, %c0_150] : memref<2x26x26x128xf32, #tpu.memory_space<vmem>>, vector<2x1x26x128xf32>
    %259 = vector.shape_cast %258 : vector<2x1x26x128xf32> to vector<2x26x128xf32>
    %260 = arith.maximumf %257, %259 : vector<2x26x128xf32>
    %261 = vector.broadcast %2 : f32 to vector<2x26x128xf32>
    %262 = arith.mulf %260, %261 : vector<2x26x128xf32>
    %263 = vector.broadcast %1 : f32 to vector<2x26x128xf32>
    %264 = arith.addf %262, %263 : vector<2x26x128xf32>
    %265 = math.roundeven %264 : vector<2x26x128xf32>
    %cst_151 = arith.constant 0.000000e+00 : f32
    %cst_152 = arith.constant 2.550000e+02 : f32
    %266 = vector.broadcast %cst_151 : f32 to vector<2x26x128xf32>
    %267 = arith.maximumf %266, %265 : vector<2x26x128xf32>
    %268 = vector.broadcast %cst_152 : f32 to vector<2x26x128xf32>
    %269 = arith.minimumf %268, %267 : vector<2x26x128xf32>
    %270 = vector.broadcast %1 : f32 to vector<2x26x128xf32>
    %271 = arith.subf %269, %270 : vector<2x26x128xf32>
    %272 = vector.broadcast %0 : f32 to vector<2x26x128xf32>
    %273 = arith.mulf %271, %272 : vector<2x26x128xf32>
    %cst_153 = arith.constant 0.000000e+00 : f32
    %274 = vector.broadcast %cst_153 : f32 to vector<2x26x128xf32>
    %275 = arith.maximumf %273, %274 : vector<2x26x128xf32>
    %c0_154 = arith.constant 0 : index
    %c11_155 = arith.constant 11 : index
    %c0_156 = arith.constant 0 : index
    %c0_157 = arith.constant 0 : index
    %276 = vector.load %arg3[%c0_154, %c11_155, %c0_156, %c0_157] : memref<2x13x26x128xf32, #tpu.memory_space<vmem>>, vector<2x1x26x128xf32>
    %277 = vector.shape_cast %276 : vector<2x1x26x128xf32> to vector<2x26x128xf32>
    %278 = vector.shape_cast %275 : vector<2x26x128xf32> to vector<2x1x26x128xf32>
    tpu.vector_store %arg3[%c0_154, %c11_155, %c0_156, %c0_157], %278 {strides = array<i32>} : memref<2x13x26x128xf32, #tpu.memory_space<vmem>>, vector<2x1x26x128xf32>,
    %c0_158 = arith.constant 0 : index
    %c24 = arith.constant 24 : index
    %c0_159 = arith.constant 0 : index
    %c0_160 = arith.constant 0 : index
    %279 = vector.load %arg2[%c0_158, %c24, %c0_159, %c0_160] : memref<2x26x26x128xf32, #tpu.memory_space<vmem>>, vector<2x1x26x128xf32>
    %280 = vector.shape_cast %279 : vector<2x1x26x128xf32> to vector<2x26x128xf32>
    %c0_161 = arith.constant 0 : index
    %c25 = arith.constant 25 : index
    %c0_162 = arith.constant 0 : index
    %c0_163 = arith.constant 0 : index
    %281 = vector.load %arg2[%c0_161, %c25, %c0_162, %c0_163] : memref<2x26x26x128xf32, #tpu.memory_space<vmem>>, vector<2x1x26x128xf32>
    %282 = vector.shape_cast %281 : vector<2x1x26x128xf32> to vector<2x26x128xf32>
    %283 = arith.maximumf %280, %282 : vector<2x26x128xf32>
    %284 = vector.broadcast %2 : f32 to vector<2x26x128xf32>
    %285 = arith.mulf %283, %284 : vector<2x26x128xf32>
    %286 = vector.broadcast %1 : f32 to vector<2x26x128xf32>
    %287 = arith.addf %285, %286 : vector<2x26x128xf32>
    %288 = math.roundeven %287 : vector<2x26x128xf32>
    %cst_164 = arith.constant 0.000000e+00 : f32
    %cst_165 = arith.constant 2.550000e+02 : f32
    %289 = vector.broadcast %cst_164 : f32 to vector<2x26x128xf32>
    %290 = arith.maximumf %289, %288 : vector<2x26x128xf32>
    %291 = vector.broadcast %cst_165 : f32 to vector<2x26x128xf32>
    %292 = arith.minimumf %291, %290 : vector<2x26x128xf32>
    %293 = vector.broadcast %1 : f32 to vector<2x26x128xf32>
    %294 = arith.subf %292, %293 : vector<2x26x128xf32>
    %295 = vector.broadcast %0 : f32 to vector<2x26x128xf32>
    %296 = arith.mulf %294, %295 : vector<2x26x128xf32>
    %cst_166 = arith.constant 0.000000e+00 : f32
    %297 = vector.broadcast %cst_166 : f32 to vector<2x26x128xf32>
    %298 = arith.maximumf %296, %297 : vector<2x26x128xf32>
    %c0_167 = arith.constant 0 : index
    %c12_168 = arith.constant 12 : index
    %c0_169 = arith.constant 0 : index
    %c0_170 = arith.constant 0 : index
    %299 = vector.load %arg3[%c0_167, %c12_168, %c0_169, %c0_170] : memref<2x13x26x128xf32, #tpu.memory_space<vmem>>, vector<2x1x26x128xf32>
    %300 = vector.shape_cast %299 : vector<2x1x26x128xf32> to vector<2x26x128xf32>
    %301 = vector.shape_cast %298 : vector<2x26x128xf32> to vector<2x1x26x128xf32>
    tpu.vector_store %arg3[%c0_167, %c12_168, %c0_169, %c0_170], %301 {strides = array<i32>} : memref<2x13x26x128xf32, #tpu.memory_space<vmem>>, vector<2x1x26x128xf32>,
    return
  }
  func.func @transform_0(%arg0: i32) -> i32 {
    %c0_i32 = arith.constant 0 : i32
    %c0_i32_0 = arith.constant 0 : i32
    return %c0_i32 : i32
  }
  func.func @transform_1(%arg0: i32) -> (i32, i32, i32, i32) {
    %c0_i32 = arith.constant 0 : i32
    %c0_i32_0 = arith.constant 0 : i32
    %c0_i32_1 = arith.constant 0 : i32
    %c0_i32_2 = arith.constant 0 : i32
    return %arg0, %c0_i32, %c0_i32_0, %c0_i32_1 : i32, i32, i32, i32
  }
  func.func @transform_2(%arg0: i32) -> (i32, i32, i32, i32) {
    %c0_i32 = arith.constant 0 : i32
    %c0_i32_0 = arith.constant 0 : i32
    %c0_i32_1 = arith.constant 0 : i32
    %c0_i32_2 = arith.constant 0 : i32
    return %arg0, %c0_i32, %c0_i32_0, %c0_i32_1 : i32, i32, i32, i32
  }
}

module attributes {stable_mosaic.version = 11 : i64} {
  func.func @_qmm_kernel(%arg0: i32, %arg1: memref<3xf32, #tpu.memory_space<smem>>, %arg2: memref<242x360xf32, #tpu.memory_space<vmem>>, %arg3: memref<360x128xbf16, #tpu.memory_space<vmem>>, %arg4: memref<242x128xf32, #tpu.memory_space<vmem>>) attributes {dimension_semantics = [#tpu.dimension_semantics<parallel>], iteration_bounds = array<i64: 1>, scalar_prefetch = 0 : i64, scratch_operands = 0 : i64, tpu.core_type = #tpu.core_type<tc>, window_params = [{transform_indices = @transform_0, window_bounds = array<i64: 3>}, {transform_indices = @transform_1, window_bounds = array<i64: 242, 360>}, {pipeline_mode = #tpu.pipeline_mode<synchronous>, transform_indices = @transform_2, window_bounds = array<i64: 360, 128>}, {transform_indices = @transform_3, window_bounds = array<i64: 242, 128>}]} {
    %c0 = arith.constant 0 : index
    %0 = memref.load %arg1[%c0] : memref<3xf32, #tpu.memory_space<smem>>
    %c1 = arith.constant 1 : index
    %1 = memref.load %arg1[%c1] : memref<3xf32, #tpu.memory_space<smem>>
    %c2 = arith.constant 2 : index
    %2 = memref.load %arg1[%c2] : memref<3xf32, #tpu.memory_space<smem>>
    %c0_0 = arith.constant 0 : index
    %c0_1 = arith.constant 0 : index
    %3 = vector.load %arg2[%c0_0, %c0_1] : memref<242x360xf32, #tpu.memory_space<vmem>>, vector<242x360xf32>
    %4 = vector.broadcast %0 : f32 to vector<242x360xf32>
    %5 = arith.mulf %3, %4 : vector<242x360xf32>
    %6 = vector.broadcast %1 : f32 to vector<242x360xf32>
    %7 = arith.addf %5, %6 : vector<242x360xf32>
    %8 = math.roundeven %7 : vector<242x360xf32>
    %cst = arith.constant 0.000000e+00 : f32
    %cst_2 = arith.constant 2.550000e+02 : f32
    %9 = vector.broadcast %cst : f32 to vector<242x360xf32>
    %10 = arith.maximumf %9, %8 : vector<242x360xf32>
    %11 = vector.broadcast %cst_2 : f32 to vector<242x360xf32>
    %12 = arith.minimumf %11, %10 : vector<242x360xf32>
    %13 = arith.truncf %12 : vector<242x360xf32> to vector<242x360xbf16>
    %c0_3 = arith.constant 0 : index
    %c0_4 = arith.constant 0 : index
    %14 = vector.load %arg3[%c0_3, %c0_4] : memref<360x128xbf16, #tpu.memory_space<vmem>>, vector<360x128xbf16>
    %cst_5 = arith.constant dense<0.000000e+00> : vector<242x128xf32>
    %15 = tpu.matmul %13, %14, %cst_5 {dimension_numbers = #tpu.dot_dimension_numbers<[1], [0], [0], [1], [0, 0, 1, 1], [], []>} : vector<242x360xbf16>, vector<360x128xbf16>, vector<242x128xf32> -> vector<242x128xf32>
    %16 = vector.broadcast %2 : f32 to vector<242x128xf32>
    %17 = arith.mulf %15, %16 : vector<242x128xf32>
    %c0_6 = arith.constant 0 : index
    %c0_7 = arith.constant 0 : index
    %18 = vector.load %arg4[%c0_6, %c0_7] : memref<242x128xf32, #tpu.memory_space<vmem>>, vector<242x128xf32>
    tpu.vector_store %arg4[%c0_6, %c0_7], %17 {strides = array<i32>} : memref<242x128xf32, #tpu.memory_space<vmem>>, vector<242x128xf32>,
    return
  }
  func.func @transform_0(%arg0: i32) -> i32 {
    %c0_i32 = arith.constant 0 : i32
    %c0_i32_0 = arith.constant 0 : i32
    return %c0_i32 : i32
  }
  func.func @transform_1(%arg0: i32) -> (i32, i32) {
    %c0_i32 = arith.constant 0 : i32
    %c0_i32_0 = arith.constant 0 : i32
    return %arg0, %c0_i32 : i32, i32
  }
  func.func @transform_2(%arg0: i32) -> (i32, i32) {
    %c0_i32 = arith.constant 0 : i32
    %c0_i32_0 = arith.constant 0 : i32
    %c0_i32_1 = arith.constant 0 : i32
    return %c0_i32, %c0_i32_0 : i32, i32
  }
  func.func @transform_3(%arg0: i32) -> (i32, i32) {
    %c0_i32 = arith.constant 0 : i32
    %c0_i32_0 = arith.constant 0 : i32
    return %arg0, %c0_i32 : i32, i32
  }
}

module attributes {stable_mosaic.version = 11 : i64} {
  func.func @kernel(%arg0: i32, %arg1: memref<3xf32, #tpu.memory_space<smem>>, %arg2: memref<2x10x11x128xf32, #tpu.memory_space<vmem>>, %arg3: memref<2x5x11x128xf32, #tpu.memory_space<vmem>>) attributes {dimension_semantics = [#tpu.dimension_semantics<parallel>], iteration_bounds = array<i64: 1>, scalar_prefetch = 0 : i64, scratch_operands = 0 : i64, tpu.core_type = #tpu.core_type<tc>, window_params = [{transform_indices = @transform_0, window_bounds = array<i64: 3>}, {transform_indices = @transform_1, window_bounds = array<i64: 2, 10, 11, 128>}, {transform_indices = @transform_2, window_bounds = array<i64: 2, 5, 11, 128>}]} {
    %c0 = arith.constant 0 : index
    %0 = memref.load %arg1[%c0] : memref<3xf32, #tpu.memory_space<smem>>
    %c1 = arith.constant 1 : index
    %1 = memref.load %arg1[%c1] : memref<3xf32, #tpu.memory_space<smem>>
    %c2 = arith.constant 2 : index
    %2 = memref.load %arg1[%c2] : memref<3xf32, #tpu.memory_space<smem>>
    %c0_0 = arith.constant 0 : index
    %c0_1 = arith.constant 0 : index
    %c0_2 = arith.constant 0 : index
    %c0_3 = arith.constant 0 : index
    %3 = vector.load %arg2[%c0_0, %c0_1, %c0_2, %c0_3] : memref<2x10x11x128xf32, #tpu.memory_space<vmem>>, vector<2x1x11x128xf32>
    %4 = vector.shape_cast %3 : vector<2x1x11x128xf32> to vector<2x11x128xf32>
    %c0_4 = arith.constant 0 : index
    %c1_5 = arith.constant 1 : index
    %c0_6 = arith.constant 0 : index
    %c0_7 = arith.constant 0 : index
    %5 = vector.load %arg2[%c0_4, %c1_5, %c0_6, %c0_7] : memref<2x10x11x128xf32, #tpu.memory_space<vmem>>, vector<2x1x11x128xf32>
    %6 = vector.shape_cast %5 : vector<2x1x11x128xf32> to vector<2x11x128xf32>
    %7 = arith.maximumf %4, %6 : vector<2x11x128xf32>
    %8 = vector.broadcast %2 : f32 to vector<2x11x128xf32>
    %9 = arith.mulf %7, %8 : vector<2x11x128xf32>
    %10 = vector.broadcast %1 : f32 to vector<2x11x128xf32>
    %11 = arith.addf %9, %10 : vector<2x11x128xf32>
    %12 = math.roundeven %11 : vector<2x11x128xf32>
    %cst = arith.constant 0.000000e+00 : f32
    %cst_8 = arith.constant 2.550000e+02 : f32
    %13 = vector.broadcast %cst : f32 to vector<2x11x128xf32>
    %14 = arith.maximumf %13, %12 : vector<2x11x128xf32>
    %15 = vector.broadcast %cst_8 : f32 to vector<2x11x128xf32>
    %16 = arith.minimumf %15, %14 : vector<2x11x128xf32>
    %17 = vector.broadcast %1 : f32 to vector<2x11x128xf32>
    %18 = arith.subf %16, %17 : vector<2x11x128xf32>
    %19 = vector.broadcast %0 : f32 to vector<2x11x128xf32>
    %20 = arith.mulf %18, %19 : vector<2x11x128xf32>
    %cst_9 = arith.constant 0.000000e+00 : f32
    %21 = vector.broadcast %cst_9 : f32 to vector<2x11x128xf32>
    %22 = arith.maximumf %20, %21 : vector<2x11x128xf32>
    %c0_10 = arith.constant 0 : index
    %c0_11 = arith.constant 0 : index
    %c0_12 = arith.constant 0 : index
    %c0_13 = arith.constant 0 : index
    %23 = vector.load %arg3[%c0_10, %c0_11, %c0_12, %c0_13] : memref<2x5x11x128xf32, #tpu.memory_space<vmem>>, vector<2x1x11x128xf32>
    %24 = vector.shape_cast %23 : vector<2x1x11x128xf32> to vector<2x11x128xf32>
    %25 = vector.shape_cast %22 : vector<2x11x128xf32> to vector<2x1x11x128xf32>
    tpu.vector_store %arg3[%c0_10, %c0_11, %c0_12, %c0_13], %25 {strides = array<i32>} : memref<2x5x11x128xf32, #tpu.memory_space<vmem>>, vector<2x1x11x128xf32>,
    %c0_14 = arith.constant 0 : index
    %c2_15 = arith.constant 2 : index
    %c0_16 = arith.constant 0 : index
    %c0_17 = arith.constant 0 : index
    %26 = vector.load %arg2[%c0_14, %c2_15, %c0_16, %c0_17] : memref<2x10x11x128xf32, #tpu.memory_space<vmem>>, vector<2x1x11x128xf32>
    %27 = vector.shape_cast %26 : vector<2x1x11x128xf32> to vector<2x11x128xf32>
    %c0_18 = arith.constant 0 : index
    %c3 = arith.constant 3 : index
    %c0_19 = arith.constant 0 : index
    %c0_20 = arith.constant 0 : index
    %28 = vector.load %arg2[%c0_18, %c3, %c0_19, %c0_20] : memref<2x10x11x128xf32, #tpu.memory_space<vmem>>, vector<2x1x11x128xf32>
    %29 = vector.shape_cast %28 : vector<2x1x11x128xf32> to vector<2x11x128xf32>
    %30 = arith.maximumf %27, %29 : vector<2x11x128xf32>
    %31 = vector.broadcast %2 : f32 to vector<2x11x128xf32>
    %32 = arith.mulf %30, %31 : vector<2x11x128xf32>
    %33 = vector.broadcast %1 : f32 to vector<2x11x128xf32>
    %34 = arith.addf %32, %33 : vector<2x11x128xf32>
    %35 = math.roundeven %34 : vector<2x11x128xf32>
    %cst_21 = arith.constant 0.000000e+00 : f32
    %cst_22 = arith.constant 2.550000e+02 : f32
    %36 = vector.broadcast %cst_21 : f32 to vector<2x11x128xf32>
    %37 = arith.maximumf %36, %35 : vector<2x11x128xf32>
    %38 = vector.broadcast %cst_22 : f32 to vector<2x11x128xf32>
    %39 = arith.minimumf %38, %37 : vector<2x11x128xf32>
    %40 = vector.broadcast %1 : f32 to vector<2x11x128xf32>
    %41 = arith.subf %39, %40 : vector<2x11x128xf32>
    %42 = vector.broadcast %0 : f32 to vector<2x11x128xf32>
    %43 = arith.mulf %41, %42 : vector<2x11x128xf32>
    %cst_23 = arith.constant 0.000000e+00 : f32
    %44 = vector.broadcast %cst_23 : f32 to vector<2x11x128xf32>
    %45 = arith.maximumf %43, %44 : vector<2x11x128xf32>
    %c0_24 = arith.constant 0 : index
    %c1_25 = arith.constant 1 : index
    %c0_26 = arith.constant 0 : index
    %c0_27 = arith.constant 0 : index
    %46 = vector.load %arg3[%c0_24, %c1_25, %c0_26, %c0_27] : memref<2x5x11x128xf32, #tpu.memory_space<vmem>>, vector<2x1x11x128xf32>
    %47 = vector.shape_cast %46 : vector<2x1x11x128xf32> to vector<2x11x128xf32>
    %48 = vector.shape_cast %45 : vector<2x11x128xf32> to vector<2x1x11x128xf32>
    tpu.vector_store %arg3[%c0_24, %c1_25, %c0_26, %c0_27], %48 {strides = array<i32>} : memref<2x5x11x128xf32, #tpu.memory_space<vmem>>, vector<2x1x11x128xf32>,
    %c0_28 = arith.constant 0 : index
    %c4 = arith.constant 4 : index
    %c0_29 = arith.constant 0 : index
    %c0_30 = arith.constant 0 : index
    %49 = vector.load %arg2[%c0_28, %c4, %c0_29, %c0_30] : memref<2x10x11x128xf32, #tpu.memory_space<vmem>>, vector<2x1x11x128xf32>
    %50 = vector.shape_cast %49 : vector<2x1x11x128xf32> to vector<2x11x128xf32>
    %c0_31 = arith.constant 0 : index
    %c5 = arith.constant 5 : index
    %c0_32 = arith.constant 0 : index
    %c0_33 = arith.constant 0 : index
    %51 = vector.load %arg2[%c0_31, %c5, %c0_32, %c0_33] : memref<2x10x11x128xf32, #tpu.memory_space<vmem>>, vector<2x1x11x128xf32>
    %52 = vector.shape_cast %51 : vector<2x1x11x128xf32> to vector<2x11x128xf32>
    %53 = arith.maximumf %50, %52 : vector<2x11x128xf32>
    %54 = vector.broadcast %2 : f32 to vector<2x11x128xf32>
    %55 = arith.mulf %53, %54 : vector<2x11x128xf32>
    %56 = vector.broadcast %1 : f32 to vector<2x11x128xf32>
    %57 = arith.addf %55, %56 : vector<2x11x128xf32>
    %58 = math.roundeven %57 : vector<2x11x128xf32>
    %cst_34 = arith.constant 0.000000e+00 : f32
    %cst_35 = arith.constant 2.550000e+02 : f32
    %59 = vector.broadcast %cst_34 : f32 to vector<2x11x128xf32>
    %60 = arith.maximumf %59, %58 : vector<2x11x128xf32>
    %61 = vector.broadcast %cst_35 : f32 to vector<2x11x128xf32>
    %62 = arith.minimumf %61, %60 : vector<2x11x128xf32>
    %63 = vector.broadcast %1 : f32 to vector<2x11x128xf32>
    %64 = arith.subf %62, %63 : vector<2x11x128xf32>
    %65 = vector.broadcast %0 : f32 to vector<2x11x128xf32>
    %66 = arith.mulf %64, %65 : vector<2x11x128xf32>
    %cst_36 = arith.constant 0.000000e+00 : f32
    %67 = vector.broadcast %cst_36 : f32 to vector<2x11x128xf32>
    %68 = arith.maximumf %66, %67 : vector<2x11x128xf32>
    %c0_37 = arith.constant 0 : index
    %c2_38 = arith.constant 2 : index
    %c0_39 = arith.constant 0 : index
    %c0_40 = arith.constant 0 : index
    %69 = vector.load %arg3[%c0_37, %c2_38, %c0_39, %c0_40] : memref<2x5x11x128xf32, #tpu.memory_space<vmem>>, vector<2x1x11x128xf32>
    %70 = vector.shape_cast %69 : vector<2x1x11x128xf32> to vector<2x11x128xf32>
    %71 = vector.shape_cast %68 : vector<2x11x128xf32> to vector<2x1x11x128xf32>
    tpu.vector_store %arg3[%c0_37, %c2_38, %c0_39, %c0_40], %71 {strides = array<i32>} : memref<2x5x11x128xf32, #tpu.memory_space<vmem>>, vector<2x1x11x128xf32>,
    %c0_41 = arith.constant 0 : index
    %c6 = arith.constant 6 : index
    %c0_42 = arith.constant 0 : index
    %c0_43 = arith.constant 0 : index
    %72 = vector.load %arg2[%c0_41, %c6, %c0_42, %c0_43] : memref<2x10x11x128xf32, #tpu.memory_space<vmem>>, vector<2x1x11x128xf32>
    %73 = vector.shape_cast %72 : vector<2x1x11x128xf32> to vector<2x11x128xf32>
    %c0_44 = arith.constant 0 : index
    %c7 = arith.constant 7 : index
    %c0_45 = arith.constant 0 : index
    %c0_46 = arith.constant 0 : index
    %74 = vector.load %arg2[%c0_44, %c7, %c0_45, %c0_46] : memref<2x10x11x128xf32, #tpu.memory_space<vmem>>, vector<2x1x11x128xf32>
    %75 = vector.shape_cast %74 : vector<2x1x11x128xf32> to vector<2x11x128xf32>
    %76 = arith.maximumf %73, %75 : vector<2x11x128xf32>
    %77 = vector.broadcast %2 : f32 to vector<2x11x128xf32>
    %78 = arith.mulf %76, %77 : vector<2x11x128xf32>
    %79 = vector.broadcast %1 : f32 to vector<2x11x128xf32>
    %80 = arith.addf %78, %79 : vector<2x11x128xf32>
    %81 = math.roundeven %80 : vector<2x11x128xf32>
    %cst_47 = arith.constant 0.000000e+00 : f32
    %cst_48 = arith.constant 2.550000e+02 : f32
    %82 = vector.broadcast %cst_47 : f32 to vector<2x11x128xf32>
    %83 = arith.maximumf %82, %81 : vector<2x11x128xf32>
    %84 = vector.broadcast %cst_48 : f32 to vector<2x11x128xf32>
    %85 = arith.minimumf %84, %83 : vector<2x11x128xf32>
    %86 = vector.broadcast %1 : f32 to vector<2x11x128xf32>
    %87 = arith.subf %85, %86 : vector<2x11x128xf32>
    %88 = vector.broadcast %0 : f32 to vector<2x11x128xf32>
    %89 = arith.mulf %87, %88 : vector<2x11x128xf32>
    %cst_49 = arith.constant 0.000000e+00 : f32
    %90 = vector.broadcast %cst_49 : f32 to vector<2x11x128xf32>
    %91 = arith.maximumf %89, %90 : vector<2x11x128xf32>
    %c0_50 = arith.constant 0 : index
    %c3_51 = arith.constant 3 : index
    %c0_52 = arith.constant 0 : index
    %c0_53 = arith.constant 0 : index
    %92 = vector.load %arg3[%c0_50, %c3_51, %c0_52, %c0_53] : memref<2x5x11x128xf32, #tpu.memory_space<vmem>>, vector<2x1x11x128xf32>
    %93 = vector.shape_cast %92 : vector<2x1x11x128xf32> to vector<2x11x128xf32>
    %94 = vector.shape_cast %91 : vector<2x11x128xf32> to vector<2x1x11x128xf32>
    tpu.vector_store %arg3[%c0_50, %c3_51, %c0_52, %c0_53], %94 {strides = array<i32>} : memref<2x5x11x128xf32, #tpu.memory_space<vmem>>, vector<2x1x11x128xf32>,
    %c0_54 = arith.constant 0 : index
    %c8 = arith.constant 8 : index
    %c0_55 = arith.constant 0 : index
    %c0_56 = arith.constant 0 : index
    %95 = vector.load %arg2[%c0_54, %c8, %c0_55, %c0_56] : memref<2x10x11x128xf32, #tpu.memory_space<vmem>>, vector<2x1x11x128xf32>
    %96 = vector.shape_cast %95 : vector<2x1x11x128xf32> to vector<2x11x128xf32>
    %c0_57 = arith.constant 0 : index
    %c9 = arith.constant 9 : index
    %c0_58 = arith.constant 0 : index
    %c0_59 = arith.constant 0 : index
    %97 = vector.load %arg2[%c0_57, %c9, %c0_58, %c0_59] : memref<2x10x11x128xf32, #tpu.memory_space<vmem>>, vector<2x1x11x128xf32>
    %98 = vector.shape_cast %97 : vector<2x1x11x128xf32> to vector<2x11x128xf32>
    %99 = arith.maximumf %96, %98 : vector<2x11x128xf32>
    %100 = vector.broadcast %2 : f32 to vector<2x11x128xf32>
    %101 = arith.mulf %99, %100 : vector<2x11x128xf32>
    %102 = vector.broadcast %1 : f32 to vector<2x11x128xf32>
    %103 = arith.addf %101, %102 : vector<2x11x128xf32>
    %104 = math.roundeven %103 : vector<2x11x128xf32>
    %cst_60 = arith.constant 0.000000e+00 : f32
    %cst_61 = arith.constant 2.550000e+02 : f32
    %105 = vector.broadcast %cst_60 : f32 to vector<2x11x128xf32>
    %106 = arith.maximumf %105, %104 : vector<2x11x128xf32>
    %107 = vector.broadcast %cst_61 : f32 to vector<2x11x128xf32>
    %108 = arith.minimumf %107, %106 : vector<2x11x128xf32>
    %109 = vector.broadcast %1 : f32 to vector<2x11x128xf32>
    %110 = arith.subf %108, %109 : vector<2x11x128xf32>
    %111 = vector.broadcast %0 : f32 to vector<2x11x128xf32>
    %112 = arith.mulf %110, %111 : vector<2x11x128xf32>
    %cst_62 = arith.constant 0.000000e+00 : f32
    %113 = vector.broadcast %cst_62 : f32 to vector<2x11x128xf32>
    %114 = arith.maximumf %112, %113 : vector<2x11x128xf32>
    %c0_63 = arith.constant 0 : index
    %c4_64 = arith.constant 4 : index
    %c0_65 = arith.constant 0 : index
    %c0_66 = arith.constant 0 : index
    %115 = vector.load %arg3[%c0_63, %c4_64, %c0_65, %c0_66] : memref<2x5x11x128xf32, #tpu.memory_space<vmem>>, vector<2x1x11x128xf32>
    %116 = vector.shape_cast %115 : vector<2x1x11x128xf32> to vector<2x11x128xf32>
    %117 = vector.shape_cast %114 : vector<2x11x128xf32> to vector<2x1x11x128xf32>
    tpu.vector_store %arg3[%c0_63, %c4_64, %c0_65, %c0_66], %117 {strides = array<i32>} : memref<2x5x11x128xf32, #tpu.memory_space<vmem>>, vector<2x1x11x128xf32>,
    return
  }
  func.func @transform_0(%arg0: i32) -> i32 {
    %c0_i32 = arith.constant 0 : i32
    %c0_i32_0 = arith.constant 0 : i32
    return %c0_i32 : i32
  }
  func.func @transform_1(%arg0: i32) -> (i32, i32, i32, i32) {
    %c0_i32 = arith.constant 0 : i32
    %c0_i32_0 = arith.constant 0 : i32
    %c0_i32_1 = arith.constant 0 : i32
    %c0_i32_2 = arith.constant 0 : i32
    return %arg0, %c0_i32, %c0_i32_0, %c0_i32_1 : i32, i32, i32, i32
  }
  func.func @transform_2(%arg0: i32) -> (i32, i32, i32, i32) {
    %c0_i32 = arith.constant 0 : i32
    %c0_i32_0 = arith.constant 0 : i32
    %c0_i32_1 = arith.constant 0 : i32
    %c0_i32_2 = arith.constant 0 : i32
    return %arg0, %c0_i32, %c0_i32_0, %c0_i32_1 : i32, i32, i32, i32
  }
}

module attributes {stable_mosaic.version = 11 : i64} {
  func.func @_qmm_kernel(%arg0: i32, %arg1: memref<3xf32, #tpu.memory_space<smem>>, %arg2: memref<2x1000xf32, #tpu.memory_space<vmem>>, %arg3: memref<1000x128xbf16, #tpu.memory_space<vmem>>, %arg4: memref<2x128xf32, #tpu.memory_space<vmem>>) attributes {dimension_semantics = [#tpu.dimension_semantics<parallel>], iteration_bounds = array<i64: 1>, scalar_prefetch = 0 : i64, scratch_operands = 0 : i64, tpu.core_type = #tpu.core_type<tc>, window_params = [{transform_indices = @transform_0, window_bounds = array<i64: 3>}, {transform_indices = @transform_1, window_bounds = array<i64: 2, 1000>}, {pipeline_mode = #tpu.pipeline_mode<synchronous>, transform_indices = @transform_2, window_bounds = array<i64: 1000, 128>}, {transform_indices = @transform_3, window_bounds = array<i64: 2, 128>}]} {
    %c0 = arith.constant 0 : index
    %0 = memref.load %arg1[%c0] : memref<3xf32, #tpu.memory_space<smem>>
    %c1 = arith.constant 1 : index
    %1 = memref.load %arg1[%c1] : memref<3xf32, #tpu.memory_space<smem>>
    %c2 = arith.constant 2 : index
    %2 = memref.load %arg1[%c2] : memref<3xf32, #tpu.memory_space<smem>>
    %c0_0 = arith.constant 0 : index
    %c0_1 = arith.constant 0 : index
    %3 = vector.load %arg2[%c0_0, %c0_1] : memref<2x1000xf32, #tpu.memory_space<vmem>>, vector<2x1000xf32>
    %4 = vector.broadcast %0 : f32 to vector<2x1000xf32>
    %5 = arith.mulf %3, %4 : vector<2x1000xf32>
    %6 = vector.broadcast %1 : f32 to vector<2x1000xf32>
    %7 = arith.addf %5, %6 : vector<2x1000xf32>
    %8 = math.roundeven %7 : vector<2x1000xf32>
    %cst = arith.constant 0.000000e+00 : f32
    %cst_2 = arith.constant 2.550000e+02 : f32
    %9 = vector.broadcast %cst : f32 to vector<2x1000xf32>
    %10 = arith.maximumf %9, %8 : vector<2x1000xf32>
    %11 = vector.broadcast %cst_2 : f32 to vector<2x1000xf32>
    %12 = arith.minimumf %11, %10 : vector<2x1000xf32>
    %13 = arith.truncf %12 : vector<2x1000xf32> to vector<2x1000xbf16>
    %c0_3 = arith.constant 0 : index
    %c0_4 = arith.constant 0 : index
    %14 = vector.load %arg3[%c0_3, %c0_4] : memref<1000x128xbf16, #tpu.memory_space<vmem>>, vector<1000x128xbf16>
    %cst_5 = arith.constant dense<0.000000e+00> : vector<2x128xf32>
    %15 = tpu.matmul %13, %14, %cst_5 {dimension_numbers = #tpu.dot_dimension_numbers<[1], [0], [0], [1], [0, 0, 1, 1], [], []>} : vector<2x1000xbf16>, vector<1000x128xbf16>, vector<2x128xf32> -> vector<2x128xf32>
    %16 = vector.broadcast %2 : f32 to vector<2x128xf32>
    %17 = arith.mulf %15, %16 : vector<2x128xf32>
    %c0_6 = arith.constant 0 : index
    %c0_7 = arith.constant 0 : index
    %18 = vector.load %arg4[%c0_6, %c0_7] : memref<2x128xf32, #tpu.memory_space<vmem>>, vector<2x128xf32>
    tpu.vector_store %arg4[%c0_6, %c0_7], %17 {strides = array<i32>} : memref<2x128xf32, #tpu.memory_space<vmem>>, vector<2x128xf32>,
    return
  }
  func.func @transform_0(%arg0: i32) -> i32 {
    %c0_i32 = arith.constant 0 : i32
    %c0_i32_0 = arith.constant 0 : i32
    return %c0_i32 : i32
  }
  func.func @transform_1(%arg0: i32) -> (i32, i32) {
    %c0_i32 = arith.constant 0 : i32
    %c0_i32_0 = arith.constant 0 : i32
    return %arg0, %c0_i32 : i32, i32
  }
  func.func @transform_2(%arg0: i32) -> (i32, i32) {
    %c0_i32 = arith.constant 0 : i32
    %c0_i32_0 = arith.constant 0 : i32
    %c0_i32_1 = arith.constant 0 : i32
    return %c0_i32, %c0_i32_0 : i32, i32
  }
  func.func @transform_3(%arg0: i32) -> (i32, i32) {
    %c0_i32 = arith.constant 0 : i32
    %c0_i32_0 = arith.constant 0 : i32
    return %arg0, %c0_i32 : i32, i32
  }
}

module attributes {stable_mosaic.version = 11 : i64} {
  func.func @_fq_kernel(%arg0: i32, %arg1: memref<3xf32, #tpu.memory_space<smem>>, %arg2: memref<2x128xf32, #tpu.memory_space<vmem>>, %arg3: memref<2x128xf32, #tpu.memory_space<vmem>>) attributes {dimension_semantics = [#tpu.dimension_semantics<parallel>], iteration_bounds = array<i64: 1>, scalar_prefetch = 0 : i64, scratch_operands = 0 : i64, tpu.core_type = #tpu.core_type<tc>, window_params = [{transform_indices = @transform_0, window_bounds = array<i64: 3>}, {transform_indices = @transform_1, window_bounds = array<i64: 2, 128>}, {transform_indices = @transform_2, window_bounds = array<i64: 2, 128>}]} {
    %c0 = arith.constant 0 : index
    %0 = memref.load %arg1[%c0] : memref<3xf32, #tpu.memory_space<smem>>
    %c1 = arith.constant 1 : index
    %1 = memref.load %arg1[%c1] : memref<3xf32, #tpu.memory_space<smem>>
    %c2 = arith.constant 2 : index
    %2 = memref.load %arg1[%c2] : memref<3xf32, #tpu.memory_space<smem>>
    %c0_0 = arith.constant 0 : index
    %c0_1 = arith.constant 0 : index
    %3 = vector.load %arg2[%c0_0, %c0_1] : memref<2x128xf32, #tpu.memory_space<vmem>>, vector<2x128xf32>
    %4 = vector.broadcast %2 : f32 to vector<2x128xf32>
    %5 = arith.mulf %3, %4 : vector<2x128xf32>
    %6 = vector.broadcast %1 : f32 to vector<2x128xf32>
    %7 = arith.addf %5, %6 : vector<2x128xf32>
    %8 = math.roundeven %7 : vector<2x128xf32>
    %cst = arith.constant 0.000000e+00 : f32
    %cst_2 = arith.constant 2.550000e+02 : f32
    %9 = vector.broadcast %cst : f32 to vector<2x128xf32>
    %10 = arith.maximumf %9, %8 : vector<2x128xf32>
    %11 = vector.broadcast %cst_2 : f32 to vector<2x128xf32>
    %12 = arith.minimumf %11, %10 : vector<2x128xf32>
    %13 = vector.broadcast %1 : f32 to vector<2x128xf32>
    %14 = arith.subf %12, %13 : vector<2x128xf32>
    %15 = vector.broadcast %0 : f32 to vector<2x128xf32>
    %16 = arith.mulf %14, %15 : vector<2x128xf32>
    %c0_3 = arith.constant 0 : index
    %c0_4 = arith.constant 0 : index
    %17 = vector.load %arg3[%c0_3, %c0_4] : memref<2x128xf32, #tpu.memory_space<vmem>>, vector<2x128xf32>
    tpu.vector_store %arg3[%c0_3, %c0_4], %16 {strides = array<i32>} : memref<2x128xf32, #tpu.memory_space<vmem>>, vector<2x128xf32>,
    return
  }
  func.func @transform_0(%arg0: i32) -> i32 {
    %c0_i32 = arith.constant 0 : i32
    %c0_i32_0 = arith.constant 0 : i32
    return %c0_i32 : i32
  }
  func.func @transform_1(%arg0: i32) -> (i32, i32) {
    %c0_i32 = arith.constant 0 : i32
    %c0_i32_0 = arith.constant 0 : i32
    return %arg0, %c0_i32 : i32, i32
  }
  func.func @transform_2(%arg0: i32) -> (i32, i32) {
    %c0_i32 = arith.constant 0 : i32
    %c0_i32_0 = arith.constant 0 : i32
    return %arg0, %c0_i32 : i32, i32
  }
}

</mosaic_0001>

<bundles_post_ra>
// kernel: net_forward.6
= control target key start
LH: loop header
LB: loop body
LE: loop exit
PB: predicated region body
PF: predicated region fallthrough
CT: control target
= control target key end

     0   :  { %8 = vsyncpa [#allocation3], 0  ;;  %s2201_s12 = smov 0   ;;  %s2203_s13 = smov 0   ;;  %s3176_s0 = inlined_call_operand.vmem [shape: f32[3], index: 0, kind: input, shape index: {}]   ;;  %s3177_s1 = inlined_call_operand.vmem [shape: f32[1352,9], index: 1, kind: input, shape index: {}]   ;;  %s3178_s2 = inlined_call_operand.vmem [shape: bf16[9,128], index: 2, kind: input, shape index: {}]   ;;  %s3179_s3 = inlined_call_operand.vmem [shape: f32[1352,128], index: 3, kind: output, shape index: {}]  }
   0x1   :  { %s2205_s14 = smov 0  }
   0x2 LB: > { %s2214_s15 = sadd.s32 4294967295, %s2145_s14   ;;  %s2216_s16 = sadd.s32 1, %s2145_s14   ;;  %s2145_s14 = sphi %s2205_s14, %s3316_s14   ;;  %s2141_s13 = sphi %s2203_s13, %s3315_s13   ;;  %s2137_s12 = sphi %s2201_s12, %s3314_s12  }
   0x3   : > { %s86_s17 = ssub.s32 %s2145_s14, %s2216_s16  ;;  %s89_s18 = sadd.s32 1, %s2141_s13 }
   0x4   : > { %p87_p0 = scmp.eq.s32.totalorder %s86_s17, 0  ;;  %p99_p1 = scmp.ne.s32.totalorder %s2141_s13, %s2137_s12 }
   0x5   : > { %p100_p2 = scmp.eq.s32.totalorder %s2214_s15, 2  ;;  %p1390_p3 = scmp.ge.s32.totalorder %s2145_s14, 1 }
   0x6   : > { %s2224_s19 = scalar_select %p87_p0, %s2141_s13, %s89_s18  }
   0x7   : > { %p2226_p4 = por %p100_p2, %p99_p1  ;;  %p113_p5 = scmp.lt.s32.totalorder %s2145_s14, 4 }
   0x8   : > { %p1980_p6 = scmp.eq.s32.totalorder %s2214_s15, 0  ;;  %s125_s23 = sshll.u32 %s3176_s0, 4  ;;  %s126_s23 = int_to_ptr.vmem [resolvable:$true] %s125_s23 }
   0x9   : > { %p114_p7 = pnand %p1390_p3, %p113_p5  ;;  %s2179_s24 = smov [#allocation2]  }
   0xb   : > { %p1976_p8 = pneg %p114_p7  ;;  %158 = sbr.rel (%p114_p7) target bundleno = 444 (0x1bc), region = 32 }
   0xd   : > { %p1977_p9 = pnand %p1980_p6, %p1976_p8 }
   0xf   : > { %1979 = dma.vmem_to_smem (!%p1977_p9), %s126_s23, 16, %s2179_s24, [#allocation3]  }
  0x10   : > { %2132 = dma.done.wait (%p1980_p6), [#allocation3], 16  }
  0x11   : > { %2134 = vsyncadd (%p1980_p6), [#allocation3], 4294967280 }
  0x12   : > { %165 = sfence }
  0x13   : > { %v1402_v0 = vld [vmem:[%s3178_s2] sm:$0xf]  ;;  %v1453_v1 = vld [vmem:[%s3178_s2] sm:$0x10]  ;;  %vm732_vm0 = vcmask 1043456   ;;  %vm733_vm1 = vcmask 1044480  }
  0x14   : > { %v1403_v2 = vor.u32 %v1453_v1, %v1402_v0  ;;  %s2241_s29 = sshll.u32 %s2214_s15, 6  ;;  %s207_s30 = sld [smem:[#allocation2]]  ;;  %v2180_v3 = vmov 65535   ;;  %vm635_vm5 = vcmask 72704  }
  0x15   : > { %v734_v4 = vsel %vm732_vm0, 4294967295, %v2180_v3  ;;  %p192_p10 = scmp.lt.s32.totalorder %s2241_s29, 168  ;;  %s1398_s4 = sld [smem:[#allocation2 + $0x1]] }
  0x16   : > { %v735_v5 = vsel %vm733_vm1, %v734_v4, 0  ;;  %s2845_s10 = sld [smem:[#allocation2 + $0x2]]  ;;  %s184_s11 = sand.u32 1, %s2137_s12  }
  0x17   : > { %v737_v6 = vand.u32 %v1403_v2, %v735_v5  ;;  %s193_s5 = scalar_select %p192_p10, %s2241_s29, 168 }
  0x18   : > { %s1395_s14 = sshll.u32 %s184_s11, 9  ;;  %s1045_s17 = ssub.s32 (%p2226_p4), 169, %s2241_s29 }
  0x19   : > { %746 = vmatpush.bf16.msra.mxu0 %v737_v6  ;;  %1457 = vmatpush.bf16.msra.mxu1 %v737_v6  ;;  %s1397_s6 = sshll.u32 %s193_s5, 3  ;;  %s2898_s12 = scalar_lea.vmem [#allocation4], %s1395_s14  }
  0x1a   : > { %1458 = vmatpush.bf16.msra.mxu2 %v737_v6  ;;  %1459 = vmatpush.bf16.msra.mxu3 %v737_v6  ;;  %s2248_s9 = scalar_lea.vmem %s3177_s1, %s1397_s6  ;;  %v2250_v7 = vstv %s207_s30  ;;  %s1454_s18 = sshll.u32 (%p2226_p4), %s2214_s15, 9 }
  0x1b   : > { %v210_v8 = vld [vmem:[%s2248_s9] sm:$0xff]  ;;  %v211_v9 = vld [vmem:[%s2248_s9 + $0x8] sm:$0xff]  ;;  %v2254_v10 = vstv %s1398_s4  ;;  %v229_v41 = vld [vmem:[%s2248_s9 + $0x98] sm:$0xff]  ;;  %p1046_p11 = scmp.lt.s32.totalorder (%p2226_p4), %s1045_s17, 64  ;;  %s3041_s23 = scalar_lea.vmem (%p2226_p4), %s3179_s3, %s1454_s18  }
  0x1c   : > { %v226_v11 = vld [vmem:[%s2248_s9 + $0x80] sm:$0xff]  ;;  %v275_v12 = vmul.f32 %v2250_v7, %v210_v8  ;;  %v276_v13 = vmul.f32 %v2250_v7, %v211_v9  ;;  %v227_v14 = vld [vmem:[%s2248_s9 + $0x88] sm:$0xff]  ;;  %v294_v53 = vmul.f32 %v2250_v7, %v229_v41 }
  0x1d   : > { %v291_v15 = vmul.f32 %v2250_v7, %v226_v11  ;;  %v242_v16 = vld [vmem:[%s2248_s9 + $0x100] sm:$0xff]  ;;  %v243_v17 = vld [vmem:[%s2248_s9 + $0x108] sm:$0xff]  ;;  %v292_v18 = vmul.f32 %v2250_v7, %v227_v14 }
  0x1e   : > { %v307_v19 = vmul.f32 %v2250_v7, %v242_v16  ;;  %v308_v20 = vmul.f32 %v2250_v7, %v243_v17  ;;  %v258_v21 = vld [vmem:[%s2248_s9 + $0x180] sm:$0xff]  ;;  %v259_v22 = vld [vmem:[%s2248_s9 + $0x188] sm:$0xff]  ;;  %v340_v23 = vadd.f32 %v2254_v10, %v275_v12  ;;  %v341_v24 = vadd.f32 %v2254_v10, %v276_v13 }
  0x1f   : > { %v356_v25 = vadd.f32 %v2254_v10, %v291_v15  ;;  %v323_v26 = vmul.f32 %v2250_v7, %v258_v21  ;;  %v357_v27 = vadd.f32 %v2254_v10, %v292_v18  ;;  %v324_v30 = vmul.f32 %v2250_v7, %v259_v22 }
  0x20   : > { %v372_v28 = vadd.f32 %v2254_v10, %v307_v19  ;;  %v2275_v29 = vadd.f32 %v2254_v10, %v308_v20  ;;  %v1460_v31 = vand.u32 2147483647, %v340_v23  ;;  %v1462_v32 = vcvt.f32.s32 %v340_v23 }
  0x21   : > { %v1465_v33 = vand.u32 2147483648, %v340_v23  ;;  %v1468_v34 = vand.u32 2147483647, %v341_v24  ;;  %v1470_v35 = vcvt.f32.s32 %v341_v24  ;;  %v1473_v36 = vand.u32 2147483648, %v341_v24 }
  0x22   : > { %v1588_v37 = vand.u32 2147483647, %v356_v25  ;;  %v1590_v38 = vcvt.f32.s32 %v356_v25  ;;  %vm2278_vm2 = vcmp.lt.f32.partialorder %v1460_v31, 8388608.0  ;;  %v1463_v40 = vcvt.s32.f32 %v1462_v32 }
  0x23   : > { %vm2282_vm3 = vcmp.lt.f32.partialorder %v1468_v34, 8388608.0  ;;  %v1593_v42 = vand.u32 2147483648, %v356_v25  ;;  %v1471_v43 = vcvt.s32.f32 %v1470_v35  ;;  %v1596_v46 = vand.u32 2147483647, %v357_v27 }
  0x24   : > { %vm2286_vm4 = vcmp.lt.f32.partialorder %v1588_v37, 8388608.0  ;;  %v1591_v45 = vcvt.s32.f32 %v1590_v38  ;;  %v1464_v47 = vand.u32 2147483647, %v1463_v40  ;;  %v1598_v48 = vcvt.f32.s32 %v357_v27  ;;  %v228_v40 = vld [vmem:[%s2248_s9 + $0x90] sm:$0xff] }
  0x25   : > { %v1601_v49 = vand.u32 2147483648, %v357_v27  ;;  %v1716_v50 = vand.u32 2147483647, %v372_v28  ;;  %v1472_v51 = vand.u32 2147483647, %v1471_v43  ;;  %vm2290_vm6 = vcmp.lt.f32.partialorder %v1596_v46, 8388608.0 }
  0x26   : > { %v1592_v52 = vand.u32 2147483647, %v1591_v45  ;;  %v1718_v54 = vcvt.f32.s32 %v372_v28  ;;  %v1466_v55 = vor.u32 %v1465_v33, %v1464_v47  ;;  %v1599_v56 = vcvt.s32.f32 %v1598_v48  ;;  %v212_v33 = vld [vmem:[%s2248_s9 + $0x10] sm:$0xff] }
  0x27   : > { %vm2294_vm7 = vcmp.lt.f32.partialorder %v1716_v50, 8388608.0  ;;  %v1721_v58 = vand.u32 2147483648, %v372_v28  ;;  %v1474_v59 = vor.u32 %v1473_v36, %v1472_v51  ;;  %v1724_v62 = vand.u32 2147483647, %v2275_v29  ;;  %v213_v36 = vld [vmem:[%s2248_s9 + $0x18] sm:$0xff] }
  0x28   : > { %v1594_v60 = vor.u32 %v1593_v42, %v1592_v52  ;;  %v1719_v61 = vcvt.s32.f32 %v1718_v54  ;;  %v1467_v63 = vsel %vm2278_vm2, %v1466_v55, %v340_v23  ;;  %v1600_v0 = vand.u32 2147483647, %v1599_v56  ;;  %v244_v42 = vld [vmem:[%s2248_s9 + $0x110] sm:$0xff] }
  0x29   : > { %v1726_v1 = vcvt.f32.s32 %v2275_v29  ;;  %v1729_v2 = vand.u32 2147483648, %v2275_v29  ;;  %v1475_v3 = vsel %vm2282_vm3, %v1474_v59, %v341_v24  ;;  %v468_v4 = vmax.f32 %v1467_v63, 0.0 }
  0x2a   : > { %v1595_v5 = vsel %vm2286_vm4, %v1594_v60, %v356_v25  ;;  %v1720_v6 = vand.u32 2147483647, %v1719_v61  ;;  %v469_v8 = vmax.f32 %v1475_v3, 0.0  ;;  %v1602_v9 = vor.u32 %v1601_v49, %v1600_v0 }
  0x2b   : > { %v484_v11 = vmax.f32 %v1595_v5, 0.0  ;;  %vm2307_vm8 = vcmp.lt.f32.partialorder %v1724_v62, 8388608.0  ;;  %v532_v13 = vmin.f32 %v468_v4, 255.0  ;;  %v1727_v15 = vcvt.s32.f32 %v1726_v1 }
  0x2c   : > { %v1722_v14 = vor.u32 %v1721_v58, %v1720_v6  ;;  %v388_v16 = vadd.f32 %v2254_v10, %v323_v26  ;;  %v533_v17 = vmin.f32 %v469_v8, 255.0  ;;  %v1603_v18 = vsel %vm2290_vm6, %v1602_v9, %v357_v27 }
  0x2d   : > { %v548_v19 = vmin.f32 %v484_v11, 255.0  ;;  %v389_v20 = vadd.f32 %v2254_v10, %v324_v30  ;;  %v485_v21 = vmax.f32 %v1603_v18, 0.0  ;;  %v1728_v23 = vand.u32 2147483647, %v1727_v15 }
  0x2e   : > { %v1723_v22 = vsel %vm2294_vm7, %v1722_v14, %v372_v28  ;;  %v1844_v24 = vand.u32 2147483647, %v388_v16  ;;  %v596_v25 = vpack.c.bf16 %v533_v17, %v532_v13  ;;  %v1846_v26 = vcvt.f32.s32 %v388_v16 }
  0x2f   : > { %v500_v31 = vmax.f32 %v1723_v22, 0.0  ;;  %v1849_v32 = vand.u32 2147483648, %v388_v16  ;;  %v549_v34 = vmin.f32 %v485_v21, 255.0  ;;  %v1730_v27 = vor.u32 %v1729_v2, %v1728_v23 }
  0x30   : > { %vm2318_vm9 = vcmp.lt.f32.partialorder %v1844_v24, 8388608.0  ;;  %v1852_v30 = vand.u32 2147483647, %v389_v20  ;;  %1404 = vmatmul.msk.bf16.vlgmr.msra.gmra.mxu0 %vm635_vm5, %v596_v25  ;;  %v1847_v37 = vcvt.s32.f32 %v1846_v26  ;;  %v1854_v38 = vcvt.f32.s32 %v389_v20  ;;  %v245_v24 = vld [vmem:[%s2248_s9 + $0x118] sm:$0xff] }
  0x31   : > { %v564_v28 = vmin.f32 %v500_v31, 255.0  ;;  %v1857_v39 = vand.u32 2147483648, %v389_v20  ;;  %v604_v43 = vpack.c.bf16 %v549_v34, %v548_v19  ;;  %v1731_v44 = vsel %vm2307_vm8, %v1730_v27, %v2275_v29  ;;  %v261_v34 = vld [vmem:[%s2248_s9 + $0x198] sm:$0xff] }
  0x32   : > { %vm2330_vm10 = vcmp.lt.f32.partialorder %v1852_v30, 8388608.0  ;;  %v277_v46 = vmul.f32 %v2250_v7, %v212_v33  ;;  %v501_v47 = vmax.f32 %v1731_v44, 0.0  ;;  %v1848_v48 = vand.u32 2147483647, %v1847_v37  ;;  %v260_v33 = vld [vmem:[%s2248_s9 + $0x190] sm:$0xff] }
  0x33   : > { %v1855_v49 = vcvt.s32.f32 %v1854_v38  ;;  %v278_v50 = vmul.f32 %v2250_v7, %v213_v36  ;;  %1412 = vmatmul.msk.bf16.vlgmr.msra.gmra.mxu1 %vm635_vm5, %v604_v43  ;;  %v293_v52 = vmul.f32 %v2250_v7, %v228_v40  ;;  %v309_v29 = vmul.f32 %v2250_v7, %v244_v42 }
  0x34   : > { %v342_v51 = vadd.f32 %v2254_v10, %v277_v46  ;;  %v565_v54 = vmin.f32 %v501_v47, 255.0  ;;  %v1850_v55 = vor.u32 %v1849_v32, %v1848_v48  ;;  %v359_v11 = vadd.f32 %v2254_v10, %v294_v53 }
  0x35   : > { %v1856_v56 = vand.u32 2147483647, %v1855_v49  ;;  %v343_v57 = vadd.f32 %v2254_v10, %v278_v50  ;;  %v358_v61 = vadd.f32 %v2254_v10, %v293_v52  ;;  %v310_v38 = vmul.f32 %v2250_v7, %v245_v24  ;;  %v231_v24 = vld [vmem:[%s2248_s9 + $0xa8] sm:$0xff] }
  0x36   : > { %v1476_v58 = vand.u32 2147483647, %v342_v51  ;;  %v1478_v59 = vcvt.f32.s32 %v342_v51  ;;  %v1481_v60 = vand.u32 2147483648, %v342_v51  ;;  %v612_v62 = vpack.c.bf16 %v565_v54, %v564_v28 }
  0x37   : > { %v1851_v63 = vsel %vm2318_vm9, %v1850_v55, %v388_v16  ;;  %v1858_v0 = vor.u32 %v1857_v39, %v1856_v56  ;;  %v1484_v1 = vand.u32 2147483647, %v343_v57  ;;  %v1486_v5 = vcvt.f32.s32 %v343_v57 }
  0x38   : > { %v516_v2 = vmax.f32 %v1851_v63, 0.0  ;;  %vm2345_vm11 = vcmp.lt.f32.partialorder %v1476_v58, 8388608.0  ;;  %v1479_v4 = vcvt.s32.f32 %v1478_v59  ;;  %1420 = vmatmul.msk.bf16.vlgmr.msra.gmra.mxu2 %vm635_vm5, %v612_v62  ;;  %v1489_v9 = vand.u32 2147483648, %v343_v57  ;;  %v214_v59 = vld [vmem:[%s2248_s9 + $0x20] sm:$0xff] }
  0x39   : > { %v1859_v6 = vsel %vm2330_vm10, %v1858_v0, %v389_v20  ;;  %vm2352_vm12 = vcmp.lt.f32.partialorder %v1484_v1, 8388608.0  ;;  %v1487_v15 = vcvt.s32.f32 %v1486_v5  ;;  %v1604_v16 = vand.u32 2147483647, %v358_v61 }
  0x3a   : > { %v517_v12 = vmax.f32 %v1859_v6, 0.0  ;;  %v580_v13 = vmin.f32 %v516_v2, 255.0  ;;  %v1480_v14 = vand.u32 2147483647, %v1479_v4  ;;  %v1606_v17 = vcvt.f32.s32 %v358_v61 }
  0x3b   : > { %v1609_v18 = vand.u32 2147483648, %v358_v61  ;;  %v1612_v19 = vand.u32 2147483647, %v359_v11  ;;  %v1488_v22 = vand.u32 2147483647, %v1487_v15  ;;  %v1614_v23 = vcvt.f32.s32 %v359_v11 }
  0x3c   : > { %v581_v21 = vmin.f32 %v517_v12, 255.0  ;;  %v1482_v20 = vor.u32 %v1481_v60, %v1480_v14  ;;  %vm2358_vm13 = vcmp.lt.f32.partialorder %v1604_v16, 8388608.0  ;;  %v1607_v31 = vcvt.s32.f32 %v1606_v17 }
  0x3d   : > { %vm2362_vm14 = vcmp.lt.f32.partialorder %v1612_v19, 8388608.0  ;;  %v1617_v32 = vand.u32 2147483648, %v359_v11  ;;  %v1490_v30 = vor.u32 %v1489_v9, %v1488_v22  ;;  %v1615_v36 = vcvt.s32.f32 %v1614_v23  ;;  %v230_v23 = vld [vmem:[%s2248_s9 + $0xa0] sm:$0xff] }
  0x3e   : > { %v620_v27 = vpack.c.bf16 %v581_v21, %v580_v13  ;;  %v1483_v35 = vsel %vm2345_vm11, %v1482_v20, %v342_v51  ;;  %v1608_v37 = vand.u32 2147483647, %v1607_v31  ;;  %v374_v39 = vadd.f32 %v2254_v10, %v309_v29 }
  0x3f   : > { %v470_v28 = vmax.f32 %v1483_v35, 0.0  ;;  %v1491_v40 = vsel %vm2352_vm12, %v1490_v30, %v343_v57  ;;  %v1616_v41 = vand.u32 2147483647, %v1615_v36  ;;  %v325_v42 = vmul.f32 %v2250_v7, %v260_v33 }
  0x40   : > { %1428 = vmatmul.msk.bf16.vlgmr.msra.gmra.mxu3 %vm635_vm5, %v620_v27  ;;  %v326_v43 = vmul.f32 %v2250_v7, %v261_v34  ;;  %v471_v44 = vmax.f32 %v1491_v40, 0.0  ;;  %v1610_v46 = vor.u32 %v1609_v18, %v1608_v37  ;;  %v375_v47 = vadd.f32 %v2254_v10, %v310_v38  ;;  %v215_v18 = vld [vmem:[%s2248_s9 + $0x28] sm:$0xff] }
  0x41   : > { %v534_v45 = vmin.f32 %v470_v28, 255.0  ;;  %v1618_v48 = vor.u32 %v1617_v32, %v1616_v41  ;;  %v1732_v49 = vand.u32 2147483647, %v374_v39  ;;  %v1734_v50 = vcvt.f32.s32 %v374_v39 }
  0x42   : > { %v1737_v51 = vand.u32 2147483648, %v374_v39  ;;  %v535_v52 = vmin.f32 %v471_v44, 255.0  ;;  %v1611_v53 = vsel %vm2358_vm13, %v1610_v46, %v358_v61  ;;  %v1740_v29 = vand.u32 2147483647, %v375_v47 }
  0x43   : > { %v1742_v54 = vcvt.f32.s32 %v375_v47  ;;  %v1619_v55 = vsel %vm2362_vm14, %v1618_v48, %v359_v11  ;;  %v486_v56 = vmax.f32 %v1611_v53, 0.0  ;;  %vm2382_vm15 = vcmp.lt.f32.partialorder %v1732_v49, 8388608.0 }
  0x44   : > { %v1735_v58 = vcvt.s32.f32 %v1734_v50  ;;  %v597_v60 = vpack.c.bf16 %v535_v52, %v534_v45  ;;  %v487_v62 = vmax.f32 %v1619_v55, 0.0  ;;  %vm2387_vm0 = vcmp.lt.f32.partialorder %v1740_v29, 8388608.0 }
  0x45   : > { %v1743_v0 = vcvt.s32.f32 %v1742_v54  ;;  %v550_v61 = vmin.f32 %v486_v56, 255.0  ;;  %v1745_v2 = vand.u32 2147483648, %v375_v47  ;;  %v390_v3 = vadd.f32 %v2254_v10, %v325_v42 }
  0x46   : > { %v1736_v1 = vand.u32 2147483647, %v1735_v58  ;;  %1405 = vmatmul.msk.bf16.gmra.mxu0 %vm635_vm5, %v597_v60  ;;  %v551_v4 = vmin.f32 %v487_v62, 255.0  ;;  %v391_v6 = vadd.f32 %v2254_v10, %v326_v43  ;;  %v279_v8 = vmul.f32 %v2250_v7, %v214_v59 }
  0x47   : > { %v1744_v5 = vand.u32 2147483647, %v1743_v0  ;;  %v1860_v11 = vand.u32 2147483647, %v390_v3  ;;  %v1862_v12 = vcvt.f32.s32 %v390_v3  ;;  %v1865_v13 = vand.u32 2147483648, %v390_v3 }
  0x48   : > { %v1738_v9 = vor.u32 %v1737_v51, %v1736_v1  ;;  %v605_v14 = vpack.c.bf16 %v551_v4, %v550_v61  ;;  %v1868_v16 = vand.u32 2147483647, %v391_v6  ;;  %v1870_v17 = vcvt.f32.s32 %v391_v6  ;;  %v246_v1 = vld [vmem:[%s2248_s9 + $0x120] sm:$0xff] }
  0x49   : > { %v1746_v15 = vor.u32 %v1745_v2, %v1744_v5  ;;  %vm2398_vm1 = vcmp.lt.f32.partialorder %v1860_v11, 8388608.0  ;;  %v1863_v20 = vcvt.s32.f32 %v1862_v12  ;;  %v1873_v22 = vand.u32 2147483648, %v391_v6 }
  0x4a   : > { %v1739_v19 = vsel %vm2382_vm15, %v1738_v9, %v374_v39  ;;  %1413 = vmatmul.msk.bf16.gmra.mxu1 %vm635_vm5, %v605_v14  ;;  %vm2407_vm2 = vcmp.lt.f32.partialorder %v1868_v16, 8388608.0  ;;  %v1871_v32 = vcvt.s32.f32 %v1870_v17  ;;  %v280_v27 = vmul.f32 %v2250_v7, %v215_v18  ;;  %v263_v14 = vld [vmem:[%s2248_s9 + $0x1a8] sm:$0xff] }
  0x4b   : > { %v1747_v25 = vsel %vm2387_vm0, %v1746_v15, %v375_v47  ;;  %v502_v31 = vmax.f32 %v1739_v19, 0.0  ;;  %v1864_v34 = vand.u32 2147483647, %v1863_v20  ;;  %v344_v35 = vadd.f32 %v2254_v10, %v279_v8  ;;  %v262_v8 = vld [vmem:[%s2248_s9 + $0x1a0] sm:$0xff] }
  0x4c   : > { %v503_v33 = vmax.f32 %v1747_v25, 0.0  ;;  %v1872_v36 = vand.u32 2147483647, %v1871_v32  ;;  %v295_v28 = vmul.f32 %v2250_v7, %v230_v23  ;;  %v296_v37 = vmul.f32 %v2250_v7, %v231_v24 }
  0x4d   : > { %v566_v30 = vmin.f32 %v502_v31, 255.0  ;;  %v1866_v39 = vor.u32 %v1865_v13, %v1864_v34  ;;  %v345_v40 = vadd.f32 %v2254_v10, %v280_v27  ;;  %v1492_v41 = vand.u32 2147483647, %v344_v35 }
  0x4e   : > { %v567_v38 = vmin.f32 %v503_v33, 255.0  ;;  %v1874_v42 = vor.u32 %v1873_v22, %v1872_v36  ;;  %v1494_v43 = vcvt.f32.s32 %v344_v35  ;;  %v1497_v44 = vand.u32 2147483648, %v344_v35 }
  0x4f   : > { %v360_v45 = vadd.f32 %v2254_v10, %v295_v28  ;;  %v1867_v47 = vsel %vm2398_vm1, %v1866_v39, %v390_v3  ;;  %vm2419_vm3 = vcmp.lt.f32.partialorder %v1492_v41, 8388608.0  ;;  %v1500_v49 = vand.u32 2147483647, %v345_v40 }
  0x50   : > { %v613_v46 = vpack.c.bf16 %v567_v38, %v566_v30  ;;  %v1875_v50 = vsel %vm2407_vm2, %v1874_v42, %v391_v6  ;;  %v518_v51 = vmax.f32 %v1867_v47, 0.0  ;;  %v1495_v52 = vcvt.s32.f32 %v1494_v43  ;;  %v247_v6 = vld [vmem:[%s2248_s9 + $0x128] sm:$0xff] }
  0x51   : > { %v1502_v53 = vcvt.f32.s32 %v345_v40  ;;  %v519_v29 = vmax.f32 %v1875_v50, 0.0  ;;  %vm2426_vm4 = vcmp.lt.f32.partialorder %v1500_v49, 8388608.0  ;;  %v1505_v55 = vand.u32 2147483648, %v345_v40 }
  0x52   : > { %1421 = vmatmul.msk.bf16.gmra.mxu2 %vm635_vm5, %v613_v46  ;;  %v361_v56 = vadd.f32 %v2254_v10, %v296_v37  ;;  %v582_v57 = vmin.f32 %v518_v51, 255.0  ;;  %v1496_v58 = vand.u32 2147483647, %v1495_v52  ;;  %v1620_v60 = vand.u32 2147483647, %v360_v45 }
  0x53   : > { %v1503_v59 = vcvt.s32.f32 %v1502_v53  ;;  %v583_v62 = vmin.f32 %v519_v29, 255.0  ;;  %v1622_v63 = vcvt.f32.s32 %v360_v45  ;;  %v1625_v0 = vand.u32 2147483648, %v360_v45 }
  0x54   : > { %v1628_v61 = vand.u32 2147483647, %v361_v56  ;;  %v1498_v2 = vor.u32 %v1497_v44, %v1496_v58  ;;  %vm2432_vm6 = vcmp.lt.f32.partialorder %v1620_v60, 8388608.0  ;;  %v1630_v5 = vcvt.f32.s32 %v361_v56  ;;  %v216_v44 = vld [vmem:[%s2248_s9 + $0x30] sm:$0xff] }
  0x55   : > { %v1504_v3 = vand.u32 2147483647, %v1503_v59  ;;  %v621_v9 = vpack.c.bf16 %v583_v62, %v582_v57  ;;  %v1623_v11 = vcvt.s32.f32 %v1622_v63  ;;  %v1633_v13 = vand.u32 2147483648, %v361_v56 }
  0x56   : > { %vm2438_vm7 = vcmp.lt.f32.partialorder %v1628_v61, 8388608.0  ;;  %v1499_v15 = vsel %vm2419_vm3, %v1498_v2, %v344_v35  ;;  %v1631_v17 = vcvt.s32.f32 %v1630_v5  ;;  %v311_v18 = vmul.f32 %v2250_v7, %v246_v1  ;;  %v217_v61 = vld [vmem:[%s2248_s9 + $0x38] sm:$0xff]  ;;  %v232_v5 = vld [vmem:[%s2248_s9 + $0xb0] sm:$0xff] }
  0x57   : > { %v1506_v16 = vor.u32 %v1505_v55, %v1504_v3  ;;  %1429 = vmatmul.msk.bf16.gmra.mxu3 %vm635_vm5, %v621_v9  ;;  %v472_v19 = vmax.f32 %v1499_v15, 0.0  ;;  %v1624_v21 = vand.u32 2147483647, %v1623_v11  ;;  %v312_v20 = vmul.f32 %v2250_v7, %v247_v6  ;;  %v233_v6 = vld [vmem:[%s2248_s9 + $0xb8] sm:$0xff] }
  0x58   : > { %v327_v22 = vmul.f32 %v2250_v7, %v262_v8  ;;  %v1632_v24 = vand.u32 2147483647, %v1631_v17  ;;  %v376_v25 = vadd.f32 %v2254_v10, %v311_v18  ;;  %v328_v31 = vmul.f32 %v2250_v7, %v263_v14 }
  0x59   : > { %v1507_v23 = vsel %vm2426_vm4, %v1506_v16, %v345_v40  ;;  %v536_v32 = vmin.f32 %v472_v19, 255.0  ;;  %v1626_v33 = vor.u32 %v1625_v0, %v1624_v21  ;;  %v377_v34 = vadd.f32 %v2254_v10, %v312_v20 }
  0x5a   : > { %v473_v26 = vmax.f32 %v1507_v23, 0.0  ;;  %v1634_v27 = vor.u32 %v1633_v13, %v1632_v24  ;;  %v1748_v35 = vand.u32 2147483647, %v376_v25  ;;  %v1750_v30 = vcvt.f32.s32 %v376_v25 }
  0x5b   : > { %v1753_v36 = vand.u32 2147483648, %v376_v25  ;;  %v1627_v37 = vsel %vm2432_vm6, %v1626_v33, %v360_v45  ;;  %v1756_v38 = vand.u32 2147483647, %v377_v34  ;;  %v1758_v39 = vcvt.f32.s32 %v377_v34 }
  0x5c   : > { %v537_v28 = vmin.f32 %v473_v26, 255.0  ;;  %v1635_v40 = vsel %vm2438_vm7, %v1634_v27, %v361_v56  ;;  %v488_v41 = vmax.f32 %v1627_v37, 0.0  ;;  %vm2458_vm8 = vcmp.lt.f32.partialorder %v1748_v35, 8388608.0 }
  0x5d   : > { %v1751_v43 = vcvt.s32.f32 %v1750_v30  ;;  %v489_v47 = vmax.f32 %v1635_v40, 0.0  ;;  %vm2463_vm9 = vcmp.lt.f32.partialorder %v1756_v38, 8388608.0  ;;  %v1759_v49 = vcvt.s32.f32 %v1758_v39 }
  0x5e   : > { %v598_v46 = vpack.c.bf16 %v537_v28, %v536_v32  ;;  %v552_v45 = vmin.f32 %v488_v41, 255.0  ;;  %v1761_v51 = vand.u32 2147483648, %v377_v34  ;;  %v392_v52 = vadd.f32 %v2254_v10, %v327_v22 }
  0x5f   : > { %v1752_v50 = vand.u32 2147483647, %v1751_v43  ;;  %v553_v53 = vmin.f32 %v489_v47, 255.0  ;;  %v1760_v29 = vand.u32 2147483647, %v1759_v49  ;;  %v393_v54 = vadd.f32 %v2254_v10, %v328_v31 }
  0x60   : > { %1406 = vmatmul.msk.bf16.gmra.mxu0 %vm635_vm5, %v598_v46  ;;  %v281_v55 = vmul.f32 %v2250_v7, %v216_v44  ;;  %v1876_v57 = vand.u32 2147483647, %v392_v52  ;;  %v1878_v58 = vcvt.f32.s32 %v392_v52  ;;  %v1881_v59 = vand.u32 2147483648, %v392_v52 }
  0x61   : > { %v1754_v56 = vor.u32 %v1753_v36, %v1752_v50  ;;  %v606_v60 = vpack.c.bf16 %v553_v53, %v552_v45  ;;  %v1762_v62 = vor.u32 %v1761_v51, %v1760_v29  ;;  %v1884_v63 = vand.u32 2147483647, %v393_v54  ;;  %v248_v50 = vld [vmem:[%s2248_s9 + $0x130] sm:$0xff] }
  0x62   : > { %v1886_v0 = vcvt.f32.s32 %v393_v54  ;;  %vm2474_vm10 = vcmp.lt.f32.partialorder %v1876_v57, 8388608.0  ;;  %v1879_v3 = vcvt.s32.f32 %v1878_v58  ;;  %v1889_v4 = vand.u32 2147483648, %v393_v54 }
  0x63   : > { %v1755_v1 = vsel %vm2458_vm8, %v1754_v56, %v376_v25  ;;  %1414 = vmatmul.msk.bf16.gmra.mxu1 %vm635_vm5, %v606_v60  ;;  %v1763_v8 = vsel %vm2463_vm9, %v1762_v62, %v377_v34  ;;  %vm2483_vm11 = vcmp.lt.f32.partialorder %v1884_v63, 8388608.0  ;;  %v282_v15 = vmul.f32 %v2250_v7, %v217_v61  ;;  %v265_v60 = vld [vmem:[%s2248_s9 + $0x1b8] sm:$0xff] }
  0x64   : > { %v504_v9 = vmax.f32 %v1755_v1, 0.0  ;;  %v1887_v12 = vcvt.s32.f32 %v1886_v0  ;;  %v505_v13 = vmax.f32 %v1763_v8, 0.0  ;;  %v1880_v14 = vand.u32 2147483647, %v1879_v3 }
  0x65   : > { %v346_v16 = vadd.f32 %v2254_v10, %v281_v55  ;;  %v297_v19 = vmul.f32 %v2250_v7, %v232_v5  ;;  %v298_v21 = vmul.f32 %v2250_v7, %v233_v6  ;;  %v347_v23 = vadd.f32 %v2254_v10, %v282_v15  ;;  %v264_v55 = vld [vmem:[%s2248_s9 + $0x1b0] sm:$0xff] }
  0x66   : > { %v568_v17 = vmin.f32 %v504_v9, 255.0  ;;  %v1888_v18 = vand.u32 2147483647, %v1887_v12  ;;  %v569_v20 = vmin.f32 %v505_v13, 255.0  ;;  %v1882_v22 = vor.u32 %v1881_v59, %v1880_v14 }
  0x67   : > { %v1508_v24 = vand.u32 2147483647, %v346_v16  ;;  %v1510_v31 = vcvt.f32.s32 %v346_v16  ;;  %v1513_v26 = vand.u32 2147483648, %v346_v16  ;;  %v362_v32 = vadd.f32 %v2254_v10, %v297_v19 }
  0x68   : > { %v1890_v25 = vor.u32 %v1889_v4, %v1888_v18  ;;  %v614_v33 = vpack.c.bf16 %v569_v20, %v568_v17  ;;  %v1883_v34 = vsel %vm2474_vm10, %v1882_v22, %v392_v52  ;;  %v1516_v35 = vand.u32 2147483647, %v347_v23 }
  0x69   : > { %vm2495_vm12 = vcmp.lt.f32.partialorder %v1508_v24, 8388608.0  ;;  %v520_v36 = vmax.f32 %v1883_v34, 0.0  ;;  %v1511_v28 = vcvt.s32.f32 %v1510_v31  ;;  %v1518_v37 = vcvt.f32.s32 %v347_v23 }
  0x6a   : > { %v1891_v30 = vsel %vm2483_vm11, %v1890_v25, %v393_v54  ;;  %1422 = vmatmul.msk.bf16.gmra.mxu2 %vm635_vm5, %v614_v33  ;;  %vm2502_vm13 = vcmp.lt.f32.partialorder %v1516_v35, 8388608.0  ;;  %v1521_v40 = vand.u32 2147483648, %v347_v23  ;;  %v363_v41 = vadd.f32 %v2254_v10, %v298_v21  ;;  %v249_v54 = vld [vmem:[%s2248_s9 + $0x138] sm:$0xff] }
  0x6b   : > { %v521_v38 = vmax.f32 %v1891_v30, 0.0  ;;  %v584_v42 = vmin.f32 %v520_v36, 255.0  ;;  %v1512_v43 = vand.u32 2147483647, %v1511_v28  ;;  %v1519_v44 = vcvt.s32.f32 %v1518_v37 }
  0x6c   : > { %v1636_v46 = vand.u32 2147483647, %v362_v32  ;;  %v1638_v48 = vcvt.f32.s32 %v362_v32  ;;  %v1641_v49 = vand.u32 2147483648, %v362_v32  ;;  %v1644_v45 = vand.u32 2147483647, %v363_v41 }
  0x6d   : > { %v585_v47 = vmin.f32 %v521_v38, 255.0  ;;  %v1514_v51 = vor.u32 %v1513_v26, %v1512_v43  ;;  %v1520_v52 = vand.u32 2147483647, %v1519_v44  ;;  %v1646_v29 = vcvt.f32.s32 %v363_v41  ;;  %v218_v26 = vld [vmem:[%s2248_s9 + $0x40] sm:$0xff] }
  0x6e   : > { %vm2508_vm14 = vcmp.lt.f32.partialorder %v1636_v46, 8388608.0  ;;  %v1639_v57 = vcvt.s32.f32 %v1638_v48  ;;  %vm2514_vm15 = vcmp.lt.f32.partialorder %v1644_v45, 8388608.0  ;;  %v1649_v59 = vand.u32 2147483648, %v363_v41  ;;  %v219_v45 = vld [vmem:[%s2248_s9 + $0x48] sm:$0xff] }
  0x6f   : > { %v622_v56 = vpack.c.bf16 %v585_v47, %v584_v42  ;;  %v1515_v62 = vsel %vm2495_vm12, %v1514_v51, %v346_v16  ;;  %v1522_v63 = vor.u32 %v1521_v40, %v1520_v52  ;;  %v1647_v0 = vcvt.s32.f32 %v1646_v29  ;;  %v234_v29 = vld [vmem:[%s2248_s9 + $0xc0] sm:$0xff] }
  0x70   : > { %v313_v61 = vmul.f32 %v2250_v7, %v248_v50  ;;  %v474_v1 = vmax.f32 %v1515_v62, 0.0  ;;  %v1640_v2 = vand.u32 2147483647, %v1639_v57  ;;  %v314_v3 = vmul.f32 %v2250_v7, %v249_v54  ;;  %v235_v54 = vld [vmem:[%s2248_s9 + $0xc8] sm:$0xff] }
  0x71   : > { %1430 = vmatmul.msk.bf16.gmra.mxu3 %vm635_vm5, %v622_v56  ;;  %v329_v4 = vmul.f32 %v2250_v7, %v264_v55  ;;  %v1523_v5 = vsel %vm2502_vm13, %v1522_v63, %v347_v23  ;;  %v1648_v6 = vand.u32 2147483647, %v1647_v0  ;;  %v330_v9 = vmul.f32 %v2250_v7, %v265_v60 }
  0x72   : > { %v378_v8 = vadd.f32 %v2254_v10, %v313_v61  ;;  %v475_v11 = vmax.f32 %v1523_v5, 0.0  ;;  %v538_v12 = vmin.f32 %v474_v1, 255.0  ;;  %v1642_v13 = vor.u32 %v1641_v49, %v1640_v2 }
  0x73   : > { %v379_v14 = vadd.f32 %v2254_v10, %v314_v3  ;;  %v1650_v15 = vor.u32 %v1649_v59, %v1648_v6  ;;  %v394_v28 = vadd.f32 %v2254_v10, %v329_v4  ;;  %v395_v39 = vadd.f32 %v2254_v10, %v330_v9 }
  0x74   : > { %v1764_v16 = vand.u32 2147483647, %v378_v8  ;;  %v1766_v17 = vcvt.f32.s32 %v378_v8  ;;  %v1769_v18 = vand.u32 2147483648, %v378_v8  ;;  %v539_v19 = vmin.f32 %v475_v11, 255.0 }
  0x75   : > { %v1643_v21 = vsel %vm2508_vm14, %v1642_v13, %v362_v32  ;;  %v1772_v20 = vand.u32 2147483647, %v379_v14  ;;  %v1774_v22 = vcvt.f32.s32 %v379_v14  ;;  %v1651_v23 = vsel %vm2514_vm15, %v1650_v15, %v363_v41 }
  0x76   : > { %v490_v24 = vmax.f32 %v1643_v21, 0.0  ;;  %vm2534_vm0 = vcmp.lt.f32.partialorder %v1764_v16, 8388608.0  ;;  %v1767_v31 = vcvt.s32.f32 %v1766_v17  ;;  %v599_v33 = vpack.c.bf16 %v539_v19, %v538_v12 }
  0x77   : > { %v491_v34 = vmax.f32 %v1651_v23, 0.0  ;;  %vm2539_vm1 = vcmp.lt.f32.partialorder %v1772_v20, 8388608.0  ;;  %v1775_v35 = vcvt.s32.f32 %v1774_v22  ;;  %v1777_v36 = vand.u32 2147483648, %v379_v14 }
  0x78   : > { %v554_v32 = vmin.f32 %v490_v24, 255.0  ;;  %v1768_v30 = vand.u32 2147483647, %v1767_v31  ;;  %1407 = vmatmul.msk.bf16.gmra.mxu0 %vm635_vm5, %v599_v33  ;;  %v283_v40 = vmul.f32 %v2250_v7, %v218_v26  ;;  %v1892_v42 = vand.u32 2147483647, %v394_v28 }
  0x79   : > { %v555_v37 = vmin.f32 %v491_v34, 255.0  ;;  %v1776_v38 = vand.u32 2147483647, %v1775_v35  ;;  %v1894_v43 = vcvt.f32.s32 %v394_v28  ;;  %v1897_v44 = vand.u32 2147483648, %v394_v28 }
  0x7a   : > { %v1770_v41 = vor.u32 %v1769_v18, %v1768_v30  ;;  %v1900_v48 = vand.u32 2147483647, %v395_v39  ;;  %v1902_v49 = vcvt.f32.s32 %v395_v39  ;;  %vm2550_vm2 = vcmp.lt.f32.partialorder %v1892_v42, 8388608.0  ;;  %v250_v30 = vld [vmem:[%s2248_s9 + $0x140] sm:$0xff] }
  0x7b   : > { %v607_v46 = vpack.c.bf16 %v555_v37, %v554_v32  ;;  %v1778_v47 = vor.u32 %v1777_v36, %v1776_v38  ;;  %v1895_v52 = vcvt.s32.f32 %v1894_v43  ;;  %v1905_v53 = vand.u32 2147483648, %v395_v39 }
  0x7c   : > { %v1771_v50 = vsel %vm2534_vm0, %v1770_v41, %v378_v8  ;;  %vm2559_vm3 = vcmp.lt.f32.partialorder %v1900_v48, 8388608.0  ;;  %v1903_v58 = vcvt.s32.f32 %v1902_v49  ;;  %v284_v62 = vmul.f32 %v2250_v7, %v219_v45 }
  0x7d   : > { %1415 = vmatmul.msk.bf16.gmra.mxu1 %vm635_vm5, %v607_v46  ;;  %v1779_v55 = vsel %vm2539_vm1, %v1778_v47, %v379_v14  ;;  %v506_v56 = vmax.f32 %v1771_v50, 0.0  ;;  %v1896_v60 = vand.u32 2147483647, %v1895_v52  ;;  %v348_v63 = vadd.f32 %v2254_v10, %v283_v40  ;;  %v266_v40 = vld [vmem:[%s2248_s9 + $0x1c0] sm:$0xff]  ;;  %v267_v46 = vld [vmem:[%s2248_s9 + $0x1c8] sm:$0xff] }
  0x7e   : > { %v507_v59 = vmax.f32 %v1779_v55, 0.0  ;;  %v1904_v61 = vand.u32 2147483647, %v1903_v58  ;;  %v299_v1 = vmul.f32 %v2250_v7, %v234_v29  ;;  %v300_v2 = vmul.f32 %v2250_v7, %v235_v54 }
  0x7f   : > { %v570_v0 = vmin.f32 %v506_v56, 255.0  ;;  %v1898_v4 = vor.u32 %v1897_v44, %v1896_v60  ;;  %v349_v5 = vadd.f32 %v2254_v10, %v284_v62  ;;  %v1524_v6 = vand.u32 2147483647, %v348_v63 }
  0x80   : > { %v571_v3 = vmin.f32 %v507_v59, 255.0  ;;  %v1906_v8 = vor.u32 %v1905_v53, %v1904_v61  ;;  %v1526_v9 = vcvt.f32.s32 %v348_v63  ;;  %v1529_v11 = vand.u32 2147483648, %v348_v63 }
  0x81   : > { %v364_v12 = vadd.f32 %v2254_v10, %v299_v1  ;;  %v1899_v14 = vsel %vm2550_vm2, %v1898_v4, %v394_v28  ;;  %vm2571_vm4 = vcmp.lt.f32.partialorder %v1524_v6, 8388608.0  ;;  %v1532_v16 = vand.u32 2147483647, %v349_v5 }
  0x82   : > { %v615_v13 = vpack.c.bf16 %v571_v3, %v570_v0  ;;  %v1907_v17 = vsel %vm2559_vm3, %v1906_v8, %v395_v39  ;;  %v522_v18 = vmax.f32 %v1899_v14, 0.0  ;;  %v1527_v19 = vcvt.s32.f32 %v1526_v9  ;;  %v251_v39 = vld [vmem:[%s2248_s9 + $0x148] sm:$0xff] }
  0x83   : > { %v1534_v21 = vcvt.f32.s32 %v349_v5  ;;  %v523_v20 = vmax.f32 %v1907_v17, 0.0  ;;  %vm2578_vm6 = vcmp.lt.f32.partialorder %v1532_v16, 8388608.0  ;;  %v1537_v23 = vand.u32 2147483648, %v349_v5 }
  0x84   : > { %1423 = vmatmul.msk.bf16.gmra.mxu2 %vm635_vm5, %v615_v13  ;;  %v365_v24 = vadd.f32 %v2254_v10, %v300_v2  ;;  %v586_v25 = vmin.f32 %v522_v18, 255.0  ;;  %v1528_v31 = vand.u32 2147483647, %v1527_v19  ;;  %v1652_v33 = vand.u32 2147483647, %v364_v12 }
  0x85   : > { %v1535_v26 = vcvt.s32.f32 %v1534_v21  ;;  %v587_v34 = vmin.f32 %v523_v20, 255.0  ;;  %v1654_v27 = vcvt.f32.s32 %v364_v12  ;;  %v1657_v35 = vand.u32 2147483648, %v364_v12 }
  0x86   : > { %v1660_v32 = vand.u32 2147483647, %v365_v24  ;;  %v1530_v36 = vor.u32 %v1529_v11, %v1528_v31  ;;  %vm2584_vm7 = vcmp.lt.f32.partialorder %v1652_v33, 8388608.0  ;;  %v1662_v38 = vcvt.f32.s32 %v365_v24  ;;  %v220_v11 = vld [vmem:[%s2248_s9 + $0x50] sm:$0xff] }
  0x87   : > { %v1536_v28 = vand.u32 2147483647, %v1535_v26  ;;  %v623_v41 = vpack.c.bf16 %v587_v34, %v586_v25  ;;  %v1655_v42 = vcvt.s32.f32 %v1654_v27  ;;  %v1665_v44 = vand.u32 2147483648, %v365_v24 }
  0x88   : > { %vm2590_vm8 = vcmp.lt.f32.partialorder %v1660_v32, 8388608.0  ;;  %v1531_v47 = vsel %vm2571_vm4, %v1530_v36, %v348_v63  ;;  %v1663_v49 = vcvt.s32.f32 %v1662_v38  ;;  %v315_v45 = vmul.f32 %v2250_v7, %v250_v30  ;;  %v221_v32 = vld [vmem:[%s2248_s9 + $0x58] sm:$0xff]  ;;  %v236_v38 = vld [vmem:[%s2248_s9 + $0xd0] sm:$0xff] }
  0x89   : > { %v1538_v48 = vor.u32 %v1537_v23, %v1536_v28  ;;  %1431 = vmatmul.msk.bf16.gmra.mxu3 %vm635_vm5, %v623_v41  ;;  %v476_v50 = vmax.f32 %v1531_v47, 0.0  ;;  %v1656_v51 = vand.u32 2147483647, %v1655_v42  ;;  %v316_v52 = vmul.f32 %v2250_v7, %v251_v39  ;;  %v237_v39 = vld [vmem:[%s2248_s9 + $0xd8] sm:$0xff] }
  0x8a   : > { %v331_v53 = vmul.f32 %v2250_v7, %v266_v40  ;;  %v1664_v54 = vand.u32 2147483647, %v1663_v49  ;;  %v380_v55 = vadd.f32 %v2254_v10, %v315_v45  ;;  %v332_v56 = vmul.f32 %v2250_v7, %v267_v46 }
  0x8b   : > { %v1539_v29 = vsel %vm2578_vm6, %v1538_v48, %v349_v5  ;;  %v540_v58 = vmin.f32 %v476_v50, 255.0  ;;  %v1658_v59 = vor.u32 %v1657_v35, %v1656_v51  ;;  %v381_v60 = vadd.f32 %v2254_v10, %v316_v52 }
  0x8c   : > { %v477_v57 = vmax.f32 %v1539_v29, 0.0  ;;  %v1666_v62 = vor.u32 %v1665_v44, %v1664_v54  ;;  %v1780_v63 = vand.u32 2147483647, %v380_v55  ;;  %v1782_v0 = vcvt.f32.s32 %v380_v55 }
  0x8d   : > { %v1785_v61 = vand.u32 2147483648, %v380_v55  ;;  %v1659_v2 = vsel %vm2584_vm7, %v1658_v59, %v364_v12  ;;  %v1788_v3 = vand.u32 2147483647, %v381_v60  ;;  %v1790_v4 = vcvt.f32.s32 %v381_v60 }
  0x8e   : > { %v541_v1 = vmin.f32 %v477_v57, 255.0  ;;  %v1667_v5 = vsel %vm2590_vm8, %v1666_v62, %v365_v24  ;;  %v492_v6 = vmax.f32 %v1659_v2, 0.0  ;;  %vm2610_vm9 = vcmp.lt.f32.partialorder %v1780_v63, 8388608.0 }
  0x8f   : > { %v1783_v9 = vcvt.s32.f32 %v1782_v0  ;;  %v493_v14 = vmax.f32 %v1667_v5, 0.0  ;;  %vm2615_vm10 = vcmp.lt.f32.partialorder %v1788_v3, 8388608.0  ;;  %v1791_v16 = vcvt.s32.f32 %v1790_v4 }
  0x90   : > { %v600_v13 = vpack.c.bf16 %v541_v1, %v540_v58  ;;  %v556_v12 = vmin.f32 %v492_v6, 255.0  ;;  %v1793_v18 = vand.u32 2147483648, %v381_v60  ;;  %v396_v19 = vadd.f32 %v2254_v10, %v331_v53 }
  0x91   : > { %v1784_v17 = vand.u32 2147483647, %v1783_v9  ;;  %v557_v21 = vmin.f32 %v493_v14, 255.0  ;;  %v1792_v20 = vand.u32 2147483647, %v1791_v16  ;;  %v397_v22 = vadd.f32 %v2254_v10, %v332_v56 }
  0x92   : > { %1408 = vmatmul.msk.bf16.gmra.mxu0 %vm635_vm5, %v600_v13  ;;  %v285_v23 = vmul.f32 %v2250_v7, %v220_v11  ;;  %v1908_v25 = vand.u32 2147483647, %v396_v19  ;;  %v1910_v31 = vcvt.f32.s32 %v396_v19  ;;  %v1913_v26 = vand.u32 2147483648, %v396_v19 }
  0x93   : > { %v1786_v24 = vor.u32 %v1785_v61, %v1784_v17  ;;  %v608_v33 = vpack.c.bf16 %v557_v21, %v556_v12  ;;  %v1794_v34 = vor.u32 %v1793_v18, %v1792_v20  ;;  %v1916_v27 = vand.u32 2147483647, %v397_v22  ;;  %v252_v17 = vld [vmem:[%s2248_s9 + $0x150] sm:$0xff] }
  0x94   : > { %v1918_v35 = vcvt.f32.s32 %v397_v22  ;;  %vm2626_vm11 = vcmp.lt.f32.partialorder %v1908_v25, 8388608.0  ;;  %v1911_v28 = vcvt.s32.f32 %v1910_v31  ;;  %v1921_v37 = vand.u32 2147483648, %v397_v22 }
  0x95   : > { %v1787_v30 = vsel %vm2610_vm9, %v1786_v24, %v380_v55  ;;  %1416 = vmatmul.msk.bf16.gmra.mxu1 %vm635_vm5, %v608_v33  ;;  %v1795_v40 = vsel %vm2615_vm10, %v1794_v34, %v381_v60  ;;  %vm2635_vm12 = vcmp.lt.f32.partialorder %v1916_v27, 8388608.0  ;;  %v286_v47 = vmul.f32 %v2250_v7, %v221_v32  ;;  %v269_v33 = vld [vmem:[%s2248_s9 + $0x1d8] sm:$0xff] }
  0x96   : > { %v508_v41 = vmax.f32 %v1787_v30, 0.0  ;;  %v1919_v43 = vcvt.s32.f32 %v1918_v35  ;;  %v509_v44 = vmax.f32 %v1795_v40, 0.0  ;;  %v1912_v46 = vand.u32 2147483647, %v1911_v28 }
  0x97   : > { %v350_v48 = vadd.f32 %v2254_v10, %v285_v23  ;;  %v301_v50 = vmul.f32 %v2250_v7, %v236_v38  ;;  %v302_v51 = vmul.f32 %v2250_v7, %v237_v39  ;;  %v351_v29 = vadd.f32 %v2254_v10, %v286_v47  ;;  %v268_v23 = vld [vmem:[%s2248_s9 + $0x1d0] sm:$0xff] }
  0x98   : > { %v572_v49 = vmin.f32 %v508_v41, 255.0  ;;  %v1920_v45 = vand.u32 2147483647, %v1919_v43  ;;  %v573_v52 = vmin.f32 %v509_v44, 255.0  ;;  %v1914_v53 = vor.u32 %v1913_v26, %v1912_v46 }
  0x99   : > { %v1540_v54 = vand.u32 2147483647, %v350_v48  ;;  %v1542_v56 = vcvt.f32.s32 %v350_v48  ;;  %v1545_v57 = vand.u32 2147483648, %v350_v48  ;;  %v366_v58 = vadd.f32 %v2254_v10, %v301_v50 }
  0x9a   : > { %v1922_v55 = vor.u32 %v1921_v37, %v1920_v45  ;;  %v616_v59 = vpack.c.bf16 %v573_v52, %v572_v49  ;;  %v1915_v60 = vsel %vm2626_vm11, %v1914_v53, %v396_v19  ;;  %v1548_v63 = vand.u32 2147483647, %v351_v29 }
  0x9b   : > { %vm2647_vm13 = vcmp.lt.f32.partialorder %v1540_v54, 8388608.0  ;;  %v524_v61 = vmax.f32 %v1915_v60, 0.0  ;;  %v1543_v1 = vcvt.s32.f32 %v1542_v56  ;;  %v1550_v2 = vcvt.f32.s32 %v351_v29 }
  0x9c   : > { %v1923_v0 = vsel %vm2635_vm12, %v1922_v55, %v397_v22  ;;  %1424 = vmatmul.msk.bf16.gmra.mxu2 %vm635_vm5, %v616_v59  ;;  %vm2654_vm14 = vcmp.lt.f32.partialorder %v1548_v63, 8388608.0  ;;  %v1553_v5 = vand.u32 2147483648, %v351_v29  ;;  %v367_v6 = vadd.f32 %v2254_v10, %v302_v51  ;;  %v253_v22 = vld [vmem:[%s2248_s9 + $0x158] sm:$0xff] }
  0x9d   : > { %v525_v3 = vmax.f32 %v1923_v0, 0.0  ;;  %v588_v8 = vmin.f32 %v524_v61, 255.0  ;;  %v1544_v9 = vand.u32 2147483647, %v1543_v1  ;;  %v1551_v11 = vcvt.s32.f32 %v1550_v2 }
  0x9e   : > { %v1668_v13 = vand.u32 2147483647, %v366_v58  ;;  %v1670_v15 = vcvt.f32.s32 %v366_v58  ;;  %v1673_v16 = vand.u32 2147483648, %v366_v58  ;;  %v1676_v12 = vand.u32 2147483647, %v367_v6 }
  0x9f   : > { %v589_v14 = vmin.f32 %v525_v3, 255.0  ;;  %v1546_v18 = vor.u32 %v1545_v57, %v1544_v9  ;;  %v1552_v19 = vand.u32 2147483647, %v1551_v11  ;;  %v1678_v20 = vcvt.f32.s32 %v367_v6  ;;  %v222_v57 = vld [vmem:[%s2248_s9 + $0x60] sm:$0xff] }
  0xa0   : > { %vm2660_vm15 = vcmp.lt.f32.partialorder %v1668_v13, 8388608.0  ;;  %v1671_v25 = vcvt.s32.f32 %v1670_v15  ;;  %vm2666_vm0 = vcmp.lt.f32.partialorder %v1676_v12, 8388608.0  ;;  %v1681_v26 = vand.u32 2147483648, %v367_v6  ;;  %v223_v12 = vld [vmem:[%s2248_s9 + $0x68] sm:$0xff] }
  0xa1   : > { %v624_v24 = vpack.c.bf16 %v589_v14, %v588_v8  ;;  %v1547_v34 = vsel %vm2647_vm13, %v1546_v18, %v350_v48  ;;  %v1554_v27 = vor.u32 %v1553_v5, %v1552_v19  ;;  %v1679_v35 = vcvt.s32.f32 %v1678_v20  ;;  %v238_v20 = vld [vmem:[%s2248_s9 + $0xe0] sm:$0xff] }
  0xa2   : > { %v317_v32 = vmul.f32 %v2250_v7, %v252_v17  ;;  %v478_v30 = vmax.f32 %v1547_v34, 0.0  ;;  %v1672_v36 = vand.u32 2147483647, %v1671_v25  ;;  %v318_v28 = vmul.f32 %v2250_v7, %v253_v22  ;;  %v239_v22 = vld [vmem:[%s2248_s9 + $0xe8] sm:$0xff] }
  0xa3   : > { %1432 = vmatmul.msk.bf16.gmra.mxu3 %vm635_vm5, %v624_v24  ;;  %v333_v37 = vmul.f32 %v2250_v7, %v268_v23  ;;  %v1555_v38 = vsel %vm2654_vm14, %v1554_v27, %v351_v29  ;;  %v1680_v39 = vand.u32 2147483647, %v1679_v35  ;;  %v334_v41 = vmul.f32 %v2250_v7, %v269_v33 }
  0xa4   : > { %v382_v40 = vadd.f32 %v2254_v10, %v317_v32  ;;  %v479_v42 = vmax.f32 %v1555_v38, 0.0  ;;  %v542_v43 = vmin.f32 %v478_v30, 255.0  ;;  %v1674_v44 = vor.u32 %v1673_v16, %v1672_v36 }
  0xa5   : > { %v383_v46 = vadd.f32 %v2254_v10, %v318_v28  ;;  %v1682_v47 = vor.u32 %v1681_v26, %v1680_v39  ;;  %v398_v1 = vadd.f32 %v2254_v10, %v333_v37  ;;  %v399_v4 = vadd.f32 %v2254_v10, %v334_v41 }
  0xa6   : > { %v1796_v48 = vand.u32 2147483647, %v382_v40  ;;  %v1798_v49 = vcvt.f32.s32 %v382_v40  ;;  %v1801_v45 = vand.u32 2147483648, %v382_v40  ;;  %v543_v50 = vmin.f32 %v479_v42, 255.0 }
  0xa7   : > { %v1675_v51 = vsel %vm2660_vm15, %v1674_v44, %v366_v58  ;;  %v1804_v52 = vand.u32 2147483647, %v383_v46  ;;  %v1806_v53 = vcvt.f32.s32 %v383_v46  ;;  %v1683_v29 = vsel %vm2666_vm0, %v1682_v47, %v367_v6 }
  0xa8   : > { %v494_v54 = vmax.f32 %v1675_v51, 0.0  ;;  %vm2686_vm1 = vcmp.lt.f32.partialorder %v1796_v48, 8388608.0  ;;  %v1799_v56 = vcvt.s32.f32 %v1798_v49  ;;  %v601_v59 = vpack.c.bf16 %v543_v50, %v542_v43 }
  0xa9   : > { %v495_v60 = vmax.f32 %v1683_v29, 0.0  ;;  %vm2691_vm2 = vcmp.lt.f32.partialorder %v1804_v52, 8388608.0  ;;  %v1807_v63 = vcvt.s32.f32 %v1806_v53  ;;  %v1809_v61 = vand.u32 2147483648, %v383_v46 }
  0xaa   : > { %v558_v58 = vmin.f32 %v494_v54, 255.0  ;;  %v1800_v0 = vand.u32 2147483647, %v1799_v56  ;;  %1409 = vmatmul.msk.bf16.gmra.mxu0 %vm635_vm5, %v601_v59  ;;  %v287_v5 = vmul.f32 %v2250_v7, %v222_v57  ;;  %v1924_v8 = vand.u32 2147483647, %v398_v1 }
  0xab   : > { %v559_v2 = vmin.f32 %v495_v60, 255.0  ;;  %v1808_v3 = vand.u32 2147483647, %v1807_v63  ;;  %v1926_v9 = vcvt.f32.s32 %v398_v1  ;;  %v1929_v11 = vand.u32 2147483648, %v398_v1 }
  0xac   : > { %v1802_v6 = vor.u32 %v1801_v45, %v1800_v0  ;;  %v1932_v15 = vand.u32 2147483647, %v399_v4  ;;  %v1934_v16 = vcvt.f32.s32 %v399_v4  ;;  %vm2702_vm3 = vcmp.lt.f32.partialorder %v1924_v8, 8388608.0  ;;  %v254_v0 = vld [vmem:[%s2248_s9 + $0x160] sm:$0xff] }
  0xad   : > { %v609_v13 = vpack.c.bf16 %v559_v2, %v558_v58  ;;  %v1810_v14 = vor.u32 %v1809_v61, %v1808_v3  ;;  %v1927_v19 = vcvt.s32.f32 %v1926_v9  ;;  %v1937_v21 = vand.u32 2147483648, %v399_v4 }
  0xae   : > { %v1803_v17 = vsel %vm2686_vm1, %v1802_v6, %v382_v40  ;;  %vm2711_vm4 = vcmp.lt.f32.partialorder %v1932_v15, 8388608.0  ;;  %v1935_v31 = vcvt.s32.f32 %v1934_v16  ;;  %v288_v34 = vmul.f32 %v2250_v7, %v223_v12 }
  0xaf   : > { %1417 = vmatmul.msk.bf16.gmra.mxu1 %vm635_vm5, %v609_v13  ;;  %v1811_v23 = vsel %vm2691_vm2, %v1810_v14, %v383_v46  ;;  %v510_v24 = vmax.f32 %v1803_v17, 0.0  ;;  %v1928_v33 = vand.u32 2147483647, %v1927_v19  ;;  %v352_v27 = vadd.f32 %v2254_v10, %v287_v5  ;;  %v270_v5 = vld [vmem:[%s2248_s9 + $0x1e0] sm:$0xff]  ;;  %v271_v13 = vld [vmem:[%s2248_s9 + $0x1e8] sm:$0xff] }
  0xb0   : > { %v511_v26 = vmax.f32 %v1811_v23, 0.0  ;;  %v1936_v32 = vand.u32 2147483647, %v1935_v31  ;;  %v303_v30 = vmul.f32 %v2250_v7, %v238_v20  ;;  %v304_v36 = vmul.f32 %v2250_v7, %v239_v22 }
  0xb1   : > { %v574_v35 = vmin.f32 %v510_v24, 255.0  ;;  %v1930_v37 = vor.u32 %v1929_v11, %v1928_v33  ;;  %v353_v38 = vadd.f32 %v2254_v10, %v288_v34  ;;  %v1556_v39 = vand.u32 2147483647, %v352_v27 }
  0xb2   : > { %v575_v28 = vmin.f32 %v511_v26, 255.0  ;;  %v1938_v40 = vor.u32 %v1937_v21, %v1936_v32  ;;  %v1558_v41 = vcvt.f32.s32 %v352_v27  ;;  %v1561_v42 = vand.u32 2147483648, %v352_v27 }
  0xb3   : > { %v368_v43 = vadd.f32 %v2254_v10, %v303_v30  ;;  %v1931_v46 = vsel %vm2702_vm3, %v1930_v37, %v398_v1  ;;  %vm2723_vm6 = vcmp.lt.f32.partialorder %v1556_v39, 8388608.0  ;;  %v1564_v48 = vand.u32 2147483647, %v353_v38 }
  0xb4   : > { %v617_v44 = vpack.c.bf16 %v575_v28, %v574_v35  ;;  %v1939_v49 = vsel %vm2711_vm4, %v1938_v40, %v399_v4  ;;  %v526_v45 = vmax.f32 %v1931_v46, 0.0  ;;  %v1559_v50 = vcvt.s32.f32 %v1558_v41  ;;  %v255_v4 = vld [vmem:[%s2248_s9 + $0x168] sm:$0xff] }
  0xb5   : > { %v1566_v51 = vcvt.f32.s32 %v353_v38  ;;  %v527_v52 = vmax.f32 %v1939_v49, 0.0  ;;  %vm2730_vm7 = vcmp.lt.f32.partialorder %v1564_v48, 8388608.0  ;;  %v1569_v29 = vand.u32 2147483648, %v353_v38 }
  0xb6   : > { %1425 = vmatmul.msk.bf16.gmra.mxu2 %vm635_vm5, %v617_v44  ;;  %v369_v54 = vadd.f32 %v2254_v10, %v304_v36  ;;  %v590_v55 = vmin.f32 %v526_v45, 255.0  ;;  %v1560_v56 = vand.u32 2147483647, %v1559_v50  ;;  %v1684_v59 = vand.u32 2147483647, %v368_v43 }
  0xb7   : > { %v1567_v57 = vcvt.s32.f32 %v1566_v51  ;;  %v591_v60 = vmin.f32 %v527_v52, 255.0  ;;  %v1686_v62 = vcvt.f32.s32 %v368_v43  ;;  %v1689_v63 = vand.u32 2147483648, %v368_v43 }
  0xb8   : > { %v1692_v58 = vand.u32 2147483647, %v369_v54  ;;  %v1562_v61 = vor.u32 %v1561_v42, %v1560_v56  ;;  %vm2736_vm8 = vcmp.lt.f32.partialorder %v1684_v59, 8388608.0  ;;  %v1694_v3 = vcvt.f32.s32 %v369_v54  ;;  %v224_v42 = vld [vmem:[%s2248_s9 + $0x70] sm:$0xff] }
  0xb9   : > { %v1568_v1 = vand.u32 2147483647, %v1567_v57  ;;  %v625_v6 = vpack.c.bf16 %v591_v60, %v590_v55  ;;  %v1687_v8 = vcvt.s32.f32 %v1686_v62  ;;  %v1697_v11 = vand.u32 2147483648, %v369_v54 }
  0xba   : > { %vm2742_vm9 = vcmp.lt.f32.partialorder %v1692_v58, 8388608.0  ;;  %v1563_v14 = vsel %vm2723_vm6, %v1562_v61, %v352_v27  ;;  %v1695_v16 = vcvt.s32.f32 %v1694_v3  ;;  %v319_v12 = vmul.f32 %v2250_v7, %v254_v0  ;;  %v225_v58 = vld [vmem:[%s2248_s9 + $0x78] sm:$0xff]  ;;  %v240_v3 = vld [vmem:[%s2248_s9 + $0xf0] sm:$0xff] }
  0xbb   : > { %v1570_v15 = vor.u32 %v1569_v29, %v1568_v1  ;;  %1433 = vmatmul.msk.bf16.gmra.mxu3 %vm635_vm5, %v625_v6  ;;  %v480_v17 = vmax.f32 %v1563_v14, 0.0  ;;  %v1688_v18 = vand.u32 2147483647, %v1687_v8  ;;  %v320_v19 = vmul.f32 %v2250_v7, %v255_v4  ;;  %v241_v4 = vld [vmem:[%s2248_s9 + $0xf8] sm:$0xff] }
  0xbc   : > { %v335_v21 = vmul.f32 %v2250_v7, %v270_v5  ;;  %v1696_v22 = vand.u32 2147483647, %v1695_v16  ;;  %v384_v23 = vadd.f32 %v2254_v10, %v319_v12  ;;  %v336_v24 = vmul.f32 %v2250_v7, %v271_v13 }
  0xbd   : > { %v1571_v20 = vsel %vm2730_vm7, %v1570_v15, %v353_v38  ;;  %v544_v31 = vmin.f32 %v480_v17, 255.0  ;;  %v1690_v26 = vor.u32 %v1689_v63, %v1688_v18  ;;  %v385_v33 = vadd.f32 %v2254_v10, %v320_v19 }
  0xbe   : > { %v481_v25 = vmax.f32 %v1571_v20, 0.0  ;;  %v1698_v34 = vor.u32 %v1697_v11, %v1696_v22  ;;  %v1812_v27 = vand.u32 2147483647, %v384_v23  ;;  %v1814_v35 = vcvt.f32.s32 %v384_v23 }
  0xbf   : > { %v1817_v32 = vand.u32 2147483648, %v384_v23  ;;  %v1691_v36 = vsel %vm2736_vm8, %v1690_v26, %v368_v43  ;;  %v1820_v28 = vand.u32 2147483647, %v385_v33  ;;  %v1822_v37 = vcvt.f32.s32 %v385_v33 }
  0xc0   : > { %v545_v30 = vmin.f32 %v481_v25, 255.0  ;;  %v1699_v38 = vsel %vm2742_vm9, %v1698_v34, %v369_v54  ;;  %v496_v39 = vmax.f32 %v1691_v36, 0.0  ;;  %vm2762_vm10 = vcmp.lt.f32.partialorder %v1812_v27, 8388608.0  ;;  %v2803_v36 = vpop.f32.mrf.mxu0 }
  0xc1   : > { %v1815_v41 = vcvt.s32.f32 %v1814_v35  ;;  %v497_v46 = vmax.f32 %v1699_v38, 0.0  ;;  %vm2767_vm11 = vcmp.lt.f32.partialorder %v1820_v28, 8388608.0  ;;  %v1823_v48 = vcvt.s32.f32 %v1822_v37  ;;  %v2805_v28 = vpop.f32.mrf.mxu1 }
  0xc2   : > { %v602_v44 = vpack.c.bf16 %v545_v30, %v544_v31  ;;  %v560_v43 = vmin.f32 %v496_v39, 255.0  ;;  %v1825_v45 = vand.u32 2147483648, %v385_v33  ;;  %v400_v50 = vadd.f32 %v2254_v10, %v335_v21 }
  0xc3   : > { %v1816_v49 = vand.u32 2147483647, %v1815_v41  ;;  %v561_v51 = vmin.f32 %v497_v46, 255.0  ;;  %v1824_v52 = vand.u32 2147483647, %v1823_v48  ;;  %v401_v53 = vadd.f32 %v2254_v10, %v336_v24  ;;  %v2813_v41 = vpop.f32.mrf.mxu2 }
  0xc4   : > { %1410 = vmatmul.msk.bf16.gmra.mxu0 %vm635_vm5, %v602_v44  ;;  %v289_v29 = vmul.f32 %v2250_v7, %v224_v42  ;;  %v1940_v55 = vand.u32 2147483647, %v400_v50  ;;  %v1942_v56 = vcvt.f32.s32 %v400_v50  ;;  %v1945_v57 = vand.u32 2147483648, %v400_v50  ;;  %v2815_v42 = vpop.f32.mrf.mxu3 }
  0xc5   : > { %v1818_v54 = vor.u32 %v1817_v32, %v1816_v49  ;;  %v610_v59 = vpack.c.bf16 %v561_v51, %v560_v43  ;;  %v1826_v60 = vor.u32 %v1825_v45, %v1824_v52  ;;  %v1948_v62 = vand.u32 2147483647, %v401_v53  ;;  %v256_v51 = vld [vmem:[%s2248_s9 + $0x170] sm:$0xff] }
  0xc6   : > { %v1950_v63 = vcvt.f32.s32 %v401_v53  ;;  %vm2778_vm12 = vcmp.lt.f32.partialorder %v1940_v55, 8388608.0  ;;  %v1943_v1 = vcvt.s32.f32 %v1942_v56  ;;  %v1953_v2 = vand.u32 2147483648, %v401_v53  ;;  %v257_v55 = vld [vmem:[%s2248_s9 + $0x178] sm:$0xff] }
  0xc7   : > { %v1819_v0 = vsel %vm2762_vm10, %v1818_v54, %v384_v23  ;;  %1418 = vmatmul.msk.bf16.gmra.mxu1 %vm635_vm5, %v610_v59  ;;  %v1827_v5 = vsel %vm2767_vm11, %v1826_v60, %v385_v33  ;;  %vm2787_vm13 = vcmp.lt.f32.partialorder %v1948_v62, 8388608.0  ;;  %v290_v14 = vmul.f32 %v2250_v7, %v225_v58  ;;  %v272_v62 = vld [vmem:[%s2248_s9 + $0x1f0] sm:$0xff] }
  0xc8   : > { %v512_v6 = vmax.f32 %v1819_v0, 0.0  ;;  %v1951_v9 = vcvt.s32.f32 %v1950_v63  ;;  %v513_v11 = vmax.f32 %v1827_v5, 0.0  ;;  %v1944_v13 = vand.u32 2147483647, %v1943_v1  ;;  %v273_v5 = vld [vmem:[%s2248_s9 + $0x1f8] sm:$0xff] }
  0xc9   : > { %v354_v15 = vadd.f32 %v2254_v10, %v289_v29  ;;  %v305_v17 = vmul.f32 %v2250_v7, %v240_v3  ;;  %v306_v18 = vmul.f32 %v2250_v7, %v241_v4  ;;  %v355_v20 = vadd.f32 %v2254_v10, %v290_v14  ;;  %v2849_v14 = vpop.f32.mrf.mxu1 }
  0xca   : > { %v576_v16 = vmin.f32 %v512_v6, 255.0  ;;  %v1952_v12 = vand.u32 2147483647, %v1951_v9  ;;  %v577_v19 = vmin.f32 %v513_v11, 255.0  ;;  %v1946_v21 = vor.u32 %v1945_v57, %v1944_v13  ;;  %v2847_v13 = vpop.f32.mrf.mxu0 }
  0xcb   : > { %v1572_v22 = vand.u32 2147483647, %v354_v15  ;;  %v1574_v24 = vcvt.f32.s32 %v354_v15  ;;  %v1577_v25 = vand.u32 2147483648, %v354_v15  ;;  %v1580_v33 = vand.u32 2147483647, %v355_v20 }
  0xcc   : > { %v1954_v23 = vor.u32 %v1953_v2, %v1952_v12  ;;  %v618_v31 = vpack.c.bf16 %v577_v19, %v576_v16  ;;  %v1947_v26 = vsel %vm2778_vm12, %v1946_v21, %v400_v50  ;;  %v2799_v34 = vadd.f32 %v2254_v10, %v305_v17  ;;  %v2854_v19 = vpop.f32.mrf.mxu3 }
  0xcd   : > { %v528_v35 = vmax.f32 %v1947_v26, 0.0  ;;  %v1575_v32 = vcvt.s32.f32 %v1574_v24  ;;  %v1582_v30 = vcvt.f32.s32 %v355_v20  ;;  %vm2808_vm14 = vcmp.lt.f32.partialorder %v1572_v22, 8388608.0 }
  0xce   : > { %v1955_v27 = vsel %vm2787_vm13, %v1954_v23, %v401_v53  ;;  %1426 = vmatmul.msk.bf16.gmra.mxu2 %vm635_vm5, %v618_v31  ;;  %v1585_v39 = vand.u32 2147483648, %v355_v20  ;;  %v371_v40 = vadd.f32 %v2254_v10, %v306_v18  ;;  %v1700_v48 = vand.u32 2147483647, %v2799_v34  ;;  %v2852_v18 = vpop.f32.mrf.mxu2 }
  0xcf   : > { %v529_v37 = vmax.f32 %v1955_v27, 0.0  ;;  %v592_v44 = vmin.f32 %v528_v35, 255.0  ;;  %v1576_v46 = vand.u32 2147483647, %v1575_v32  ;;  %v1583_v47 = vcvt.s32.f32 %v1582_v30 }
  0xd0   : > { %vm2818_vm15 = vcmp.lt.f32.partialorder %v1580_v33, 8388608.0  ;;  %v1702_v45 = vcvt.f32.s32 %v2799_v34  ;;  %v1708_v50 = vand.u32 2147483647, %v371_v40  ;;  %v1705_v29 = vand.u32 2147483648, %v2799_v34 }
  0xd1   : > { %v593_v43 = vmin.f32 %v529_v37, 255.0  ;;  %v1578_v52 = vor.u32 %v1577_v25, %v1576_v46  ;;  %v1584_v53 = vand.u32 2147483647, %v1583_v47  ;;  %v1710_v54 = vcvt.f32.s32 %v371_v40 }
  0xd2   : > { %vm2826_vm0 = vcmp.lt.f32.partialorder %v1700_v48, 8388608.0  ;;  %v1703_v59 = vcvt.s32.f32 %v1702_v45  ;;  %v1713_v60 = vand.u32 2147483648, %v371_v40  ;;  %v321_v61 = vmul.f32 %v2250_v7, %v256_v51 }
  0xd3   : > { %v626_v56 = vpack.c.bf16 %v593_v43, %v592_v44  ;;  %v1579_v63 = vsel %vm2808_vm14, %v1578_v52, %v354_v15  ;;  %v1586_v58 = vor.u32 %v1585_v39, %v1584_v53  ;;  %v1711_v0 = vcvt.s32.f32 %v1710_v54  ;;  %v753_v52 = vpop.f32.mrf.mxu0  ;;  %v793_v53 = vpop.f32.mrf.mxu1 }
  0xd4   : > { %v482_v1 = vmax.f32 %v1579_v63, 0.0  ;;  %v1704_v2 = vand.u32 2147483647, %v1703_v59  ;;  %vm2835_vm1 = vcmp.lt.f32.partialorder %v1708_v50, 8388608.0  ;;  %v322_v4 = vmul.f32 %v2250_v7, %v257_v55 }
  0xd5   : > { %1434 = vmatmul.msk.bf16.gmra.mxu3 %vm635_vm5, %v626_v56  ;;  %v1587_v6 = vsel %vm2818_vm15, %v1586_v58, %v355_v20  ;;  %v1712_v8 = vand.u32 2147483647, %v1711_v0  ;;  %v386_v9 = vadd.f32 %v2254_v10, %v321_v61  ;;  %v337_v11 = vmul.f32 %v2250_v7, %v272_v62 }
  0xd6   : > { %v483_v15 = vmax.f32 %v1587_v6, 0.0  ;;  %v546_v16 = vmin.f32 %v482_v1, 255.0  ;;  %v1706_v12 = vor.u32 %v1705_v29, %v1704_v2  ;;  %v387_v17 = vadd.f32 %v2254_v10, %v322_v4  ;;  %v833_v57 = vpop.f32.mrf.mxu2 }
  0xd7   : > { %v1714_v21 = vor.u32 %v1713_v60, %v1712_v8  ;;  %v1828_v20 = vand.u32 2147483647, %v386_v9  ;;  %v1830_v22 = vcvt.f32.s32 %v386_v9  ;;  %v338_v23 = vmul.f32 %v2250_v7, %v273_v5 }
  0xd8   : > { %v547_v24 = vmin.f32 %v483_v15, 255.0  ;;  %v1707_v25 = vsel %vm2826_vm0, %v1706_v12, %v2799_v34  ;;  %v1836_v31 = vand.u32 2147483647, %v387_v17  ;;  %v1838_v26 = vcvt.f32.s32 %v387_v17 }
  0xd9   : > { %v1715_v33 = vsel %vm2835_vm1, %v1714_v21, %v371_v40  ;;  %v498_v27 = vmax.f32 %v1707_v25, 0.0  ;;  %v1831_v35 = vcvt.s32.f32 %v1830_v22  ;;  %v1833_v32 = vand.u32 2147483648, %v386_v9 }
  0xda   : > { %v603_v30 = vpack.c.bf16 %v547_v24, %v546_v16  ;;  %v499_v37 = vmax.f32 %v1715_v33, 0.0  ;;  %vm2862_vm2 = vcmp.lt.f32.partialorder %v1828_v20, 8388608.0  ;;  %v1839_v7 = vcvt.s32.f32 %v1838_v26  ;;  %v873_v63 = vpop.f32.mrf.mxu3 }
  0xdb   : > { %v562_v39 = vmin.f32 %v498_v27, 255.0  ;;  %v1832_v44 = vand.u32 2147483647, %v1831_v35  ;;  %v1841_v34 = vand.u32 2147483648, %v387_v17  ;;  %v402_v46 = vadd.f32 %v2254_v10, %v337_v11  ;;  %v755_v20 = vpop.f32.mrf.mxu0  ;;  %v795_v22 = vpop.f32.mrf.mxu1 }
  0xdc   : > { %1411 = vmatmul.msk.bf16.gmra.mxu0 %vm635_vm5, %v603_v30  ;;  %v563_v40 = vmin.f32 %v499_v37, 255.0  ;;  %vm2869_vm3 = vcmp.lt.f32.partialorder %v1836_v31, 8388608.0  ;;  %v1840_v48 = vand.u32 2147483647, %v1839_v7  ;;  %v403_v43 = vadd.f32 %v2254_v10, %v338_v23 }
  0xdd   : > { %v1834_v49 = vor.u32 %v1833_v32, %v1832_v44  ;;  %v1956_v45 = vand.u32 2147483647, %v402_v46  ;;  %v1958_v50 = vcvt.f32.s32 %v402_v46  ;;  %v2875_v51 = vstv %s2845_s10 }
  0xde   : > { %v611_v29 = vpack.c.bf16 %v563_v40, %v562_v39  ;;  %v1842_v54 = vor.u32 %v1841_v34, %v1840_v48  ;;  %v1961_v55 = vand.u32 2147483648, %v402_v46  ;;  %v1966_v56 = vcvt.f32.s32 %v403_v43  ;;  %v835_v24 = vpop.f32.mrf.mxu2 }
  0xdf   : > { %v1835_v59 = vsel %vm2862_vm2, %v1834_v49, %v386_v9  ;;  %vm2879_vm4 = vcmp.lt.f32.partialorder %v1956_v45, 8388608.0  ;;  %v1959_v10 = vcvt.s32.f32 %v1958_v50  ;;  %v1964_v62 = vand.u32 2147483647, %v403_v43 }
  0xe0   : > { %1419 = vmatmul.msk.bf16.gmra.mxu1 %vm635_vm5, %v611_v29  ;;  %v1843_v58 = vsel %vm2869_vm3, %v1842_v54, %v387_v17  ;;  %v514_v0 = vmax.f32 %v1835_v59, 0.0  ;;  %v1967_v61 = vcvt.s32.f32 %v1966_v56  ;;  %v1969_v1 = vand.u32 2147483648, %v403_v43 }
  0xe1   : > { %v515_v2 = vmax.f32 %v1843_v58, 0.0  ;;  %v1960_v3 = vand.u32 2147483647, %v1959_v10  ;;  %v909_v4 = vmul.f32 %v2875_v51, %v2803_v36  ;;  %v925_v5 = vmul.f32 %v2875_v51, %v2805_v28 }
  0xe2   : > { %v578_v6 = vmin.f32 %v514_v0, 255.0  ;;  %v1968_v8 = vand.u32 2147483647, %v1967_v61  ;;  %v941_v9 = vmul.f32 %v2875_v51, %v2813_v41  ;;  %v957_v11 = vmul.f32 %v2875_v51, %v2815_v42 }
  0xe3   : > { %v579_v15 = vmin.f32 %v515_v2, 255.0  ;;  %v1962_v16 = vor.u32 %v1961_v55, %v1960_v3  ;;  %vm2894_vm6 = vcmp.lt.f32.partialorder %v1964_v62, 8388608.0  ;;  %973 = vst [vmem:[%s2898_s12] sm:$0xff] %v909_v4  ;;  %v910_v36 = vmul.f32 %v2875_v51, %v2847_v13  ;;  %v758_v7 = vpop.f32.mrf.mxu0  ;;  %v798_v39 = vpop.f32.mrf.mxu1 }
  0xe4   : > { %v1970_v28 = vor.u32 %v1969_v1, %v1968_v8  ;;  %989 = vst [vmem:[%s2898_s12 + $0x80] sm:$0xff] %v925_v5  ;;  %v926_v41 = vmul.f32 %v2875_v51, %v2849_v14  ;;  %v942_v21 = vmul.f32 %v2875_v51, %v2852_v18  ;;  %v958_v14 = vmul.f32 %v2875_v51, %v2854_v19  ;;  %v875_v19 = vpop.f32.mrf.mxu3 }
  0xe5   : > { %v619_v42 = vpack.c.bf16 %v579_v15, %v578_v6  ;;  %v1963_v17 = vsel %vm2879_vm4, %v1962_v16, %v402_v46  ;;  %1005 = vst [vmem:[%s2898_s12 + $0x100] sm:$0xff] %v941_v9  ;;  %v911_v18 = vmul.f32 %v2875_v51, %v753_v52  ;;  %v927_v26 = vmul.f32 %v2875_v51, %v793_v53 }
  0xe6   : > { %v1971_v13 = vsel %vm2894_vm6, %v1970_v28, %v403_v43  ;;  %v530_v23 = vmax.f32 %v1963_v17, 0.0  ;;  %1021 = vst [vmem:[%s2898_s12 + $0x180] sm:$0xff] %v957_v11  ;;  %v943_v27 = vmul.f32 %v2875_v51, %v833_v57  ;;  %v959_v35 = vmul.f32 %v2875_v51, %v873_v63 }
  0xe7   : > { %1427 = vmatmul.msk.bf16.gmra.mxu2 %vm635_vm5, %v619_v42  ;;  %v531_v25 = vmax.f32 %v1971_v13, 0.0  ;;  %974 = vst [vmem:[%s2898_s12 + $0x8] sm:$0xff] %v910_v36  ;;  %v912_v30 = vmul.f32 %v2875_v51, %v755_v20  ;;  %v928_v37 = vmul.f32 %v2875_v51, %v795_v22  ;;  %v944_v38 = vmul.f32 %v2875_v51, %v835_v24 }
  0xe8   : > { %v594_v31 = vmin.f32 %v530_v23, 255.0  ;;  %990 = vst [vmem:[%s2898_s12 + $0x88] sm:$0xff] %v926_v41  ;;  %v960_v44 = vmul.f32 %v2875_v51, %v875_v19  ;;  %v913_v46 = vmul.f32 %v2875_v51, %v758_v7  ;;  %v929_v40 = vmul.f32 %v2875_v51, %v798_v39 }
  0xe9   : > { %v595_v33 = vmin.f32 %v531_v25, 255.0  ;;  %1006 = vst [vmem:[%s2898_s12 + $0x108] sm:$0xff] %v942_v21 }
  0xea   : > { %1022 = vst [vmem:[%s2898_s12 + $0x188] sm:$0xff] %v958_v14 }
  0xeb   : > { %v627_v32 = vpack.c.bf16 %v595_v33, %v594_v31  ;;  %975 = vst [vmem:[%s2898_s12 + $0x10] sm:$0xff] %v911_v18  ;;  %v760_v49 = vpop.f32.mrf.mxu0  ;;  %v800_v45 = vpop.f32.mrf.mxu1 }
  0xec   : > { %991 = vst [vmem:[%s2898_s12 + $0x90] sm:$0xff] %v927_v26  ;;  %v914_v50 = vmul.f32 %v2875_v51, %v760_v49  ;;  %v930_v52 = vmul.f32 %v2875_v51, %v800_v45 }
  0xed   : > { %1435 = vmatmul.msk.bf16.gmra.mxu3 %vm635_vm5, %v627_v32  ;;  %1007 = vst [vmem:[%s2898_s12 + $0x110] sm:$0xff] %v943_v27  ;;  %v838_v34 = vpop.f32.mrf.mxu2 }
  0xee   : > { %1023 = vst [vmem:[%s2898_s12 + $0x190] sm:$0xff] %v959_v35  ;;  %v945_v47 = vmul.f32 %v2875_v51, %v838_v34 }
  0xef   : > { %976 = vst [vmem:[%s2898_s12 + $0x18] sm:$0xff] %v912_v30 }
  0xf0   : > { %992 = vst [vmem:[%s2898_s12 + $0x98] sm:$0xff] %v928_v37 }
  0xf1   : > { %1008 = vst [vmem:[%s2898_s12 + $0x118] sm:$0xff] %v944_v38 }
  0xf2   : > { %1024 = vst [vmem:[%s2898_s12 + $0x198] sm:$0xff] %v960_v44 }
  0xf3   : > { %977 = vst [vmem:[%s2898_s12 + $0x20] sm:$0xff] %v913_v46 }
  0xf4   : > { %v878_v48 = vpop.f32.mrf.mxu3  ;;  %993 = vst [vmem:[%s2898_s12 + $0xa0] sm:$0xff] %v929_v40 }
  0xf5   : > { %v961_v43 = vmul.f32 %v2875_v51, %v878_v48  ;;  %1009 = vst [vmem:[%s2898_s12 + $0x120] sm:$0xff] %v945_v47  ;;  %v840_v53 = vpop.f32.mrf.mxu2  ;;  %v763_v56 = vpop.f32.mrf.mxu0 }
  0xf6   : > { %v946_v29 = vmul.f32 %v2875_v51, %v840_v53  ;;  %978 = vst [vmem:[%s2898_s12 + $0x28] sm:$0xff] %v914_v50  ;;  %v915_v59 = vmul.f32 %v2875_v51, %v763_v56 }
  0xf7   : > { %1025 = vst [vmem:[%s2898_s12 + $0x1a0] sm:$0xff] %v961_v43 }
  0xf8   : > { %994 = vst [vmem:[%s2898_s12 + $0xa8] sm:$0xff] %v930_v52 }
  0xf9   : > { %1010 = vst [vmem:[%s2898_s12 + $0x128] sm:$0xff] %v946_v29 }
  0xfa   : > { %v803_v57 = vpop.f32.mrf.mxu1  ;;  %979 = vst [vmem:[%s2898_s12 + $0x30] sm:$0xff] %v915_v59 }
  0xfb   : > { %v931_v60 = vmul.f32 %v2875_v51, %v803_v57 }
  0xfc   : > { %v880_v54 = vpop.f32.mrf.mxu3 }
  0xfd   : > { %v962_v55 = vmul.f32 %v2875_v51, %v880_v54  ;;  %995 = vst [vmem:[%s2898_s12 + $0xb0] sm:$0xff] %v931_v60  ;;  %v765_v10 = vpop.f32.mrf.mxu0 }
  0xfe   : > { %v916_v58 = vmul.f32 %v2875_v51, %v765_v10 }
  0xff   : > { %1026 = vst [vmem:[%s2898_s12 + $0x1a8] sm:$0xff] %v962_v55 }
 0x100   : > { %980 = vst [vmem:[%s2898_s12 + $0x38] sm:$0xff] %v916_v58 }
 0x102   : > { %v805_v62 = vpop.f32.mrf.mxu1 }
 0x103   : > { %v932_v0 = vmul.f32 %v2875_v51, %v805_v62 }
 0x105   : > { %996 = vst [vmem:[%s2898_s12 + $0xb8] sm:$0xff] %v932_v0 }
 0x107   : > { %v843_v63 = vpop.f32.mrf.mxu2 }
 0x108   : > { %v947_v61 = vmul.f32 %v2875_v51, %v843_v63 }
 0x10a   : > { %1011 = vst [vmem:[%s2898_s12 + $0x130] sm:$0xff] %v947_v61 }
 0x10c   : > { %v883_v1 = vpop.f32.mrf.mxu3 }
 0x10d   : > { %v963_v2 = vmul.f32 %v2875_v51, %v883_v1 }
 0x10f   : > { %v845_v3 = vpop.f32.mrf.mxu2  ;;  %v768_v4 = vpop.f32.mrf.mxu0  ;;  %1027 = vst [vmem:[%s2898_s12 + $0x1b0] sm:$0xff] %v963_v2 }
 0x110   : > { %v948_v5 = vmul.f32 %v2875_v51, %v845_v3  ;;  %v917_v6 = vmul.f32 %v2875_v51, %v768_v4 }
 0x112   : > { %1012 = vst [vmem:[%s2898_s12 + $0x138] sm:$0xff] %v948_v5  ;;  %v808_v8 = vpop.f32.mrf.mxu1 }
 0x113   : > { %981 = vst [vmem:[%s2898_s12 + $0x40] sm:$0xff] %v917_v6  ;;  %v933_v9 = vmul.f32 %v2875_v51, %v808_v8 }
 0x114   : > { %v885_v11 = vpop.f32.mrf.mxu3 }
 0x115   : > { %v964_v15 = vmul.f32 %v2875_v51, %v885_v11  ;;  %997 = vst [vmem:[%s2898_s12 + $0xc0] sm:$0xff] %v933_v9 }
 0x117   : > { %v770_v16 = vpop.f32.mrf.mxu0  ;;  %1028 = vst [vmem:[%s2898_s12 + $0x1b8] sm:$0xff] %v964_v15 }
 0x118   : > { %v918_v12 = vmul.f32 %v2875_v51, %v770_v16 }
 0x11a   : > { %982 = vst [vmem:[%s2898_s12 + $0x48] sm:$0xff] %v918_v12  ;;  %v810_v36 = vpop.f32.mrf.mxu1 }
 0x11b   : > { %v934_v28 = vmul.f32 %v2875_v51, %v810_v36 }
 0x11d   : > { %998 = vst [vmem:[%s2898_s12 + $0xc8] sm:$0xff] %v934_v28 }
 0x11f   : > { %v848_v41 = vpop.f32.mrf.mxu2 }
 0x120   : > { %v949_v42 = vmul.f32 %v2875_v51, %v848_v41 }
 0x122   : > { %1013 = vst [vmem:[%s2898_s12 + $0x140] sm:$0xff] %v949_v42 }
 0x126   : > { %v888_v17 = vpop.f32.mrf.mxu3 }
 0x127   : > { %v965_v21 = vmul.f32 %v2875_v51, %v888_v17  ;;  %v850_v20 = vpop.f32.mrf.mxu2  ;;  %v773_v22 = vpop.f32.mrf.mxu0 }
 0x128   : > { %v950_v13 = vmul.f32 %v2875_v51, %v850_v20  ;;  %v919_v23 = vmul.f32 %v2875_v51, %v773_v22 }
 0x129   : > { %1029 = vst [vmem:[%s2898_s12 + $0x1c0] sm:$0xff] %v965_v21 }
 0x12a   : > { %1014 = vst [vmem:[%s2898_s12 + $0x148] sm:$0xff] %v950_v13 }
 0x12b   : > { %983 = vst [vmem:[%s2898_s12 + $0x50] sm:$0xff] %v919_v23 }
 0x12c   : > { %v813_v14 = vpop.f32.mrf.mxu1 }
 0x12d   : > { %v935_v24 = vmul.f32 %v2875_v51, %v813_v14 }
 0x12e   : > { %v890_v25 = vpop.f32.mrf.mxu3 }
 0x12f   : > { %v966_v18 = vmul.f32 %v2875_v51, %v890_v25  ;;  %999 = vst [vmem:[%s2898_s12 + $0xd0] sm:$0xff] %v935_v24  ;;  %v775_v31 = vpop.f32.mrf.mxu0 }
 0x130   : > { %v920_v26 = vmul.f32 %v2875_v51, %v775_v31 }
 0x131   : > { %1030 = vst [vmem:[%s2898_s12 + $0x1c8] sm:$0xff] %v966_v18 }
 0x132   : > { %984 = vst [vmem:[%s2898_s12 + $0x58] sm:$0xff] %v920_v26 }
 0x134   : > { %v815_v33 = vpop.f32.mrf.mxu1 }
 0x135   : > { %v936_v27 = vmul.f32 %v2875_v51, %v815_v33 }
 0x137   : > { %1000 = vst [vmem:[%s2898_s12 + $0xd8] sm:$0xff] %v936_v27 }
 0x139   : > { %v853_v19 = vpop.f32.mrf.mxu2 }
 0x13a   : > { %v951_v35 = vmul.f32 %v2875_v51, %v853_v19 }
 0x13c   : > { %1015 = vst [vmem:[%s2898_s12 + $0x150] sm:$0xff] %v951_v35 }
 0x13e   : > { %v893_v32 = vpop.f32.mrf.mxu3 }
 0x13f   : > { %v967_v30 = vmul.f32 %v2875_v51, %v893_v32 }
 0x141   : > { %v855_v37 = vpop.f32.mrf.mxu2  ;;  %v778_v38 = vpop.f32.mrf.mxu0  ;;  %1031 = vst [vmem:[%s2898_s12 + $0x1d0] sm:$0xff] %v967_v30 }
 0x142   : > { %v952_v7 = vmul.f32 %v2875_v51, %v855_v37  ;;  %v921_v39 = vmul.f32 %v2875_v51, %v778_v38 }
 0x144   : > { %1016 = vst [vmem:[%s2898_s12 + $0x158] sm:$0xff] %v952_v7  ;;  %v818_v44 = vpop.f32.mrf.mxu1 }
 0x145   : > { %985 = vst [vmem:[%s2898_s12 + $0x60] sm:$0xff] %v921_v39  ;;  %v937_v34 = vmul.f32 %v2875_v51, %v818_v44 }
 0x146   : > { %v895_v46 = vpop.f32.mrf.mxu3 }
 0x147   : > { %v968_v40 = vmul.f32 %v2875_v51, %v895_v46  ;;  %1001 = vst [vmem:[%s2898_s12 + $0xe0] sm:$0xff] %v937_v34 }
 0x149   : > { %v780_v47 = vpop.f32.mrf.mxu0  ;;  %1032 = vst [vmem:[%s2898_s12 + $0x1d8] sm:$0xff] %v968_v40 }
 0x14a   : > { %v922_v48 = vmul.f32 %v2875_v51, %v780_v47 }
 0x14c   : > { %986 = vst [vmem:[%s2898_s12 + $0x68] sm:$0xff] %v922_v48  ;;  %v820_v43 = vpop.f32.mrf.mxu1 }
 0x14d   : > { %v938_v49 = vmul.f32 %v2875_v51, %v820_v43 }
 0x14f   : > { %1002 = vst [vmem:[%s2898_s12 + $0xe8] sm:$0xff] %v938_v49 }
 0x151   : > { %v858_v45 = vpop.f32.mrf.mxu2 }
 0x152   : > { %v953_v50 = vmul.f32 %v2875_v51, %v858_v45 }
 0x154   : > { %1017 = vst [vmem:[%s2898_s12 + $0x160] sm:$0xff] %v953_v50 }
 0x158   : > { %v898_v52 = vpop.f32.mrf.mxu3 }
 0x159   : > { %v969_v53 = vmul.f32 %v2875_v51, %v898_v52  ;;  %v860_v29 = vpop.f32.mrf.mxu2  ;;  %v783_v54 = vpop.f32.mrf.mxu0 }
 0x15a   : > { %v954_v55 = vmul.f32 %v2875_v51, %v860_v29  ;;  %v923_v56 = vmul.f32 %v2875_v51, %v783_v54 }
 0x15b   : > { %1033 = vst [vmem:[%s2898_s12 + $0x1e0] sm:$0xff] %v969_v53 }
 0x15c   : > { %1018 = vst [vmem:[%s2898_s12 + $0x168] sm:$0xff] %v954_v55 }
 0x15d   : > { %987 = vst [vmem:[%s2898_s12 + $0x70] sm:$0xff] %v923_v56  ;;  %v823_v57 = vpop.f32.mrf.mxu1 }
 0x15e   : > { %v939_v59 = vmul.f32 %v2875_v51, %v823_v57 }
 0x160   : > { %v900_v60 = vpop.f32.mrf.mxu3  ;;  %1003 = vst [vmem:[%s2898_s12 + $0xf0] sm:$0xff] %v939_v59 }
 0x161   : > { %v970_v10 = vmul.f32 %v2875_v51, %v900_v60  ;;  %v785_v62 = vpop.f32.mrf.mxu0 }
 0x162   : > { %v924_v63 = vmul.f32 %v2875_v51, %v785_v62 }
 0x163   : > { %1034 = vst [vmem:[%s2898_s12 + $0x1e8] sm:$0xff] %v970_v10 }
 0x164   : > { %988 = vst [vmem:[%s2898_s12 + $0x78] sm:$0xff] %v924_v63 }
 0x165   : > { %v825_v58 = vpop.f32.mrf.mxu1 }
 0x166   : > { %v940_v0 = vmul.f32 %v2875_v51, %v825_v58 }
 0x168   : > { %1004 = vst [vmem:[%s2898_s12 + $0xf8] sm:$0xff] %v940_v0 }
 0x16a   : > { %v863_v61 = vpop.f32.mrf.mxu2 }
 0x16b   : > { %v955_v1 = vmul.f32 %v2875_v51, %v863_v61 }
 0x16d   : > { %1019 = vst [vmem:[%s2898_s12 + $0x170] sm:$0xff] %v955_v1 }
 0x170   : > { %v903_v2 = vpop.f32.mrf.mxu3 }
 0x171   : > { %v971_v3 = vmul.f32 %v2875_v51, %v903_v2 }
 0x172   : > { %v865_v4 = vpop.f32.mrf.mxu2 }
 0x173   : > { %1035 = vst [vmem:[%s2898_s12 + $0x1f0] sm:$0xff] %v971_v3  ;;  %v956_v5 = vmul.f32 %v2875_v51, %v865_v4 }
 0x175   : > { %1020 = vst [vmem:[%s2898_s12 + $0x178] sm:$0xff] %v956_v5 }
 0x177   : > { %1043 = sbr.rel (!%p2226_p4) target bundleno = 444 (0x1bc), region = 40 }
 0x178   : > { %v905_v6 = vpop.f32.mrf.mxu3 }
 0x179   : > { %v972_v8 = vmul.f32 %v2875_v51, %v905_v6 }
 0x17b   : > { %1036 = vst [vmem:[%s2898_s12 + $0x1f8] sm:$0xff] %v972_v8 }
 0x17c   : > { %s3318_s17 = smov (!%p1046_p11, %s1045_s17), 64 }
 0x17d   : > { %s1438_s24 = sshll.u32 %s3318_s17, 3 }
 0x17e   : > { %p1441_p12 = scmp.eq.s32.totalorder %s1438_s24, 0 }
 0x17f   : > { %s3047_s25 = sshrl.u32 (!%p1441_p12), %s3318_s17, 5 }
 0x180   : > { %1054 = sbr.rel (%p1441_p12) target bundleno = 444 (0x1bc), region = 44  ;;  %p1442_p13 = scmp.le.s32.totalorder (!%p1441_p12), %s3047_s25, 0 }
 0x185   : > { %1336 = sbr.rel (%p1442_p13) target bundleno = 427 (0x1ab), region = 121  ;;  %s3309_s15 = smov (!%p1442_p13), %s3041_s23 }
 0x186   : > { %s3310_s20 = smov (!%p1442_p13), %s2898_s12  ;;  %s3056_s26 = smov (!%p1442_p13), 0  }
 0x187   : > { %s3058_s27 = smov (!%p1442_p13), 0  }
 0x18a LB: >> { %v1179_v51 = vld [vmem:[%s2153_s20] sm:$0xff]  ;;  %v1181_v9 = vld [vmem:[%s2153_s20 + $0x8] sm:$0xff]  ;;  %v1183_v11 = vld [vmem:[%s2153_s20 + $0x10] sm:$0xff]  ;;  %s1243_s28 = sadd.s32 1, %s2157_s26  ;;  %s1173_s27 = sadd.s32 1, %s2161_s27   ;;  %s2161_s27 = sphi %s3058_s27, %s1173_s27   ;;  %s2157_s26 = sphi %s3056_s26, %s3313_s26   ;;  %s2153_s20 = sphi %s3310_s20, %s3312_s20   ;;  %s2149_s15 = sphi %s3309_s15, %s3311_s15  }
 0x18b   : >> { %1180 = vst [vmem:[%s2149_s15] sm:$0xff] %v1179_v51  ;;  %v1185_v15 = vld [vmem:[%s2153_s20 + $0x18] sm:$0xff]  ;;  %p1244_p0 = scmp.ge.s32.totalorder %s1243_s28, %s3047_s25  ;;  %v1187_v16 = vld [vmem:[%s2153_s20 + $0x20] sm:$0xff]  ;;  %v1189_v12 = vld [vmem:[%s2153_s20 + $0x28] sm:$0xff]  ;;  %p1172_p1 = scmp.ge.s32.totalorder %s1173_s27, %s3047_s25 }
 0x18c   : >> { %1182 = vst [vmem:[%s2149_s15 + $0x8] sm:$0xff] %v1181_v9  ;;  %v1191_v36 = vld [vmem:[%s2153_s20 + $0x30] sm:$0xff]  ;;  %v1193_v28 = vld [vmem:[%s2153_s20 + $0x38] sm:$0xff]  ;;  %v1195_v41 = vld [vmem:[%s2153_s20 + $0x40] sm:$0xff] }
 0x18d   : >> { %1184 = vst [vmem:[%s2149_s15 + $0x10] sm:$0xff] %v1183_v11  ;;  %s3320_s28 = smov (%p1244_p0, %s1243_s28), 0  ;;  %v1197_v42 = vld [vmem:[%s2153_s20 + $0x48] sm:$0xff]  ;;  %v1199_v17 = vld [vmem:[%s2153_s20 + $0x50] sm:$0xff]  ;;  %v1201_v21 = vld [vmem:[%s2153_s20 + $0x58] sm:$0xff] }
 0x18e   : >> { %1186 = vst [vmem:[%s2149_s15 + $0x18] sm:$0xff] %v1185_v15  ;;  %s1443_s29 = sshll.u32 %s3320_s28, 8  ;;  %v1203_v20 = vld [vmem:[%s2153_s20 + $0x60] sm:$0xff]  ;;  %v1205_v22 = vld [vmem:[%s2153_s20 + $0x68] sm:$0xff]  ;;  %v1207_v13 = vld [vmem:[%s2153_s20 + $0x70] sm:$0xff]  ;;  %s3313_s26 = smov %s3320_s28 }
 0x18f   : >> { %1188 = vst [vmem:[%s2149_s15 + $0x20] sm:$0xff] %v1187_v16  ;;  %s3090_s30 = scalar_lea.vmem %s2898_s12, %s1443_s29 [#allocation4]   ;;  %s3093_s4 = scalar_lea.vmem %s3041_s23, %s1443_s29   ;;  %v1209_v23 = vld [vmem:[%s2153_s20 + $0x78] sm:$0xff]  ;;  %v1211_v14 = vld [vmem:[%s2153_s20 + $0x80] sm:$0xff]  ;;  %v1213_v24 = vld [vmem:[%s2153_s20 + $0x88] sm:$0xff] }
 0x190   : >> { %1190 = vst [vmem:[%s2149_s15 + $0x28] sm:$0xff] %v1189_v12  ;;  %v1215_v25 = vld [vmem:[%s2153_s20 + $0x90] sm:$0xff]  ;;  %v1217_v18 = vld [vmem:[%s2153_s20 + $0x98] sm:$0xff]  ;;  %v1219_v31 = vld [vmem:[%s2153_s20 + $0xa0] sm:$0xff] }
 0x191   : >> { %1192 = vst [vmem:[%s2149_s15 + $0x30] sm:$0xff] %v1191_v36  ;;  %v1221_v26 = vld [vmem:[%s2153_s20 + $0xa8] sm:$0xff]  ;;  %v1223_v33 = vld [vmem:[%s2153_s20 + $0xb0] sm:$0xff]  ;;  %v1225_v27 = vld [vmem:[%s2153_s20 + $0xb8] sm:$0xff] }
 0x192   : >> { %1194 = vst [vmem:[%s2149_s15 + $0x38] sm:$0xff] %v1193_v28  ;;  %v1227_v19 = vld [vmem:[%s2153_s20 + $0xc0] sm:$0xff]  ;;  %v1229_v35 = vld [vmem:[%s2153_s20 + $0xc8] sm:$0xff]  ;;  %v1231_v32 = vld [vmem:[%s2153_s20 + $0xd0] sm:$0xff] }
 0x193   : >> { %1196 = vst [vmem:[%s2149_s15 + $0x40] sm:$0xff] %v1195_v41  ;;  %v1233_v30 = vld [vmem:[%s2153_s20 + $0xd8] sm:$0xff]  ;;  %v1235_v37 = vld [vmem:[%s2153_s20 + $0xe0] sm:$0xff]  ;;  %v1237_v38 = vld [vmem:[%s2153_s20 + $0xe8] sm:$0xff] }
 0x194   : >> { %1198 = vst [vmem:[%s2149_s15 + $0x48] sm:$0xff] %v1197_v42  ;;  %v1239_v7 = vld [vmem:[%s2153_s20 + $0xf0] sm:$0xff]  ;;  %v1241_v39 = vld [vmem:[%s2153_s20 + $0xf8] sm:$0xff]  ;;  %s3312_s20 = smov %s3090_s30 }
 0x195   : >> { %1200 = vst [vmem:[%s2149_s15 + $0x50] sm:$0xff] %v1199_v17 }
 0x196   : >> { %1202 = vst [vmem:[%s2149_s15 + $0x58] sm:$0xff] %v1201_v21 }
 0x197   : >> { %1204 = vst [vmem:[%s2149_s15 + $0x60] sm:$0xff] %v1203_v20 }
 0x198   : >> { %1206 = vst [vmem:[%s2149_s15 + $0x68] sm:$0xff] %v1205_v22 }
 0x199   : >> { %1208 = vst [vmem:[%s2149_s15 + $0x70] sm:$0xff] %v1207_v13 }
 0x19a   : >> { %1210 = vst [vmem:[%s2149_s15 + $0x78] sm:$0xff] %v1209_v23 }
 0x19b   : >> { %1212 = vst [vmem:[%s2149_s15 + $0x80] sm:$0xff] %v1211_v14 }
 0x19c   : >> { %1214 = vst [vmem:[%s2149_s15 + $0x88] sm:$0xff] %v1213_v24 }
 0x19d   : >> { %1216 = vst [vmem:[%s2149_s15 + $0x90] sm:$0xff] %v1215_v25 }
 0x19e   : >> { %1218 = vst [vmem:[%s2149_s15 + $0x98] sm:$0xff] %v1217_v18 }
 0x19f   : >> { %1220 = vst [vmem:[%s2149_s15 + $0xa0] sm:$0xff] %v1219_v31 }
 0x1a0   : >> { %1222 = vst [vmem:[%s2149_s15 + $0xa8] sm:$0xff] %v1221_v26 }
 0x1a1   : >> { %1224 = vst [vmem:[%s2149_s15 + $0xb0] sm:$0xff] %v1223_v33 }
 0x1a2   : >> { %1226 = vst [vmem:[%s2149_s15 + $0xb8] sm:$0xff] %v1225_v27 }
 0x1a3   : >> { %1228 = vst [vmem:[%s2149_s15 + $0xc0] sm:$0xff] %v1227_v19 }
 0x1a4   : >> { %1230 = vst [vmem:[%s2149_s15 + $0xc8] sm:$0xff] %v1229_v35 }
 0x1a5   : >> { %1232 = vst [vmem:[%s2149_s15 + $0xd0] sm:$0xff] %v1231_v32 }
 0x1a6   : >> { %1234 = vst [vmem:[%s2149_s15 + $0xd8] sm:$0xff] %v1233_v30  ;;  %1175 = sbr.rel (!%p1172_p1) target bundleno = 394 (0x18a), region = 127 }
 0x1a7   : >> { %1236 = vst [vmem:[%s2149_s15 + $0xe0] sm:$0xff] %v1235_v37 }
 0x1a8   : >> { %1238 = vst [vmem:[%s2149_s15 + $0xe8] sm:$0xff] %v1237_v38 }
 0x1a9   : >> { %1240 = vst [vmem:[%s2149_s15 + $0xf0] sm:$0xff] %v1239_v7 }
 0x1aa   : >> { %1242 = vst [vmem:[%s2149_s15 + $0xf8] sm:$0xff] %v1241_v39  ;;  %s3311_s15 = smov %s3093_s4 }
 0x1ab PF: > { %s3158_s5 = sand.u32 31, %s3318_s17   ;;  %s1455_s6 = sshll.u32 %s3047_s25, 8 }
 0x1ac   : > { %s1254_s7 = scalar_lea.vmem %s2898_s12, %s1455_s6 [#allocation4]   ;;  %s1256_s8 = scalar_lea.vmem %s3041_s23, %s1455_s6  }
 0x1ad   : > { %p1448_p2 = scmp.le.s32.totalorder %s3158_s5, 0 }
 0x1ae   : > { %s2163_s9 = smov (!%p1448_p2), %s1256_s8   ;;  %s2167_s10 = smov (!%p1448_p2), %s1254_s7  }
 0x1af   : > { %1350 = sbr.rel (%p1448_p2) target bundleno = 444 (0x1bc), region = 132  ;;  %s2171_s11 = smov (!%p1448_p2), 0  }
 0x1b0   : > { %s2175_s14 = smov (!%p1448_p2), 0  }
 0x1b4 LB: >> { %v1266_v44 = vld [vmem:[%s2169_s10] sm:$0xff]  ;;  %s1268_s17 = sadd.s32 1, %s2173_s11  ;;  %s1260_s14 = sadd.s32 1, %s2177_s14   ;;  %s2177_s14 = sphi %s2175_s14, %s1260_s14   ;;  %s2173_s11 = sphi %s2171_s11, %s2172_s11   ;;  %s2169_s10 = sphi %s2167_s10, %s1273_s10   ;;  %s2165_s9 = sphi %s2163_s9, %s1274_s9  }
 0x1b5   : >> { %1267 = vst [vmem:[%s2165_s9] sm:$0xff] %v1266_v44  ;;  %p1269_p3 = scmp.ge.s32.totalorder %s1268_s17, %s3158_s5  ;;  %p1259_p4 = scmp.ge.s32.totalorder %s1260_s14, %s3158_s5 }
 0x1b7   : >> { %s3322_s17 = smov (%p1269_p3, %s1268_s17), 0  ;;  %1262 = sbr.rel (!%p1259_p4) target bundleno = 436 (0x1b4), region = 138 }
 0x1b8   : >> { %s1449_s12 = sshll.u32 %s3322_s17, 3  ;;  %s2172_s11 = smov %s3322_s17  }
 0x1b9   : >> { %s1273_s10 = scalar_lea.vmem %s1254_s7, %s1449_s12 [#allocation4]   ;;  %s1274_s9 = scalar_lea.vmem %s1256_s8, %s1449_s12  }
 0x1bc PF: > { %p11_p5 = scmp.ge.s32.totalorder %s2216_s16, 5   ;;  %s3314_s12 = smov %s2141_s13 }
 0x1bd   : > { %s3315_s13 = smov %s2224_s19  ;;  %s3316_s14 = smov %s2216_s16 }
 0x1be   :  { %13 = sbr.rel (!%p11_p5) target bundleno = 2 (0x2), region = 149 }
 0x1c3   :  { %1290 = vsyncpa [#allocation3], 1 }
 0x1c4   :  { %1292 = vsyncpa [#allocation3 + $0x1], 1 }

// kernel: net_forward.7
= control target key start
LH: loop header
LB: loop body
LE: loop exit
PB: predicated region body
PF: predicated region fallthrough
CT: control target
= control target key end

     0   :  { %7 = vsyncpa [#allocation3], 0  ;;  %s2465_s12 = smov [#allocation2]   ;;  %s4502_s0 = inlined_call_operand.vmem [shape: f32[3], index: 0, kind: input, shape index: {}]   ;;  %s4503_s1 = inlined_call_operand.vmem [shape: f32[2,26,26,128], index: 1, kind: input, shape index: {}]   ;;  %s4504_s2 = inlined_call_operand.vmem [shape: f32[2,13,26,128], index: 2, kind: output, shape index: {}]  }
   0x1   :  { %s13_s11 = sshll.u32 %s4502_s0, 4  ;;  %s14_s11 = int_to_ptr.vmem [resolvable:$true] %s13_s11 }
   0x2   :  { %16 = dma.vmem_to_smem %s14_s11, 16, %s2465_s12, [#allocation3]  }
   0x3   :  { %2463 = dma.done.wait [#allocation3], 16  }
   0x4   :  { %2464 = vsyncadd [#allocation3], 4294967280 }
   0x5   :  { %23 = sfence }
   0x6   :  { %s2484_s13 = sld [smem:[#allocation2]]  ;;  %v27_v0 = vld [vmem:[%s4503_s1] sm:$0xff]  ;;  %v28_v2 = vld [vmem:[%s4503_s1 + $0x8] sm:$0xff]  ;;  %v29_v4 = vld [vmem:[%s4503_s1 + $0x10] sm:$0xff] }
   0x7   :  { %v1322_v1 = vld [vmem:[%s4503_s1 + $0x20] sm:$0xff]  ;;  %s1320_s0 = sld [smem:[#allocation2 + $0x1]]  ;;  %v1323_v3 = vld [vmem:[%s4503_s1 + $0x28] sm:$0xff]  ;;  %v1324_v5 = vld [vmem:[%s4503_s1 + $0x30] sm:$0xff] }
   0x8   :  { %s1321_s26 = sld [smem:[#allocation2 + $0x2]]  ;;  %v30_v6 = vld [vmem:[%s4503_s1 + $0x18] sm:$0x3]  ;;  %v31_v8 = vld [vmem:[%s4503_s1 + $0x340] sm:$0xff]  ;;  %v32_v10 = vld [vmem:[%s4503_s1 + $0x348] sm:$0xff]  ;;  %v44_v14 = vmax.f32 %v27_v0, %v1322_v1  ;;  %v45_v15 = vmax.f32 %v28_v2, %v1323_v3  ;;  %v46_v16 = vmax.f32 %v29_v4, %v1324_v5 }
   0x9   :  { %v1325_v7 = vld [vmem:[%s4503_s1 + $0x38] sm:$0x3]  ;;  %v1326_v9 = vld [vmem:[%s4503_s1 + $0x360] sm:$0xff]  ;;  %v1327_v11 = vld [vmem:[%s4503_s1 + $0x368] sm:$0xff] }
   0xa   :  { %v33_v12 = vld [vmem:[%s4503_s1 + $0x350] sm:$0xff]  ;;  %v47_v17 = vmax.f32 %v30_v6, %v1325_v7  ;;  %v34_v18 = vld [vmem:[%s4503_s1 + $0x358] sm:$0x3]  ;;  %v2537_v20 = vld [vmem:[%s4503_s1 + $0x40] sm:$0xff]  ;;  %v48_v21 = vmax.f32 %v31_v8, %v1326_v9  ;;  %v49_v22 = vmax.f32 %v32_v10, %v1327_v11 }
   0xb   :  { %v1328_v13 = vld [vmem:[%s4503_s1 + $0x370] sm:$0xff]  ;;  %v1329_v19 = vld [vmem:[%s4503_s1 + $0x378] sm:$0x3]  ;;  %v2542_v25 = vld [vmem:[%s4503_s1 + $0x60] sm:$0xff] }
   0xc   :  { %v50_v23 = vmax.f32 %v33_v12, %v1328_v13  ;;  %v51_v24 = vmax.f32 %v34_v18, %v1329_v19  ;;  %v2547_v26 = vld [vmem:[%s4503_s1 + $0x48] sm:$0xff]  ;;  %v2557_v29 = vstv %s2484_s13  ;;  %v2562_v30 = vld [vmem:[%s4503_s1 + $0x50] sm:$0xff]  ;;  %v145_v33 = vmax.f32 %v2537_v20, %v2542_v25 }
   0xd   :  { %v2552_v27 = vld [vmem:[%s4503_s1 + $0x68] sm:$0xff]  ;;  %v2554_v28 = vstv %s1320_s0  ;;  %v2567_v31 = vld [vmem:[%s4503_s1 + $0x70] sm:$0xff] }
   0xe   :  { %v2569_v32 = vstv %s1321_s26  ;;  %v146_v34 = vmax.f32 %v2547_v26, %v2552_v27  ;;  %v147_v35 = vmax.f32 %v2562_v30, %v2567_v31 }
   0xf   :  { %v53_v36 = vmul.f32 %v2569_v32, %v44_v14  ;;  %v54_v37 = vmul.f32 %v2569_v32, %v45_v15  ;;  %v55_v38 = vmul.f32 %v2569_v32, %v46_v16  ;;  %v56_v39 = vmul.f32 %v2569_v32, %v47_v17 }
  0x10   :  { %v57_v40 = vmul.f32 %v2569_v32, %v48_v21  ;;  %v58_v41 = vmul.f32 %v2569_v32, %v49_v22  ;;  %v59_v42 = vmul.f32 %v2569_v32, %v50_v23  ;;  %v60_v43 = vmul.f32 %v2569_v32, %v51_v24 }
  0x11   :  { %v62_v44 = vadd.f32 %v2554_v28, %v53_v36  ;;  %v63_v45 = vadd.f32 %v2554_v28, %v54_v37  ;;  %v64_v46 = vadd.f32 %v2554_v28, %v55_v38  ;;  %v65_v47 = vadd.f32 %v2554_v28, %v56_v39 }
  0x12   :  { %v66_v48 = vadd.f32 %v2554_v28, %v57_v40  ;;  %v2591_v49 = vadd.f32 %v2554_v28, %v58_v41  ;;  %v2594_v50 = vadd.f32 %v2554_v28, %v59_v42  ;;  %v2597_v51 = vadd.f32 %v2554_v28, %v60_v43 }
  0x13   :  { %v1618_v52 = vand.u32 2147483647, %v62_v44  ;;  %v1620_v53 = vcvt.f32.s32 %v62_v44  ;;  %v1623_v54 = vand.u32 2147483648, %v62_v44  ;;  %v1626_v55 = vand.u32 2147483647, %v63_v45 }
  0x14   :  { %v1628_v56 = vcvt.f32.s32 %v63_v45  ;;  %v1631_v57 = vand.u32 2147483648, %v63_v45  ;;  %v1634_v58 = vand.u32 2147483647, %v64_v46  ;;  %v1636_v59 = vcvt.f32.s32 %v64_v46 }
  0x15   :  { %vm2599_vm0 = vcmp.lt.f32.partialorder %v1618_v52, 8388608.0  ;;  %v1621_v61 = vcvt.s32.f32 %v1620_v53  ;;  %vm2603_vm1 = vcmp.lt.f32.partialorder %v1626_v55, 8388608.0  ;;  %v1639_v63 = vand.u32 2147483648, %v64_v46 }
  0x16   :  { %v1629_v0 = vcvt.s32.f32 %v1628_v56  ;;  %vm2607_vm2 = vcmp.lt.f32.partialorder %v1634_v58, 8388608.0  ;;  %v1637_v2 = vcvt.s32.f32 %v1636_v59  ;;  %v1642_v3 = vand.u32 2147483647, %v65_v47 }
  0x17   :  { %v1622_v4 = vand.u32 2147483647, %v1621_v61  ;;  %v1644_v5 = vcvt.f32.s32 %v65_v47  ;;  %v1647_v6 = vand.u32 2147483648, %v65_v47  ;;  %v1650_v7 = vand.u32 2147483647, %v66_v48 }
  0x18   :  { %v1630_v8 = vand.u32 2147483647, %v1629_v0  ;;  %v1638_v9 = vand.u32 2147483647, %v1637_v2  ;;  %vm2611_vm3 = vcmp.lt.f32.partialorder %v1642_v3, 8388608.0  ;;  %v1652_v11 = vcvt.f32.s32 %v66_v48 }
  0x19   :  { %v1624_v12 = vor.u32 %v1623_v54, %v1622_v4  ;;  %v1645_v13 = vcvt.s32.f32 %v1644_v5  ;;  %vm2615_vm4 = vcmp.lt.f32.partialorder %v1650_v7, 8388608.0  ;;  %v1655_v15 = vand.u32 2147483648, %v66_v48 }
  0x1a   :  { %v1632_v16 = vor.u32 %v1631_v57, %v1630_v8  ;;  %v1640_v17 = vor.u32 %v1639_v63, %v1638_v9  ;;  %v1653_v18 = vcvt.s32.f32 %v1652_v11  ;;  %v1658_v19 = vand.u32 2147483647, %v2591_v49 }
  0x1b   :  { %v1625_v21 = vsel %vm2599_vm0, %v1624_v12, %v62_v44  ;;  %v1646_v22 = vand.u32 2147483647, %v1645_v13  ;;  %v1660_v23 = vcvt.f32.s32 %v2591_v49  ;;  %v1663_v24 = vand.u32 2147483648, %v2591_v49 }
  0x1c   :  { %v78_v36 = vmax.f32 %v1625_v21, 0.0  ;;  %v1633_v37 = vsel %vm2603_vm1, %v1632_v16, %v63_v45  ;;  %v1641_v38 = vsel %vm2607_vm2, %v1640_v17, %v64_v46  ;;  %v1654_v39 = vand.u32 2147483647, %v1653_v18 }
  0x1d   :  { %v79_v40 = vmax.f32 %v1633_v37, 0.0  ;;  %v80_v41 = vmax.f32 %v1641_v38, 0.0  ;;  %v1648_v42 = vor.u32 %v1647_v6, %v1646_v22  ;;  %vm2628_vm5 = vcmp.lt.f32.partialorder %v1658_v19, 8388608.0 }
  0x1e   :  { %v86_v44 = vmin.f32 %v78_v36, 255.0  ;;  %v1656_v52 = vor.u32 %v1655_v15, %v1654_v39  ;;  %v1661_v53 = vcvt.s32.f32 %v1660_v23  ;;  %v1666_v54 = vand.u32 2147483647, %v2594_v50 }
  0x1f   :  { %v87_v55 = vmin.f32 %v79_v40, 255.0  ;;  %v88_v56 = vmin.f32 %v80_v41, 255.0  ;;  %v1649_v45 = vsel %vm2611_vm3, %v1648_v42, %v65_v47  ;;  %v1668_v46 = vcvt.f32.s32 %v2594_v50 }
  0x20   :  { %v94_v57 = vsub.f32 %v86_v44, %v2554_v28  ;;  %v81_v58 = vmax.f32 %v1649_v45, 0.0  ;;  %v1657_v59 = vsel %vm2615_vm4, %v1656_v52, %v66_v48  ;;  %v1662_v60 = vand.u32 2147483647, %v1661_v53 }
  0x21   :  { %v95_v61 = vsub.f32 %v87_v55, %v2554_v28  ;;  %v96_v62 = vsub.f32 %v88_v56, %v2554_v28  ;;  %v82_v63 = vmax.f32 %v1657_v59, 0.0  ;;  %vm2641_vm6 = vcmp.lt.f32.partialorder %v1666_v54, 8388608.0  ;;  %v1334_v59 = vld [vmem:[%s4503_s1 + $0x380] sm:$0xff] }
  0x22   :  { %v103_v47 = vmul.f32 %v2557_v29, %v94_v57  ;;  %v89_v1 = vmin.f32 %v81_v58, 255.0  ;;  %v1664_v2 = vor.u32 %v1663_v24, %v1662_v60  ;;  %v1669_v3 = vcvt.s32.f32 %v1668_v46  ;;  %v1341_v24 = vld [vmem:[%s4503_s1 + $0x78] sm:$0x3]  ;;  %v1342_v60 = vld [vmem:[%s4503_s1 + $0x3a0] sm:$0xff] }
  0x23   :  { %v104_v4 = vmul.f32 %v2557_v29, %v95_v61  ;;  %v105_v5 = vmul.f32 %v2557_v29, %v96_v62  ;;  %v90_v48 = vmin.f32 %v82_v63, 255.0  ;;  %v1671_v6 = vand.u32 2147483648, %v2594_v50  ;;  %v1335_v61 = vld [vmem:[%s4503_s1 + $0x388] sm:$0xff] }
  0x24   :  { %v111_v7 = vmax.f32 %v103_v47, 0.0  ;;  %v97_v8 = vsub.f32 %v89_v1, %v2554_v28  ;;  %v1665_v9 = vsel %vm2628_vm5, %v1664_v2, %v2591_v49  ;;  %v1670_v10 = vand.u32 2147483647, %v1669_v3  ;;  %v1333_v49 = vld [vmem:[%s4503_s1 + $0x58] sm:$0x3] }
  0x25   :  { %v112_v11 = vmax.f32 %v104_v4, 0.0  ;;  %v113_v12 = vmax.f32 %v105_v5, 0.0  ;;  %v98_v13 = vsub.f32 %v90_v48, %v2554_v28  ;;  %v83_v14 = vmax.f32 %v1665_v9, 0.0  ;;  %v1343_v4 = vld [vmem:[%s4503_s1 + $0x3a8] sm:$0xff]  ;;  %v1336_v5 = vld [vmem:[%s4503_s1 + $0x390] sm:$0xff] }
  0x26   :  { %119 = vst [vmem:[%s4504_s2] sm:$0xff] %v111_v7  ;;  %v106_v15 = vmul.f32 %v2557_v29, %v97_v8  ;;  %v1672_v16 = vor.u32 %v1671_v6, %v1670_v10  ;;  %v1674_v17 = vand.u32 2147483647, %v2597_v51  ;;  %v1676_v18 = vcvt.f32.s32 %v2597_v51  ;;  %v1344_v48 = vld [vmem:[%s4503_s1 + $0x3b0] sm:$0xff] }
  0x27   :  { %120 = vst [vmem:[%s4504_s2 + $0x8] sm:$0xff] %v112_v11  ;;  %v107_v19 = vmul.f32 %v2557_v29, %v98_v13  ;;  %v91_v21 = vmin.f32 %v83_v14, 255.0  ;;  %v1679_v22 = vand.u32 2147483648, %v2597_v51  ;;  %v153_v23 = vmul.f32 %v145_v33, %v2569_v32 }
  0x28   :  { %121 = vst [vmem:[%s4504_s2 + $0x10] sm:$0xff] %v113_v12  ;;  %v114_v36 = vmax.f32 %v106_v15, 0.0  ;;  %v1673_v37 = vsel %vm2641_vm6, %v1672_v16, %v2594_v50  ;;  %vm2681_vm7 = vcmp.lt.f32.partialorder %v1674_v17, 8388608.0  ;;  %v1677_v39 = vcvt.s32.f32 %v1676_v18 }
  0x29   :  { %v115_v20 = vmax.f32 %v107_v19, 0.0  ;;  %v99_v25 = vsub.f32 %v91_v21, %v2554_v28  ;;  %v84_v33 = vmax.f32 %v1673_v37, 0.0  ;;  %v161_v40 = vadd.f32 %v153_v23, %v2554_v28 }
  0x2a   :  { %122 = vst [vmem:[%s4504_s2 + $0x18] sm:$0x3] %v114_v36  ;;  %v1678_v41 = vand.u32 2147483647, %v1677_v39  ;;  %v154_v50 = vmul.f32 %v146_v34, %v2569_v32  ;;  %v155_v42 = vmul.f32 %v147_v35, %v2569_v32  ;;  %v148_v43 = vmax.f32 %v1333_v49, %v1341_v24 }
  0x2b   :  { %123 = vst [vmem:[%s4504_s2 + $0x1a0] sm:$0xff] %v115_v20  ;;  %v108_v44 = vmul.f32 %v2557_v29, %v99_v25  ;;  %v92_v52 = vmin.f32 %v84_v33, 255.0  ;;  %v1682_v53 = vand.u32 2147483647, %v161_v40  ;;  %v1684_v54 = vcvt.f32.s32 %v161_v40 }
  0x2c   :  { %v1680_v55 = vor.u32 %v1679_v22, %v1678_v41  ;;  %v1687_v56 = vand.u32 2147483648, %v161_v40  ;;  %v162_v26 = vadd.f32 %v154_v50, %v2554_v28  ;;  %v163_v27 = vadd.f32 %v155_v42, %v2554_v28 }
  0x2d   :  { %v116_v34 = vmax.f32 %v108_v44, 0.0  ;;  %v100_v30 = vsub.f32 %v92_v52, %v2554_v28  ;;  %vm2705_vm8 = vcmp.lt.f32.partialorder %v1682_v53, 8388608.0  ;;  %v1685_v35 = vcvt.s32.f32 %v1684_v54 }
  0x2e   :  { %v1681_v45 = vsel %vm2681_vm7, %v1680_v55, %v2597_v51  ;;  %v1690_v46 = vand.u32 2147483647, %v162_v26  ;;  %v1692_v57 = vcvt.f32.s32 %v162_v26  ;;  %v1695_v58 = vand.u32 2147483648, %v162_v26 }
  0x2f   :  { %124 = vst [vmem:[%s4504_s2 + $0x1a8] sm:$0xff] %v116_v34  ;;  %v109_v51 = vmul.f32 %v2557_v29, %v100_v30  ;;  %v85_v62 = vmax.f32 %v1681_v45, 0.0  ;;  %v1686_v63 = vand.u32 2147483647, %v1685_v35  ;;  %v1698_v0 = vand.u32 2147483647, %v163_v27 }
  0x30   :  { %vm2725_vm9 = vcmp.lt.f32.partialorder %v1690_v46, 8388608.0  ;;  %v1693_v1 = vcvt.s32.f32 %v1692_v57  ;;  %v1700_v2 = vcvt.f32.s32 %v163_v27  ;;  %v1703_v3 = vand.u32 2147483648, %v163_v27 }
  0x31   :  { %v117_v6 = vmax.f32 %v109_v51, 0.0  ;;  %v93_v7 = vmin.f32 %v85_v62, 255.0  ;;  %v1688_v8 = vor.u32 %v1687_v56, %v1686_v63  ;;  %vm2738_vm10 = vcmp.lt.f32.partialorder %v1698_v0, 8388608.0 }
  0x32   :  { %v1694_v10 = vand.u32 2147483647, %v1693_v1  ;;  %v1701_v11 = vcvt.s32.f32 %v1700_v2  ;;  %v156_v12 = vmul.f32 %v148_v43, %v2569_v32  ;;  %v149_v13 = vmax.f32 %v1334_v59, %v1342_v60  ;;  %v1337_v60 = vld [vmem:[%s4503_s1 + $0x398] sm:$0x3] }
  0x33   :  { %125 = vst [vmem:[%s4504_s2 + $0x1b0] sm:$0xff] %v117_v6  ;;  %v101_v14 = vsub.f32 %v93_v7, %v2554_v28  ;;  %v1689_v15 = vsel %vm2705_vm8, %v1688_v8, %v161_v40  ;;  %v150_v16 = vmax.f32 %v1335_v61, %v1343_v4  ;;  %v151_v17 = vmax.f32 %v1336_v5, %v1344_v48  ;;  %v1345_v61 = vld [vmem:[%s4503_s1 + $0x3b8] sm:$0x3]  ;;  %v1354_v7 = vld [vmem:[%s4503_s1 + $0x80] sm:$0xff] }
  0x34   :  { %v177_v18 = vmax.f32 %v1689_v15, 0.0  ;;  %v1696_v49 = vor.u32 %v1695_v58, %v1694_v10  ;;  %v1702_v19 = vand.u32 2147483647, %v1701_v11  ;;  %v164_v21 = vadd.f32 %v156_v12, %v2554_v28  ;;  %v1362_v8 = vld [vmem:[%s4503_s1 + $0xa0] sm:$0xff] }
  0x35   :  { %v110_v22 = vmul.f32 %v2557_v29, %v101_v14  ;;  %v157_v23 = vmul.f32 %v149_v13, %v2569_v32  ;;  %v158_v24 = vmul.f32 %v150_v16, %v2569_v32  ;;  %v159_v36 = vmul.f32 %v151_v17, %v2569_v32  ;;  %v1355_v13 = vld [vmem:[%s4503_s1 + $0x88] sm:$0xff] }
  0x36   :  { %v185_v37 = vmin.f32 %v177_v18, 255.0  ;;  %v1697_v38 = vsel %vm2725_vm9, %v1696_v49, %v162_v26  ;;  %v1704_v39 = vor.u32 %v1703_v3, %v1702_v19  ;;  %v1706_v20 = vand.u32 2147483647, %v164_v21  ;;  %v1363_v18 = vld [vmem:[%s4503_s1 + $0xa8] sm:$0xff]  ;;  %v1356_v49 = vld [vmem:[%s4503_s1 + $0x90] sm:$0xff] }
  0x37   :  { %v118_v25 = vmax.f32 %v110_v22, 0.0  ;;  %v178_v33 = vmax.f32 %v1697_v38, 0.0  ;;  %v1708_v40 = vcvt.f32.s32 %v164_v21  ;;  %v1711_v41 = vand.u32 2147483648, %v164_v21  ;;  %v1364_v19 = vld [vmem:[%s4503_s1 + $0xb0] sm:$0xff] }
  0x38   :  { %v193_v50 = vsub.f32 %v185_v37, %v2554_v28  ;;  %v1705_v42 = vsel %vm2738_vm10, %v1704_v39, %v163_v27  ;;  %vm2759_vm11 = vcmp.lt.f32.partialorder %v1706_v20, 8388608.0  ;;  %v165_v44 = vadd.f32 %v157_v23, %v2554_v28 }
  0x39   :  { %126 = vst [vmem:[%s4504_s2 + $0x1b8] sm:$0x3] %v118_v25  ;;  %v186_v52 = vmin.f32 %v178_v33, 255.0  ;;  %v179_v53 = vmax.f32 %v1705_v42, 0.0  ;;  %v1709_v54 = vcvt.s32.f32 %v1708_v40  ;;  %v166_v55 = vadd.f32 %v158_v24, %v2554_v28  ;;  %v1359_v24 = vld [vmem:[%s4503_s1 + $0x3c8] sm:$0xff] }
  0x3a   :  { %v201_v56 = vmul.f32 %v193_v50, %v2557_v29  ;;  %v1714_v26 = vand.u32 2147483647, %v165_v44  ;;  %v1716_v34 = vcvt.f32.s32 %v165_v44  ;;  %v1719_v27 = vand.u32 2147483648, %v165_v44 }
  0x3b   :  { %v194_v30 = vsub.f32 %v186_v52, %v2554_v28  ;;  %v187_v31 = vmin.f32 %v179_v53, 255.0  ;;  %v1710_v35 = vand.u32 2147483647, %v1709_v54  ;;  %v1722_v45 = vand.u32 2147483647, %v166_v55 }
  0x3c   :  { %v209_v46 = vmax.f32 %v201_v56, 0.0  ;;  %vm2770_vm12 = vcmp.lt.f32.partialorder %v1714_v26, 8388608.0  ;;  %v1717_v58 = vcvt.s32.f32 %v1716_v34  ;;  %v1724_v59 = vcvt.f32.s32 %v166_v55 }
  0x3d   :  { %v202_v51 = vmul.f32 %v194_v30, %v2557_v29  ;;  %v195_v62 = vsub.f32 %v187_v31, %v2554_v28  ;;  %v1712_v63 = vor.u32 %v1711_v41, %v1710_v35  ;;  %vm2782_vm13 = vcmp.lt.f32.partialorder %v1722_v45, 8388608.0 }
  0x3e   :  { %1346 = vst [vmem:[%s4504_s2 + $0x20] sm:$0xff] %v209_v46  ;;  %v1718_v47 = vand.u32 2147483647, %v1717_v58  ;;  %v1725_v1 = vcvt.s32.f32 %v1724_v59  ;;  %v1727_v2 = vand.u32 2147483648, %v166_v55  ;;  %v167_v3 = vadd.f32 %v159_v36, %v2554_v28 }
  0x3f   :  { %v210_v4 = vmax.f32 %v202_v51, 0.0  ;;  %v203_v5 = vmul.f32 %v195_v62, %v2557_v29  ;;  %v1713_v48 = vsel %vm2759_vm11, %v1712_v63, %v164_v21  ;;  %v152_v6 = vmax.f32 %v1337_v60, %v1345_v61 }
  0x40   :  { %v180_v9 = vmax.f32 %v1713_v48, 0.0  ;;  %v1720_v10 = vor.u32 %v1719_v27, %v1718_v47  ;;  %v1726_v11 = vand.u32 2147483647, %v1725_v1  ;;  %v1730_v12 = vand.u32 2147483647, %v167_v3 }
  0x41   :  { %1347 = vst [vmem:[%s4504_s2 + $0x28] sm:$0xff] %v210_v4  ;;  %v211_v14 = vmax.f32 %v203_v5, 0.0  ;;  %v1732_v15 = vcvt.f32.s32 %v167_v3  ;;  %v1735_v16 = vand.u32 2147483648, %v167_v3  ;;  %v160_v17 = vmul.f32 %v152_v6, %v2569_v32  ;;  %v1357_v5 = vld [vmem:[%s4503_s1 + $0x98] sm:$0x3] }
  0x42   :  { %v188_v21 = vmin.f32 %v180_v9, 255.0  ;;  %v1721_v22 = vsel %vm2770_vm12, %v1720_v10, %v165_v44  ;;  %v1728_v23 = vor.u32 %v1727_v2, %v1726_v11  ;;  %vm2817_vm14 = vcmp.lt.f32.partialorder %v1730_v12, 8388608.0  ;;  %v1381_v6 = vld [vmem:[%s4503_s1 + $0xd8] sm:$0x3] }
  0x43   :  { %1348 = vst [vmem:[%s4504_s2 + $0x30] sm:$0xff] %v211_v14  ;;  %v181_v36 = vmax.f32 %v1721_v22, 0.0  ;;  %v1733_v37 = vcvt.s32.f32 %v1732_v15  ;;  %v168_v38 = vadd.f32 %v160_v17, %v2554_v28  ;;  %v244_v39 = vmax.f32 %v1354_v7, %v1362_v8  ;;  %v1358_v14 = vld [vmem:[%s4503_s1 + $0x3c0] sm:$0xff] }
  0x44   :  { %v196_v20 = vsub.f32 %v188_v21, %v2554_v28  ;;  %v1729_v25 = vsel %vm2782_vm13, %v1728_v23, %v166_v55  ;;  %v245_v33 = vmax.f32 %v1355_v13, %v1363_v18  ;;  %v246_v40 = vmax.f32 %v1356_v49, %v1364_v19  ;;  %v1365_v13 = vld [vmem:[%s4503_s1 + $0xb8] sm:$0x3]  ;;  %v1366_v49 = vld [vmem:[%s4503_s1 + $0x3e0] sm:$0xff] }
  0x45   :  { %v189_v41 = vmin.f32 %v181_v36, 255.0  ;;  %v182_v50 = vmax.f32 %v1729_v25, 0.0  ;;  %v1734_v42 = vand.u32 2147483647, %v1733_v37  ;;  %v1738_v43 = vand.u32 2147483647, %v168_v38 }
  0x46   :  { %v204_v44 = vmul.f32 %v196_v20, %v2557_v29  ;;  %v1740_v52 = vcvt.f32.s32 %v168_v38  ;;  %v1743_v53 = vand.u32 2147483648, %v168_v38  ;;  %v252_v54 = vmul.f32 %v244_v39, %v2569_v32  ;;  %v1367_v36 = vld [vmem:[%s4503_s1 + $0x3e8] sm:$0xff]  ;;  %v1360_v25 = vld [vmem:[%s4503_s1 + $0x3d0] sm:$0xff] }
  0x47   :  { %v197_v56 = vsub.f32 %v189_v41, %v2554_v28  ;;  %v190_v26 = vmin.f32 %v182_v50, 255.0  ;;  %v1736_v34 = vor.u32 %v1735_v16, %v1734_v42  ;;  %vm2831_vm15 = vcmp.lt.f32.partialorder %v1738_v43, 8388608.0 }
  0x48   :  { %v212_v55 = vmax.f32 %v204_v44, 0.0  ;;  %v1741_v30 = vcvt.s32.f32 %v1740_v52  ;;  %v260_v31 = vadd.f32 %v252_v54, %v2554_v28  ;;  %v253_v35 = vmul.f32 %v245_v33, %v2569_v32  ;;  %v1368_v33 = vld [vmem:[%s4503_s1 + $0x3f0] sm:$0xff] }
  0x49   :  { %v205_v45 = vmul.f32 %v197_v56, %v2557_v29  ;;  %v198_v46 = vsub.f32 %v190_v26, %v2554_v28  ;;  %v1737_v57 = vsel %vm2817_vm14, %v1736_v34, %v167_v3  ;;  %v254_v58 = vmul.f32 %v246_v40, %v2569_v32 }
  0x4a   :  { %1349 = vst [vmem:[%s4504_s2 + $0x38] sm:$0x3] %v212_v55  ;;  %v183_v59 = vmax.f32 %v1737_v57, 0.0  ;;  %v1742_v60 = vand.u32 2147483647, %v1741_v30  ;;  %v1748_v61 = vcvt.f32.s32 %v260_v31  ;;  %v1751_v51 = vand.u32 2147483648, %v260_v31 }
  0x4b   :  { %v213_v62 = vmax.f32 %v205_v45, 0.0  ;;  %v206_v63 = vmul.f32 %v198_v46, %v2557_v29  ;;  %v1746_v0 = vand.u32 2147483647, %v260_v31  ;;  %v261_v47 = vadd.f32 %v253_v35, %v2554_v28 }
  0x4c   :  { %v191_v1 = vmin.f32 %v183_v59, 255.0  ;;  %v1744_v2 = vor.u32 %v1743_v53, %v1742_v60  ;;  %v1749_v4 = vcvt.s32.f32 %v1748_v61  ;;  %v2848_v3 = vadd.f32 %v254_v58, %v2554_v28 }
  0x4d   :  { %1350 = vst [vmem:[%s4504_s2 + $0x1c0] sm:$0xff] %v213_v62  ;;  %v214_v48 = vmax.f32 %v206_v63, 0.0  ;;  %vm2856_vm0 = vcmp.lt.f32.partialorder %v1746_v0, 8388608.0  ;;  %v1754_v7 = vand.u32 2147483647, %v261_v47  ;;  %v1756_v8 = vcvt.f32.s32 %v261_v47 }
  0x4e   :  { %v199_v9 = vsub.f32 %v191_v1, %v2554_v28  ;;  %v1745_v10 = vsel %vm2831_vm15, %v1744_v2, %v168_v38  ;;  %v1750_v11 = vand.u32 2147483647, %v1749_v4  ;;  %v1759_v12 = vand.u32 2147483648, %v261_v47 }
  0x4f   :  { %1351 = vst [vmem:[%s4504_s2 + $0x1c8] sm:$0xff] %v214_v48  ;;  %v184_v15 = vmax.f32 %v1745_v10, 0.0  ;;  %vm2872_vm1 = vcmp.lt.f32.partialorder %v1754_v7, 8388608.0  ;;  %v1757_v17 = vcvt.s32.f32 %v1756_v8  ;;  %v1762_v18 = vand.u32 2147483647, %v2848_v3 }
  0x50   :  { %v207_v19 = vmul.f32 %v199_v9, %v2557_v29  ;;  %v1752_v21 = vor.u32 %v1751_v51, %v1750_v11  ;;  %v1764_v22 = vcvt.f32.s32 %v2848_v3  ;;  %v1767_v23 = vand.u32 2147483648, %v2848_v3 }
  0x51   :  { %v192_v37 = vmin.f32 %v184_v15, 255.0  ;;  %v1758_v38 = vand.u32 2147483647, %v1757_v17  ;;  %vm2889_vm2 = vcmp.lt.f32.partialorder %v1762_v18, 8388608.0  ;;  %v247_v20 = vmax.f32 %v1357_v5, %v1365_v13 }
  0x52   :  { %v215_v40 = vmax.f32 %v207_v19, 0.0  ;;  %v1753_v41 = vsel %vm2856_vm0, %v1752_v21, %v260_v31  ;;  %v1765_v50 = vcvt.s32.f32 %v1764_v22  ;;  %v248_v42 = vmax.f32 %v1358_v14, %v1366_v49 }
  0x53   :  { %v200_v43 = vsub.f32 %v192_v37, %v2554_v28  ;;  %v276_v44 = vmax.f32 %v1753_v41, 0.0  ;;  %v1760_v52 = vor.u32 %v1759_v12, %v1758_v38  ;;  %v255_v53 = vmul.f32 %v247_v20, %v2569_v32  ;;  %v1378_v20 = vld [vmem:[%s4503_s1 + $0xc0] sm:$0xff] }
  0x54   :  { %1352 = vst [vmem:[%s4504_s2 + $0x1d0] sm:$0xff] %v215_v40  ;;  %v1766_v54 = vand.u32 2147483647, %v1765_v50  ;;  %v256_v56 = vmul.f32 %v248_v42, %v2569_v32  ;;  %v249_v26 = vmax.f32 %v1359_v24, %v1367_v36  ;;  %v250_v34 = vmax.f32 %v1360_v25, %v1368_v33  ;;  %v1386_v25 = vld [vmem:[%s4503_s1 + $0xe0] sm:$0xff]  ;;  %v1379_v42 = vld [vmem:[%s4503_s1 + $0xc8] sm:$0xff] }
  0x55   :  { %v208_v27 = vmul.f32 %v200_v43, %v2557_v29  ;;  %v284_v55 = vmin.f32 %v276_v44, 255.0  ;;  %v1761_v30 = vsel %vm2872_vm1, %v1760_v52, %v261_v47  ;;  %v263_v31 = vadd.f32 %v255_v53, %v2554_v28  ;;  %v1361_v47 = vld [vmem:[%s4503_s1 + $0x3d8] sm:$0x3]  ;;  %v1387_v43 = vld [vmem:[%s4503_s1 + $0xe8] sm:$0xff] }
  0x56   :  { %v277_v35 = vmax.f32 %v1761_v30, 0.0  ;;  %v1768_v45 = vor.u32 %v1767_v23, %v1766_v54  ;;  %v264_v46 = vadd.f32 %v256_v56, %v2554_v28  ;;  %v257_v57 = vmul.f32 %v249_v26, %v2569_v32  ;;  %v1380_v56 = vld [vmem:[%s4503_s1 + $0xd0] sm:$0xff] }
  0x57   :  { %v216_v58 = vmax.f32 %v208_v27, 0.0  ;;  %v292_v59 = vsub.f32 %v284_v55, %v2554_v28  ;;  %v1770_v60 = vand.u32 2147483647, %v263_v31  ;;  %v1772_v61 = vcvt.f32.s32 %v263_v31  ;;  %v1388_v26 = vld [vmem:[%s4503_s1 + $0xf0] sm:$0xff] }
  0x58   :  { %v285_v51 = vmin.f32 %v277_v35, 255.0  ;;  %v1769_v62 = vsel %vm2889_vm2, %v1768_v45, %v2848_v3  ;;  %v1775_v63 = vand.u32 2147483648, %v263_v31  ;;  %v1778_v0 = vand.u32 2147483647, %v264_v46  ;;  %v1369_v3 = vld [vmem:[%s4503_s1 + $0x3f8] sm:$0x3] }
  0x59   :  { %1353 = vst [vmem:[%s4504_s2 + $0x1d8] sm:$0x3] %v216_v58  ;;  %v300_v1 = vmul.f32 %v292_v59, %v2557_v29  ;;  %v278_v2 = vmax.f32 %v1769_v62, 0.0  ;;  %vm2924_vm3 = vcmp.lt.f32.partialorder %v1770_v60, 8388608.0  ;;  %v1773_v5 = vcvt.s32.f32 %v1772_v61 }
  0x5a   :  { %v293_v48 = vsub.f32 %v285_v51, %v2554_v28  ;;  %vm2932_vm4 = vcmp.lt.f32.partialorder %v1778_v0, 8388608.0  ;;  %v1780_v7 = vcvt.f32.s32 %v264_v46  ;;  %v1783_v8 = vand.u32 2147483648, %v264_v46 }
  0x5b   :  { %v308_v9 = vmax.f32 %v300_v1, 0.0  ;;  %v286_v10 = vmin.f32 %v278_v2, 255.0  ;;  %v1774_v11 = vand.u32 2147483647, %v1773_v5  ;;  %v265_v12 = vadd.f32 %v257_v57, %v2554_v28  ;;  %v1384_v5 = vld [vmem:[%s4503_s1 + $0x410] sm:$0xff] }
  0x5c   :  { %v301_v13 = vmul.f32 %v293_v48, %v2557_v29  ;;  %v1781_v14 = vcvt.s32.f32 %v1780_v7  ;;  %v258_v15 = vmul.f32 %v250_v34, %v2569_v32  ;;  %v251_v16 = vmax.f32 %v1361_v47, %v1369_v3  ;;  %v1389_v7 = vld [vmem:[%s4503_s1 + $0xf8] sm:$0x3] }
  0x5d   :  { %1370 = vst [vmem:[%s4504_s2 + $0x40] sm:$0xff] %v308_v9  ;;  %v294_v17 = vsub.f32 %v286_v10, %v2554_v28  ;;  %v1776_v18 = vor.u32 %v1775_v63, %v1774_v11  ;;  %v1786_v49 = vand.u32 2147483647, %v265_v12  ;;  %v1788_v19 = vcvt.f32.s32 %v265_v12 }
  0x5e   :  { %v309_v21 = vmax.f32 %v301_v13, 0.0  ;;  %v1782_v22 = vand.u32 2147483647, %v1781_v14  ;;  %v1791_v23 = vand.u32 2147483648, %v265_v12  ;;  %v266_v24 = vadd.f32 %v258_v15, %v2554_v28 }
  0x5f   :  { %v302_v36 = vmul.f32 %v294_v17, %v2557_v29  ;;  %v1777_v37 = vsel %vm2924_vm3, %v1776_v18, %v263_v31  ;;  %vm2947_vm5 = vcmp.lt.f32.partialorder %v1786_v49, 8388608.0  ;;  %v1789_v39 = vcvt.s32.f32 %v1788_v19 }
  0x60   :  { %1371 = vst [vmem:[%s4504_s2 + $0x48] sm:$0xff] %v309_v21  ;;  %v279_v33 = vmax.f32 %v1777_v37, 0.0  ;;  %v1784_v40 = vor.u32 %v1783_v8, %v1782_v22  ;;  %v1794_v41 = vand.u32 2147483647, %v266_v24  ;;  %v1796_v50 = vcvt.f32.s32 %v266_v24 }
  0x61   :  { %v310_v44 = vmax.f32 %v302_v36, 0.0  ;;  %v1790_v52 = vand.u32 2147483647, %v1789_v39  ;;  %v1799_v53 = vand.u32 2147483648, %v266_v24  ;;  %v259_v54 = vmul.f32 %v251_v16, %v2569_v32 }
  0x62   :  { %v287_v34 = vmin.f32 %v279_v33, 255.0  ;;  %v1785_v27 = vsel %vm2932_vm4, %v1784_v40, %v264_v46  ;;  %vm2975_vm6 = vcmp.lt.f32.partialorder %v1794_v41, 8388608.0  ;;  %v1797_v30 = vcvt.s32.f32 %v1796_v50  ;;  %v1382_v40 = vld [vmem:[%s4503_s1 + $0x400] sm:$0xff] }
  0x63   :  { %1372 = vst [vmem:[%s4504_s2 + $0x50] sm:$0xff] %v310_v44  ;;  %v280_v31 = vmax.f32 %v1785_v27, 0.0  ;;  %v1792_v35 = vor.u32 %v1791_v23, %v1790_v52  ;;  %v267_v45 = vadd.f32 %v259_v54, %v2554_v28  ;;  %v343_v57 = vmax.f32 %v1378_v20, %v1386_v25  ;;  %v1390_v41 = vld [vmem:[%s4503_s1 + $0x420] sm:$0xff] }
  0x64   :  { %v295_v58 = vsub.f32 %v287_v34, %v2554_v28  ;;  %v1798_v59 = vand.u32 2147483647, %v1797_v30  ;;  %v344_v60 = vmax.f32 %v1379_v42, %v1387_v43  ;;  %v345_v61 = vmax.f32 %v1380_v56, %v1388_v26 }
  0x65   :  { %v288_v46 = vmin.f32 %v280_v31, 255.0  ;;  %v1793_v51 = vsel %vm2947_vm5, %v1792_v35, %v265_v12  ;;  %v1802_v62 = vand.u32 2147483647, %v267_v45  ;;  %v1804_v63 = vcvt.f32.s32 %v267_v45 }
  0x66   :  { %v303_v0 = vmul.f32 %v295_v58, %v2557_v29  ;;  %v281_v47 = vmax.f32 %v1793_v51, 0.0  ;;  %v1800_v1 = vor.u32 %v1799_v53, %v1798_v59  ;;  %v1807_v2 = vand.u32 2147483648, %v267_v45 }
  0x67   :  { %v296_v4 = vsub.f32 %v288_v46, %v2554_v28  ;;  %vm2988_vm7 = vcmp.lt.f32.partialorder %v1802_v62, 8388608.0  ;;  %v1805_v3 = vcvt.s32.f32 %v1804_v63  ;;  %v351_v48 = vmul.f32 %v343_v57, %v2569_v32  ;;  %v1383_v63 = vld [vmem:[%s4503_s1 + $0x408] sm:$0xff]  ;;  %v1402_v46 = vld [vmem:[%s4503_s1 + $0x100] sm:$0xff] }
  0x68   :  { %v311_v8 = vmax.f32 %v303_v0, 0.0  ;;  %v289_v9 = vmin.f32 %v281_v47, 255.0  ;;  %v1801_v10 = vsel %vm2975_vm6, %v1800_v1, %v266_v24  ;;  %v352_v11 = vmul.f32 %v344_v60, %v2569_v32  ;;  %v1391_v0 = vld [vmem:[%s4503_s1 + $0x428] sm:$0xff] }
  0x69   :  { %v304_v12 = vmul.f32 %v296_v4, %v2557_v29  ;;  %v282_v13 = vmax.f32 %v1801_v10, 0.0  ;;  %v1806_v14 = vand.u32 2147483647, %v1805_v3  ;;  %v359_v15 = vadd.f32 %v351_v48, %v2554_v28  ;;  %v1392_v3 = vld [vmem:[%s4503_s1 + $0x430] sm:$0xff]  ;;  %v1385_v48 = vld [vmem:[%s4503_s1 + $0x418] sm:$0x3] }
  0x6a   :  { %1373 = vst [vmem:[%s4504_s2 + $0x58] sm:$0x3] %v311_v8  ;;  %v297_v16 = vsub.f32 %v289_v9, %v2554_v28  ;;  %v360_v17 = vadd.f32 %v352_v11, %v2554_v28  ;;  %v353_v18 = vmul.f32 %v345_v61, %v2569_v32  ;;  %v346_v49 = vmax.f32 %v1381_v6, %v1389_v7  ;;  %v1393_v10 = vld [vmem:[%s4503_s1 + $0x438] sm:$0x3] }
  0x6b   :  { %v312_v19 = vmax.f32 %v304_v12, 0.0  ;;  %v290_v21 = vmin.f32 %v282_v13, 255.0  ;;  %v1808_v22 = vor.u32 %v1807_v2, %v1806_v14  ;;  %v1810_v23 = vand.u32 2147483647, %v359_v15 }
  0x6c   :  { %v305_v24 = vmul.f32 %v297_v16, %v2557_v29  ;;  %v1812_v36 = vcvt.f32.s32 %v359_v15  ;;  %v1815_v37 = vand.u32 2147483648, %v359_v15  ;;  %v1818_v38 = vand.u32 2147483647, %v360_v17 }
  0x6d   :  { %1374 = vst [vmem:[%s4504_s2 + $0x1e0] sm:$0xff] %v312_v19  ;;  %v298_v39 = vsub.f32 %v290_v21, %v2554_v28  ;;  %v1809_v20 = vsel %vm2988_vm7, %v1808_v22, %v267_v45  ;;  %vm3017_vm8 = vcmp.lt.f32.partialorder %v1810_v23, 8388608.0  ;;  %v1820_v33 = vcvt.f32.s32 %v360_v17 }
  0x6e   :  { %v313_v50 = vmax.f32 %v305_v24, 0.0  ;;  %v283_v42 = vmax.f32 %v1809_v20, 0.0  ;;  %v1813_v43 = vcvt.s32.f32 %v1812_v36  ;;  %vm3027_vm9 = vcmp.lt.f32.partialorder %v1818_v38, 8388608.0 }
  0x6f   :  { %v306_v52 = vmul.f32 %v298_v39, %v2557_v29  ;;  %v1821_v53 = vcvt.s32.f32 %v1820_v33  ;;  %v1823_v54 = vand.u32 2147483648, %v360_v17  ;;  %v361_v56 = vadd.f32 %v353_v18, %v2554_v28 }
  0x70   :  { %1375 = vst [vmem:[%s4504_s2 + $0x1e8] sm:$0xff] %v313_v50  ;;  %v291_v26 = vmin.f32 %v283_v42, 255.0  ;;  %v1814_v34 = vand.u32 2147483647, %v1813_v43  ;;  %v354_v27 = vmul.f32 %v346_v49, %v2569_v32  ;;  %v347_v55 = vmax.f32 %v1382_v40, %v1390_v41 }
  0x71   :  { %v314_v30 = vmax.f32 %v306_v52, 0.0  ;;  %v1822_v31 = vand.u32 2147483647, %v1821_v53  ;;  %v1826_v35 = vand.u32 2147483647, %v361_v56  ;;  %v1828_v45 = vcvt.f32.s32 %v361_v56 }
  0x72   :  { %v299_v57 = vsub.f32 %v291_v26, %v2554_v28  ;;  %v1816_v58 = vor.u32 %v1815_v37, %v1814_v34  ;;  %v1831_v59 = vand.u32 2147483648, %v361_v56  ;;  %v362_v60 = vadd.f32 %v354_v27, %v2554_v28 }
  0x73   :  { %1376 = vst [vmem:[%s4504_s2 + $0x1f0] sm:$0xff] %v314_v30  ;;  %v1824_v61 = vor.u32 %v1823_v54, %v1822_v31  ;;  %vm3042_vm10 = vcmp.lt.f32.partialorder %v1826_v35, 8388608.0  ;;  %v1829_v51 = vcvt.s32.f32 %v1828_v45  ;;  %v355_v62 = vmul.f32 %v347_v55, %v2569_v32 }
  0x74   :  { %v307_v47 = vmul.f32 %v299_v57, %v2557_v29  ;;  %v1817_v1 = vsel %vm3017_vm8, %v1816_v58, %v359_v15  ;;  %v1834_v2 = vand.u32 2147483647, %v362_v60  ;;  %v1836_v4 = vcvt.f32.s32 %v362_v60 }
  0x75   :  { %v375_v6 = vmax.f32 %v1817_v1, 0.0  ;;  %v1825_v7 = vsel %vm3027_vm9, %v1824_v61, %v360_v17  ;;  %v1830_v8 = vand.u32 2147483647, %v1829_v51  ;;  %v1839_v9 = vand.u32 2147483648, %v362_v60  ;;  %v1403_v1 = vld [vmem:[%s4503_s1 + $0x108] sm:$0xff] }
  0x76   :  { %v315_v11 = vmax.f32 %v307_v47, 0.0  ;;  %v376_v12 = vmax.f32 %v1825_v7, 0.0  ;;  %vm3070_vm11 = vcmp.lt.f32.partialorder %v1834_v2, 8388608.0  ;;  %v1837_v14 = vcvt.s32.f32 %v1836_v4  ;;  %v1410_v47 = vld [vmem:[%s4503_s1 + $0x120] sm:$0xff]  ;;  %v1411_v2 = vld [vmem:[%s4503_s1 + $0x128] sm:$0xff] }
  0x77   :  { %v383_v15 = vmin.f32 %v375_v6, 255.0  ;;  %v1832_v16 = vor.u32 %v1831_v59, %v1830_v8  ;;  %v363_v18 = vadd.f32 %v355_v62, %v2554_v28  ;;  %v348_v49 = vmax.f32 %v1383_v63, %v1391_v0 }
  0x78   :  { %1377 = vst [vmem:[%s4504_s2 + $0x1f8] sm:$0x3] %v315_v11  ;;  %v384_v17 = vmin.f32 %v376_v12, 255.0  ;;  %v1838_v19 = vand.u32 2147483647, %v1837_v14  ;;  %v349_v21 = vmax.f32 %v1384_v5, %v1392_v3  ;;  %v350_v22 = vmax.f32 %v1385_v48, %v1393_v10 }
  0x79   :  { %v391_v23 = vsub.f32 %v383_v15, %v2554_v28  ;;  %v1833_v24 = vsel %vm3042_vm10, %v1832_v16, %v361_v56  ;;  %v1842_v36 = vand.u32 2147483647, %v363_v18  ;;  %v1844_v37 = vcvt.f32.s32 %v363_v18 }
  0x7a   :  { %v392_v38 = vsub.f32 %v384_v17, %v2554_v28  ;;  %v377_v39 = vmax.f32 %v1833_v24, 0.0  ;;  %v1840_v20 = vor.u32 %v1839_v9, %v1838_v19  ;;  %v1847_v25 = vand.u32 2147483648, %v363_v18 }
  0x7b   :  { %v399_v33 = vmul.f32 %v391_v23, %v2557_v29  ;;  %vm3083_vm12 = vcmp.lt.f32.partialorder %v1842_v36, 8388608.0  ;;  %v1845_v41 = vcvt.s32.f32 %v1844_v37  ;;  %v356_v50 = vmul.f32 %v348_v49, %v2569_v32  ;;  %v1412_v23 = vld [vmem:[%s4503_s1 + $0x130] sm:$0xff] }
  0x7c   :  { %v400_v42 = vmul.f32 %v392_v38, %v2557_v29  ;;  %v385_v43 = vmin.f32 %v377_v39, 255.0  ;;  %v1841_v44 = vsel %vm3070_vm11, %v1840_v20, %v362_v60  ;;  %v357_v52 = vmul.f32 %v349_v21, %v2569_v32 }
  0x7d   :  { %v407_v53 = vmax.f32 %v399_v33, 0.0  ;;  %v378_v54 = vmax.f32 %v1841_v44, 0.0  ;;  %v1846_v56 = vand.u32 2147483647, %v1845_v41  ;;  %v364_v26 = vadd.f32 %v356_v50, %v2554_v28 }
  0x7e   :  { %v408_v34 = vmax.f32 %v400_v42, 0.0  ;;  %v393_v27 = vsub.f32 %v385_v43, %v2554_v28  ;;  %v365_v55 = vadd.f32 %v357_v52, %v2554_v28  ;;  %v358_v30 = vmul.f32 %v350_v22, %v2569_v32  ;;  %v1404_v22 = vld [vmem:[%s4503_s1 + $0x110] sm:$0xff] }
  0x7f   :  { %1394 = vst [vmem:[%s4504_s2 + $0x60] sm:$0xff] %v407_v53  ;;  %v386_v31 = vmin.f32 %v378_v54, 255.0  ;;  %v1848_v35 = vor.u32 %v1847_v25, %v1846_v56  ;;  %v1850_v45 = vand.u32 2147483647, %v364_v26  ;;  %v1852_v57 = vcvt.f32.s32 %v364_v26 }
  0x80   :  { %1395 = vst [vmem:[%s4504_s2 + $0x68] sm:$0xff] %v408_v34  ;;  %v401_v58 = vmul.f32 %v393_v27, %v2557_v29  ;;  %v1855_v59 = vand.u32 2147483648, %v364_v26  ;;  %v1858_v60 = vand.u32 2147483647, %v365_v55  ;;  %v1860_v61 = vcvt.f32.s32 %v365_v55  ;;  %v1405_v27 = vld [vmem:[%s4503_s1 + $0x118] sm:$0x3] }
  0x81   :  { %v394_v51 = vsub.f32 %v386_v31, %v2554_v28  ;;  %v1849_v62 = vsel %vm3083_vm12, %v1848_v35, %v363_v18  ;;  %vm3109_vm13 = vcmp.lt.f32.partialorder %v1850_v45, 8388608.0  ;;  %v1853_v0 = vcvt.s32.f32 %v1852_v57  ;;  %v1413_v45 = vld [vmem:[%s4503_s1 + $0x138] sm:$0x3]  ;;  %v1406_v57 = vld [vmem:[%s4503_s1 + $0x440] sm:$0xff] }
  0x82   :  { %v409_v4 = vmax.f32 %v401_v58, 0.0  ;;  %v379_v5 = vmax.f32 %v1849_v62, 0.0  ;;  %vm3122_vm14 = vcmp.lt.f32.partialorder %v1858_v60, 8388608.0  ;;  %v1861_v48 = vcvt.s32.f32 %v1860_v61  ;;  %v1414_v58 = vld [vmem:[%s4503_s1 + $0x460] sm:$0xff] }
  0x83   :  { %v402_v6 = vmul.f32 %v394_v51, %v2557_v29  ;;  %v1854_v7 = vand.u32 2147483647, %v1853_v0  ;;  %v1863_v8 = vand.u32 2147483648, %v365_v55  ;;  %v366_v9 = vadd.f32 %v358_v30, %v2554_v28 }
  0x84   :  { %1396 = vst [vmem:[%s4504_s2 + $0x70] sm:$0xff] %v409_v4  ;;  %v387_v10 = vmin.f32 %v379_v5, 255.0  ;;  %v1862_v11 = vand.u32 2147483647, %v1861_v48  ;;  %v442_v12 = vmax.f32 %v1402_v46, %v1410_v47  ;;  %v443_v13 = vmax.f32 %v1403_v1, %v1411_v2 }
  0x85   :  { %v410_v14 = vmax.f32 %v402_v6, 0.0  ;;  %v1856_v15 = vor.u32 %v1855_v59, %v1854_v7  ;;  %v1866_v16 = vand.u32 2147483647, %v366_v9  ;;  %v1868_v18 = vcvt.f32.s32 %v366_v9  ;;  %v1407_v7 = vld [vmem:[%s4503_s1 + $0x448] sm:$0xff] }
  0x86   :  { %v395_v49 = vsub.f32 %v387_v10, %v2554_v28  ;;  %v1864_v17 = vor.u32 %v1863_v8, %v1862_v11  ;;  %v1871_v19 = vand.u32 2147483648, %v366_v9  ;;  %v450_v21 = vmul.f32 %v442_v12, %v2569_v32  ;;  %v1415_v8 = vld [vmem:[%s4503_s1 + $0x468] sm:$0xff] }
  0x87   :  { %1397 = vst [vmem:[%s4504_s2 + $0x78] sm:$0x3] %v410_v14  ;;  %v1857_v24 = vsel %vm3109_vm13, %v1856_v15, %v364_v26  ;;  %vm3144_vm15 = vcmp.lt.f32.partialorder %v1866_v16, 8388608.0  ;;  %v1869_v37 = vcvt.s32.f32 %v1868_v18  ;;  %v451_v38 = vmul.f32 %v443_v13, %v2569_v32 }
  0x88   :  { %v403_v39 = vmul.f32 %v395_v49, %v2557_v29  ;;  %v380_v20 = vmax.f32 %v1857_v24, 0.0  ;;  %v1865_v25 = vsel %vm3122_vm14, %v1864_v17, %v365_v55  ;;  %v458_v33 = vadd.f32 %v450_v21, %v2554_v28 }
  0x89   :  { %v381_v40 = vmax.f32 %v1865_v25, 0.0  ;;  %v1870_v41 = vand.u32 2147483647, %v1869_v37  ;;  %v459_v50 = vadd.f32 %v451_v38, %v2554_v28  ;;  %v444_v42 = vmax.f32 %v1404_v22, %v1412_v23 }
  0x8a   :  { %v411_v43 = vmax.f32 %v403_v39, 0.0  ;;  %v388_v44 = vmin.f32 %v380_v20, 255.0  ;;  %v1874_v52 = vand.u32 2147483647, %v458_v33  ;;  %v1876_v53 = vcvt.f32.s32 %v458_v33  ;;  %v1408_v39 = vld [vmem:[%s4503_s1 + $0x450] sm:$0xff] }
  0x8b   :  { %v389_v54 = vmin.f32 %v381_v40, 255.0  ;;  %v1872_v56 = vor.u32 %v1871_v19, %v1870_v41  ;;  %v1879_v26 = vand.u32 2147483648, %v458_v33  ;;  %v1882_v34 = vand.u32 2147483647, %v459_v50  ;;  %v1416_v20 = vld [vmem:[%s4503_s1 + $0x470] sm:$0xff] }
  0x8c   :  { %1398 = vst [vmem:[%s4504_s2 + $0x200] sm:$0xff] %v411_v43  ;;  %v396_v55 = vsub.f32 %v388_v44, %v2554_v28  ;;  %vm3161_vm0 = vcmp.lt.f32.partialorder %v1874_v52, 8388608.0  ;;  %v1877_v31 = vcvt.s32.f32 %v1876_v53  ;;  %v1884_v35 = vcvt.f32.s32 %v459_v50  ;;  %v1417_v53 = vld [vmem:[%s4503_s1 + $0x478] sm:$0x3] }
  0x8d   :  { %v397_v59 = vsub.f32 %v389_v54, %v2554_v28  ;;  %v1873_v60 = vsel %vm3144_vm15, %v1872_v56, %v366_v9  ;;  %vm3177_vm1 = vcmp.lt.f32.partialorder %v1882_v34, 8388608.0  ;;  %v1887_v46 = vand.u32 2147483648, %v459_v50 }
  0x8e   :  { %v404_v51 = vmul.f32 %v396_v55, %v2557_v29  ;;  %v382_v62 = vmax.f32 %v1873_v60, 0.0  ;;  %v1878_v63 = vand.u32 2147483647, %v1877_v31  ;;  %v1885_v0 = vcvt.s32.f32 %v1884_v35 }
  0x8f   :  { %v405_v47 = vmul.f32 %v397_v59, %v2557_v29  ;;  %v452_v1 = vmul.f32 %v444_v42, %v2569_v32  ;;  %v445_v2 = vmax.f32 %v1405_v27, %v1413_v45  ;;  %v446_v4 = vmax.f32 %v1406_v57, %v1414_v58 }
  0x90   :  { %v412_v5 = vmax.f32 %v404_v51, 0.0  ;;  %v390_v3 = vmin.f32 %v382_v62, 255.0  ;;  %v1880_v48 = vor.u32 %v1879_v26, %v1878_v63  ;;  %v1886_v6 = vand.u32 2147483647, %v1885_v0 }
  0x91   :  { %v413_v9 = vmax.f32 %v405_v47, 0.0  ;;  %v460_v10 = vadd.f32 %v452_v1, %v2554_v28  ;;  %v453_v11 = vmul.f32 %v445_v2, %v2569_v32  ;;  %v454_v12 = vmul.f32 %v446_v4, %v2569_v32  ;;  %v1426_v47 = vld [vmem:[%s4503_s1 + $0x140] sm:$0xff] }
  0x92   :  { %1399 = vst [vmem:[%s4504_s2 + $0x208] sm:$0xff] %v412_v5  ;;  %v398_v13 = vsub.f32 %v390_v3, %v2554_v28  ;;  %v1881_v14 = vsel %vm3161_vm0, %v1880_v48, %v458_v33  ;;  %v1888_v15 = vor.u32 %v1887_v46, %v1886_v6  ;;  %v447_v17 = vmax.f32 %v1407_v7, %v1415_v8  ;;  %v1434_v1 = vld [vmem:[%s4503_s1 + $0x160] sm:$0xff] }
  0x93   :  { %1400 = vst [vmem:[%s4504_s2 + $0x210] sm:$0xff] %v413_v9  ;;  %v474_v16 = vmax.f32 %v1881_v14, 0.0  ;;  %v1890_v18 = vand.u32 2147483647, %v460_v10  ;;  %v1892_v49 = vcvt.f32.s32 %v460_v10  ;;  %v461_v22 = vadd.f32 %v453_v11, %v2554_v28 }
  0x94   :  { %v406_v19 = vmul.f32 %v398_v13, %v2557_v29  ;;  %v1889_v21 = vsel %vm3177_vm1, %v1888_v15, %v459_v50  ;;  %v462_v23 = vadd.f32 %v454_v12, %v2554_v28  ;;  %v1895_v38 = vand.u32 2147483648, %v460_v10  ;;  %v1409_v50 = vld [vmem:[%s4503_s1 + $0x458] sm:$0x3] }
  0x95   :  { %v482_v24 = vmin.f32 %v474_v16, 255.0  ;;  %v475_v36 = vmax.f32 %v1889_v21, 0.0  ;;  %v1893_v37 = vcvt.s32.f32 %v1892_v49  ;;  %vm3213_vm2 = vcmp.lt.f32.partialorder %v1890_v18, 8388608.0 }
  0x96   :  { %v414_v25 = vmax.f32 %v406_v19, 0.0  ;;  %v1898_v40 = vand.u32 2147483647, %v461_v22  ;;  %v1900_v41 = vcvt.f32.s32 %v461_v22  ;;  %v1903_v52 = vand.u32 2147483648, %v461_v22 }
  0x97   :  { %v490_v42 = vsub.f32 %v482_v24, %v2554_v28  ;;  %v483_v43 = vmin.f32 %v475_v36, 255.0  ;;  %v1894_v44 = vand.u32 2147483647, %v1893_v37  ;;  %v1906_v26 = vand.u32 2147483647, %v462_v23  ;;  %v1427_v37 = vld [vmem:[%s4503_s1 + $0x148] sm:$0xff] }
  0x98   :  { %1401 = vst [vmem:[%s4504_s2 + $0x218] sm:$0x3] %v414_v25  ;;  %vm3227_vm3 = vcmp.lt.f32.partialorder %v1898_v40, 8388608.0  ;;  %v1901_v56 = vcvt.s32.f32 %v1900_v41  ;;  %v1908_v34 = vcvt.f32.s32 %v462_v23  ;;  %v1911_v31 = vand.u32 2147483648, %v462_v23  ;;  %v1435_v25 = vld [vmem:[%s4503_s1 + $0x168] sm:$0xff] }
  0x99   :  { %v498_v27 = vmul.f32 %v490_v42, %v2557_v29  ;;  %v491_v55 = vsub.f32 %v483_v43, %v2554_v28  ;;  %v1896_v30 = vor.u32 %v1895_v38, %v1894_v44  ;;  %v455_v57 = vmul.f32 %v447_v17, %v2569_v32  ;;  %v1428_v42 = vld [vmem:[%s4503_s1 + $0x150] sm:$0xff] }
  0x9a   :  { %v1902_v35 = vand.u32 2147483647, %v1901_v56  ;;  %v1909_v45 = vcvt.s32.f32 %v1908_v34  ;;  %v448_v58 = vmax.f32 %v1408_v39, %v1416_v20  ;;  %v449_v46 = vmax.f32 %v1409_v50, %v1417_v53  ;;  %v1436_v43 = vld [vmem:[%s4503_s1 + $0x170] sm:$0xff] }
  0x9b   :  { %v506_v59 = vmax.f32 %v498_v27, 0.0  ;;  %v499_v60 = vmul.f32 %v491_v55, %v2557_v29  ;;  %v1897_v61 = vsel %vm3213_vm2, %v1896_v30, %v460_v10  ;;  %v463_v0 = vadd.f32 %v455_v57, %v2554_v28 }
  0x9c   :  { %v476_v51 = vmax.f32 %v1897_v61, 0.0  ;;  %v1904_v62 = vor.u32 %v1903_v52, %v1902_v35  ;;  %v1910_v63 = vand.u32 2147483647, %v1909_v45  ;;  %vm3247_vm4 = vcmp.lt.f32.partialorder %v1906_v26, 8388608.0  ;;  %v1429_v45 = vld [vmem:[%s4503_s1 + $0x158] sm:$0x3] }
  0x9d   :  { %1418 = vst [vmem:[%s4504_s2 + $0x80] sm:$0xff] %v506_v59  ;;  %v507_v2 = vmax.f32 %v499_v60, 0.0  ;;  %v456_v5 = vmul.f32 %v448_v58, %v2569_v32  ;;  %v457_v3 = vmul.f32 %v449_v46, %v2569_v32  ;;  %v1914_v8 = vand.u32 2147483647, %v463_v0  ;;  %v1437_v61 = vld [vmem:[%s4503_s1 + $0x178] sm:$0x3] }
  0x9e   :  { %v484_v48 = vmin.f32 %v476_v51, 255.0  ;;  %v1905_v6 = vsel %vm3227_vm3, %v1904_v62, %v461_v22  ;;  %v1912_v7 = vor.u32 %v1911_v31, %v1910_v63  ;;  %v1916_v10 = vcvt.f32.s32 %v463_v0 }
  0x9f   :  { %1419 = vst [vmem:[%s4504_s2 + $0x88] sm:$0xff] %v507_v2  ;;  %v477_v9 = vmax.f32 %v1905_v6, 0.0  ;;  %v464_v11 = vadd.f32 %v456_v5, %v2554_v28  ;;  %v541_v12 = vmax.f32 %v1426_v47, %v1434_v1  ;;  %v1919_v15 = vand.u32 2147483648, %v463_v0 }
  0xa0   :  { %v492_v13 = vsub.f32 %v484_v48, %v2554_v28  ;;  %v1913_v14 = vsel %vm3247_vm4, %v1912_v7, %v462_v23  ;;  %v465_v16 = vadd.f32 %v457_v3, %v2554_v28  ;;  %v1917_v17 = vcvt.s32.f32 %v1916_v10 }
  0xa1   :  { %v485_v18 = vmin.f32 %v477_v9, 255.0  ;;  %v478_v49 = vmax.f32 %v1913_v14, 0.0  ;;  %v1922_v19 = vand.u32 2147483647, %v464_v11  ;;  %vm3264_vm5 = vcmp.lt.f32.partialorder %v1914_v8, 8388608.0 }
  0xa2   :  { %v500_v21 = vmul.f32 %v492_v13, %v2557_v29  ;;  %v1924_v24 = vcvt.f32.s32 %v464_v11  ;;  %v1927_v36 = vand.u32 2147483648, %v464_v11  ;;  %v1918_v39 = vand.u32 2147483647, %v1917_v17  ;;  %v1430_v17 = vld [vmem:[%s4503_s1 + $0x480] sm:$0xff] }
  0xa3   :  { %v493_v23 = vsub.f32 %v485_v18, %v2554_v28  ;;  %v486_v38 = vmin.f32 %v478_v49, 255.0  ;;  %v1930_v20 = vand.u32 2147483647, %v465_v16  ;;  %vm3275_vm6 = vcmp.lt.f32.partialorder %v1922_v19, 8388608.0 }
  0xa4   :  { %v508_v33 = vmax.f32 %v500_v21, 0.0  ;;  %v1925_v41 = vcvt.s32.f32 %v1924_v24  ;;  %v1932_v50 = vcvt.f32.s32 %v465_v16  ;;  %v1920_v53 = vor.u32 %v1919_v15, %v1918_v39  ;;  %v1438_v24 = vld [vmem:[%s4503_s1 + $0x4a0] sm:$0xff]  ;;  %v1431_v39 = vld [vmem:[%s4503_s1 + $0x488] sm:$0xff] }
  0xa5   :  { %v501_v44 = vmul.f32 %v493_v23, %v2557_v29  ;;  %v494_v52 = vsub.f32 %v486_v38, %v2554_v28  ;;  %v1935_v54 = vand.u32 2147483648, %v465_v16  ;;  %v549_v34 = vmul.f32 %v541_v12, %v2569_v32 }
  0xa6   :  { %1420 = vst [vmem:[%s4504_s2 + $0x90] sm:$0xff] %v508_v33  ;;  %v1926_v56 = vand.u32 2147483647, %v1925_v41  ;;  %v1933_v26 = vcvt.s32.f32 %v1932_v50  ;;  %v542_v27 = vmax.f32 %v1427_v37, %v1435_v25  ;;  %v1921_v31 = vsel %vm3264_vm5, %v1920_v53, %v463_v0 }
  0xa7   :  { %v509_v55 = vmax.f32 %v501_v44, 0.0  ;;  %v502_v30 = vmul.f32 %v494_v52, %v2557_v29  ;;  %v543_v35 = vmax.f32 %v1428_v42, %v1436_v43  ;;  %v479_v57 = vmax.f32 %v1921_v31, 0.0  ;;  %v1440_v31 = vld [vmem:[%s4503_s1 + $0x4b0] sm:$0xff] }
  0xa8   :  { %v1928_v58 = vor.u32 %v1927_v36, %v1926_v56  ;;  %v1934_v59 = vand.u32 2147483647, %v1933_v26  ;;  %v557_v60 = vadd.f32 %v549_v34, %v2554_v28  ;;  %vm3304_vm7 = vcmp.lt.f32.partialorder %v1930_v20, 8388608.0  ;;  %v1439_v20 = vld [vmem:[%s4503_s1 + $0x4a8] sm:$0xff] }
  0xa9   :  { %1421 = vst [vmem:[%s4504_s2 + $0x98] sm:$0x3] %v509_v55  ;;  %v510_v46 = vmax.f32 %v502_v30, 0.0  ;;  %v550_v62 = vmul.f32 %v542_v27, %v2569_v32  ;;  %v551_v63 = vmul.f32 %v543_v35, %v2569_v32  ;;  %v487_v0 = vmin.f32 %v479_v57, 255.0  ;;  %v1432_v30 = vld [vmem:[%s4503_s1 + $0x490] sm:$0xff] }
  0xaa   :  { %v1929_v47 = vsel %vm3275_vm6, %v1928_v58, %v464_v11  ;;  %v1936_v1 = vor.u32 %v1935_v54, %v1934_v59  ;;  %v1938_v2 = vand.u32 2147483647, %v557_v60  ;;  %v1940_v5 = vcvt.f32.s32 %v557_v60 }
  0xab   :  { %1422 = vst [vmem:[%s4504_s2 + $0x220] sm:$0xff] %v510_v46  ;;  %v480_v4 = vmax.f32 %v1929_v47, 0.0  ;;  %v558_v3 = vadd.f32 %v550_v62, %v2554_v28  ;;  %v544_v48 = vmax.f32 %v1429_v45, %v1437_v61  ;;  %v495_v6 = vsub.f32 %v487_v0, %v2554_v28 }
  0xac   :  { %v1937_v7 = vsel %vm3304_vm7, %v1936_v1, %v465_v16  ;;  %v1943_v8 = vand.u32 2147483648, %v557_v60  ;;  %v559_v9 = vadd.f32 %v551_v63, %v2554_v28  ;;  %v1941_v12 = vcvt.s32.f32 %v1940_v5 }
  0xad   :  { %v488_v10 = vmin.f32 %v480_v4, 255.0  ;;  %v481_v11 = vmax.f32 %v1937_v7, 0.0  ;;  %v1946_v13 = vand.u32 2147483647, %v558_v3  ;;  %v503_v14 = vmul.f32 %v495_v6, %v2557_v29 }
  0xae   :  { %vm3321_vm8 = vcmp.lt.f32.partialorder %v1938_v2, 8388608.0  ;;  %v1948_v18 = vcvt.f32.s32 %v558_v3  ;;  %v1951_v49 = vand.u32 2147483648, %v558_v3  ;;  %v1942_v21 = vand.u32 2147483647, %v1941_v12  ;;  %v1433_v12 = vld [vmem:[%s4503_s1 + $0x498] sm:$0x3] }
  0xaf   :  { %v496_v16 = vsub.f32 %v488_v10, %v2554_v28  ;;  %v489_v19 = vmin.f32 %v481_v11, 255.0  ;;  %v1954_v22 = vand.u32 2147483647, %v559_v9  ;;  %v511_v36 = vmax.f32 %v503_v14, 0.0 }
  0xb0   :  { %vm3332_vm9 = vcmp.lt.f32.partialorder %v1946_v13, 8388608.0  ;;  %v1949_v23 = vcvt.s32.f32 %v1948_v18  ;;  %v1956_v38 = vcvt.f32.s32 %v559_v9  ;;  %v1944_v40 = vor.u32 %v1943_v8, %v1942_v21  ;;  %v1450_v21 = vld [vmem:[%s4503_s1 + $0x180] sm:$0xff] }
  0xb1   :  { %v504_v25 = vmul.f32 %v496_v16, %v2557_v29  ;;  %v497_v33 = vsub.f32 %v489_v19, %v2554_v28  ;;  %v1959_v41 = vand.u32 2147483648, %v559_v9  ;;  %1423 = vst [vmem:[%s4504_s2 + $0x228] sm:$0xff] %v511_v36  ;;  %v552_v43 = vmul.f32 %v544_v48, %v2569_v32 }
  0xb2   :  { %v1950_v50 = vand.u32 2147483647, %v1949_v23  ;;  %v1957_v42 = vcvt.s32.f32 %v1956_v38  ;;  %v545_v44 = vmax.f32 %v1430_v17, %v1438_v24  ;;  %v1945_v54 = vsel %vm3321_vm8, %v1944_v40, %v557_v60 }
  0xb3   :  { %v512_v52 = vmax.f32 %v504_v25, 0.0  ;;  %v505_v53 = vmul.f32 %v497_v33, %v2557_v29  ;;  %v546_v56 = vmax.f32 %v1431_v39, %v1439_v20  ;;  %v573_v26 = vmax.f32 %v1945_v54, 0.0  ;;  %v1459_v54 = vld [vmem:[%s4503_s1 + $0x1a8] sm:$0xff] }
  0xb4   :  { %v1952_v34 = vor.u32 %v1951_v49, %v1950_v50  ;;  %v1958_v27 = vand.u32 2147483647, %v1957_v42  ;;  %v560_v55 = vadd.f32 %v552_v43, %v2554_v28  ;;  %vm3361_vm10 = vcmp.lt.f32.partialorder %v1954_v22, 8388608.0  ;;  %v1458_v22 = vld [vmem:[%s4503_s1 + $0x1a0] sm:$0xff] }
  0xb5   :  { %1424 = vst [vmem:[%s4504_s2 + $0x230] sm:$0xff] %v512_v52  ;;  %v513_v35 = vmax.f32 %v505_v53, 0.0  ;;  %v553_v57 = vmul.f32 %v545_v44, %v2569_v32  ;;  %v554_v58 = vmul.f32 %v546_v56, %v2569_v32  ;;  %v581_v59 = vmin.f32 %v573_v26, 255.0  ;;  %v1451_v53 = vld [vmem:[%s4503_s1 + $0x188] sm:$0xff] }
  0xb6   :  { %v1953_v60 = vsel %vm3332_vm9, %v1952_v34, %v558_v3  ;;  %v1960_v61 = vor.u32 %v1959_v41, %v1958_v27  ;;  %v1962_v46 = vand.u32 2147483647, %v560_v55  ;;  %v1964_v62 = vcvt.f32.s32 %v560_v55 }
  0xb7   :  { %1425 = vst [vmem:[%s4504_s2 + $0x238] sm:$0x3] %v513_v35  ;;  %v574_v51 = vmax.f32 %v1953_v60, 0.0  ;;  %v561_v63 = vadd.f32 %v553_v57, %v2554_v28  ;;  %v547_v0 = vmax.f32 %v1432_v30, %v1440_v31  ;;  %v589_v47 = vsub.f32 %v581_v59, %v2554_v28 }
  0xb8   :  { %v1961_v1 = vsel %vm3361_vm10, %v1960_v61, %v559_v9  ;;  %v1967_v2 = vand.u32 2147483648, %v560_v55  ;;  %v562_v4 = vadd.f32 %v554_v58, %v2554_v28  ;;  %v1965_v48 = vcvt.s32.f32 %v1964_v62  ;;  %v1441_v9 = vld [vmem:[%s4503_s1 + $0x4b8] sm:$0x3] }
  0xb9   :  { %v582_v5 = vmin.f32 %v574_v51, 255.0  ;;  %v575_v3 = vmax.f32 %v1961_v1, 0.0  ;;  %v1970_v6 = vand.u32 2147483647, %v561_v63  ;;  %v597_v7 = vmul.f32 %v589_v47, %v2557_v29 }
  0xba   :  { %vm3378_vm11 = vcmp.lt.f32.partialorder %v1962_v46, 8388608.0  ;;  %v1972_v10 = vcvt.f32.s32 %v561_v63  ;;  %v1975_v11 = vand.u32 2147483648, %v561_v63  ;;  %v1966_v15 = vand.u32 2147483647, %v1965_v48  ;;  %v1452_v48 = vld [vmem:[%s4503_s1 + $0x190] sm:$0xff] }
  0xbb   :  { %v590_v13 = vsub.f32 %v582_v5, %v2554_v28  ;;  %v583_v14 = vmin.f32 %v575_v3, 255.0  ;;  %v1978_v18 = vand.u32 2147483647, %v562_v4  ;;  %v605_v49 = vmax.f32 %v597_v7, 0.0 }
  0xbc   :  { %vm3389_vm12 = vcmp.lt.f32.partialorder %v1970_v6, 8388608.0  ;;  %v1973_v16 = vcvt.s32.f32 %v1972_v10  ;;  %v1980_v19 = vcvt.f32.s32 %v562_v4  ;;  %v1968_v37 = vor.u32 %v1967_v2, %v1966_v15  ;;  %v1460_v10 = vld [vmem:[%s4503_s1 + $0x1b0] sm:$0xff]  ;;  %v1461_v15 = vld [vmem:[%s4503_s1 + $0x1b8] sm:$0x3] }
  0xbd   :  { %v598_v24 = vmul.f32 %v590_v13, %v2557_v29  ;;  %v591_v36 = vsub.f32 %v583_v14, %v2554_v28  ;;  %v1983_v23 = vand.u32 2147483648, %v562_v4  ;;  %1442 = vst [vmem:[%s4504_s2 + $0xa0] sm:$0xff] %v605_v49  ;;  %v555_v20 = vmul.f32 %v547_v0, %v2569_v32  ;;  %v1453_v14 = vld [vmem:[%s4503_s1 + $0x198] sm:$0x3] }
  0xbe   :  { %v1974_v38 = vand.u32 2147483647, %v1973_v16  ;;  %v1981_v39 = vcvt.s32.f32 %v1980_v19  ;;  %v548_v25 = vmax.f32 %v1433_v12, %v1441_v9  ;;  %v1969_v41 = vsel %vm3378_vm11, %v1968_v37, %v560_v55 }
  0xbf   :  { %v606_v33 = vmax.f32 %v598_v24, 0.0  ;;  %v599_v40 = vmul.f32 %v591_v36, %v2557_v29  ;;  %v640_v50 = vmax.f32 %v1450_v21, %v1458_v22  ;;  %v576_v42 = vmax.f32 %v1969_v41, 0.0  ;;  %v1462_v41 = vld [vmem:[%s4503_s1 + $0x4e0] sm:$0xff] }
  0xc0   :  { %v1976_v43 = vor.u32 %v1975_v11, %v1974_v38  ;;  %v1982_v44 = vand.u32 2147483647, %v1981_v39  ;;  %v563_v52 = vadd.f32 %v555_v20, %v2554_v28  ;;  %vm3418_vm13 = vcmp.lt.f32.partialorder %v1978_v18, 8388608.0 }
  0xc1   :  { %1443 = vst [vmem:[%s4504_s2 + $0xa8] sm:$0xff] %v606_v33  ;;  %v607_v56 = vmax.f32 %v599_v40, 0.0  ;;  %v556_v34 = vmul.f32 %v548_v25, %v2569_v32  ;;  %v648_v27 = vmul.f32 %v640_v50, %v2569_v32  ;;  %v584_v55 = vmin.f32 %v576_v42, 255.0  ;;  %v1454_v40 = vld [vmem:[%s4503_s1 + $0x4c0] sm:$0xff] }
  0xc2   :  { %v1977_v30 = vsel %vm3389_vm12, %v1976_v43, %v561_v63  ;;  %v1984_v31 = vor.u32 %v1983_v23, %v1982_v44  ;;  %v1986_v35 = vand.u32 2147483647, %v563_v52  ;;  %v1988_v57 = vcvt.f32.s32 %v563_v52 }
  0xc3   :  { %1444 = vst [vmem:[%s4504_s2 + $0xb0] sm:$0xff] %v607_v56  ;;  %v577_v45 = vmax.f32 %v1977_v30, 0.0  ;;  %v564_v58 = vadd.f32 %v556_v34, %v2554_v28  ;;  %v641_v59 = vmax.f32 %v1451_v53, %v1459_v54  ;;  %v592_v60 = vsub.f32 %v584_v55, %v2554_v28 }
  0xc4   :  { %v1985_v61 = vsel %vm3418_vm13, %v1984_v31, %v562_v4  ;;  %v1991_v46 = vand.u32 2147483648, %v563_v52  ;;  %v656_v51 = vadd.f32 %v648_v27, %v2554_v28  ;;  %v1989_v0 = vcvt.s32.f32 %v1988_v57 }
  0xc5   :  { %v585_v62 = vmin.f32 %v577_v45, 255.0  ;;  %v578_v63 = vmax.f32 %v1985_v61, 0.0  ;;  %v1994_v47 = vand.u32 2147483647, %v564_v58  ;;  %v600_v1 = vmul.f32 %v592_v60, %v2557_v29 }
  0xc6   :  { %vm3435_vm14 = vcmp.lt.f32.partialorder %v1986_v35, 8388608.0  ;;  %v1996_v5 = vcvt.f32.s32 %v564_v58  ;;  %v1999_v3 = vand.u32 2147483648, %v564_v58  ;;  %v1990_v7 = vand.u32 2147483647, %v1989_v0  ;;  %v1455_v0 = vld [vmem:[%s4503_s1 + $0x4c8] sm:$0xff] }
  0xc7   :  { %v593_v4 = vsub.f32 %v585_v62, %v2554_v28  ;;  %v586_v6 = vmin.f32 %v578_v63, 255.0  ;;  %v2002_v8 = vand.u32 2147483647, %v656_v51  ;;  %v608_v11 = vmax.f32 %v600_v1, 0.0 }
  0xc8   :  { %vm3446_vm15 = vcmp.lt.f32.partialorder %v1994_v47, 8388608.0  ;;  %v1997_v9 = vcvt.s32.f32 %v1996_v5  ;;  %v2004_v13 = vcvt.f32.s32 %v656_v51  ;;  %v1992_v17 = vor.u32 %v1991_v46, %v1990_v7  ;;  %v1463_v5 = vld [vmem:[%s4503_s1 + $0x4e8] sm:$0xff]  ;;  %v1456_v7 = vld [vmem:[%s4503_s1 + $0x4d0] sm:$0xff] }
  0xc9   :  { %v601_v18 = vmul.f32 %v593_v4, %v2557_v29  ;;  %v594_v49 = vsub.f32 %v586_v6, %v2554_v28  ;;  %v2007_v16 = vand.u32 2147483648, %v656_v51  ;;  %1445 = vst [vmem:[%s4504_s2 + $0xb8] sm:$0x3] %v608_v11  ;;  %v649_v22 = vmul.f32 %v641_v59, %v2569_v32 }
  0xca   :  { %v1998_v19 = vand.u32 2147483647, %v1997_v9  ;;  %v2005_v21 = vcvt.s32.f32 %v2004_v13  ;;  %v642_v24 = vmax.f32 %v1452_v48, %v1460_v10  ;;  %v1993_v23 = vsel %vm3435_vm14, %v1992_v17, %v563_v52 }
  0xcb   :  { %v609_v36 = vmax.f32 %v601_v18, 0.0  ;;  %v602_v37 = vmul.f32 %v594_v49, %v2557_v29  ;;  %v643_v38 = vmax.f32 %v1453_v14, %v1461_v15  ;;  %v579_v39 = vmax.f32 %v1993_v23, 0.0  ;;  %v1465_v23 = vld [vmem:[%s4503_s1 + $0x4f8] sm:$0x3] }
  0xcc   :  { %v2000_v20 = vor.u32 %v1999_v3, %v1998_v19  ;;  %v2006_v25 = vand.u32 2147483647, %v2005_v21  ;;  %v657_v33 = vadd.f32 %v649_v22, %v2554_v28  ;;  %vm3475_vm0 = vcmp.lt.f32.partialorder %v2002_v8, 8388608.0  ;;  %v1464_v8 = vld [vmem:[%s4503_s1 + $0x4f0] sm:$0xff]  ;;  %v1457_v21 = vld [vmem:[%s4503_s1 + $0x4d8] sm:$0x3] }
  0xcd   :  { %1446 = vst [vmem:[%s4504_s2 + $0x240] sm:$0xff] %v609_v36  ;;  %v610_v50 = vmax.f32 %v602_v37, 0.0  ;;  %v650_v43 = vmul.f32 %v642_v24, %v2569_v32  ;;  %v651_v44 = vmul.f32 %v643_v38, %v2569_v32  ;;  %v587_v52 = vmin.f32 %v579_v39, 255.0 }
  0xce   :  { %v2001_v53 = vsel %vm3446_vm15, %v2000_v20, %v564_v58  ;;  %v2008_v54 = vor.u32 %v2007_v16, %v2006_v25  ;;  %v2010_v56 = vand.u32 2147483647, %v657_v33  ;;  %v2012_v34 = vcvt.f32.s32 %v657_v33 }
  0xcf   :  { %1447 = vst [vmem:[%s4504_s2 + $0x248] sm:$0xff] %v610_v50  ;;  %v580_v26 = vmax.f32 %v2001_v53, 0.0  ;;  %v658_v27 = vadd.f32 %v650_v43, %v2554_v28  ;;  %v644_v55 = vmax.f32 %v1454_v40, %v1462_v41  ;;  %v595_v30 = vsub.f32 %v587_v52, %v2554_v28 }
  0xd0   :  { %v2009_v31 = vsel %vm3475_vm0, %v2008_v54, %v656_v51  ;;  %v2015_v35 = vand.u32 2147483648, %v657_v33  ;;  %v659_v45 = vadd.f32 %v651_v44, %v2554_v28  ;;  %v2013_v59 = vcvt.s32.f32 %v2012_v34 }
  0xd1   :  { %v588_v57 = vmin.f32 %v580_v26, 255.0  ;;  %v672_v58 = vmax.f32 %v2009_v31, 0.0  ;;  %v2018_v60 = vand.u32 2147483647, %v658_v27  ;;  %v603_v61 = vmul.f32 %v595_v30, %v2557_v29 }
  0xd2   :  { %vm3492_vm1 = vcmp.lt.f32.partialorder %v2010_v56, 8388608.0  ;;  %v2020_v62 = vcvt.f32.s32 %v658_v27  ;;  %v2023_v63 = vand.u32 2147483648, %v658_v27  ;;  %v2014_v1 = vand.u32 2147483647, %v2013_v59  ;;  %v1474_v59 = vld [vmem:[%s4503_s1 + $0x1c0] sm:$0xff] }
  0xd3   :  { %v596_v51 = vsub.f32 %v588_v57, %v2554_v28  ;;  %v680_v47 = vmin.f32 %v672_v58, 255.0  ;;  %v2026_v2 = vand.u32 2147483647, %v659_v45  ;;  %v611_v3 = vmax.f32 %v603_v61, 0.0 }
  0xd4   :  { %vm3503_vm2 = vcmp.lt.f32.partialorder %v2018_v60, 8388608.0  ;;  %v2021_v4 = vcvt.s32.f32 %v2020_v62  ;;  %v2028_v6 = vcvt.f32.s32 %v659_v45  ;;  %v2016_v12 = vor.u32 %v2015_v35, %v2014_v1  ;;  %v1482_v62 = vld [vmem:[%s4503_s1 + $0x1e0] sm:$0xff]  ;;  %v1475_v1 = vld [vmem:[%s4503_s1 + $0x1c8] sm:$0xff] }
  0xd5   :  { %v604_v10 = vmul.f32 %v596_v51, %v2557_v29  ;;  %v688_v11 = vsub.f32 %v680_v47, %v2554_v28  ;;  %v2031_v9 = vand.u32 2147483648, %v659_v45  ;;  %1448 = vst [vmem:[%s4504_s2 + $0x250] sm:$0xff] %v611_v3  ;;  %v652_v15 = vmul.f32 %v644_v55, %v2569_v32 }
  0xd6   :  { %v2022_v13 = vand.u32 2147483647, %v2021_v4  ;;  %v2029_v14 = vcvt.s32.f32 %v2028_v6  ;;  %v645_v18 = vmax.f32 %v1455_v0, %v1463_v5  ;;  %v2017_v16 = vsel %vm3492_vm1, %v2016_v12, %v657_v33 }
  0xd7   :  { %v612_v49 = vmax.f32 %v604_v10, 0.0  ;;  %v696_v17 = vmul.f32 %v688_v11, %v2557_v29  ;;  %v646_v19 = vmax.f32 %v1456_v7, %v1464_v8  ;;  %v673_v22 = vmax.f32 %v2017_v16, 0.0  ;;  %v1484_v16 = vld [vmem:[%s4503_s1 + $0x1f0] sm:$0xff] }
  0xd8   :  { %v2024_v24 = vor.u32 %v2023_v63, %v2022_v13  ;;  %v2030_v36 = vand.u32 2147483647, %v2029_v14  ;;  %v660_v37 = vadd.f32 %v652_v15, %v2554_v28  ;;  %vm3532_vm3 = vcmp.lt.f32.partialorder %v2026_v2, 8388608.0  ;;  %v1483_v2 = vld [vmem:[%s4503_s1 + $0x1e8] sm:$0xff] }
  0xd9   :  { %1449 = vst [vmem:[%s4504_s2 + $0x258] sm:$0x3] %v612_v49  ;;  %v704_v38 = vmax.f32 %v696_v17, 0.0  ;;  %v653_v20 = vmul.f32 %v645_v18, %v2569_v32  ;;  %v654_v25 = vmul.f32 %v646_v19, %v2569_v32  ;;  %v681_v33 = vmin.f32 %v673_v22, 255.0  ;;  %v1476_v17 = vld [vmem:[%s4503_s1 + $0x1d0] sm:$0xff] }
  0xda   :  { %v2025_v40 = vsel %vm3503_vm2, %v2024_v24, %v658_v27  ;;  %v2032_v41 = vor.u32 %v2031_v9, %v2030_v36  ;;  %v2034_v50 = vand.u32 2147483647, %v660_v37  ;;  %v2036_v43 = vcvt.f32.s32 %v660_v37 }
  0xdb   :  { %1466 = vst [vmem:[%s4504_s2 + $0xc0] sm:$0xff] %v704_v38  ;;  %v674_v42 = vmax.f32 %v2025_v40, 0.0  ;;  %v661_v44 = vadd.f32 %v653_v20, %v2554_v28  ;;  %v647_v52 = vmax.f32 %v1457_v21, %v1465_v23  ;;  %v689_v53 = vsub.f32 %v681_v33, %v2554_v28 }
  0xdc   :  { %v2033_v54 = vsel %vm3532_vm3, %v2032_v41, %v659_v45  ;;  %v2039_v56 = vand.u32 2147483648, %v660_v37  ;;  %v662_v26 = vadd.f32 %v654_v25, %v2554_v28  ;;  %v2037_v55 = vcvt.s32.f32 %v2036_v43 }
  0xdd   :  { %v682_v34 = vmin.f32 %v674_v42, 255.0  ;;  %v675_v27 = vmax.f32 %v2033_v54, 0.0  ;;  %v2042_v30 = vand.u32 2147483647, %v661_v44  ;;  %v697_v31 = vmul.f32 %v689_v53, %v2557_v29 }
  0xde   :  { %vm3549_vm4 = vcmp.lt.f32.partialorder %v2034_v50, 8388608.0  ;;  %v2044_v57 = vcvt.f32.s32 %v661_v44  ;;  %v2047_v58 = vand.u32 2147483648, %v661_v44  ;;  %v2038_v61 = vand.u32 2147483647, %v2037_v55  ;;  %v1477_v55 = vld [vmem:[%s4503_s1 + $0x1d8] sm:$0x3] }
  0xdf   :  { %v690_v45 = vsub.f32 %v682_v34, %v2554_v28  ;;  %v683_v60 = vmin.f32 %v675_v27, 255.0  ;;  %v2050_v46 = vand.u32 2147483647, %v662_v26  ;;  %v705_v63 = vmax.f32 %v697_v31, 0.0 }
  0xe0   :  { %vm3560_vm5 = vcmp.lt.f32.partialorder %v2042_v30, 8388608.0  ;;  %v2045_v51 = vcvt.s32.f32 %v2044_v57  ;;  %v2052_v47 = vcvt.f32.s32 %v662_v26  ;;  %v2040_v48 = vor.u32 %v2039_v56, %v2038_v61  ;;  %v1478_v61 = vld [vmem:[%s4503_s1 + $0x500] sm:$0xff] }
  0xe1   :  { %v698_v5 = vmul.f32 %v690_v45, %v2557_v29  ;;  %v691_v3 = vsub.f32 %v683_v60, %v2554_v28  ;;  %v2055_v4 = vand.u32 2147483648, %v662_v26  ;;  %1467 = vst [vmem:[%s4504_s2 + $0xc8] sm:$0xff] %v705_v63  ;;  %v655_v8 = vmul.f32 %v647_v52, %v2569_v32 }
  0xe2   :  { %v2046_v6 = vand.u32 2147483647, %v2045_v51  ;;  %v2053_v7 = vcvt.s32.f32 %v2052_v47  ;;  %v739_v10 = vmax.f32 %v1474_v59, %v1482_v62  ;;  %v2041_v9 = vsel %vm3549_vm4, %v2040_v48, %v660_v37 }
  0xe3   :  { %v706_v11 = vmax.f32 %v698_v5, 0.0  ;;  %v699_v12 = vmul.f32 %v691_v3, %v2557_v29  ;;  %v740_v13 = vmax.f32 %v1475_v1, %v1483_v2  ;;  %v676_v14 = vmax.f32 %v2041_v9, 0.0  ;;  %v1487_v9 = vld [vmem:[%s4503_s1 + $0x528] sm:$0xff] }
  0xe4   :  { %v2048_v15 = vor.u32 %v2047_v58, %v2046_v6  ;;  %v2054_v18 = vand.u32 2147483647, %v2053_v7  ;;  %v663_v49 = vadd.f32 %v655_v8, %v2554_v28  ;;  %vm3589_vm6 = vcmp.lt.f32.partialorder %v2050_v46, 8388608.0  ;;  %v1486_v46 = vld [vmem:[%s4503_s1 + $0x520] sm:$0xff] }
  0xe5   :  { %1468 = vst [vmem:[%s4504_s2 + $0xd0] sm:$0xff] %v706_v11  ;;  %v707_v19 = vmax.f32 %v699_v12, 0.0  ;;  %v747_v22 = vmul.f32 %v739_v10, %v2569_v32  ;;  %v748_v24 = vmul.f32 %v740_v13, %v2569_v32  ;;  %v684_v36 = vmin.f32 %v676_v14, 255.0  ;;  %v1479_v12 = vld [vmem:[%s4503_s1 + $0x508] sm:$0xff] }
  0xe6   :  { %v2049_v37 = vsel %vm3560_vm5, %v2048_v15, %v661_v44  ;;  %v2056_v23 = vor.u32 %v2055_v4, %v2054_v18  ;;  %v2058_v38 = vand.u32 2147483647, %v663_v49  ;;  %v2060_v20 = vcvt.f32.s32 %v663_v49 }
  0xe7   :  { %1469 = vst [vmem:[%s4504_s2 + $0xd8] sm:$0x3] %v707_v19  ;;  %v677_v39 = vmax.f32 %v2049_v37, 0.0  ;;  %v755_v25 = vadd.f32 %v747_v22, %v2554_v28  ;;  %v741_v33 = vmax.f32 %v1476_v17, %v1484_v16  ;;  %v692_v40 = vsub.f32 %v684_v36, %v2554_v28 }
  0xe8   :  { %v2057_v41 = vsel %vm3589_vm6, %v2056_v23, %v662_v26  ;;  %v2063_v50 = vand.u32 2147483648, %v663_v49  ;;  %v756_v42 = vadd.f32 %v748_v24, %v2554_v28  ;;  %v2061_v52 = vcvt.s32.f32 %v2060_v20  ;;  %v1485_v26 = vld [vmem:[%s4503_s1 + $0x1f8] sm:$0x3] }
  0xe9   :  { %v685_v43 = vmin.f32 %v677_v39, 255.0  ;;  %v678_v44 = vmax.f32 %v2057_v41, 0.0  ;;  %v2066_v53 = vand.u32 2147483647, %v755_v25  ;;  %v700_v54 = vmul.f32 %v692_v40, %v2557_v29 }
  0xea   :  { %vm3606_vm7 = vcmp.lt.f32.partialorder %v2058_v38, 8388608.0  ;;  %v2068_v34 = vcvt.f32.s32 %v755_v25  ;;  %v2071_v27 = vand.u32 2147483648, %v755_v25  ;;  %v2062_v35 = vand.u32 2147483647, %v2061_v52  ;;  %v1480_v52 = vld [vmem:[%s4503_s1 + $0x510] sm:$0xff] }
  0xeb   :  { %v693_v30 = vsub.f32 %v685_v43, %v2554_v28  ;;  %v686_v31 = vmin.f32 %v678_v44, 255.0  ;;  %v2074_v57 = vand.u32 2147483647, %v756_v42  ;;  %v708_v58 = vmax.f32 %v700_v54, 0.0 }
  0xec   :  { %vm3617_vm8 = vcmp.lt.f32.partialorder %v2066_v53, 8388608.0  ;;  %v2069_v45 = vcvt.s32.f32 %v2068_v34  ;;  %v2076_v60 = vcvt.f32.s32 %v756_v42  ;;  %v2064_v0 = vor.u32 %v2063_v50, %v2062_v35  ;;  %v1488_v34 = vld [vmem:[%s4503_s1 + $0x530] sm:$0xff]  ;;  %v1489_v35 = vld [vmem:[%s4503_s1 + $0x538] sm:$0x3] }
  0xed   :  { %v701_v62 = vmul.f32 %v693_v30, %v2557_v29  ;;  %v694_v63 = vsub.f32 %v686_v31, %v2554_v28  ;;  %v2079_v51 = vand.u32 2147483648, %v756_v42  ;;  %1470 = vst [vmem:[%s4504_s2 + $0x260] sm:$0xff] %v708_v58  ;;  %v749_v2 = vmul.f32 %v741_v33, %v2569_v32  ;;  %v1481_v31 = vld [vmem:[%s4503_s1 + $0x518] sm:$0x3] }
  0xee   :  { %v2070_v47 = vand.u32 2147483647, %v2069_v45  ;;  %v2077_v1 = vcvt.s32.f32 %v2076_v60  ;;  %v742_v5 = vmax.f32 %v1477_v55, %v1485_v26  ;;  %v2065_v4 = vsel %vm3606_vm7, %v2064_v0, %v663_v49 }
  0xef   :  { %v709_v3 = vmax.f32 %v701_v62, 0.0  ;;  %v702_v48 = vmul.f32 %v694_v63, %v2557_v29  ;;  %v743_v6 = vmax.f32 %v1478_v61, %v1486_v46  ;;  %v679_v7 = vmax.f32 %v2065_v4, 0.0  ;;  %v1506_v4 = vld [vmem:[%s4503_s1 + $0x220] sm:$0xff] }
  0xf0   :  { %v2072_v8 = vor.u32 %v2071_v27, %v2070_v47  ;;  %v2078_v10 = vand.u32 2147483647, %v2077_v1  ;;  %v757_v11 = vadd.f32 %v749_v2, %v2554_v28  ;;  %vm3646_vm9 = vcmp.lt.f32.partialorder %v2074_v57, 8388608.0 }
  0xf1   :  { %1471 = vst [vmem:[%s4504_s2 + $0x268] sm:$0xff] %v709_v3  ;;  %v710_v13 = vmax.f32 %v702_v48, 0.0  ;;  %v750_v15 = vmul.f32 %v742_v5, %v2569_v32  ;;  %v751_v18 = vmul.f32 %v743_v6, %v2569_v32  ;;  %v687_v49 = vmin.f32 %v679_v7, 255.0  ;;  %v1498_v48 = vld [vmem:[%s4503_s1 + $0x200] sm:$0xff] }
  0xf2   :  { %v2073_v17 = vsel %vm3617_vm8, %v2072_v8, %v755_v25  ;;  %v2080_v16 = vor.u32 %v2079_v51, %v2078_v10  ;;  %v2082_v19 = vand.u32 2147483647, %v757_v11  ;;  %v2084_v22 = vcvt.f32.s32 %v757_v11 }
  0xf3   :  { %1472 = vst [vmem:[%s4504_s2 + $0x270] sm:$0xff] %v710_v13  ;;  %v771_v21 = vmax.f32 %v2073_v17, 0.0  ;;  %v758_v24 = vadd.f32 %v750_v15, %v2554_v28  ;;  %v744_v36 = vmax.f32 %v1479_v12, %v1487_v9  ;;  %v695_v37 = vsub.f32 %v687_v49, %v2554_v28 }
  0xf4   :  { %v2081_v23 = vsel %vm3646_vm9, %v2080_v16, %v756_v42  ;;  %v2087_v38 = vand.u32 2147483648, %v757_v11  ;;  %v759_v39 = vadd.f32 %v751_v18, %v2554_v28  ;;  %v2085_v33 = vcvt.s32.f32 %v2084_v22 }
  0xf5   :  { %v779_v20 = vmin.f32 %v771_v21, 255.0  ;;  %v772_v25 = vmax.f32 %v2081_v23, 0.0  ;;  %v2090_v40 = vand.u32 2147483647, %v758_v24  ;;  %v703_v41 = vmul.f32 %v695_v37, %v2557_v29 }
  0xf6   :  { %vm3663_vm10 = vcmp.lt.f32.partialorder %v2082_v19, 8388608.0  ;;  %v2092_v43 = vcvt.f32.s32 %v758_v24  ;;  %v2095_v44 = vand.u32 2147483648, %v758_v24  ;;  %v2086_v54 = vand.u32 2147483647, %v2085_v33  ;;  %v1499_v33 = vld [vmem:[%s4503_s1 + $0x208] sm:$0xff] }
  0xf7   :  { %v787_v42 = vsub.f32 %v779_v20, %v2554_v28  ;;  %v780_v53 = vmin.f32 %v772_v25, 255.0  ;;  %v2098_v56 = vand.u32 2147483647, %v759_v39  ;;  %v711_v27 = vmax.f32 %v703_v41, 0.0 }
  0xf8   :  { %vm3674_vm11 = vcmp.lt.f32.partialorder %v2090_v40, 8388608.0  ;;  %v2093_v26 = vcvt.s32.f32 %v2092_v43  ;;  %v2100_v30 = vcvt.f32.s32 %v759_v39  ;;  %v2088_v59 = vor.u32 %v2087_v38, %v2086_v54  ;;  %v1507_v43 = vld [vmem:[%s4503_s1 + $0x228] sm:$0xff]  ;;  %v1500_v54 = vld [vmem:[%s4503_s1 + $0x210] sm:$0xff] }
  0xf9   :  { %v795_v57 = vmul.f32 %v787_v42, %v2557_v29  ;;  %v788_v58 = vsub.f32 %v780_v53, %v2554_v28  ;;  %v2103_v45 = vand.u32 2147483648, %v759_v39  ;;  %1473 = vst [vmem:[%s4504_s2 + $0x278] sm:$0x3] %v711_v27  ;;  %v752_v46 = vmul.f32 %v744_v36, %v2569_v32 }
  0xfa   :  { %v2094_v60 = vand.u32 2147483647, %v2093_v26  ;;  %v2101_v61 = vcvt.s32.f32 %v2100_v30  ;;  %v745_v62 = vmax.f32 %v1480_v52, %v1488_v34  ;;  %v2089_v51 = vsel %vm3663_vm10, %v2088_v59, %v757_v11 }
  0xfb   :  { %v803_v63 = vmax.f32 %v795_v57, 0.0  ;;  %v796_v0 = vmul.f32 %v788_v58, %v2557_v29  ;;  %v746_v47 = vmax.f32 %v1481_v31, %v1489_v35  ;;  %v773_v1 = vmax.f32 %v2089_v51, 0.0  ;;  %v1509_v51 = vld [vmem:[%s4503_s1 + $0x238] sm:$0x3] }
  0xfc   :  { %v2096_v2 = vor.u32 %v2095_v44, %v2094_v60  ;;  %v2102_v5 = vand.u32 2147483647, %v2101_v61  ;;  %v760_v3 = vadd.f32 %v752_v46, %v2554_v28  ;;  %vm3703_vm12 = vcmp.lt.f32.partialorder %v2098_v56, 8388608.0  ;;  %v1508_v56 = vld [vmem:[%s4503_s1 + $0x230] sm:$0xff]  ;;  %v1501_v61 = vld [vmem:[%s4503_s1 + $0x218] sm:$0x3] }
  0xfd   :  { %1490 = vst [vmem:[%s4504_s2 + $0xe0] sm:$0xff] %v803_v63  ;;  %v804_v6 = vmax.f32 %v796_v0, 0.0  ;;  %v753_v8 = vmul.f32 %v745_v62, %v2569_v32  ;;  %v754_v10 = vmul.f32 %v746_v47, %v2569_v32  ;;  %v781_v11 = vmin.f32 %v773_v1, 255.0 }
  0xfe   :  { %v2097_v12 = vsel %vm3674_vm11, %v2096_v2, %v758_v24  ;;  %v2104_v9 = vor.u32 %v2103_v45, %v2102_v5  ;;  %v2106_v13 = vand.u32 2147483647, %v760_v3  ;;  %v2108_v15 = vcvt.f32.s32 %v760_v3 }
  0xff   :  { %1491 = vst [vmem:[%s4504_s2 + $0xe8] sm:$0xff] %v804_v6  ;;  %v774_v14 = vmax.f32 %v2097_v12, 0.0  ;;  %v761_v18 = vadd.f32 %v753_v8, %v2554_v28  ;;  %v838_v49 = vmax.f32 %v1498_v48, %v1506_v4  ;;  %v789_v17 = vsub.f32 %v781_v11, %v2554_v28 }
 0x100   :  { %v2105_v16 = vsel %vm3703_vm12, %v2104_v9, %v759_v39  ;;  %v2111_v19 = vand.u32 2147483648, %v760_v3  ;;  %v762_v21 = vadd.f32 %v754_v10, %v2554_v28  ;;  %v2109_v36 = vcvt.s32.f32 %v2108_v15 }
 0x101   :  { %v782_v22 = vmin.f32 %v774_v14, 255.0  ;;  %v775_v24 = vmax.f32 %v2105_v16, 0.0  ;;  %v2114_v37 = vand.u32 2147483647, %v761_v18  ;;  %v797_v23 = vmul.f32 %v789_v17, %v2557_v29 }
 0x102   :  { %vm3720_vm13 = vcmp.lt.f32.partialorder %v2106_v13, 8388608.0  ;;  %v2116_v20 = vcvt.f32.s32 %v761_v18  ;;  %v2119_v25 = vand.u32 2147483648, %v761_v18  ;;  %v2110_v41 = vand.u32 2147483647, %v2109_v36  ;;  %v1502_v36 = vld [vmem:[%s4503_s1 + $0x540] sm:$0xff] }
 0x103   :  { %v790_v39 = vsub.f32 %v782_v22, %v2554_v28  ;;  %v783_v40 = vmin.f32 %v775_v24, 255.0  ;;  %v2122_v50 = vand.u32 2147483647, %v762_v21  ;;  %v805_v44 = vmax.f32 %v797_v23, 0.0 }
 0x104   :  { %vm3731_vm14 = vcmp.lt.f32.partialorder %v2114_v37, 8388608.0  ;;  %v2117_v42 = vcvt.s32.f32 %v2116_v20  ;;  %v2124_v53 = vcvt.f32.s32 %v762_v21  ;;  %v2112_v55 = vor.u32 %v2111_v19, %v2110_v41  ;;  %v1510_v20 = vld [vmem:[%s4503_s1 + $0x560] sm:$0xff]  ;;  %v1503_v41 = vld [vmem:[%s4503_s1 + $0x548] sm:$0xff] }
 0x105   :  { %v798_v34 = vmul.f32 %v790_v39, %v2557_v29  ;;  %v791_v27 = vsub.f32 %v783_v40, %v2554_v28  ;;  %v2127_v26 = vand.u32 2147483648, %v762_v21  ;;  %1492 = vst [vmem:[%s4504_s2 + $0xf0] sm:$0xff] %v805_v44  ;;  %v846_v35 = vmul.f32 %v838_v49, %v2569_v32 }
 0x106   :  { %v2118_v30 = vand.u32 2147483647, %v2117_v42  ;;  %v2125_v31 = vcvt.s32.f32 %v2124_v53  ;;  %v839_v57 = vmax.f32 %v1499_v33, %v1507_v43  ;;  %v2113_v45 = vsel %vm3720_vm13, %v2112_v55, %v760_v3 }
 0x107   :  { %v806_v58 = vmax.f32 %v798_v34, 0.0  ;;  %v799_v59 = vmul.f32 %v791_v27, %v2557_v29  ;;  %v840_v60 = vmax.f32 %v1500_v54, %v1508_v56  ;;  %v776_v46 = vmax.f32 %v2113_v45, 0.0  ;;  %v1512_v45 = vld [vmem:[%s4503_s1 + $0x570] sm:$0xff] }
 0x108   :  { %v2120_v62 = vor.u32 %v2119_v25, %v2118_v30  ;;  %v2126_v63 = vand.u32 2147483647, %v2125_v31  ;;  %v854_v0 = vadd.f32 %v846_v35, %v2554_v28  ;;  %vm3760_vm15 = vcmp.lt.f32.partialorder %v2122_v50, 8388608.0  ;;  %v1511_v50 = vld [vmem:[%s4503_s1 + $0x568] sm:$0xff] }
 0x109   :  { %1493 = vst [vmem:[%s4504_s2 + $0xf8] sm:$0x3] %v806_v58  ;;  %v807_v47 = vmax.f32 %v799_v59, 0.0  ;;  %v847_v2 = vmul.f32 %v839_v57, %v2569_v32  ;;  %v848_v5 = vmul.f32 %v840_v60, %v2569_v32  ;;  %v784_v3 = vmin.f32 %v776_v46, 255.0  ;;  %v1504_v59 = vld [vmem:[%s4503_s1 + $0x550] sm:$0xff] }
 0x10a   :  { %v2121_v48 = vsel %vm3731_vm14, %v2120_v62, %v761_v18  ;;  %v2128_v4 = vor.u32 %v2127_v26, %v2126_v63  ;;  %v2130_v6 = vand.u32 2147483647, %v854_v0  ;;  %v2132_v8 = vcvt.f32.s32 %v854_v0 }
 0x10b   :  { %1494 = vst [vmem:[%s4504_s2 + $0x280] sm:$0xff] %v807_v47  ;;  %v777_v7 = vmax.f32 %v2121_v48, 0.0  ;;  %v855_v10 = vadd.f32 %v847_v2, %v2554_v28  ;;  %v841_v11 = vmax.f32 %v1501_v61, %v1509_v51  ;;  %v792_v12 = vsub.f32 %v784_v3, %v2554_v28 }
 0x10c   :  { %v2129_v9 = vsel %vm3760_vm15, %v2128_v4, %v762_v21  ;;  %v2135_v13 = vand.u32 2147483648, %v854_v0  ;;  %v856_v14 = vadd.f32 %v848_v5, %v2554_v28  ;;  %v2133_v49 = vcvt.s32.f32 %v2132_v8 }
 0x10d   :  { %v785_v15 = vmin.f32 %v777_v7, 255.0  ;;  %v778_v18 = vmax.f32 %v2129_v9, 0.0  ;;  %v2138_v17 = vand.u32 2147483647, %v855_v10  ;;  %v800_v16 = vmul.f32 %v792_v12, %v2557_v29 }
 0x10e   :  { %vm3777_vm0 = vcmp.lt.f32.partialorder %v2130_v6, 8388608.0  ;;  %v2140_v22 = vcvt.f32.s32 %v855_v10  ;;  %v2143_v24 = vand.u32 2147483648, %v855_v10  ;;  %v2134_v23 = vand.u32 2147483647, %v2133_v49  ;;  %v1505_v49 = vld [vmem:[%s4503_s1 + $0x558] sm:$0x3] }
 0x10f   :  { %v793_v21 = vsub.f32 %v785_v15, %v2554_v28  ;;  %v786_v37 = vmin.f32 %v778_v18, 255.0  ;;  %v2146_v38 = vand.u32 2147483647, %v856_v14  ;;  %v808_v25 = vmax.f32 %v800_v16, 0.0 }
 0x110   :  { %vm3788_vm1 = vcmp.lt.f32.partialorder %v2138_v17, 8388608.0  ;;  %v2141_v39 = vcvt.s32.f32 %v2140_v22  ;;  %v2148_v40 = vcvt.f32.s32 %v856_v14  ;;  %v2136_v52 = vor.u32 %v2135_v13, %v2134_v23  ;;  %v1522_v23 = vld [vmem:[%s4503_s1 + $0x240] sm:$0xff] }
 0x111   :  { %v801_v43 = vmul.f32 %v793_v21, %v2557_v29  ;;  %v794_v44 = vsub.f32 %v786_v37, %v2554_v28  ;;  %v2151_v42 = vand.u32 2147483648, %v856_v14  ;;  %1495 = vst [vmem:[%s4504_s2 + $0x288] sm:$0xff] %v808_v25  ;;  %v849_v56 = vmul.f32 %v841_v11, %v2569_v32 }
 0x112   :  { %v2142_v53 = vand.u32 2147483647, %v2141_v39  ;;  %v2149_v54 = vcvt.s32.f32 %v2148_v40  ;;  %v842_v34 = vmax.f32 %v1502_v36, %v1510_v20  ;;  %v2137_v26 = vsel %vm3777_vm0, %v2136_v52, %v854_v0 }
 0x113   :  { %v809_v27 = vmax.f32 %v801_v43, 0.0  ;;  %v802_v55 = vmul.f32 %v794_v44, %v2557_v29  ;;  %v843_v30 = vmax.f32 %v1503_v41, %v1511_v50  ;;  %v870_v31 = vmax.f32 %v2137_v26, 0.0  ;;  %v1531_v26 = vld [vmem:[%s4503_s1 + $0x268] sm:$0xff] }
 0x114   :  { %v2144_v35 = vor.u32 %v2143_v24, %v2142_v53  ;;  %v2150_v57 = vand.u32 2147483647, %v2149_v54  ;;  %v857_v58 = vadd.f32 %v849_v56, %v2554_v28  ;;  %vm3817_vm2 = vcmp.lt.f32.partialorder %v2146_v38, 8388608.0  ;;  %v1530_v38 = vld [vmem:[%s4503_s1 + $0x260] sm:$0xff] }
 0x115   :  { %1496 = vst [vmem:[%s4504_s2 + $0x290] sm:$0xff] %v809_v27  ;;  %v810_v60 = vmax.f32 %v802_v55, 0.0  ;;  %v850_v46 = vmul.f32 %v842_v34, %v2569_v32  ;;  %v851_v62 = vmul.f32 %v843_v30, %v2569_v32  ;;  %v878_v63 = vmin.f32 %v870_v31, 255.0  ;;  %v1523_v55 = vld [vmem:[%s4503_s1 + $0x248] sm:$0xff] }
 0x116   :  { %v2145_v0 = vsel %vm3788_vm1, %v2144_v35, %v855_v10  ;;  %v2152_v51 = vor.u32 %v2151_v42, %v2150_v57  ;;  %v2154_v47 = vand.u32 2147483647, %v857_v58  ;;  %v2156_v2 = vcvt.f32.s32 %v857_v58 }
 0x117   :  { %1497 = vst [vmem:[%s4504_s2 + $0x298] sm:$0x3] %v810_v60  ;;  %v871_v1 = vmax.f32 %v2145_v0, 0.0  ;;  %v858_v5 = vadd.f32 %v850_v46, %v2554_v28  ;;  %v844_v3 = vmax.f32 %v1504_v59, %v1512_v45  ;;  %v886_v48 = vsub.f32 %v878_v63, %v2554_v28 }
 0x118   :  { %v2153_v4 = vsel %vm3817_vm2, %v2152_v51, %v856_v14  ;;  %v2159_v6 = vand.u32 2147483648, %v857_v58  ;;  %v859_v7 = vadd.f32 %v851_v62, %v2554_v28  ;;  %v2157_v11 = vcvt.s32.f32 %v2156_v2  ;;  %v1513_v14 = vld [vmem:[%s4503_s1 + $0x578] sm:$0x3] }
 0x119   :  { %v879_v8 = vmin.f32 %v871_v1, 255.0  ;;  %v872_v10 = vmax.f32 %v2153_v4, 0.0  ;;  %v2162_v12 = vand.u32 2147483647, %v858_v5  ;;  %v894_v9 = vmul.f32 %v886_v48, %v2557_v29 }
 0x11a   :  { %vm3834_vm3 = vcmp.lt.f32.partialorder %v2154_v47, 8388608.0  ;;  %v2164_v15 = vcvt.f32.s32 %v858_v5  ;;  %v2167_v18 = vand.u32 2147483648, %v858_v5  ;;  %v2158_v19 = vand.u32 2147483647, %v2157_v11  ;;  %v1524_v11 = vld [vmem:[%s4503_s1 + $0x250] sm:$0xff] }
 0x11b   :  { %v887_v17 = vsub.f32 %v879_v8, %v2554_v28  ;;  %v880_v16 = vmin.f32 %v872_v10, 255.0  ;;  %v2170_v22 = vand.u32 2147483647, %v859_v7  ;;  %v902_v24 = vmax.f32 %v894_v9, 0.0 }
 0x11c   :  { %vm3845_vm4 = vcmp.lt.f32.partialorder %v2162_v12, 8388608.0  ;;  %v2165_v21 = vcvt.s32.f32 %v2164_v15  ;;  %v2172_v37 = vcvt.f32.s32 %v859_v7  ;;  %v2160_v33 = vor.u32 %v2159_v6, %v2158_v19  ;;  %v1532_v15 = vld [vmem:[%s4503_s1 + $0x270] sm:$0xff]  ;;  %v1533_v19 = vld [vmem:[%s4503_s1 + $0x278] sm:$0x3] }
 0x11d   :  { %v895_v20 = vmul.f32 %v887_v17, %v2557_v29  ;;  %v888_v25 = vsub.f32 %v880_v16, %v2554_v28  ;;  %v2175_v39 = vand.u32 2147483648, %v859_v7  ;;  %1514 = vst [vmem:[%s4504_s2 + $0x100] sm:$0xff] %v902_v24  ;;  %v852_v50 = vmul.f32 %v844_v3, %v2569_v32  ;;  %v1525_v16 = vld [vmem:[%s4503_s1 + $0x258] sm:$0x3] }
 0x11e   :  { %v2166_v40 = vand.u32 2147483647, %v2165_v21  ;;  %v2173_v41 = vcvt.s32.f32 %v2172_v37  ;;  %v845_v43 = vmax.f32 %v1505_v49, %v1513_v14  ;;  %v2161_v42 = vsel %vm3834_vm3, %v2160_v33, %v857_v58 }
 0x11f   :  { %v903_v44 = vmax.f32 %v895_v20, 0.0  ;;  %v896_v52 = vmul.f32 %v888_v25, %v2557_v29  ;;  %v937_v53 = vmax.f32 %v1522_v23, %v1530_v38  ;;  %v873_v54 = vmax.f32 %v2161_v42, 0.0  ;;  %v1534_v42 = vld [vmem:[%s4503_s1 + $0x5a0] sm:$0xff] }
 0x120   :  { %v2168_v56 = vor.u32 %v2167_v18, %v2166_v40  ;;  %v2174_v34 = vand.u32 2147483647, %v2173_v41  ;;  %v860_v27 = vadd.f32 %v852_v50, %v2554_v28  ;;  %vm3874_vm5 = vcmp.lt.f32.partialorder %v2170_v22, 8388608.0 }
 0x121   :  { %1515 = vst [vmem:[%s4504_s2 + $0x108] sm:$0xff] %v903_v44  ;;  %v904_v30 = vmax.f32 %v896_v52, 0.0  ;;  %v853_v35 = vmul.f32 %v845_v43, %v2569_v32  ;;  %v945_v57 = vmul.f32 %v937_v53, %v2569_v32  ;;  %v881_v58 = vmin.f32 %v873_v54, 255.0  ;;  %v1526_v52 = vld [vmem:[%s4503_s1 + $0x580] sm:$0xff] }
 0x122   :  { %v2169_v59 = vsel %vm3845_vm4, %v2168_v56, %v858_v5  ;;  %v2176_v45 = vor.u32 %v2175_v39, %v2174_v34  ;;  %v2178_v60 = vand.u32 2147483647, %v860_v27  ;;  %v2180_v46 = vcvt.f32.s32 %v860_v27 }
 0x123   :  { %1516 = vst [vmem:[%s4504_s2 + $0x110] sm:$0xff] %v904_v30  ;;  %v874_v61 = vmax.f32 %v2169_v59, 0.0  ;;  %v861_v62 = vadd.f32 %v853_v35, %v2554_v28  ;;  %v938_v63 = vmax.f32 %v1523_v55, %v1531_v26  ;;  %v889_v0 = vsub.f32 %v881_v58, %v2554_v28 }
 0x124   :  { %v2177_v51 = vsel %vm3874_vm5, %v2176_v45, %v859_v7  ;;  %v2183_v47 = vand.u32 2147483648, %v860_v27  ;;  %v953_v1 = vadd.f32 %v945_v57, %v2554_v28  ;;  %v2181_v3 = vcvt.s32.f32 %v2180_v46 }
 0x125   :  { %v882_v2 = vmin.f32 %v874_v61, 255.0  ;;  %v875_v5 = vmax.f32 %v2177_v51, 0.0  ;;  %v2186_v48 = vand.u32 2147483647, %v861_v62  ;;  %v897_v4 = vmul.f32 %v889_v0, %v2557_v29 }
 0x126   :  { %vm3891_vm6 = vcmp.lt.f32.partialorder %v2178_v60, 8388608.0  ;;  %v2188_v8 = vcvt.f32.s32 %v861_v62  ;;  %v2191_v10 = vand.u32 2147483648, %v861_v62  ;;  %v2182_v9 = vand.u32 2147483647, %v2181_v3  ;;  %v1527_v3 = vld [vmem:[%s4503_s1 + $0x588] sm:$0xff] }
 0x127   :  { %v890_v7 = vsub.f32 %v882_v2, %v2554_v28  ;;  %v883_v12 = vmin.f32 %v875_v5, 255.0  ;;  %v2194_v13 = vand.u32 2147483647, %v953_v1  ;;  %v905_v18 = vmax.f32 %v897_v4, 0.0 }
 0x128   :  { %vm3902_vm7 = vcmp.lt.f32.partialorder %v2186_v48, 8388608.0  ;;  %v2189_v14 = vcvt.s32.f32 %v2188_v8  ;;  %v2196_v17 = vcvt.f32.s32 %v953_v1  ;;  %v2184_v36 = vor.u32 %v2183_v47, %v2182_v9  ;;  %v1535_v8 = vld [vmem:[%s4503_s1 + $0x5a8] sm:$0xff]  ;;  %v1528_v9 = vld [vmem:[%s4503_s1 + $0x590] sm:$0xff] }
 0x129   :  { %v898_v22 = vmul.f32 %v890_v7, %v2557_v29  ;;  %v891_v24 = vsub.f32 %v883_v12, %v2554_v28  ;;  %v2199_v21 = vand.u32 2147483648, %v953_v1  ;;  %1517 = vst [vmem:[%s4504_s2 + $0x118] sm:$0x3] %v905_v18  ;;  %v946_v38 = vmul.f32 %v938_v63, %v2569_v32 }
 0x12a   :  { %v2190_v37 = vand.u32 2147483647, %v2189_v14  ;;  %v2197_v23 = vcvt.s32.f32 %v2196_v17  ;;  %v939_v20 = vmax.f32 %v1524_v11, %v1532_v15  ;;  %v2185_v39 = vsel %vm3891_vm6, %v2184_v36, %v860_v27 }
 0x12b   :  { %v906_v25 = vmax.f32 %v898_v22, 0.0  ;;  %v899_v33 = vmul.f32 %v891_v24, %v2557_v29  ;;  %v940_v40 = vmax.f32 %v1525_v16, %v1533_v19  ;;  %v876_v41 = vmax.f32 %v2185_v39, 0.0  ;;  %v1537_v39 = vld [vmem:[%s4503_s1 + $0x5b8] sm:$0x3] }
 0x12c   :  { %v2192_v50 = vor.u32 %v2191_v10, %v2190_v37  ;;  %v2198_v43 = vand.u32 2147483647, %v2197_v23  ;;  %v954_v44 = vadd.f32 %v946_v38, %v2554_v28  ;;  %vm3931_vm8 = vcmp.lt.f32.partialorder %v2194_v13, 8388608.0  ;;  %v1536_v13 = vld [vmem:[%s4503_s1 + $0x5b0] sm:$0xff]  ;;  %v1529_v23 = vld [vmem:[%s4503_s1 + $0x598] sm:$0x3] }
 0x12d   :  { %1518 = vst [vmem:[%s4504_s2 + $0x2a0] sm:$0xff] %v906_v25  ;;  %v907_v53 = vmax.f32 %v899_v33, 0.0  ;;  %v947_v56 = vmul.f32 %v939_v20, %v2569_v32  ;;  %v948_v34 = vmul.f32 %v940_v40, %v2569_v32  ;;  %v884_v27 = vmin.f32 %v876_v41, 255.0 }
 0x12e   :  { %v2193_v55 = vsel %vm3902_vm7, %v2192_v50, %v861_v62  ;;  %v2200_v26 = vor.u32 %v2199_v21, %v2198_v43  ;;  %v2202_v30 = vand.u32 2147483647, %v954_v44  ;;  %v2204_v35 = vcvt.f32.s32 %v954_v44 }
 0x12f   :  { %1519 = vst [vmem:[%s4504_s2 + $0x2a8] sm:$0xff] %v907_v53  ;;  %v877_v31 = vmax.f32 %v2193_v55, 0.0  ;;  %v955_v57 = vadd.f32 %v947_v56, %v2554_v28  ;;  %v941_v58 = vmax.f32 %v1526_v52, %v1534_v42  ;;  %v892_v59 = vsub.f32 %v884_v27, %v2554_v28 }
 0x130   :  { %v2201_v45 = vsel %vm3931_vm8, %v2200_v26, %v953_v1  ;;  %v2207_v60 = vand.u32 2147483648, %v954_v44  ;;  %v956_v61 = vadd.f32 %v948_v34, %v2554_v28  ;;  %v2205_v63 = vcvt.s32.f32 %v2204_v35 }
 0x131   :  { %v885_v46 = vmin.f32 %v877_v31, 255.0  ;;  %v969_v62 = vmax.f32 %v2201_v45, 0.0  ;;  %v2210_v0 = vand.u32 2147483647, %v955_v57  ;;  %v900_v51 = vmul.f32 %v892_v59, %v2557_v29 }
 0x132   :  { %vm3948_vm9 = vcmp.lt.f32.partialorder %v2202_v30, 8388608.0  ;;  %v2212_v2 = vcvt.f32.s32 %v955_v57  ;;  %v2215_v5 = vand.u32 2147483648, %v955_v57  ;;  %v2206_v4 = vand.u32 2147483647, %v2205_v63  ;;  %v1546_v63 = vld [vmem:[%s4503_s1 + $0x280] sm:$0xff] }
 0x133   :  { %v893_v1 = vsub.f32 %v885_v46, %v2554_v28  ;;  %v977_v48 = vmin.f32 %v969_v62, 255.0  ;;  %v2218_v6 = vand.u32 2147483647, %v956_v61  ;;  %v908_v10 = vmax.f32 %v900_v51, 0.0 }
 0x134   :  { %vm3959_vm10 = vcmp.lt.f32.partialorder %v2210_v0, 8388608.0  ;;  %v2213_v7 = vcvt.s32.f32 %v2212_v2  ;;  %v2220_v12 = vcvt.f32.s32 %v956_v61  ;;  %v2208_v49 = vor.u32 %v2207_v60, %v2206_v4  ;;  %v1554_v2 = vld [vmem:[%s4503_s1 + $0x2a0] sm:$0xff]  ;;  %v1547_v4 = vld [vmem:[%s4503_s1 + $0x288] sm:$0xff] }
 0x135   :  { %v901_v15 = vmul.f32 %v893_v1, %v2557_v29  ;;  %v985_v18 = vsub.f32 %v977_v48, %v2554_v28  ;;  %v2223_v14 = vand.u32 2147483648, %v956_v61  ;;  %1520 = vst [vmem:[%s4504_s2 + $0x2b0] sm:$0xff] %v908_v10  ;;  %v949_v19 = vmul.f32 %v941_v58, %v2569_v32 }
 0x136   :  { %v2214_v17 = vand.u32 2147483647, %v2213_v7  ;;  %v2221_v16 = vcvt.s32.f32 %v2220_v12  ;;  %v942_v22 = vmax.f32 %v1527_v3, %v1535_v8  ;;  %v2209_v21 = vsel %vm3948_vm9, %v2208_v49, %v954_v44 }
 0x137   :  { %v909_v24 = vmax.f32 %v901_v15, 0.0  ;;  %v993_v36 = vmul.f32 %v985_v18, %v2557_v29  ;;  %v943_v37 = vmax.f32 %v1528_v9, %v1536_v13  ;;  %v970_v38 = vmax.f32 %v2209_v21, 0.0  ;;  %v1556_v21 = vld [vmem:[%s4503_s1 + $0x2b0] sm:$0xff] }
 0x138   :  { %v2216_v20 = vor.u32 %v2215_v5, %v2214_v17  ;;  %v2222_v25 = vand.u32 2147483647, %v2221_v16  ;;  %v957_v33 = vadd.f32 %v949_v19, %v2554_v28  ;;  %vm3988_vm11 = vcmp.lt.f32.partialorder %v2218_v6, 8388608.0  ;;  %v1555_v6 = vld [vmem:[%s4503_s1 + $0x2a8] sm:$0xff] }
 0x139   :  { %1521 = vst [vmem:[%s4504_s2 + $0x2b8] sm:$0x3] %v909_v24  ;;  %v1001_v40 = vmax.f32 %v993_v36, 0.0  ;;  %v950_v50 = vmul.f32 %v942_v22, %v2569_v32  ;;  %v951_v43 = vmul.f32 %v943_v37, %v2569_v32  ;;  %v978_v44 = vmin.f32 %v970_v38, 255.0  ;;  %v1548_v36 = vld [vmem:[%s4503_s1 + $0x290] sm:$0xff] }
 0x13a   :  { %v2217_v52 = vsel %vm3959_vm10, %v2216_v20, %v955_v57  ;;  %v2224_v42 = vor.u32 %v2223_v14, %v2222_v25  ;;  %v2226_v53 = vand.u32 2147483647, %v957_v33  ;;  %v2228_v56 = vcvt.f32.s32 %v957_v33 }
 0x13b   :  { %1538 = vst [vmem:[%s4504_s2 + $0x120] sm:$0xff] %v1001_v40  ;;  %v971_v54 = vmax.f32 %v2217_v52, 0.0  ;;  %v958_v34 = vadd.f32 %v950_v50, %v2554_v28  ;;  %v944_v27 = vmax.f32 %v1529_v23, %v1537_v39  ;;  %v986_v55 = vsub.f32 %v978_v44, %v2554_v28 }
 0x13c   :  { %v2225_v26 = vsel %vm3988_vm11, %v2224_v42, %v956_v61  ;;  %v2231_v30 = vand.u32 2147483648, %v957_v33  ;;  %v959_v31 = vadd.f32 %v951_v43, %v2554_v28  ;;  %v2229_v58 = vcvt.s32.f32 %v2228_v56 }
 0x13d   :  { %v979_v35 = vmin.f32 %v971_v54, 255.0  ;;  %v972_v57 = vmax.f32 %v2225_v26, 0.0  ;;  %v2234_v59 = vand.u32 2147483647, %v958_v34  ;;  %v994_v45 = vmul.f32 %v986_v55, %v2557_v29 }
 0x13e   :  { %vm4005_vm12 = vcmp.lt.f32.partialorder %v2226_v53, 8388608.0  ;;  %v2236_v46 = vcvt.f32.s32 %v958_v34  ;;  %v2239_v62 = vand.u32 2147483648, %v958_v34  ;;  %v2230_v51 = vand.u32 2147483647, %v2229_v58  ;;  %v1549_v58 = vld [vmem:[%s4503_s1 + $0x298] sm:$0x3] }
 0x13f   :  { %v987_v61 = vsub.f32 %v979_v35, %v2554_v28  ;;  %v980_v0 = vmin.f32 %v972_v57, 255.0  ;;  %v2242_v47 = vand.u32 2147483647, %v959_v31  ;;  %v1002_v5 = vmax.f32 %v994_v45, 0.0 }
 0x140   :  { %vm4016_vm13 = vcmp.lt.f32.partialorder %v2234_v59, 8388608.0  ;;  %v2237_v1 = vcvt.s32.f32 %v2236_v46  ;;  %v2244_v48 = vcvt.f32.s32 %v959_v31  ;;  %v2232_v11 = vor.u32 %v2231_v30, %v2230_v51  ;;  %v1550_v51 = vld [vmem:[%s4503_s1 + $0x5c0] sm:$0xff] }
 0x141   :  { %v995_v8 = vmul.f32 %v987_v61, %v2557_v29  ;;  %v988_v10 = vsub.f32 %v980_v0, %v2554_v28  ;;  %v2247_v7 = vand.u32 2147483648, %v959_v31  ;;  %1539 = vst [vmem:[%s4504_s2 + $0x128] sm:$0xff] %v1002_v5  ;;  %v952_v13 = vmul.f32 %v944_v27, %v2569_v32 }
 0x142   :  { %v2238_v12 = vand.u32 2147483647, %v2237_v1  ;;  %v2245_v9 = vcvt.s32.f32 %v2244_v48  ;;  %v1036_v15 = vmax.f32 %v1546_v63, %v1554_v2  ;;  %v2233_v14 = vsel %vm4005_vm12, %v2232_v11, %v957_v33 }
 0x143   :  { %v1003_v18 = vmax.f32 %v995_v8, 0.0  ;;  %v996_v49 = vmul.f32 %v988_v10, %v2557_v29  ;;  %v1037_v17 = vmax.f32 %v1547_v4, %v1555_v6  ;;  %v973_v16 = vmax.f32 %v2233_v14, 0.0  ;;  %v1559_v14 = vld [vmem:[%s4503_s1 + $0x5e8] sm:$0xff] }
 0x144   :  { %v2240_v19 = vor.u32 %v2239_v62, %v2238_v12  ;;  %v2246_v22 = vand.u32 2147483647, %v2245_v9  ;;  %v960_v24 = vadd.f32 %v952_v13, %v2554_v28  ;;  %vm4045_vm14 = vcmp.lt.f32.partialorder %v2242_v47, 8388608.0  ;;  %v1558_v47 = vld [vmem:[%s4503_s1 + $0x5e0] sm:$0xff] }
 0x145   :  { %1540 = vst [vmem:[%s4504_s2 + $0x130] sm:$0xff] %v1003_v18  ;;  %v1004_v37 = vmax.f32 %v996_v49, 0.0  ;;  %v1044_v38 = vmul.f32 %v1036_v15, %v2569_v32  ;;  %v1045_v20 = vmul.f32 %v1037_v17, %v2569_v32  ;;  %v981_v25 = vmin.f32 %v973_v16, 255.0  ;;  %v1551_v49 = vld [vmem:[%s4503_s1 + $0x5c8] sm:$0xff] }
 0x146   :  { %v2241_v33 = vsel %vm4016_vm13, %v2240_v19, %v958_v34  ;;  %v2248_v39 = vor.u32 %v2247_v7, %v2246_v22  ;;  %v2250_v40 = vand.u32 2147483647, %v960_v24  ;;  %v2252_v50 = vcvt.f32.s32 %v960_v24 }
 0x147   :  { %1541 = vst [vmem:[%s4504_s2 + $0x138] sm:$0x3] %v1004_v37  ;;  %v974_v41 = vmax.f32 %v2241_v33, 0.0  ;;  %v1052_v43 = vadd.f32 %v1044_v38, %v2554_v28  ;;  %v1038_v44 = vmax.f32 %v1548_v36, %v1556_v21  ;;  %v989_v52 = vsub.f32 %v981_v25, %v2554_v28 }
 0x148   :  { %v2249_v42 = vsel %vm4045_vm14, %v2248_v39, %v959_v31  ;;  %v2255_v53 = vand.u32 2147483648, %v960_v24  ;;  %v1053_v54 = vadd.f32 %v1045_v20, %v2554_v28  ;;  %v2253_v27 = vcvt.s32.f32 %v2252_v50  ;;  %v1557_v31 = vld [vmem:[%s4503_s1 + $0x2b8] sm:$0x3] }
 0x149   :  { %v982_v56 = vmin.f32 %v974_v41, 255.0  ;;  %v975_v34 = vmax.f32 %v2249_v42, 0.0  ;;  %v2258_v55 = vand.u32 2147483647, %v1052_v43  ;;  %v997_v26 = vmul.f32 %v989_v52, %v2557_v29 }
 0x14a   :  { %vm4062_vm15 = vcmp.lt.f32.partialorder %v2250_v40, 8388608.0  ;;  %v2260_v35 = vcvt.f32.s32 %v1052_v43  ;;  %v2263_v57 = vand.u32 2147483648, %v1052_v43  ;;  %v2254_v60 = vand.u32 2147483647, %v2253_v27  ;;  %v1552_v27 = vld [vmem:[%s4503_s1 + $0x5d0] sm:$0xff] }
 0x14b   :  { %v990_v59 = vsub.f32 %v982_v56, %v2554_v28  ;;  %v983_v45 = vmin.f32 %v975_v34, 255.0  ;;  %v2266_v46 = vand.u32 2147483647, %v1053_v54  ;;  %v1005_v62 = vmax.f32 %v997_v26, 0.0 }
 0x14c   :  { %vm4073_vm0 = vcmp.lt.f32.partialorder %v2258_v55, 8388608.0  ;;  %v2261_v61 = vcvt.s32.f32 %v2260_v35  ;;  %v2268_v0 = vcvt.f32.s32 %v1053_v54  ;;  %v2256_v3 = vor.u32 %v2255_v53, %v2254_v60  ;;  %v1560_v35 = vld [vmem:[%s4503_s1 + $0x5f0] sm:$0xff]  ;;  %v1561_v60 = vld [vmem:[%s4503_s1 + $0x5f8] sm:$0x3] }
 0x14d   :  { %v998_v2 = vmul.f32 %v990_v59, %v2557_v29  ;;  %v991_v5 = vsub.f32 %v983_v45, %v2554_v28  ;;  %v2271_v1 = vand.u32 2147483648, %v1053_v54  ;;  %1542 = vst [vmem:[%s4504_s2 + $0x2c0] sm:$0xff] %v1005_v62  ;;  %v1046_v6 = vmul.f32 %v1038_v44, %v2569_v32  ;;  %v1553_v45 = vld [vmem:[%s4503_s1 + $0x5d8] sm:$0x3] }
 0x14e   :  { %v2262_v48 = vand.u32 2147483647, %v2261_v61  ;;  %v2269_v4 = vcvt.s32.f32 %v2268_v0  ;;  %v1039_v8 = vmax.f32 %v1549_v58, %v1557_v31  ;;  %v2257_v7 = vsel %vm4062_vm15, %v2256_v3, %v960_v24 }
 0x14f   :  { %v1006_v10 = vmax.f32 %v998_v2, 0.0  ;;  %v999_v11 = vmul.f32 %v991_v5, %v2557_v29  ;;  %v1040_v12 = vmax.f32 %v1550_v51, %v1558_v47  ;;  %v976_v9 = vmax.f32 %v2257_v7, 0.0  ;;  %v1578_v7 = vld [vmem:[%s4503_s1 + $0x2e0] sm:$0xff] }
 0x150   :  { %v2264_v13 = vor.u32 %v2263_v57, %v2262_v48  ;;  %v2270_v15 = vand.u32 2147483647, %v2269_v4  ;;  %v1054_v18 = vadd.f32 %v1046_v6, %v2554_v28  ;;  %vm4102_vm1 = vcmp.lt.f32.partialorder %v2266_v46, 8388608.0 }
 0x151   :  { %1543 = vst [vmem:[%s4504_s2 + $0x2c8] sm:$0xff] %v1006_v10  ;;  %v1007_v17 = vmax.f32 %v999_v11, 0.0  ;;  %v1047_v19 = vmul.f32 %v1039_v8, %v2569_v32  ;;  %v1048_v22 = vmul.f32 %v1040_v12, %v2569_v32  ;;  %v984_v24 = vmin.f32 %v976_v9, 255.0  ;;  %v1570_v11 = vld [vmem:[%s4503_s1 + $0x2c0] sm:$0xff] }
 0x152   :  { %v2265_v36 = vsel %vm4073_vm0, %v2264_v13, %v1052_v43  ;;  %v2272_v21 = vor.u32 %v2271_v1, %v2270_v15  ;;  %v2274_v37 = vand.u32 2147483647, %v1054_v18  ;;  %v2276_v38 = vcvt.f32.s32 %v1054_v18 }
 0x153   :  { %1544 = vst [vmem:[%s4504_s2 + $0x2d0] sm:$0xff] %v1007_v17  ;;  %v1068_v23 = vmax.f32 %v2265_v36, 0.0  ;;  %v1055_v20 = vadd.f32 %v1047_v19, %v2554_v28  ;;  %v1041_v25 = vmax.f32 %v1551_v49, %v1559_v14  ;;  %v992_v33 = vsub.f32 %v984_v24, %v2554_v28 }
 0x154   :  { %v2273_v39 = vsel %vm4102_vm1, %v2272_v21, %v1053_v54  ;;  %v2279_v40 = vand.u32 2147483648, %v1054_v18  ;;  %v1056_v41 = vadd.f32 %v1048_v22, %v2554_v28  ;;  %v2277_v44 = vcvt.s32.f32 %v2276_v38 }
 0x155   :  { %v1076_v50 = vmin.f32 %v1068_v23, 255.0  ;;  %v1069_v43 = vmax.f32 %v2273_v39, 0.0  ;;  %v2282_v52 = vand.u32 2147483647, %v1055_v20  ;;  %v1000_v42 = vmul.f32 %v992_v33, %v2557_v29 }
 0x156   :  { %vm4119_vm2 = vcmp.lt.f32.partialorder %v2274_v37, 8388608.0  ;;  %v2284_v56 = vcvt.f32.s32 %v1055_v20  ;;  %v2287_v34 = vand.u32 2147483648, %v1055_v20  ;;  %v2278_v26 = vand.u32 2147483647, %v2277_v44  ;;  %v1571_v44 = vld [vmem:[%s4503_s1 + $0x2c8] sm:$0xff] }
 0x157   :  { %v1084_v54 = vsub.f32 %v1076_v50, %v2554_v28  ;;  %v1077_v55 = vmin.f32 %v1069_v43, 255.0  ;;  %v2290_v30 = vand.u32 2147483647, %v1056_v41  ;;  %v1008_v57 = vmax.f32 %v1000_v42, 0.0 }
 0x158   :  { %vm4130_vm3 = vcmp.lt.f32.partialorder %v2282_v52, 8388608.0  ;;  %v2285_v31 = vcvt.s32.f32 %v2284_v56  ;;  %v2292_v59 = vcvt.f32.s32 %v1056_v41  ;;  %v2280_v63 = vor.u32 %v2279_v40, %v2278_v26  ;;  %v1579_v56 = vld [vmem:[%s4503_s1 + $0x2e8] sm:$0xff]  ;;  %v1572_v26 = vld [vmem:[%s4503_s1 + $0x2d0] sm:$0xff] }
 0x159   :  { %v1092_v46 = vmul.f32 %v1084_v54, %v2557_v29  ;;  %v1085_v62 = vsub.f32 %v1077_v55, %v2554_v28  ;;  %v2295_v61 = vand.u32 2147483648, %v1056_v41  ;;  %1545 = vst [vmem:[%s4504_s2 + $0x2d8] sm:$0x3] %v1008_v57  ;;  %v1049_v47 = vmul.f32 %v1041_v25, %v2569_v32 }
 0x15a   :  { %v2286_v0 = vand.u32 2147483647, %v2285_v31  ;;  %v2293_v51 = vcvt.s32.f32 %v2292_v59  ;;  %v1042_v2 = vmax.f32 %v1552_v27, %v1560_v35  ;;  %v2281_v1 = vsel %vm4119_vm2, %v2280_v63, %v1054_v18 }
 0x15b   :  { %v1100_v5 = vmax.f32 %v1092_v46, 0.0  ;;  %v1093_v3 = vmul.f32 %v1085_v62, %v2557_v29  ;;  %v1043_v48 = vmax.f32 %v1553_v45, %v1561_v60  ;;  %v1070_v4 = vmax.f32 %v2281_v1, 0.0  ;;  %v1581_v1 = vld [vmem:[%s4503_s1 + $0x2f8] sm:$0x3] }
 0x15c   :  { %v2288_v6 = vor.u32 %v2287_v34, %v2286_v0  ;;  %v2294_v8 = vand.u32 2147483647, %v2293_v51  ;;  %v1057_v10 = vadd.f32 %v1049_v47, %v2554_v28  ;;  %vm4159_vm4 = vcmp.lt.f32.partialorder %v2290_v30, 8388608.0  ;;  %v1580_v30 = vld [vmem:[%s4503_s1 + $0x2f0] sm:$0xff]  ;;  %v1573_v51 = vld [vmem:[%s4503_s1 + $0x2d8] sm:$0x3] }
 0x15d   :  { %1562 = vst [vmem:[%s4504_s2 + $0x140] sm:$0xff] %v1100_v5  ;;  %v1101_v12 = vmax.f32 %v1093_v3, 0.0  ;;  %v1050_v13 = vmul.f32 %v1042_v2, %v2569_v32  ;;  %v1051_v15 = vmul.f32 %v1043_v48, %v2569_v32  ;;  %v1078_v18 = vmin.f32 %v1070_v4, 255.0 }
 0x15e   :  { %v2289_v49 = vsel %vm4130_vm3, %v2288_v6, %v1055_v20  ;;  %v2296_v14 = vor.u32 %v2295_v61, %v2294_v8  ;;  %v2298_v17 = vand.u32 2147483647, %v1057_v10  ;;  %v2300_v19 = vcvt.f32.s32 %v1057_v10 }
 0x15f   :  { %1563 = vst [vmem:[%s4504_s2 + $0x148] sm:$0xff] %v1101_v12  ;;  %v1071_v16 = vmax.f32 %v2289_v49, 0.0  ;;  %v1058_v22 = vadd.f32 %v1050_v13, %v2554_v28  ;;  %v1135_v24 = vmax.f32 %v1570_v11, %v1578_v7  ;;  %v1086_v36 = vsub.f32 %v1078_v18, %v2554_v28 }
 0x160   :  { %v2297_v21 = vsel %vm4159_vm4, %v2296_v14, %v1056_v41  ;;  %v2303_v37 = vand.u32 2147483648, %v1057_v10  ;;  %v1059_v23 = vadd.f32 %v1051_v15, %v2554_v28  ;;  %v2301_v25 = vcvt.s32.f32 %v2300_v19 }
 0x161   :  { %v1079_v38 = vmin.f32 %v1071_v16, 255.0  ;;  %v1072_v20 = vmax.f32 %v2297_v21, 0.0  ;;  %v2306_v33 = vand.u32 2147483647, %v1058_v22  ;;  %v1094_v39 = vmul.f32 %v1086_v36, %v2557_v29 }
 0x162   :  { %vm4176_vm5 = vcmp.lt.f32.partialorder %v2298_v17, 8388608.0  ;;  %v2308_v50 = vcvt.f32.s32 %v1058_v22  ;;  %v2311_v43 = vand.u32 2147483648, %v1058_v22  ;;  %v2302_v42 = vand.u32 2147483647, %v2301_v25  ;;  %v1574_v25 = vld [vmem:[%s4503_s1 + $0x600] sm:$0xff] }
 0x163   :  { %v1087_v41 = vsub.f32 %v1079_v38, %v2554_v28  ;;  %v1080_v52 = vmin.f32 %v1072_v20, 255.0  ;;  %v2314_v53 = vand.u32 2147483647, %v1059_v23  ;;  %v1102_v34 = vmax.f32 %v1094_v39, 0.0 }
 0x164   :  { %vm4187_vm6 = vcmp.lt.f32.partialorder %v2306_v33, 8388608.0  ;;  %v2309_v54 = vcvt.s32.f32 %v2308_v50  ;;  %v2316_v55 = vcvt.f32.s32 %v1059_v23  ;;  %v2304_v58 = vor.u32 %v2303_v37, %v2302_v42  ;;  %v1582_v50 = vld [vmem:[%s4503_s1 + $0x620] sm:$0xff]  ;;  %v1575_v42 = vld [vmem:[%s4503_s1 + $0x608] sm:$0xff] }
 0x165   :  { %v1095_v35 = vmul.f32 %v1087_v41, %v2557_v29  ;;  %v1088_v57 = vsub.f32 %v1080_v52, %v2554_v28  ;;  %v2319_v31 = vand.u32 2147483648, %v1059_v23  ;;  %1564 = vst [vmem:[%s4504_s2 + $0x150] sm:$0xff] %v1102_v34  ;;  %v1143_v60 = vmul.f32 %v1135_v24, %v2569_v32 }
 0x166   :  { %v2310_v59 = vand.u32 2147483647, %v2309_v54  ;;  %v2317_v45 = vcvt.s32.f32 %v2316_v55  ;;  %v1136_v46 = vmax.f32 %v1571_v44, %v1579_v56  ;;  %v2305_v61 = vsel %vm4176_vm5, %v2304_v58, %v1057_v10 }
 0x167   :  { %v1103_v62 = vmax.f32 %v1095_v35, 0.0  ;;  %v1096_v63 = vmul.f32 %v1088_v57, %v2557_v29  ;;  %v1137_v0 = vmax.f32 %v1572_v26, %v1580_v30  ;;  %v1073_v47 = vmax.f32 %v2305_v61, 0.0  ;;  %v1584_v61 = vld [vmem:[%s4503_s1 + $0x630] sm:$0xff] }
 0x168   :  { %v2312_v2 = vor.u32 %v2311_v43, %v2310_v59  ;;  %v2318_v5 = vand.u32 2147483647, %v2317_v45  ;;  %v1151_v3 = vadd.f32 %v1143_v60, %v2554_v28  ;;  %vm4216_vm7 = vcmp.lt.f32.partialorder %v2314_v53, 8388608.0  ;;  %v1583_v53 = vld [vmem:[%s4503_s1 + $0x628] sm:$0xff] }
 0x169   :  { %1565 = vst [vmem:[%s4504_s2 + $0x158] sm:$0x3] %v1103_v62  ;;  %v1104_v48 = vmax.f32 %v1096_v63, 0.0  ;;  %v1144_v6 = vmul.f32 %v1136_v46, %v2569_v32  ;;  %v1145_v8 = vmul.f32 %v1137_v0, %v2569_v32  ;;  %v1081_v10 = vmin.f32 %v1073_v47, 255.0  ;;  %v1576_v63 = vld [vmem:[%s4503_s1 + $0x610] sm:$0xff] }
 0x16a   :  { %v2313_v11 = vsel %vm4187_vm6, %v2312_v2, %v1058_v22  ;;  %v2320_v7 = vor.u32 %v2319_v31, %v2318_v5  ;;  %v2322_v12 = vand.u32 2147483647, %v1151_v3  ;;  %v2324_v13 = vcvt.f32.s32 %v1151_v3 }
 0x16b   :  { %1566 = vst [vmem:[%s4504_s2 + $0x2e0] sm:$0xff] %v1104_v48  ;;  %v1074_v9 = vmax.f32 %v2313_v11, 0.0  ;;  %v1152_v15 = vadd.f32 %v1144_v6, %v2554_v28  ;;  %v1138_v18 = vmax.f32 %v1573_v51, %v1581_v1  ;;  %v1089_v49 = vsub.f32 %v1081_v10, %v2554_v28 }
 0x16c   :  { %v2321_v14 = vsel %vm4216_vm7, %v2320_v7, %v1059_v23  ;;  %v2327_v17 = vand.u32 2147483648, %v1151_v3  ;;  %v1153_v16 = vadd.f32 %v1145_v8, %v2554_v28  ;;  %v2325_v24 = vcvt.s32.f32 %v2324_v13 }
 0x16d   :  { %v1082_v19 = vmin.f32 %v1074_v9, 255.0  ;;  %v1075_v22 = vmax.f32 %v2321_v14, 0.0  ;;  %v2330_v36 = vand.u32 2147483647, %v1152_v15  ;;  %v1097_v21 = vmul.f32 %v1089_v49, %v2557_v29 }
 0x16e   :  { %vm4233_vm8 = vcmp.lt.f32.partialorder %v2322_v12, 8388608.0  ;;  %v2332_v38 = vcvt.f32.s32 %v1152_v15  ;;  %v2335_v20 = vand.u32 2147483648, %v1152_v15  ;;  %v2326_v39 = vand.u32 2147483647, %v2325_v24  ;;  %v1577_v24 = vld [vmem:[%s4503_s1 + $0x618] sm:$0x3] }
 0x16f   :  { %v1090_v23 = vsub.f32 %v1082_v19, %v2554_v28  ;;  %v1083_v33 = vmin.f32 %v1075_v22, 255.0  ;;  %v2338_v40 = vand.u32 2147483647, %v1153_v16  ;;  %v1105_v43 = vmax.f32 %v1097_v21, 0.0 }
 0x170   :  { %vm4244_vm9 = vcmp.lt.f32.partialorder %v2330_v36, 8388608.0  ;;  %v2333_v41 = vcvt.s32.f32 %v2332_v38  ;;  %v2340_v52 = vcvt.f32.s32 %v1153_v16  ;;  %v2328_v27 = vor.u32 %v2327_v17, %v2326_v39  ;;  %v1594_v39 = vld [vmem:[%s4503_s1 + $0x300] sm:$0xff] }
 0x171   :  { %v1098_v56 = vmul.f32 %v1090_v23, %v2557_v29  ;;  %v1091_v34 = vsub.f32 %v1083_v33, %v2554_v28  ;;  %v2343_v54 = vand.u32 2147483648, %v1153_v16  ;;  %1567 = vst [vmem:[%s4504_s2 + $0x2e8] sm:$0xff] %v1105_v43  ;;  %v1146_v30 = vmul.f32 %v1138_v18, %v2569_v32 }
 0x172   :  { %v2334_v55 = vand.u32 2147483647, %v2333_v41  ;;  %v2341_v26 = vcvt.s32.f32 %v2340_v52  ;;  %v1139_v35 = vmax.f32 %v1574_v25, %v1582_v50  ;;  %v2329_v31 = vsel %vm4233_vm8, %v2328_v27, %v1151_v3 }
 0x173   :  { %v1106_v57 = vmax.f32 %v1098_v56, 0.0  ;;  %v1099_v58 = vmul.f32 %v1091_v34, %v2557_v29  ;;  %v1140_v59 = vmax.f32 %v1575_v42, %v1583_v53  ;;  %v1167_v45 = vmax.f32 %v2329_v31, 0.0  ;;  %v1603_v31 = vld [vmem:[%s4503_s1 + $0x328] sm:$0xff] }
 0x174   :  { %v2336_v60 = vor.u32 %v2335_v20, %v2334_v55  ;;  %v2342_v46 = vand.u32 2147483647, %v2341_v26  ;;  %v1154_v62 = vadd.f32 %v1146_v30, %v2554_v28  ;;  %vm4273_vm10 = vcmp.lt.f32.partialorder %v2338_v40, 8388608.0  ;;  %v1602_v40 = vld [vmem:[%s4503_s1 + $0x320] sm:$0xff] }
 0x175   :  { %1568 = vst [vmem:[%s4504_s2 + $0x2f0] sm:$0xff] %v1106_v57  ;;  %v1107_v0 = vmax.f32 %v1099_v58, 0.0  ;;  %v1147_v47 = vmul.f32 %v1139_v35, %v2569_v32  ;;  %v1148_v2 = vmul.f32 %v1140_v59, %v2569_v32  ;;  %v1175_v5 = vmin.f32 %v1167_v45, 255.0  ;;  %v1595_v58 = vld [vmem:[%s4503_s1 + $0x308] sm:$0xff] }
 0x176   :  { %v2337_v3 = vsel %vm4244_vm9, %v2336_v60, %v1152_v15  ;;  %v2344_v1 = vor.u32 %v2343_v54, %v2342_v46  ;;  %v2346_v48 = vand.u32 2147483647, %v1154_v62  ;;  %v2348_v6 = vcvt.f32.s32 %v1154_v62 }
 0x177   :  { %1569 = vst [vmem:[%s4504_s2 + $0x2f8] sm:$0x3] %v1107_v0  ;;  %v1168_v4 = vmax.f32 %v2337_v3, 0.0  ;;  %v1155_v8 = vadd.f32 %v1147_v47, %v2554_v28  ;;  %v1141_v10 = vmax.f32 %v1576_v63, %v1584_v61  ;;  %v1183_v11 = vsub.f32 %v1175_v5, %v2554_v28 }
 0x178   :  { %v2345_v7 = vsel %vm4273_vm10, %v2344_v1, %v1153_v16  ;;  %v2351_v12 = vand.u32 2147483648, %v1154_v62  ;;  %v1156_v9 = vadd.f32 %v1148_v2, %v2554_v28  ;;  %v2349_v18 = vcvt.s32.f32 %v2348_v6  ;;  %v1585_v16 = vld [vmem:[%s4503_s1 + $0x638] sm:$0x3] }
 0x179   :  { %v1176_v13 = vmin.f32 %v1168_v4, 255.0  ;;  %v1169_v15 = vmax.f32 %v2345_v7, 0.0  ;;  %v2354_v49 = vand.u32 2147483647, %v1155_v8  ;;  %v1191_v14 = vmul.f32 %v1183_v11, %v2557_v29 }
 0x17a   :  { %vm4290_vm11 = vcmp.lt.f32.partialorder %v2346_v48, 8388608.0  ;;  %v2356_v19 = vcvt.f32.s32 %v1155_v8  ;;  %v2359_v22 = vand.u32 2147483648, %v1155_v8  ;;  %v2350_v37 = vand.u32 2147483647, %v2349_v18  ;;  %v1596_v18 = vld [vmem:[%s4503_s1 + $0x310] sm:$0xff] }
 0x17b   :  { %v1184_v36 = vsub.f32 %v1176_v13, %v2554_v28  ;;  %v1177_v21 = vmin.f32 %v1169_v15, 255.0  ;;  %v2362_v38 = vand.u32 2147483647, %v1156_v9  ;;  %v1199_v20 = vmax.f32 %v1191_v14, 0.0 }
 0x17c   :  { %vm4301_vm12 = vcmp.lt.f32.partialorder %v2354_v49, 8388608.0  ;;  %v2357_v23 = vcvt.s32.f32 %v2356_v19  ;;  %v2364_v33 = vcvt.f32.s32 %v1156_v9  ;;  %v2352_v44 = vor.u32 %v2351_v12, %v2350_v37  ;;  %v1604_v19 = vld [vmem:[%s4503_s1 + $0x330] sm:$0xff]  ;;  %v1605_v37 = vld [vmem:[%s4503_s1 + $0x338] sm:$0x3] }
 0x17d   :  { %v1192_v50 = vmul.f32 %v1184_v36, %v2557_v29  ;;  %v1185_v43 = vsub.f32 %v1177_v21, %v2554_v28  ;;  %v2367_v41 = vand.u32 2147483648, %v1156_v9  ;;  %1586 = vst [vmem:[%s4504_s2 + $0x160] sm:$0xff] %v1199_v20  ;;  %v1149_v53 = vmul.f32 %v1141_v10, %v2569_v32  ;;  %v1597_v21 = vld [vmem:[%s4503_s1 + $0x318] sm:$0x3] }
 0x17e   :  { %v2358_v52 = vand.u32 2147483647, %v2357_v23  ;;  %v2365_v42 = vcvt.s32.f32 %v2364_v33  ;;  %v1142_v56 = vmax.f32 %v1577_v24, %v1585_v16  ;;  %v2353_v54 = vsel %vm4290_vm11, %v2352_v44, %v1154_v62 }
 0x17f   :  { %v1200_v34 = vmax.f32 %v1192_v50, 0.0  ;;  %v1193_v27 = vmul.f32 %v1185_v43, %v2557_v29  ;;  %v1234_v55 = vmax.f32 %v1594_v39, %v1602_v40  ;;  %v1170_v26 = vmax.f32 %v2353_v54, 0.0  ;;  %v1606_v54 = vld [vmem:[%s4503_s1 + $0x660] sm:$0xff] }
 0x180   :  { %v2360_v30 = vor.u32 %v2359_v22, %v2358_v52  ;;  %v2366_v35 = vand.u32 2147483647, %v2365_v42  ;;  %v1157_v57 = vadd.f32 %v1149_v53, %v2554_v28  ;;  %vm4330_vm13 = vcmp.lt.f32.partialorder %v2362_v38, 8388608.0 }
 0x181   :  { %1587 = vst [vmem:[%s4504_s2 + $0x168] sm:$0xff] %v1200_v34  ;;  %v1201_v59 = vmax.f32 %v1193_v27, 0.0  ;;  %v1150_v60 = vmul.f32 %v1142_v56, %v2569_v32  ;;  %v1242_v46 = vmul.f32 %v1234_v55, %v2569_v32  ;;  %v1178_v62 = vmin.f32 %v1170_v26, 255.0  ;;  %v1598_v27 = vld [vmem:[%s4503_s1 + $0x640] sm:$0xff] }
 0x182   :  { %v2361_v63 = vsel %vm4301_vm12, %v2360_v30, %v1155_v8  ;;  %v2368_v61 = vor.u32 %v2367_v41, %v2366_v35  ;;  %v2370_v0 = vand.u32 2147483647, %v1157_v57  ;;  %v2372_v47 = vcvt.f32.s32 %v1157_v57 }
 0x183   :  { %1588 = vst [vmem:[%s4504_s2 + $0x170] sm:$0xff] %v1201_v59  ;;  %v1171_v51 = vmax.f32 %v2361_v63, 0.0  ;;  %v1158_v2 = vadd.f32 %v1150_v60, %v2554_v28  ;;  %v1235_v5 = vmax.f32 %v1595_v58, %v1603_v31  ;;  %v1186_v3 = vsub.f32 %v1178_v62, %v2554_v28 }
 0x184   :  { %v2369_v1 = vsel %vm4330_vm13, %v2368_v61, %v1156_v9  ;;  %v2375_v48 = vand.u32 2147483648, %v1157_v57  ;;  %v1250_v4 = vadd.f32 %v1242_v46, %v2554_v28  ;;  %v2373_v10 = vcvt.s32.f32 %v2372_v47 }
 0x185   :  { %v1179_v6 = vmin.f32 %v1171_v51, 255.0  ;;  %v1172_v8 = vmax.f32 %v2369_v1, 0.0  ;;  %v2378_v11 = vand.u32 2147483647, %v1158_v2  ;;  %v1194_v7 = vmul.f32 %v1186_v3, %v2557_v29 }
 0x186   :  { %vm4347_vm14 = vcmp.lt.f32.partialorder %v2370_v0, 8388608.0  ;;  %v2380_v13 = vcvt.f32.s32 %v1158_v2  ;;  %v2383_v15 = vand.u32 2147483648, %v1158_v2  ;;  %v2374_v14 = vand.u32 2147483647, %v2373_v10  ;;  %v1599_v10 = vld [vmem:[%s4503_s1 + $0x648] sm:$0xff] }
 0x187   :  { %v1187_v9 = vsub.f32 %v1179_v6, %v2554_v28  ;;  %v1180_v49 = vmin.f32 %v1172_v8, 255.0  ;;  %v2386_v17 = vand.u32 2147483647, %v1250_v4  ;;  %v1202_v22 = vmax.f32 %v1194_v7, 0.0 }
 0x188   :  { %vm4358_vm15 = vcmp.lt.f32.partialorder %v2378_v11, 8388608.0  ;;  %v2381_v16 = vcvt.s32.f32 %v2380_v13  ;;  %v2388_v36 = vcvt.f32.s32 %v1250_v4  ;;  %v2376_v25 = vor.u32 %v2375_v48, %v2374_v14  ;;  %v1607_v13 = vld [vmem:[%s4503_s1 + $0x668] sm:$0xff]  ;;  %v1600_v14 = vld [vmem:[%s4503_s1 + $0x650] sm:$0xff] }
 0x189   :  { %v1195_v38 = vmul.f32 %v1187_v9, %v2557_v29  ;;  %v1188_v20 = vsub.f32 %v1180_v49, %v2554_v28  ;;  %v2391_v23 = vand.u32 2147483648, %v1250_v4  ;;  %1589 = vst [vmem:[%s4504_s2 + $0x178] sm:$0x3] %v1202_v22  ;;  %v1243_v40 = vmul.f32 %v1235_v5, %v2569_v32 }
 0x18a   :  { %v2382_v33 = vand.u32 2147483647, %v2381_v16  ;;  %v2389_v39 = vcvt.s32.f32 %v2388_v36  ;;  %v1236_v50 = vmax.f32 %v1596_v18, %v1604_v19  ;;  %v2377_v41 = vsel %vm4347_vm14, %v2376_v25, %v1157_v57 }
 0x18b   :  { %v1203_v43 = vmax.f32 %v1195_v38, 0.0  ;;  %v1196_v44 = vmul.f32 %v1188_v20, %v2557_v29  ;;  %v1237_v52 = vmax.f32 %v1597_v21, %v1605_v37  ;;  %v1173_v42 = vmax.f32 %v2377_v41, 0.0 }
 0x18c   :  { %v2384_v53 = vor.u32 %v2383_v15, %v2382_v33  ;;  %v2390_v56 = vand.u32 2147483647, %v2389_v39  ;;  %v1251_v34 = vadd.f32 %v1243_v40, %v2554_v28  ;;  %vm4387_vm0 = vcmp.lt.f32.partialorder %v2386_v17, 8388608.0  ;;  %v1608_v17 = vld [vmem:[%s4503_s1 + $0x670] sm:$0xff] }
 0x18d   :  { %1590 = vst [vmem:[%s4504_s2 + $0x300] sm:$0xff] %v1203_v43  ;;  %v1204_v55 = vmax.f32 %v1196_v44, 0.0  ;;  %v1244_v30 = vmul.f32 %v1236_v50, %v2569_v32  ;;  %v1245_v35 = vmul.f32 %v1237_v52, %v2569_v32  ;;  %v1181_v57 = vmin.f32 %v1173_v42, 255.0 }
 0x18e   :  { %v2385_v58 = vsel %vm4358_vm15, %v2384_v53, %v1158_v2  ;;  %v2392_v31 = vor.u32 %v2391_v23, %v2390_v56  ;;  %v2394_v59 = vand.u32 2147483647, %v1251_v34  ;;  %v2396_v60 = vcvt.f32.s32 %v1251_v34 }
 0x18f   :  { %1591 = vst [vmem:[%s4504_s2 + $0x308] sm:$0xff] %v1204_v55  ;;  %v1174_v45 = vmax.f32 %v2385_v58, 0.0  ;;  %v1252_v46 = vadd.f32 %v1244_v30, %v2554_v28  ;;  %v1238_v62 = vmax.f32 %v1598_v27, %v1606_v54  ;;  %v1189_v63 = vsub.f32 %v1181_v57, %v2554_v28  ;;  %v1601_v30 = vld [vmem:[%s4503_s1 + $0x658] sm:$0x3] }
 0x190   :  { %v2393_v61 = vsel %vm4387_vm0, %v2392_v31, %v1250_v4  ;;  %v2399_v0 = vand.u32 2147483648, %v1251_v34  ;;  %v1253_v51 = vadd.f32 %v1245_v35, %v2554_v28  ;;  %v2397_v5 = vcvt.s32.f32 %v2396_v60  ;;  %v1609_v35 = vld [vmem:[%s4503_s1 + $0x678] sm:$0x3] }
 0x191   :  { %v1182_v47 = vmin.f32 %v1174_v45, 255.0  ;;  %v1266_v2 = vmax.f32 %v2393_v61, 0.0  ;;  %v2402_v3 = vand.u32 2147483647, %v1252_v46  ;;  %v1197_v1 = vmul.f32 %v1189_v63, %v2557_v29 }
 0x192   :  { %vm4404_vm1 = vcmp.lt.f32.partialorder %v2394_v59, 8388608.0  ;;  %v2404_v6 = vcvt.f32.s32 %v1252_v46  ;;  %v2407_v8 = vand.u32 2147483648, %v1252_v46  ;;  %v2398_v7 = vand.u32 2147483647, %v2397_v5 }
 0x193   :  { %v1190_v4 = vsub.f32 %v1182_v47, %v2554_v28  ;;  %v1274_v11 = vmin.f32 %v1266_v2, 255.0  ;;  %v2410_v12 = vand.u32 2147483647, %v1253_v51  ;;  %v1205_v15 = vmax.f32 %v1197_v1, 0.0 }
 0x194   :  { %vm4415_vm2 = vcmp.lt.f32.partialorder %v2402_v3, 8388608.0  ;;  %v2405_v9 = vcvt.s32.f32 %v2404_v6  ;;  %v2412_v49 = vcvt.f32.s32 %v1253_v51  ;;  %v2400_v24 = vor.u32 %v2399_v0, %v2398_v7 }
 0x195   :  { %v1198_v19 = vmul.f32 %v1190_v4, %v2557_v29  ;;  %v1282_v22 = vsub.f32 %v1274_v11, %v2554_v28  ;;  %v2415_v16 = vand.u32 2147483648, %v1253_v51  ;;  %1592 = vst [vmem:[%s4504_s2 + $0x310] sm:$0xff] %v1205_v15  ;;  %v1246_v37 = vmul.f32 %v1238_v62, %v2569_v32 }
 0x196   :  { %v2406_v36 = vand.u32 2147483647, %v2405_v9  ;;  %v2413_v21 = vcvt.s32.f32 %v2412_v49  ;;  %v1239_v38 = vmax.f32 %v1599_v10, %v1607_v13  ;;  %v2401_v23 = vsel %vm4404_vm1, %v2400_v24, %v1251_v34 }
 0x197   :  { %v1206_v20 = vmax.f32 %v1198_v19, 0.0  ;;  %v1290_v25 = vmul.f32 %v1282_v22, %v2557_v29  ;;  %v1240_v33 = vmax.f32 %v1600_v14, %v1608_v17  ;;  %v1267_v39 = vmax.f32 %v2401_v23, 0.0 }
 0x198   :  { %v2408_v40 = vor.u32 %v2407_v8, %v2406_v36  ;;  %v2414_v50 = vand.u32 2147483647, %v2413_v21  ;;  %v1254_v43 = vadd.f32 %v1246_v37, %v2554_v28  ;;  %vm4438_vm3 = vcmp.lt.f32.partialorder %v2410_v12, 8388608.0 }
 0x199   :  { %1593 = vst [vmem:[%s4504_s2 + $0x318] sm:$0x3] %v1206_v20  ;;  %v1298_v44 = vmax.f32 %v1290_v25, 0.0  ;;  %v1247_v52 = vmul.f32 %v1239_v38, %v2569_v32  ;;  %v1248_v42 = vmul.f32 %v1240_v33, %v2569_v32  ;;  %v1275_v53 = vmin.f32 %v1267_v39, 255.0 }
 0x19a   :  { %v2409_v56 = vsel %vm4415_vm2, %v2408_v40, %v1252_v46  ;;  %v2416_v34 = vor.u32 %v2415_v16, %v2414_v50  ;;  %v2418_v27 = vand.u32 2147483647, %v1254_v43  ;;  %v2420_v55 = vcvt.f32.s32 %v1254_v43 }
 0x19b   :  { %1610 = vst [vmem:[%s4504_s2 + $0x180] sm:$0xff] %v1298_v44  ;;  %v1268_v54 = vmax.f32 %v2409_v56, 0.0  ;;  %v1255_v26 = vadd.f32 %v1247_v52, %v2554_v28  ;;  %v1283_v57 = vsub.f32 %v1275_v53, %v2554_v28  ;;  %v1256_v31 = vadd.f32 %v1248_v42, %v2554_v28 }
 0x19c   :  { %v2417_v58 = vsel %vm4438_vm3, %v2416_v34, %v1253_v51  ;;  %v2421_v60 = vcvt.s32.f32 %v2420_v55  ;;  %v2423_v46 = vand.u32 2147483648, %v1254_v43  ;;  %vm4461_vm4 = vcmp.lt.f32.partialorder %v2418_v27, 8388608.0 }
 0x19d   :  { %v1276_v59 = vmin.f32 %v1268_v54, 255.0  ;;  %v1269_v45 = vmax.f32 %v2417_v58, 0.0  ;;  %v1291_v62 = vmul.f32 %v1283_v57, %v2557_v29  ;;  %v2428_v61 = vcvt.f32.s32 %v1255_v26 }
 0x19e   :  { %v1241_v0 = vmax.f32 %v1601_v30, %v1609_v35  ;;  %v2422_v5 = vand.u32 2147483647, %v2421_v60  ;;  %v2426_v3 = vand.u32 2147483647, %v1255_v26  ;;  %v2431_v48 = vand.u32 2147483648, %v1255_v26 }
 0x19f   :  { %v1284_v47 = vsub.f32 %v1276_v59, %v2554_v28  ;;  %v1277_v2 = vmin.f32 %v1269_v45, 255.0  ;;  %v1299_v51 = vmax.f32 %v1291_v62, 0.0  ;;  %v2429_v1 = vcvt.s32.f32 %v2428_v61 }
 0x1a0   :  { %v2436_v6 = vcvt.f32.s32 %v1256_v31  ;;  %v2424_v4 = vor.u32 %v2423_v46, %v2422_v5  ;;  %v2434_v11 = vand.u32 2147483647, %v1256_v31  ;;  %v2439_v13 = vand.u32 2147483648, %v1256_v31 }
 0x1a1   :  { %v1292_v8 = vmul.f32 %v1284_v47, %v2557_v29  ;;  %v1285_v10 = vsub.f32 %v1277_v2, %v2554_v28  ;;  %1611 = vst [vmem:[%s4504_s2 + $0x188] sm:$0xff] %v1299_v51  ;;  %v2430_v7 = vand.u32 2147483647, %v2429_v1  ;;  %v1249_v15 = vmul.f32 %v1241_v0, %v2569_v32 }
 0x1a2   :  { %v2437_v12 = vcvt.s32.f32 %v2436_v6  ;;  %v2425_v49 = vsel %vm4461_vm4, %v2424_v4, %v1254_v43  ;;  %vm2427_vm5 = vcmp.lt.f32.partialorder %v2426_v3, 8388608.0  ;;  %vm2435_vm6 = vcmp.lt.f32.partialorder %v2434_v11, 8388608.0 }
 0x1a3   :  { %v1300_v18 = vmax.f32 %v1292_v8, 0.0  ;;  %v1293_v9 = vmul.f32 %v1285_v10, %v2557_v29  ;;  %v1270_v14 = vmax.f32 %v2425_v49, 0.0  ;;  %v2432_v17 = vor.u32 %v2431_v48, %v2430_v7 }
 0x1a4   :  { %v2438_v19 = vand.u32 2147483647, %v2437_v12  ;;  %v1257_v22 = vadd.f32 %v1249_v15, %v2554_v28 }
 0x1a5   :  { %1612 = vst [vmem:[%s4504_s2 + $0x190] sm:$0xff] %v1300_v18  ;;  %v1301_v24 = vmax.f32 %v1293_v9, 0.0  ;;  %v1278_v16 = vmin.f32 %v1270_v14, 255.0  ;;  %v2433_v32 = vsel %vm2427_vm5, %v2432_v17, %v1255_v26 }
 0x1a6   :  { %v2440_v36 = vor.u32 %v2439_v13, %v2438_v19  ;;  %v1271_v21 = vmax.f32 %v2433_v32, 0.0  ;;  %v2444_v37 = vcvt.f32.s32 %v1257_v22  ;;  %v2442_v25 = vand.u32 2147483647, %v1257_v22 }
 0x1a7   :  { %1613 = vst [vmem:[%s4504_s2 + $0x198] sm:$0x3] %v1301_v24  ;;  %v1286_v38 = vsub.f32 %v1278_v16, %v2554_v28  ;;  %v2447_v40 = vand.u32 2147483648, %v1257_v22 }
 0x1a8   :  { %v2441_v20 = vsel %vm2435_vm6, %v2440_v36, %v1256_v31  ;;  %v1279_v23 = vmin.f32 %v1271_v21, 255.0  ;;  %v2445_v39 = vcvt.s32.f32 %v2444_v37  ;;  %vm2443_vm7 = vcmp.lt.f32.partialorder %v2442_v25, 8388608.0 }
 0x1a9   :  { %v1272_v33 = vmax.f32 %v2441_v20, 0.0  ;;  %v1294_v50 = vmul.f32 %v1286_v38, %v2557_v29 }
 0x1aa   :  { %v1287_v43 = vsub.f32 %v1279_v23, %v2554_v28  ;;  %v2446_v41 = vand.u32 2147483647, %v2445_v39 }
 0x1ab   :  { %v1280_v44 = vmin.f32 %v1272_v33, 255.0  ;;  %v1302_v52 = vmax.f32 %v1294_v50, 0.0 }
 0x1ac   :  { %v1295_v42 = vmul.f32 %v1287_v43, %v2557_v29  ;;  %v2448_v56 = vor.u32 %v2447_v40, %v2446_v41 }
 0x1ad   :  { %v1288_v53 = vsub.f32 %v1280_v44, %v2554_v28  ;;  %1614 = vst [vmem:[%s4504_s2 + $0x320] sm:$0xff] %v1302_v52 }
 0x1ae   :  { %v1303_v34 = vmax.f32 %v1295_v42, 0.0  ;;  %v2449_v54 = vsel %vm2443_vm7, %v2448_v56, %v1257_v22 }
 0x1af   :  { %v1296_v27 = vmul.f32 %v1288_v53, %v2557_v29  ;;  %v1273_v55 = vmax.f32 %v2449_v54, 0.0 }
 0x1b0   :  { %1615 = vst [vmem:[%s4504_s2 + $0x328] sm:$0xff] %v1303_v34 }
 0x1b1   :  { %v1304_v26 = vmax.f32 %v1296_v27, 0.0  ;;  %v1281_v30 = vmin.f32 %v1273_v55, 255.0 }
 0x1b3   :  { %1616 = vst [vmem:[%s4504_s2 + $0x330] sm:$0xff] %v1304_v26  ;;  %v1289_v35 = vsub.f32 %v1281_v30, %v2554_v28 }
 0x1b5   :  { %v1297_v57 = vmul.f32 %v1289_v35, %v2557_v29 }
 0x1b7   :  { %v1305_v58 = vmax.f32 %v1297_v57, 0.0 }
 0x1b9   :  { %1617 = vst [vmem:[%s4504_s2 + $0x338] sm:$0x3] %v1305_v58 }
 0x1ba   :  { %1319 = vsyncpa [#allocation3], 1 }

// kernel: net_forward.8
= control target key start
LH: loop header
LB: loop body
LE: loop exit
PB: predicated region body
PF: predicated region fallthrough
CT: control target
= control target key end

     0   :  { %8 = vsyncpa [#allocation3], 0  ;;  %s2114_s15 = smov [#allocation2]   ;;  %s3547_s0 = inlined_call_operand.vmem [shape: f32[3], index: 0, kind: input, shape index: {}]   ;;  %s3548_s1 = inlined_call_operand.vmem [shape: f32[242,360], index: 1, kind: input, shape index: {}]   ;;  %s3549_s2 = inlined_call_operand.vmem [shape: bf16[360,128], index: 2, kind: input, shape index: {}]   ;;  %s3550_s3 = inlined_call_operand.vmem [shape: f32[242,128], index: 3, kind: output, shape index: {}]  }
   0x1   :  { %s14_s14 = sshll.u32 %s3547_s0, 4  ;;  %s15_s14 = int_to_ptr.vmem [resolvable:$true] %s14_s14 }
   0x2   :  { %17 = dma.vmem_to_smem %s15_s14, 16, %s2114_s15, [#allocation3]  }
   0x3   :  { %2112 = dma.done.wait [#allocation3], 16  }
   0x4   :  { %2113 = vsyncadd [#allocation3], 4294967280 }
   0x5   :  { %26 = sfence }
   0x6   :  { %v1317_v0 = vld [vmem:[%s3549_s2 + $0x38] sm:$0xff]  ;;  %v683_v2 = vld [vmem:[%s3549_s2 + $0xb0] sm:$0xf]  ;;  %s28_s0 = sld [smem:[#allocation2]]  ;;  %vm868_vm0 = vcmask 1043456   ;;  %v2164_v8 = vld [vmem:[%s3549_s2 + $0xa8] sm:$0xff] }
   0x7   :  { %v2144_v1 = vld [vmem:[%s3549_s2 + $0x78] sm:$0xff]  ;;  %v773_v3 = vunpack.c.l.b16 %v683_v2  ;;  %1332 = vmatpush.bf16.msra.mxu3 %v1317_v0  ;;  %872 = vmatpush.bf16.msra.mxu0 %v1317_v0  ;;  %v1316_v4 = vld [vmem:[%s3549_s2 + $0x30] sm:$0xff]  ;;  %s1204_s24 = sld [smem:[#allocation2 + $0x1]]  ;;  %v1315_v9 = vld [vmem:[%s3549_s2 + $0x28] sm:$0xff]  ;;  %vm819_vm6 = vcmask 850944  }
   0x8   :  { %960 = vmatpush.bf16.msra.mxu1 %v2144_v1  ;;  %v2156_v6 = vld [vmem:[%s3549_s2 + $0x70] sm:$0xff]  ;;  %v2173_v10 = vld [vmem:[%s3549_s2 + $0x68] sm:$0xff]  ;;  %v103_v17 = vld [vmem:[%s3548_s1 + $0x240] sm:$0xff]  ;;  %s3017_s20 = sld [smem:[#allocation2 + $0x2]] }
   0x9   :  { %v796_v5 = vpack.c.b16 %v773_v3, %v773_v3  ;;  %v33_v11 = vld [vmem:[%s3548_s1 + $0x10] sm:$0xff]  ;;  %v36_v12 = vld [vmem:[%s3548_s1 + $0x28] sm:$0xff]  ;;  %v106_v18 = vld [vmem:[%s3548_s1 + $0x258] sm:$0xff] }
   0xa   :  { %v31_v21 = vld [vmem:[%s3548_s1] sm:$0xff]  ;;  %v34_v22 = vld [vmem:[%s3548_s1 + $0x18] sm:$0xff]  ;;  %v2274_v58 = vld [vmem:[%s3549_s2 + $0x90] sm:$0xff] }
   0xb   :  { %v2158_v7 = vsel %vm868_vm0, %v796_v5, 0  ;;  %1333 = vmatpush.bf16.msra.mxu3 %v1316_v4  ;;  %873 = vmatpush.bf16.msra.mxu0 %v1316_v4  ;;  %v2205_v23 = vld [vmem:[%s3549_s2 + $0xa0] sm:$0xff]  ;;  %v2236_v39 = vld [vmem:[%s3549_s2 + $0x98] sm:$0xff]  ;;  %v1312_v59 = vld [vmem:[%s3549_s2 + $0x10] sm:$0xff] }
   0xc   :  { %1049 = vmatpush.bf16.msra.mxu2 %v2158_v7  ;;  %961 = vmatpush.bf16.msra.mxu1 %v2156_v6  ;;  %v2181_v13 = vstv %s28_s0  ;;  %v1314_v24 = vld [vmem:[%s3549_s2 + $0x20] sm:$0xff]  ;;  %v1313_v40 = vld [vmem:[%s3549_s2 + $0x18] sm:$0xff]  ;;  %v2285_v0 = vld [vmem:[%s3549_s2 + $0x50] sm:$0xff] }
   0xd   :  { %v127_v14 = vmul.f32 %v2181_v13, %v33_v11  ;;  %v130_v15 = vmul.f32 %v2181_v13, %v36_v12  ;;  %v2185_v16 = vstv %s1204_s24  ;;  %v197_v19 = vmul.f32 %v2181_v13, %v103_v17  ;;  %v2218_v27 = vld [vmem:[%s3549_s2 + $0x60] sm:$0xff]  ;;  %v2254_v45 = vld [vmem:[%s3549_s2 + $0x58] sm:$0xff]  ;;  %v2301_v17 = vld [vmem:[%s3549_s2 + $0x88] sm:$0xff] }
   0xe   :  { %v200_v20 = vmul.f32 %v2181_v13, %v106_v18  ;;  %v125_v30 = vmul.f32 %v2181_v13, %v31_v21  ;;  %v128_v34 = vmul.f32 %v2181_v13, %v34_v22  ;;  %v1311_v22 = vld [vmem:[%s3549_s2 + $0x8] sm:$0xff] }
   0xf   :  { %1334 = vmatpush.bf16.msra.mxu3 %v1315_v9  ;;  %v221_v25 = vadd.f32 %v2185_v16, %v127_v14  ;;  %v2212_v26 = vadd.f32 %v2185_v16, %v130_v15  ;;  %874 = vmatpush.bf16.msra.mxu0 %v1315_v9  ;;  %v2221_v28 = vadd.f32 %v2185_v16, %v197_v19  ;;  %v32_v15 = vld [vmem:[%s3548_s1 + $0x8] sm:$0xff] }
  0x10   :  { %1050 = vmatpush.bf16.msra.mxu2 %v2164_v8  ;;  %962 = vmatpush.bf16.msra.mxu1 %v2173_v10  ;;  %v2224_v29 = vadd.f32 %v2185_v16, %v200_v20  ;;  %v2264_v53 = vadd.f32 %v2185_v16, %v125_v30  ;;  %v2268_v57 = vadd.f32 %v2185_v16, %v128_v34 }
  0x11   :  { %v1371_v31 = vand.u32 2147483647, %v221_v25  ;;  %v1373_v32 = vcvt.f32.s32 %v221_v25  ;;  %v1395_v33 = vand.u32 2147483647, %v2212_v26  ;;  %v1376_v35 = vand.u32 2147483648, %v221_v25 }
  0x12   :  { %v1397_v36 = vcvt.f32.s32 %v2212_v26  ;;  %v1931_v37 = vand.u32 2147483647, %v2221_v28  ;;  %v1933_v38 = vcvt.f32.s32 %v2221_v28  ;;  %v1400_v44 = vand.u32 2147483648, %v2212_v26 }
  0x13   :  { %1335 = vmatpush.bf16.msra.mxu3 %v1314_v24  ;;  %vm2241_vm1 = vcmp.lt.f32.partialorder %v1371_v31, 8388608.0  ;;  %v1374_v42 = vcvt.s32.f32 %v1373_v32  ;;  %vm2245_vm2 = vcmp.lt.f32.partialorder %v1395_v33, 8388608.0  ;;  %875 = vmatpush.bf16.msra.mxu0 %v1314_v24  ;;  %v1936_v48 = vand.u32 2147483648, %v2221_v28  ;;  %v2324_v31 = vld [vmem:[%s3549_s2 + $0x48] sm:$0xff] }
  0x14   :  { %1051 = vmatpush.bf16.msra.mxu2 %v2205_v23  ;;  %963 = vmatpush.bf16.msra.mxu1 %v2218_v27  ;;  %v1398_v46 = vcvt.s32.f32 %v1397_v36  ;;  %v1934_v47 = vcvt.s32.f32 %v1933_v38  ;;  %v1955_v49 = vand.u32 2147483647, %v2224_v29  ;;  %vm2258_vm3 = vcmp.lt.f32.partialorder %v1931_v37, 8388608.0  ;;  %v39_v36 = vld [vmem:[%s3548_s1 + $0x40] sm:$0xff] }
  0x15   :  { %v1375_v50 = vand.u32 2147483647, %v1374_v42  ;;  %v1957_v52 = vcvt.f32.s32 %v2224_v29  ;;  %v1960_v56 = vand.u32 2147483648, %v2224_v29  ;;  %v1355_v62 = vand.u32 2147483647, %v2264_v53 }
  0x16   :  { %v1399_v54 = vand.u32 2147483647, %v1398_v46  ;;  %v1935_v55 = vand.u32 2147483647, %v1934_v47  ;;  %v1357_v63 = vcvt.f32.s32 %v2264_v53  ;;  %vm2287_vm4 = vcmp.lt.f32.partialorder %v1955_v49, 8388608.0  ;;  %v42_v47 = vld [vmem:[%s3548_s1 + $0x58] sm:$0xff] }
  0x17   :  { %1336 = vmatpush.bf16.msra.mxu3 %v1313_v40  ;;  %v1377_v60 = vor.u32 %v1376_v35, %v1375_v50  ;;  %v1958_v61 = vcvt.s32.f32 %v1957_v52  ;;  %876 = vmatpush.bf16.msra.mxu0 %v1313_v40  ;;  %v1360_v5 = vand.u32 2147483648, %v2264_v53  ;;  %v1379_v14 = vand.u32 2147483647, %v2268_v57 }
  0x18   :  { %1052 = vmatpush.bf16.msra.mxu2 %v2236_v39  ;;  %964 = vmatpush.bf16.msra.mxu1 %v2254_v45  ;;  %v1401_v2 = vor.u32 %v1400_v44, %v1399_v54  ;;  %v1937_v3 = vor.u32 %v1936_v48, %v1935_v55  ;;  %v1358_v12 = vcvt.s32.f32 %v1357_v63  ;;  %vm2309_vm5 = vcmp.lt.f32.partialorder %v1355_v62, 8388608.0  ;;  %v1310_v48 = vld [vmem:[%s3549_s2] sm:$0xff] }
  0x19   :  { %v1378_v9 = vsel %vm2241_vm1, %v1377_v60, %v221_v25  ;;  %v1959_v11 = vand.u32 2147483647, %v1958_v61  ;;  %v1381_v33 = vcvt.f32.s32 %v2268_v57  ;;  %v1384_v34 = vand.u32 2147483648, %v2268_v57  ;;  %v2363_v55 = vld [vmem:[%s3549_s2 + $0x40] sm:$0xff] }
  0x1a   :  { %v1402_v18 = vsel %vm2245_vm2, %v1401_v2, %v2212_v26  ;;  %v407_v19 = vmax.f32 %v1378_v9, 0.0  ;;  %v1938_v20 = vsel %vm2258_vm3, %v1937_v3, %v2221_v28  ;;  %v1359_v30 = vand.u32 2147483647, %v1358_v12  ;;  %v35_v28 = vld [vmem:[%s3548_s1 + $0x20] sm:$0xff]  ;;  %v109_v9 = vld [vmem:[%s3548_s1 + $0x270] sm:$0xff] }
  0x1b   :  { %1337 = vmatpush.bf16.msra.mxu3 %v1312_v59  ;;  %v410_v24 = vmax.f32 %v1402_v18, 0.0  ;;  %v1961_v25 = vor.u32 %v1960_v56, %v1959_v11  ;;  %v477_v26 = vmax.f32 %v1938_v20, 0.0  ;;  %877 = vmatpush.bf16.msra.mxu0 %v1312_v59  ;;  %v126_v35 = vmul.f32 %v2181_v13, %v32_v15 }
  0x1c   :  { %1053 = vmatpush.bf16.msra.mxu2 %v2274_v58  ;;  %965 = vmatpush.bf16.msra.mxu1 %v2285_v0  ;;  %v500_v32 = vmin.f32 %v407_v19, 255.0  ;;  %v1361_v41 = vor.u32 %v1360_v5, %v1359_v30  ;;  %v1382_v43 = vcvt.s32.f32 %v1381_v33  ;;  %v129_v44 = vmul.f32 %v2181_v13, %v35_v28 }
  0x1d   :  { %v503_v37 = vmin.f32 %v410_v24, 255.0  ;;  %v1962_v38 = vsel %vm2287_vm4, %v1961_v25, %v2224_v29  ;;  %v570_v40 = vmin.f32 %v477_v26, 255.0  ;;  %v2337_v46 = vadd.f32 %v2185_v16, %v126_v35  ;;  %v2346_v29 = vld [vmem:[%s3549_s2 + $0x80] sm:$0xff] }
  0x1e   :  { %v480_v42 = vmax.f32 %v1962_v38, 0.0  ;;  %v1362_v50 = vsel %vm2309_vm5, %v1361_v41, %v2264_v53  ;;  %vm2354_vm7 = vcmp.lt.f32.partialorder %v1379_v14, 8388608.0  ;;  %v133_v52 = vmul.f32 %v2181_v13, %v39_v36 }
  0x1f   :  { %1338 = vmatpush.bf16.msra.mxu3 %v1311_v22  ;;  %v593_v49 = vpack.c.bf16 %v503_v37, %v500_v32  ;;  %878 = vmatpush.bf16.msra.mxu0 %v1311_v22  ;;  %v1383_v56 = vand.u32 2147483647, %v1382_v43  ;;  %v405_v59 = vmax.f32 %v1362_v50, 0.0  ;;  %v223_v60 = vadd.f32 %v2185_v16, %v129_v44  ;;  %v112_v37 = vld [vmem:[%s3548_s1 + $0x288] sm:$0xff] }
  0x20   :  { %1054 = vmatpush.bf16.msra.mxu2 %v2301_v17  ;;  %966 = vmatpush.bf16.msra.mxu1 %v2324_v31  ;;  %v573_v54 = vmin.f32 %v480_v42, 255.0  ;;  %v1363_v53 = vand.u32 2147483647, %v2337_v46  ;;  %v1365_v61 = vcvt.f32.s32 %v2337_v46  ;;  %v1368_v62 = vand.u32 2147483648, %v2337_v46  ;;  %v37_v42 = vld [vmem:[%s3548_s1 + $0x30] sm:$0xff]  ;;  %v40_v43 = vld [vmem:[%s3548_s1 + $0x48] sm:$0xff] }
  0x21   :  { %v136_v63 = vmul.f32 %v2181_v13, %v42_v47  ;;  %v1385_v3 = vor.u32 %v1384_v34, %v1383_v56  ;;  %v498_v4 = vmin.f32 %v405_v59, 255.0  ;;  %v1387_v5 = vand.u32 2147483647, %v223_v60 }
  0x22   :  { %v627_v2 = vpack.c.bf16 %v573_v54, %v570_v40  ;;  %vm2374_vm8 = vcmp.lt.f32.partialorder %v1363_v53, 8388608.0  ;;  %v1366_v12 = vcvt.s32.f32 %v1365_v61  ;;  %v1389_v14 = vcvt.f32.s32 %v223_v60 }
  0x23   :  { %1339 = vmatpush.bf16.msra.mxu3 %v1310_v48  ;;  %v1392_v15 = vand.u32 2147483648, %v223_v60  ;;  %879 = vmatpush.bf16.msra.mxu0 %v1310_v48  ;;  %v1386_v18 = vsel %vm2354_vm7, %v1385_v3, %v2268_v57  ;;  %vm2382_vm9 = vcmp.lt.f32.partialorder %v1387_v5, 8388608.0  ;;  %v227_v20 = vadd.f32 %v2185_v16, %v133_v52 }
  0x24   :  { %1055 = vmatpush.bf16.msra.mxu2 %v2346_v29  ;;  %967 = vmatpush.bf16.msra.mxu1 %v2363_v55  ;;  %v230_v21 = vadd.f32 %v2185_v16, %v136_v63  ;;  %v408_v22 = vmax.f32 %v1386_v18, 0.0  ;;  %v1367_v24 = vand.u32 2147483647, %v1366_v12  ;;  %v1390_v25 = vcvt.s32.f32 %v1389_v14 }
  0x25   :  { %v203_v26 = vmul.f32 %v2181_v13, %v109_v9  ;;  %v1419_v30 = vand.u32 2147483647, %v227_v20  ;;  %v1421_v57 = vcvt.f32.s32 %v227_v20  ;;  %v1424_v28 = vand.u32 2147483648, %v227_v20 }
  0x26   :  { %940 = vmatmul.bf16.vlgmr.msra.gmra.mxu3 %v627_v2  ;;  %v1443_v32 = vand.u32 2147483647, %v230_v21  ;;  %v501_v33 = vmin.f32 %v408_v22, 255.0  ;;  %v1369_v34 = vor.u32 %v1368_v62, %v1367_v24  ;;  %v1391_v35 = vand.u32 2147483647, %v1390_v25  ;;  %v38_v22 = vld [vmem:[%s3548_s1 + $0x38] sm:$0xff] }
  0x27   :  { %1340 = vmatpush.bf16.msrb.mxu3 %v2144_v1  ;;  %1294 = vmatmul.msk.bf16.vlgmr.msra.gmra.mxu2 %vm819_vm6, %v593_v49  ;;  %v1445_v36 = vcvt.f32.s32 %v230_v21  ;;  %vm2394_vm10 = vcmp.lt.f32.partialorder %v1419_v30, 8388608.0  ;;  %v1422_v1 = vcvt.s32.f32 %v1421_v57  ;;  %v1448_v41 = vand.u32 2147483648, %v230_v21 }
  0x28   :  { %vm2398_vm11 = vcmp.lt.f32.partialorder %v1443_v32, 8388608.0  ;;  %v591_v44 = vpack.c.bf16 %v501_v33, %v498_v4  ;;  %v1370_v47 = vsel %vm2374_vm8, %v1369_v34, %v2337_v46  ;;  %v1393_v48 = vor.u32 %v1392_v15, %v1391_v35 }
  0x29   :  { %v1446_v49 = vcvt.s32.f32 %v1445_v36  ;;  %v406_v50 = vmax.f32 %v1370_v47, 0.0  ;;  %v1423_v51 = vand.u32 2147483647, %v1422_v1  ;;  %v206_v52 = vmul.f32 %v2181_v13, %v112_v37 }
  0x2a   :  { %v297_v54 = vadd.f32 %v2185_v16, %v203_v26  ;;  %880 = vmatmul.bf16.vlgmr.msra.gmra.mxu0 %v591_v44  ;;  %v1394_v56 = vsel %vm2382_vm9, %v1393_v48, %v223_v60  ;;  %v131_v53 = vmul.f32 %v2181_v13, %v37_v42  ;;  %v134_v61 = vmul.f32 %v2181_v13, %v40_v43  ;;  %v41_v43 = vld [vmem:[%s3548_s1 + $0x50] sm:$0xff]  ;;  %v54_v44 = vld [vmem:[%s3548_s1 + $0xb8] sm:$0xff] }
  0x2b   :  { %1341 = vmatpush.bf16.msrb.mxu3 %v2156_v6  ;;  %v1447_v59 = vand.u32 2147483647, %v1446_v49  ;;  %v409_v46 = vmax.f32 %v1394_v56, 0.0  ;;  %v499_v62 = vmin.f32 %v406_v50, 255.0  ;;  %v1425_v63 = vor.u32 %v1424_v28, %v1423_v51  ;;  %v45_v49 = vld [vmem:[%s3548_s1 + $0x70] sm:$0xff]  ;;  %v48_v50 = vld [vmem:[%s3548_s1 + $0x88] sm:$0xff] }
  0x2c   :  { %v300_v6 = vadd.f32 %v2185_v16, %v206_v52  ;;  %v1979_v3 = vand.u32 2147483647, %v297_v54  ;;  %v1981_v4 = vcvt.f32.s32 %v297_v54  ;;  %v1984_v5 = vand.u32 2147483648, %v297_v54 }
  0x2d   :  { %v1449_v2 = vor.u32 %v1448_v41, %v1447_v59  ;;  %v502_v9 = vmin.f32 %v409_v46, 255.0  ;;  %v1426_v60 = vsel %vm2394_vm10, %v1425_v63, %v227_v20  ;;  %v225_v57 = vadd.f32 %v2185_v16, %v131_v53 }
  0x2e   :  { %v2003_v11 = vand.u32 2147483647, %v300_v6  ;;  %v2005_v12 = vcvt.f32.s32 %v300_v6  ;;  %v413_v15 = vmax.f32 %v1426_v60, 0.0  ;;  %vm2424_vm12 = vcmp.lt.f32.partialorder %v1979_v3, 8388608.0 }
  0x2f   :  { %1342 = vmatpush.bf16.msrb.mxu3 %v2173_v10  ;;  %v1450_v14 = vsel %vm2398_vm11, %v1449_v2, %v230_v21  ;;  %v1982_v19 = vcvt.s32.f32 %v1981_v4  ;;  %v592_v10 = vpack.c.bf16 %v502_v9, %v499_v62  ;;  %v2008_v21 = vand.u32 2147483648, %v300_v6 }
  0x30   :  { %v416_v24 = vmax.f32 %v1450_v14, 0.0  ;;  %vm2431_vm13 = vcmp.lt.f32.partialorder %v2003_v11, 8388608.0  ;;  %v2006_v20 = vcvt.s32.f32 %v2005_v12  ;;  %v506_v26 = vmin.f32 %v413_v15, 255.0 }
  0x31   :  { %v1983_v30 = vand.u32 2147483647, %v1982_v19  ;;  %968 = vmatmul.bf16.vlgmr.msra.gmra.mxu1 %v592_v10  ;;  %v228_v33 = vadd.f32 %v2185_v16, %v134_v61  ;;  %v132_v34 = vmul.f32 %v2181_v13, %v38_v22  ;;  %v1403_v36 = vand.u32 2147483647, %v225_v57 }
  0x32   :  { %v509_v28 = vmin.f32 %v416_v24, 255.0  ;;  %v2007_v32 = vand.u32 2147483647, %v2006_v20  ;;  %v1405_v37 = vcvt.f32.s32 %v225_v57  ;;  %v1408_v38 = vand.u32 2147483648, %v225_v57 }
  0x33   :  { %1343 = vmatpush.bf16.msrb.mxu3 %v2218_v27  ;;  %v1985_v35 = vor.u32 %v1984_v5, %v1983_v30  ;;  %v1427_v41 = vand.u32 2147483647, %v228_v33  ;;  %v1429_v42 = vcvt.f32.s32 %v228_v33  ;;  %vm2444_vm14 = vcmp.lt.f32.partialorder %v1403_v36, 8388608.0 }
  0x34   :  { %v596_v1 = vpack.c.bf16 %v509_v28, %v506_v26  ;;  %v2009_v40 = vor.u32 %v2008_v21, %v2007_v32  ;;  %v1406_v47 = vcvt.s32.f32 %v1405_v37  ;;  %v1432_v48 = vand.u32 2147483648, %v228_v33  ;;  %v115_v37 = vld [vmem:[%s3548_s1 + $0x2a0] sm:$0xff] }
  0x35   :  { %v1986_v27 = vsel %vm2424_vm12, %v1985_v35, %v297_v54  ;;  %vm2458_vm15 = vcmp.lt.f32.partialorder %v1427_v41, 8388608.0  ;;  %v1430_v56 = vcvt.s32.f32 %v1429_v42  ;;  %v135_v61 = vmul.f32 %v2181_v13, %v41_v43  ;;  %v43_v42 = vld [vmem:[%s3548_s1 + $0x60] sm:$0xff] }
  0x36   :  { %v2010_v51 = vsel %vm2431_vm13, %v2009_v40, %v300_v6  ;;  %v483_v52 = vmax.f32 %v1986_v27, 0.0  ;;  %v1407_v53 = vand.u32 2147483647, %v1406_v47  ;;  %v226_v46 = vadd.f32 %v2185_v16, %v132_v34 }
  0x37   :  { %1344 = vmatpush.bf16.msrb.mxu3 %v2254_v45  ;;  %1295 = vmatmul.msk.bf16.gmra.mxu2 %vm819_vm6, %v596_v1  ;;  %v486_v59 = vmax.f32 %v2010_v51, 0.0  ;;  %v1431_v63 = vand.u32 2147483647, %v1430_v56  ;;  %v139_v45 = vmul.f32 %v2181_v13, %v45_v49  ;;  %v142_v2 = vmul.f32 %v2181_v13, %v48_v50 }
  0x38   :  { %v576_v62 = vmin.f32 %v483_v52, 255.0  ;;  %v1409_v6 = vor.u32 %v1408_v38, %v1407_v53  ;;  %v229_v4 = vadd.f32 %v2185_v16, %v135_v61  ;;  %v1411_v5 = vand.u32 2147483647, %v226_v46 }
  0x39   :  { %v579_v3 = vmin.f32 %v486_v59, 255.0  ;;  %v1433_v9 = vor.u32 %v1432_v48, %v1431_v63  ;;  %v1413_v60 = vcvt.f32.s32 %v226_v46  ;;  %v1416_v11 = vand.u32 2147483648, %v226_v46  ;;  %v46_v48 = vld [vmem:[%s3548_s1 + $0x78] sm:$0xff] }
  0x3a   :  { %v2469_v12 = vadd.f32 %v2185_v16, %v139_v45  ;;  %v1410_v15 = vsel %vm2444_vm14, %v1409_v6, %v225_v57  ;;  %vm2473_vm0 = vcmp.lt.f32.partialorder %v1411_v5, 8388608.0  ;;  %v1435_v19 = vand.u32 2147483647, %v229_v4 }
  0x3b   :  { %1345 = vmatpush.bf16.msrb.mxu3 %v2285_v0  ;;  %v630_v14 = vpack.c.bf16 %v579_v3, %v576_v62  ;;  %v1434_v22 = vsel %vm2458_vm15, %v1433_v9, %v228_v33  ;;  %v411_v10 = vmax.f32 %v1410_v15, 0.0  ;;  %v1414_v0 = vcvt.s32.f32 %v1413_v60 }
  0x3c   :  { %v1437_v24 = vcvt.f32.s32 %v229_v4  ;;  %v414_v25 = vmax.f32 %v1434_v22, 0.0  ;;  %vm2479_vm1 = vcmp.lt.f32.partialorder %v1435_v19, 8388608.0  ;;  %v1440_v26 = vand.u32 2147483648, %v229_v4 }
  0x3d   :  { %945 = vmatmul.bf16.gmra.mxu3 %v630_v14  ;;  %v236_v30 = vadd.f32 %v2185_v16, %v142_v2  ;;  %v504_v21 = vmin.f32 %v411_v10, 255.0  ;;  %v1415_v57 = vand.u32 2147483647, %v1414_v0  ;;  %v1467_v32 = vand.u32 2147483647, %v2469_v12  ;;  %v44_v10 = vld [vmem:[%s3548_s1 + $0x68] sm:$0xff] }
  0x3e   :  { %v1438_v28 = vcvt.s32.f32 %v1437_v24  ;;  %v507_v33 = vmin.f32 %v414_v25, 255.0  ;;  %v1469_v34 = vcvt.f32.s32 %v2469_v12  ;;  %v1472_v35 = vand.u32 2147483648, %v2469_v12 }
  0x3f   :  { %1346 = vmatpush.bf16.msrb.mxu3 %v2324_v31  ;;  %v1491_v36 = vand.u32 2147483647, %v236_v30  ;;  %v1417_v38 = vor.u32 %v1416_v11, %v1415_v57  ;;  %vm2491_vm2 = vcmp.lt.f32.partialorder %v1467_v32, 8388608.0  ;;  %v1493_v41 = vcvt.f32.s32 %v236_v30  ;;  %v118_v31 = vld [vmem:[%s3548_s1 + $0x2b8] sm:$0xff] }
  0x40   :  { %v1439_v1 = vand.u32 2147483647, %v1438_v28  ;;  %v594_v43 = vpack.c.bf16 %v507_v33, %v504_v21  ;;  %v1470_v27 = vcvt.s32.f32 %v1469_v34  ;;  %v1496_v47 = vand.u32 2147483648, %v236_v30 }
  0x41   :  { %vm2501_vm3 = vcmp.lt.f32.partialorder %v1491_v36, 8388608.0  ;;  %v1418_v49 = vsel %vm2473_vm0, %v1417_v38, %v226_v46  ;;  %v1494_v51 = vcvt.s32.f32 %v1493_v41  ;;  %v209_v52 = vmul.f32 %v2181_v13, %v115_v37  ;;  %v47_v41 = vld [vmem:[%s3548_s1 + $0x80] sm:$0xff] }
  0x42   :  { %v1441_v50 = vor.u32 %v1440_v26, %v1439_v1  ;;  %885 = vmatmul.bf16.gmra.mxu0 %v594_v43  ;;  %v412_v54 = vmax.f32 %v1418_v49, 0.0  ;;  %v1471_v56 = vand.u32 2147483647, %v1470_v27  ;;  %v212_v59 = vmul.f32 %v2181_v13, %v118_v31  ;;  %v51_v27 = vld [vmem:[%s3548_s1 + $0xa0] sm:$0xff] }
  0x43   :  { %1347 = vmatpush.bf16.msrb.mxu3 %v2363_v55  ;;  %v137_v53 = vmul.f32 %v2181_v13, %v43_v42  ;;  %v1495_v62 = vand.u32 2147483647, %v1494_v51  ;;  %v303_v46 = vadd.f32 %v2185_v16, %v209_v52  ;;  %v140_v63 = vmul.f32 %v2181_v13, %v46_v48 }
  0x44   :  { %v1442_v61 = vsel %vm2479_vm1, %v1441_v50, %v229_v4  ;;  %v505_v2 = vmin.f32 %v412_v54, 255.0  ;;  %v1473_v55 = vor.u32 %v1472_v35, %v1471_v56  ;;  %v306_v3 = vadd.f32 %v2185_v16, %v212_v59 }
  0x45   :  { %v415_v45 = vmax.f32 %v1442_v61, 0.0  ;;  %v1497_v6 = vor.u32 %v1496_v47, %v1495_v62  ;;  %v2027_v5 = vand.u32 2147483647, %v303_v46  ;;  %v2029_v9 = vcvt.f32.s32 %v303_v46 }
  0x46   :  { %v2032_v60 = vand.u32 2147483648, %v303_v46  ;;  %v2051_v4 = vand.u32 2147483647, %v306_v3  ;;  %v2053_v14 = vcvt.f32.s32 %v306_v3  ;;  %v2056_v26 = vand.u32 2147483648, %v306_v3 }
  0x47   :  { %1348 = vmatpush.bf16.msra.mxu3 %v2158_v7  ;;  %v508_v11 = vmin.f32 %v415_v45, 255.0  ;;  %v1474_v7 = vsel %vm2491_vm2, %v1473_v55, %v2469_v12  ;;  %v1498_v15 = vsel %vm2501_vm3, %v1497_v6, %v236_v30  ;;  %vm2526_vm4 = vcmp.lt.f32.partialorder %v2027_v5, 8388608.0 }
  0x48   :  { %v419_v18 = vmax.f32 %v1474_v7, 0.0  ;;  %v2030_v22 = vcvt.s32.f32 %v2029_v9  ;;  %v422_v24 = vmax.f32 %v1498_v15, 0.0  ;;  %vm2533_vm5 = vcmp.lt.f32.partialorder %v2051_v4, 8388608.0 }
  0x49   :  { %v595_v0 = vpack.c.bf16 %v508_v11, %v505_v2  ;;  %v231_v30 = vadd.f32 %v2185_v16, %v137_v53  ;;  %v234_v28 = vadd.f32 %v2185_v16, %v140_v63  ;;  %v138_v32 = vmul.f32 %v2181_v13, %v44_v10 }
  0x4a   :  { %v512_v25 = vmin.f32 %v419_v18, 255.0  ;;  %v2031_v20 = vand.u32 2147483647, %v2030_v22  ;;  %v515_v21 = vmin.f32 %v422_v24, 255.0  ;;  %v141_v54 = vmul.f32 %v2181_v13, %v47_v41 }
  0x4b   :  { %1349 = vmatpush.bf16.msra.mxu3 %v2164_v8  ;;  %v2054_v8 = vcvt.s32.f32 %v2053_v14  ;;  %973 = vmatmul.bf16.gmra.mxu1 %v595_v0  ;;  %v1451_v34 = vand.u32 2147483647, %v231_v30  ;;  %v1453_v35 = vcvt.f32.s32 %v231_v30  ;;  %v1456_v36 = vand.u32 2147483648, %v231_v30 }
  0x4c   :  { %v2033_v33 = vor.u32 %v2032_v60, %v2031_v20  ;;  %v599_v37 = vpack.c.bf16 %v515_v21, %v512_v25  ;;  %v1475_v1 = vand.u32 2147483647, %v234_v28  ;;  %v1477_v40 = vcvt.f32.s32 %v234_v28 }
  0x4d   :  { %v2055_v57 = vand.u32 2147483647, %v2054_v8  ;;  %vm2546_vm7 = vcmp.lt.f32.partialorder %v1451_v34, 8388608.0  ;;  %v1480_v43 = vand.u32 2147483648, %v234_v28  ;;  %v232_v56 = vadd.f32 %v2185_v16, %v138_v32 }
  0x4e   :  { %v2034_v31 = vsel %vm2526_vm4, %v2033_v33, %v303_v46  ;;  %1296 = vmatmul.msk.bf16.gmra.mxu2 %vm819_vm6, %v599_v37  ;;  %vm2559_vm8 = vcmp.lt.f32.partialorder %v1475_v1, 8388608.0  ;;  %v1478_v50 = vcvt.s32.f32 %v1477_v40  ;;  %v145_v61 = vmul.f32 %v2181_v13, %v51_v27  ;;  %v52_v33 = vld [vmem:[%s3548_s1 + $0xa8] sm:$0xff] }
  0x4f   :  { %1350 = vmatpush.bf16.msra.mxu3 %v2205_v23  ;;  %v2057_v38 = vor.u32 %v2056_v26, %v2055_v57  ;;  %v1454_v23 = vcvt.s32.f32 %v1453_v35  ;;  %v489_v48 = vmax.f32 %v2034_v31, 0.0  ;;  %v148_v62 = vmul.f32 %v2181_v13, %v54_v44 }
  0x50   :  { %v1479_v53 = vand.u32 2147483647, %v1478_v50  ;;  %v235_v45 = vadd.f32 %v2185_v16, %v141_v54  ;;  %v1459_v2 = vand.u32 2147483647, %v232_v56  ;;  %v2570_v6 = vadd.f32 %v2185_v16, %v145_v61 }
  0x51   :  { %v2058_v47 = vsel %vm2533_vm5, %v2057_v38, %v306_v3  ;;  %v1455_v52 = vand.u32 2147483647, %v1454_v23  ;;  %v582_v59 = vmin.f32 %v489_v48, 255.0  ;;  %v1461_v3 = vcvt.f32.s32 %v232_v56  ;;  %v50_v38 = vld [vmem:[%s3548_s1 + $0x98] sm:$0xff] }
  0x52   :  { %v492_v51 = vmax.f32 %v2058_v47, 0.0  ;;  %v1481_v55 = vor.u32 %v1480_v43, %v1479_v53  ;;  %vm2575_vm9 = vcmp.lt.f32.partialorder %v1459_v2, 8388608.0  ;;  %v1483_v11 = vand.u32 2147483647, %v235_v45 }
  0x53   :  { %1351 = vmatpush.bf16.msra.mxu3 %v2236_v39  ;;  %v1457_v63 = vor.u32 %v1456_v36, %v1455_v52  ;;  %v1464_v39 = vand.u32 2147483648, %v232_v56  ;;  %v1462_v14 = vcvt.s32.f32 %v1461_v3  ;;  %v1485_v15 = vcvt.f32.s32 %v235_v45 }
  0x54   :  { %v585_v46 = vmin.f32 %v492_v51, 255.0  ;;  %v1482_v7 = vsel %vm2559_vm8, %v1481_v55, %v234_v28  ;;  %vm2581_vm10 = vcmp.lt.f32.partialorder %v1483_v11, 8388608.0  ;;  %v242_v22 = vadd.f32 %v2185_v16, %v148_v62  ;;  %v57_v11 = vld [vmem:[%s3548_s1 + $0xd0] sm:$0xff] }
  0x55   :  { %v1458_v9 = vsel %vm2546_vm7, %v1457_v63, %v231_v30  ;;  %v420_v18 = vmax.f32 %v1482_v7, 0.0  ;;  %v1463_v0 = vand.u32 2147483647, %v1462_v14  ;;  %v1486_v24 = vcvt.s32.f32 %v1485_v15  ;;  %v121_v30 = vld [vmem:[%s3548_s1 + $0x2d0] sm:$0x3] }
  0x56   :  { %v633_v5 = vpack.c.bf16 %v585_v46, %v582_v59  ;;  %v417_v4 = vmax.f32 %v1458_v9, 0.0  ;;  %v1515_v12 = vand.u32 2147483647, %v2570_v6  ;;  %v1517_v25 = vcvt.f32.s32 %v2570_v6  ;;  %v107_v9 = vld [vmem:[%s3548_s1 + $0x260] sm:$0xff] }
  0x57   :  { %1352 = vmatpush.bf16.msra.mxu3 %v2274_v58  ;;  %v1488_v58 = vand.u32 2147483648, %v235_v45  ;;  %v513_v8 = vmin.f32 %v420_v18, 255.0  ;;  %v1520_v20 = vand.u32 2147483648, %v2570_v6  ;;  %v1539_v26 = vand.u32 2147483647, %v242_v22 }
  0x58   :  { %950 = vmatmul.bf16.gmra.mxu3 %v633_v5  ;;  %v510_v10 = vmin.f32 %v417_v4, 255.0  ;;  %v1465_v21 = vor.u32 %v1464_v39, %v1463_v0  ;;  %v1487_v57 = vand.u32 2147483647, %v1486_v24  ;;  %vm2593_vm11 = vcmp.lt.f32.partialorder %v1515_v12, 8388608.0 }
  0x59   :  { %v1541_v32 = vcvt.f32.s32 %v242_v22  ;;  %v1518_v35 = vcvt.s32.f32 %v1517_v25  ;;  %vm2603_vm12 = vcmp.lt.f32.partialorder %v1539_v26, 8388608.0  ;;  %v1544_v37 = vand.u32 2147483648, %v242_v22 }
  0x5a   :  { %v597_v34 = vpack.c.bf16 %v513_v8, %v510_v10  ;;  %v1466_v1 = vsel %vm2575_vm9, %v1465_v21, %v232_v56  ;;  %v1489_v40 = vor.u32 %v1488_v58, %v1487_v57  ;;  %v215_v31 = vmul.f32 %v2181_v13, %v121_v30 }
  0x5b   :  { %1353 = vmatpush.bf16.msra.mxu3 %v2301_v17  ;;  %v49_v17 = vld [vmem:[%s3548_s1 + $0x90] sm:$0xff]  ;;  %v1542_v41 = vcvt.s32.f32 %v1541_v32  ;;  %v418_v42 = vmax.f32 %v1466_v1, 0.0  ;;  %v1519_v23 = vand.u32 2147483647, %v1518_v35  ;;  %v146_v27 = vmul.f32 %v2181_v13, %v52_v33  ;;  %v60_v1 = vld [vmem:[%s3548_s1 + $0xe8] sm:$0xff] }
  0x5c   :  { %890 = vmatmul.bf16.gmra.mxu0 %v597_v34  ;;  %v143_v43 = vmul.f32 %v2181_v13, %v49_v17  ;;  %v1490_v44 = vsel %vm2581_vm10, %v1489_v40, %v235_v45  ;;  %v309_v48 = vadd.f32 %v2185_v16, %v215_v31  ;;  %v144_v49 = vmul.f32 %v2181_v13, %v50_v38 }
  0x5d   :  { %v1543_v47 = vand.u32 2147483647, %v1542_v41  ;;  %v421_v50 = vmax.f32 %v1490_v44, 0.0  ;;  %v511_v51 = vmin.f32 %v418_v42, 255.0  ;;  %v1521_v52 = vor.u32 %v1520_v20, %v1519_v23 }
  0x5e   :  { %v2075_v56 = vand.u32 2147483647, %v309_v48  ;;  %v2077_v59 = vcvt.f32.s32 %v309_v48  ;;  %v2080_v53 = vand.u32 2147483648, %v309_v48  ;;  %v240_v46 = vadd.f32 %v2185_v16, %v146_v27 }
  0x5f   :  { %1354 = vmatpush.bf16.msra.mxu3 %v2346_v29  ;;  %v237_v29 = vadd.f32 %v2185_v16, %v143_v43  ;;  %v1545_v54 = vor.u32 %v1544_v37, %v1543_v47  ;;  %v514_v61 = vmin.f32 %v421_v50, 255.0  ;;  %v1522_v62 = vsel %vm2593_vm11, %v1521_v52, %v2570_v6  ;;  %v53_v6 = vld [vmem:[%s3548_s1 + $0xb0] sm:$0xff] }
  0x60   :  { %v425_v2 = vmax.f32 %v1522_v62, 0.0  ;;  %vm2627_vm13 = vcmp.lt.f32.partialorder %v2075_v56, 8388608.0  ;;  %v2078_v3 = vcvt.s32.f32 %v2077_v59  ;;  %v1523_v15 = vand.u32 2147483647, %v240_v46 }
  0x61   :  { %v1499_v63 = vand.u32 2147483647, %v237_v29  ;;  %v1546_v45 = vsel %vm2603_vm12, %v1545_v54, %v242_v22  ;;  %v598_v39 = vpack.c.bf16 %v514_v61, %v511_v51  ;;  %v1501_v60 = vcvt.f32.s32 %v237_v29  ;;  %v104_v51 = vld [vmem:[%s3548_s1 + $0x248] sm:$0xff] }
  0x62   :  { %v428_v5 = vmax.f32 %v1546_v45, 0.0  ;;  %v518_v7 = vmin.f32 %v425_v2, 255.0  ;;  %v2079_v4 = vand.u32 2147483647, %v2078_v3  ;;  %v1504_v14 = vand.u32 2147483648, %v237_v29 }
  0x63   :  { %vm2631_vm14 = vcmp.lt.f32.partialorder %v1499_v63, 8388608.0  ;;  %978 = vmatmul.bf16.gmra.mxu1 %v598_v39  ;;  %v1502_v19 = vcvt.s32.f32 %v1501_v60  ;;  %v1525_v58 = vcvt.f32.s32 %v240_v46  ;;  %v1528_v22 = vand.u32 2147483648, %v240_v46  ;;  %v55_v60 = vld [vmem:[%s3548_s1 + $0xc0] sm:$0xff] }
  0x64   :  { %v521_v18 = vmin.f32 %v428_v5, 255.0  ;;  %v2081_v10 = vor.u32 %v2080_v53, %v2079_v4  ;;  %vm2641_vm15 = vcmp.lt.f32.partialorder %v1523_v15, 8388608.0  ;;  %v147_v24 = vmul.f32 %v2181_v13, %v53_v6  ;;  %v56_v15 = vld [vmem:[%s3548_s1 + $0xc8] sm:$0xff] }
  0x65   :  { %v238_v12 = vadd.f32 %v2185_v16, %v144_v49  ;;  %v1503_v25 = vand.u32 2147483647, %v1502_v19  ;;  %v1526_v20 = vcvt.s32.f32 %v1525_v58  ;;  %v151_v26 = vmul.f32 %v2181_v13, %v57_v11 }
  0x66   :  { %v602_v8 = vpack.c.bf16 %v521_v18, %v518_v7  ;;  %v2082_v30 = vsel %vm2627_vm13, %v2081_v10, %v309_v48  ;;  %v241_v21 = vadd.f32 %v2185_v16, %v147_v24  ;;  %v154_v49 = vmul.f32 %v2181_v13, %v60_v1 }
  0x67   :  { %v1507_v57 = vand.u32 2147483647, %v238_v12  ;;  %v1509_v28 = vcvt.f32.s32 %v238_v12  ;;  %v495_v32 = vmax.f32 %v2082_v30, 0.0  ;;  %v1505_v17 = vor.u32 %v1504_v14, %v1503_v25  ;;  %v58_v14 = vld [vmem:[%s3548_s1 + $0xd8] sm:$0xff] }
  0x68   :  { %1297 = vmatmul.msk.bf16.gmra.mxu2 %vm819_vm6, %v602_v8  ;;  %v1527_v33 = vand.u32 2147483647, %v1526_v20  ;;  %v1512_v34 = vand.u32 2147483648, %v238_v12  ;;  %v1531_v37 = vand.u32 2147483647, %v241_v21  ;;  %v1533_v38 = vcvt.f32.s32 %v241_v21 }
  0x69   :  { %vm2652_vm0 = vcmp.lt.f32.partialorder %v1507_v57, 8388608.0  ;;  %v1510_v36 = vcvt.s32.f32 %v1509_v28  ;;  %v588_v40 = vmin.f32 %v495_v32, 255.0  ;;  %v1506_v41 = vsel %vm2631_vm14, %v1505_v17, %v237_v29 }
  0x6a   :  { %v1529_v31 = vor.u32 %v1528_v22, %v1527_v33  ;;  %v1536_v42 = vand.u32 2147483648, %v241_v21  ;;  %v423_v23 = vmax.f32 %v1506_v41, 0.0  ;;  %vm2661_vm1 = vcmp.lt.f32.partialorder %v1531_v37, 8388608.0 }
  0x6b   :  { %v1511_v43 = vand.u32 2147483647, %v1510_v36  ;;  %v1534_v44 = vcvt.s32.f32 %v1533_v38  ;;  %v636_v47 = vpack.c.bf16 %v588_v40, %v588_v40  ;;  %v245_v50 = vadd.f32 %v2185_v16, %v151_v26 }
  0x6c   :  { %v1530_v48 = vsel %vm2641_vm15, %v1529_v31, %v240_v46  ;;  %v516_v29 = vmin.f32 %v423_v23, 255.0  ;;  %v248_v59 = vadd.f32 %v2185_v16, %v154_v49  ;;  %v198_v2 = vmul.f32 %v2181_v13, %v104_v51 }
  0x6d   :  { %v426_v52 = vmax.f32 %v1530_v48, 0.0  ;;  %v1513_v54 = vor.u32 %v1512_v34, %v1511_v43  ;;  %v1535_v56 = vand.u32 2147483647, %v1534_v44  ;;  %955 = vmatmul.bf16.gmra.mxu3 %v636_v47  ;;  %v1563_v53 = vand.u32 2147483647, %v245_v50 }
  0x6e   :  { %v1565_v61 = vcvt.f32.s32 %v245_v50  ;;  %v1568_v62 = vand.u32 2147483648, %v245_v50  ;;  %v1587_v5 = vand.u32 2147483647, %v248_v59  ;;  %v1589_v7 = vcvt.f32.s32 %v248_v59 }
  0x6f   :  { %v519_v63 = vmin.f32 %v426_v52, 255.0  ;;  %v1514_v46 = vsel %vm2652_vm0, %v1513_v54, %v238_v12  ;;  %v1537_v45 = vor.u32 %v1536_v42, %v1535_v56  ;;  %vm2676_vm2 = vcmp.lt.f32.partialorder %v1563_v53, 8388608.0  ;;  %v113_v52 = vld [vmem:[%s3548_s1 + $0x290] sm:$0xff] }
  0x70   :  { %v424_v55 = vmax.f32 %v1514_v46, 0.0  ;;  %v1566_v39 = vcvt.s32.f32 %v1565_v61  ;;  %v1592_v4 = vand.u32 2147483648, %v248_v59  ;;  %vm2694_vm3 = vcmp.lt.f32.partialorder %v1587_v5, 8388608.0 }
  0x71   :  { %v600_v6 = vpack.c.bf16 %v519_v63, %v516_v29  ;;  %v1538_v11 = vsel %vm2661_vm1, %v1537_v45, %v241_v21  ;;  %v1590_v10 = vcvt.s32.f32 %v1589_v7  ;;  %v201_v0 = vmul.f32 %v2181_v13, %v107_v9 }
  0x72   :  { %v427_v18 = vmax.f32 %v1538_v11, 0.0  ;;  %v517_v19 = vmin.f32 %v424_v55, 255.0  ;;  %v1567_v58 = vand.u32 2147483647, %v1566_v39  ;;  %v292_v24 = vadd.f32 %v2185_v16, %v198_v2  ;;  %v66_v55 = vld [vmem:[%s3548_s1 + $0x118] sm:$0xff] }
  0x73   :  { %895 = vmatmul.bf16.gmra.mxu0 %v600_v6  ;;  %v149_v12 = vmul.f32 %v2181_v13, %v55_v60  ;;  %v152_v20 = vmul.f32 %v2181_v13, %v58_v14  ;;  %v150_v26 = vmul.f32 %v2181_v13, %v56_v15  ;;  %v1591_v30 = vand.u32 2147483647, %v1590_v10 }
  0x74   :  { %v520_v8 = vmin.f32 %v427_v18, 255.0  ;;  %v1569_v25 = vor.u32 %v1568_v62, %v1567_v58  ;;  %v295_v21 = vadd.f32 %v2185_v16, %v201_v0  ;;  %v1939_v57 = vand.u32 2147483647, %v292_v24  ;;  %v63_v62 = vld [vmem:[%s3548_s1 + $0x100] sm:$0xff] }
  0x75   :  { %v1941_v28 = vcvt.f32.s32 %v292_v24  ;;  %v1944_v33 = vand.u32 2147483648, %v292_v24  ;;  %v243_v34 = vadd.f32 %v2185_v16, %v149_v12  ;;  %v1593_v35 = vor.u32 %v1592_v4, %v1591_v30 }
  0x76   :  { %v601_v32 = vpack.c.bf16 %v520_v8, %v517_v19  ;;  %v1570_v17 = vsel %vm2676_vm2, %v1569_v25, %v245_v50  ;;  %vm2707_vm4 = vcmp.lt.f32.partialorder %v1939_v57, 8388608.0  ;;  %v1963_v1 = vand.u32 2147483647, %v295_v21  ;;  %v59_v50 = vld [vmem:[%s3548_s1 + $0xe0] sm:$0xff] }
  0x77   :  { %v431_v36 = vmax.f32 %v1570_v17, 0.0  ;;  %v1942_v38 = vcvt.s32.f32 %v1941_v28  ;;  %v1965_v40 = vcvt.f32.s32 %v295_v21  ;;  %v1968_v41 = vand.u32 2147483648, %v295_v21  ;;  %v110_v17 = vld [vmem:[%s3548_s1 + $0x278] sm:$0xff] }
  0x78   :  { %983 = vmatmul.bf16.gmra.mxu1 %v601_v32  ;;  %v246_v31 = vadd.f32 %v2185_v16, %v152_v20  ;;  %v1594_v42 = vsel %vm2694_vm3, %v1593_v35, %v248_v59  ;;  %v1547_v27 = vand.u32 2147483647, %v243_v34  ;;  %vm2714_vm5 = vcmp.lt.f32.partialorder %v1963_v1, 8388608.0 }
  0x79   :  { %v524_v23 = vmin.f32 %v431_v36, 255.0  ;;  %v1943_v43 = vand.u32 2147483647, %v1942_v38  ;;  %v434_v44 = vmax.f32 %v1594_v42, 0.0  ;;  %v1966_v48 = vcvt.s32.f32 %v1965_v40 }
  0x7a   :  { %v1549_v49 = vcvt.f32.s32 %v243_v34  ;;  %vm2721_vm7 = vcmp.lt.f32.partialorder %v1547_v27, 8388608.0  ;;  %v1552_v29 = vand.u32 2147483648, %v243_v34  ;;  %v1571_v54 = vand.u32 2147483647, %v246_v31 }
  0x7b   :  { %v1945_v51 = vor.u32 %v1944_v33, %v1943_v43  ;;  %v527_v56 = vmin.f32 %v434_v44, 255.0  ;;  %v1967_v59 = vand.u32 2147483647, %v1966_v48  ;;  %v1573_v61 = vcvt.f32.s32 %v246_v31 }
  0x7c   :  { %v1550_v53 = vcvt.s32.f32 %v1549_v49  ;;  %vm2730_vm8 = vcmp.lt.f32.partialorder %v1571_v54, 8388608.0  ;;  %v1576_v45 = vand.u32 2147483648, %v246_v31  ;;  %v153_v2 = vmul.f32 %v2181_v13, %v59_v50  ;;  %v64_v54 = vld [vmem:[%s3548_s1 + $0x108] sm:$0xff] }
  0x7d   :  { %v1946_v63 = vsel %vm2707_vm4, %v1945_v51, %v292_v24  ;;  %v605_v3 = vpack.c.bf16 %v527_v56, %v524_v23  ;;  %v1969_v39 = vor.u32 %v1968_v41, %v1967_v59  ;;  %v1574_v60 = vcvt.s32.f32 %v1573_v61 }
  0x7e   :  { %v478_v5 = vmax.f32 %v1946_v63, 0.0  ;;  %v1551_v9 = vand.u32 2147483647, %v1550_v53  ;;  %v244_v6 = vadd.f32 %v2185_v16, %v150_v26  ;;  %v247_v11 = vadd.f32 %v2185_v16, %v153_v2 }
  0x7f   :  { %v157_v7 = vmul.f32 %v2181_v13, %v63_v62  ;;  %1298 = vmatmul.msk.bf16.gmra.mxu2 %vm819_vm6, %v605_v3  ;;  %v1970_v4 = vsel %vm2714_vm5, %v1969_v39, %v295_v21  ;;  %v160_v18 = vmul.f32 %v2181_v13, %v66_v55  ;;  %v1575_v58 = vand.u32 2147483647, %v1574_v60 }
  0x80   :  { %v571_v14 = vmin.f32 %v478_v5, 255.0  ;;  %v1553_v15 = vor.u32 %v1552_v29, %v1551_v9  ;;  %v481_v19 = vmax.f32 %v1970_v4, 0.0  ;;  %v1555_v22 = vand.u32 2147483647, %v244_v6  ;;  %v61_v29 = vld [vmem:[%s3548_s1 + $0xf0] sm:$0xff] }
  0x81   :  { %v1557_v10 = vcvt.f32.s32 %v244_v6  ;;  %v1560_v24 = vand.u32 2147483648, %v244_v6  ;;  %v1579_v12 = vand.u32 2147483647, %v247_v11  ;;  %v1581_v8 = vcvt.f32.s32 %v247_v11 }
  0x82   :  { %v1554_v0 = vsel %vm2721_vm7, %v1553_v15, %v243_v34  ;;  %v574_v25 = vmin.f32 %v481_v19, 255.0  ;;  %v1577_v20 = vor.u32 %v1576_v45, %v1575_v58  ;;  %vm2747_vm9 = vcmp.lt.f32.partialorder %v1555_v22, 8388608.0 }
  0x83   :  { %v429_v26 = vmax.f32 %v1554_v0, 0.0  ;;  %v1558_v21 = vcvt.s32.f32 %v1557_v10  ;;  %vm2751_vm10 = vcmp.lt.f32.partialorder %v1579_v12, 8388608.0  ;;  %v1582_v28 = vcvt.s32.f32 %v1581_v8 }
  0x84   :  { %v1584_v32 = vand.u32 2147483648, %v247_v11  ;;  %v628_v33 = vpack.c.bf16 %v574_v25, %v571_v14  ;;  %v1578_v34 = vsel %vm2730_vm8, %v1577_v20, %v246_v31  ;;  %v251_v36 = vadd.f32 %v2185_v16, %v157_v7 }
  0x85   :  { %v522_v35 = vmin.f32 %v429_v26, 255.0  ;;  %v432_v37 = vmax.f32 %v1578_v34, 0.0  ;;  %v1559_v38 = vand.u32 2147483647, %v1558_v21  ;;  %v1583_v1 = vand.u32 2147483647, %v1582_v28 }
  0x86   :  { %v254_v40 = vadd.f32 %v2185_v16, %v160_v18  ;;  %1028 = vmatmul.bf16.vlgmr.msrb.gmra.mxu3 %v628_v33  ;;  %v1611_v41 = vand.u32 2147483647, %v251_v36  ;;  %v1613_v42 = vcvt.f32.s32 %v251_v36  ;;  %v1616_v23 = vand.u32 2147483648, %v251_v36 }
  0x87   :  { %v204_v43 = vmul.f32 %v2181_v13, %v110_v17  ;;  %v525_v27 = vmin.f32 %v432_v37, 255.0  ;;  %v1561_v44 = vor.u32 %v1560_v24, %v1559_v38  ;;  %v1585_v47 = vor.u32 %v1584_v32, %v1583_v1  ;;  %v62_v38 = vld [vmem:[%s3548_s1 + $0xf8] sm:$0xff]  ;;  %v65_v1 = vld [vmem:[%s3548_s1 + $0x110] sm:$0xff] }
  0x88   :  { %v1635_v48 = vand.u32 2147483647, %v254_v40  ;;  %vm2763_vm11 = vcmp.lt.f32.partialorder %v1611_v41, 8388608.0  ;;  %v1614_v49 = vcvt.s32.f32 %v1613_v42  ;;  %v1637_v50 = vcvt.f32.s32 %v254_v40 }
  0x89   :  { %v1640_v51 = vand.u32 2147483648, %v254_v40  ;;  %v603_v56 = vpack.c.bf16 %v525_v27, %v522_v35  ;;  %v1562_v59 = vsel %vm2747_vm9, %v1561_v44, %v244_v6  ;;  %v1586_v53 = vsel %vm2751_vm10, %v1585_v47, %v247_v11  ;;  %v72_v27 = vld [vmem:[%s3548_s1 + $0x148] sm:$0xff] }
  0x8a   :  { %vm2780_vm12 = vcmp.lt.f32.partialorder %v1635_v48, 8388608.0  ;;  %v430_v62 = vmax.f32 %v1562_v59, 0.0  ;;  %v433_v63 = vmax.f32 %v1586_v53, 0.0  ;;  %v1615_v46 = vand.u32 2147483647, %v1614_v49 }
  0x8b   :  { %v1638_v45 = vcvt.s32.f32 %v1637_v50  ;;  %900 = vmatmul.bf16.gmra.mxu0 %v603_v56  ;;  %v207_v2 = vmul.f32 %v2181_v13, %v113_v52  ;;  %v298_v55 = vadd.f32 %v2185_v16, %v204_v43  ;;  %v155_v3 = vmul.f32 %v2181_v13, %v61_v29  ;;  %v69_v43 = vld [vmem:[%s3548_s1 + $0x130] sm:$0xff] }
  0x8c   :  { %v158_v39 = vmul.f32 %v2181_v13, %v64_v54  ;;  %v523_v5 = vmin.f32 %v430_v62, 255.0  ;;  %v526_v9 = vmin.f32 %v433_v63, 255.0  ;;  %v1617_v60 = vor.u32 %v1616_v23, %v1615_v46 }
  0x8d   :  { %v1639_v6 = vand.u32 2147483647, %v1638_v45  ;;  %v301_v11 = vadd.f32 %v2185_v16, %v207_v2  ;;  %v1987_v7 = vand.u32 2147483647, %v298_v55  ;;  %v1989_v4 = vcvt.f32.s32 %v298_v55 }
  0x8e   :  { %v1992_v14 = vand.u32 2147483648, %v298_v55  ;;  %v604_v15 = vpack.c.bf16 %v526_v9, %v523_v5  ;;  %v1618_v18 = vsel %vm2763_vm11, %v1617_v60, %v251_v36  ;;  %v249_v58 = vadd.f32 %v2185_v16, %v155_v3 }
  0x8f   :  { %v1641_v19 = vor.u32 %v1640_v51, %v1639_v6  ;;  %v437_v22 = vmax.f32 %v1618_v18, 0.0  ;;  %vm2792_vm13 = vcmp.lt.f32.partialorder %v1987_v7, 8388608.0  ;;  %v1990_v0 = vcvt.s32.f32 %v1989_v4 }
  0x90   :  { %v2011_v24 = vand.u32 2147483647, %v301_v11  ;;  %988 = vmatmul.bf16.gmra.mxu1 %v604_v15  ;;  %v2013_v8 = vcvt.f32.s32 %v301_v11  ;;  %v2016_v25 = vand.u32 2147483648, %v301_v11  ;;  %v252_v20 = vadd.f32 %v2185_v16, %v158_v39 }
  0x91   :  { %v1642_v12 = vsel %vm2780_vm12, %v1641_v19, %v254_v40  ;;  %v530_v30 = vmin.f32 %v437_v22, 255.0  ;;  %v1991_v21 = vand.u32 2147483647, %v1990_v0  ;;  %v1595_v32 = vand.u32 2147483647, %v249_v58  ;;  %v116_v19 = vld [vmem:[%s3548_s1 + $0x2a8] sm:$0xff] }
  0x92   :  { %v440_v26 = vmax.f32 %v1642_v12, 0.0  ;;  %vm2799_vm14 = vcmp.lt.f32.partialorder %v2011_v24, 8388608.0  ;;  %v2014_v28 = vcvt.s32.f32 %v2013_v8  ;;  %v1597_v17 = vcvt.f32.s32 %v249_v58 }
  0x93   :  { %v1600_v33 = vand.u32 2147483648, %v249_v58  ;;  %v1993_v35 = vor.u32 %v1992_v14, %v1991_v21  ;;  %v1619_v36 = vand.u32 2147483647, %v252_v20  ;;  %v1621_v37 = vcvt.f32.s32 %v252_v20  ;;  %v119_v21 = vld [vmem:[%s3548_s1 + $0x2c0] sm:$0xff] }
  0x94   :  { %v533_v34 = vmin.f32 %v440_v26, 255.0  ;;  %v2015_v40 = vand.u32 2147483647, %v2014_v28  ;;  %vm2809_vm15 = vcmp.lt.f32.partialorder %v1595_v32, 8388608.0  ;;  %v1598_v42 = vcvt.s32.f32 %v1597_v17 }
  0x95   :  { %v1624_v23 = vand.u32 2147483648, %v252_v20  ;;  %v1994_v47 = vsel %vm2792_vm13, %v1993_v35, %v298_v55  ;;  %vm2821_vm0 = vcmp.lt.f32.partialorder %v1619_v36, 8388608.0  ;;  %v1622_v31 = vcvt.s32.f32 %v1621_v37 }
  0x96   :  { %v608_v44 = vpack.c.bf16 %v533_v34, %v530_v30  ;;  %v2017_v49 = vor.u32 %v2016_v25, %v2015_v40  ;;  %v484_v50 = vmax.f32 %v1994_v47, 0.0  ;;  %v1599_v51 = vand.u32 2147483647, %v1598_v42 }
  0x97   :  { %v156_v52 = vmul.f32 %v2181_v13, %v62_v38  ;;  %v1623_v29 = vand.u32 2147483647, %v1622_v31  ;;  %v159_v54 = vmul.f32 %v2181_v13, %v65_v1  ;;  %v163_v56 = vmul.f32 %v2181_v13, %v69_v43  ;;  %v67_v38 = vld [vmem:[%s3548_s1 + $0x120] sm:$0xff]  ;;  %v70_v1 = vld [vmem:[%s3548_s1 + $0x138] sm:$0xff] }
  0x98   :  { %1299 = vmatmul.msk.bf16.gmra.mxu2 %vm819_vm6, %v608_v44  ;;  %v166_v59 = vmul.f32 %v2181_v13, %v72_v27  ;;  %v2018_v53 = vsel %vm2799_vm14, %v2017_v49, %v301_v11  ;;  %v577_v61 = vmin.f32 %v484_v50, 255.0  ;;  %v1601_v62 = vor.u32 %v1600_v33, %v1599_v51 }
  0x99   :  { %v250_v63 = vadd.f32 %v2185_v16, %v156_v52  ;;  %v487_v46 = vmax.f32 %v2018_v53, 0.0  ;;  %v1625_v45 = vor.u32 %v1624_v23, %v1623_v29  ;;  %v253_v2 = vadd.f32 %v2185_v16, %v159_v54 }
  0x9a   :  { %v2835_v55 = vadd.f32 %v2185_v16, %v163_v56  ;;  %v1602_v3 = vsel %vm2809_vm15, %v1601_v62, %v249_v58  ;;  %v260_v25 = vadd.f32 %v2185_v16, %v166_v59  ;;  %v210_v57 = vmul.f32 %v2181_v13, %v116_v19 }
  0x9b   :  { %v1603_v39 = vand.u32 2147483647, %v250_v63  ;;  %v1605_v5 = vcvt.f32.s32 %v250_v63  ;;  %v1608_v9 = vand.u32 2147483648, %v250_v63  ;;  %v580_v60 = vmin.f32 %v487_v46, 255.0 }
  0x9c   :  { %v1626_v6 = vsel %vm2821_vm0, %v1625_v45, %v252_v20  ;;  %v435_v11 = vmax.f32 %v1602_v3, 0.0  ;;  %v1627_v7 = vand.u32 2147483647, %v253_v2  ;;  %v1629_v18 = vcvt.f32.s32 %v253_v2 }
  0x9d   :  { %v438_v4 = vmax.f32 %v1626_v6, 0.0  ;;  %vm2841_vm1 = vcmp.lt.f32.partialorder %v1603_v39, 8388608.0  ;;  %v1606_v15 = vcvt.s32.f32 %v1605_v5  ;;  %v631_v58 = vpack.c.bf16 %v580_v60, %v577_v61 }
  0x9e   :  { %v528_v22 = vmin.f32 %v435_v11, 255.0  ;;  %vm2848_vm2 = vcmp.lt.f32.partialorder %v1627_v7, 8388608.0  ;;  %v1632_v0 = vand.u32 2147483648, %v253_v2  ;;  %v1630_v8 = vcvt.s32.f32 %v1629_v18 }
  0x9f   :  { %v531_v24 = vmin.f32 %v438_v4, 255.0  ;;  %v1607_v12 = vand.u32 2147483647, %v1606_v15  ;;  %1033 = vmatmul.bf16.gmra.mxu3 %v631_v58  ;;  %v1659_v20 = vand.u32 2147483647, %v2835_v55  ;;  %v1661_v26 = vcvt.f32.s32 %v2835_v55 }
  0xa0   :  { %v1664_v30 = vand.u32 2147483648, %v2835_v55  ;;  %v1631_v17 = vand.u32 2147483647, %v1630_v8  ;;  %v1683_v33 = vand.u32 2147483647, %v260_v25  ;;  %v1685_v36 = vcvt.f32.s32 %v260_v25 }
  0xa1   :  { %v606_v28 = vpack.c.bf16 %v531_v24, %v528_v22  ;;  %v1609_v32 = vor.u32 %v1608_v9, %v1607_v12  ;;  %vm2860_vm3 = vcmp.lt.f32.partialorder %v1659_v20, 8388608.0  ;;  %v1662_v35 = vcvt.s32.f32 %v1661_v26  ;;  %v68_v9 = vld [vmem:[%s3548_s1 + $0x128] sm:$0xff] }
  0xa2   :  { %v1688_v37 = vand.u32 2147483648, %v260_v25  ;;  %v1633_v41 = vor.u32 %v1632_v0, %v1631_v17  ;;  %vm2872_vm4 = vcmp.lt.f32.partialorder %v1683_v33, 8388608.0  ;;  %v213_v23 = vmul.f32 %v2181_v13, %v119_v21  ;;  %v75_v17 = vld [vmem:[%s3548_s1 + $0x160] sm:$0xff] }
  0xa3   :  { %905 = vmatmul.bf16.gmra.mxu0 %v606_v28  ;;  %v1610_v40 = vsel %vm2841_vm1, %v1609_v32, %v250_v63  ;;  %v1663_v27 = vand.u32 2147483647, %v1662_v35  ;;  %v1686_v44 = vcvt.s32.f32 %v1685_v36  ;;  %v304_v47 = vadd.f32 %v2185_v16, %v210_v57 }
  0xa4   :  { %v436_v43 = vmax.f32 %v1610_v40, 0.0  ;;  %v1634_v48 = vsel %vm2848_vm2, %v1633_v41, %v253_v2  ;;  %v307_v31 = vadd.f32 %v2185_v16, %v213_v23  ;;  %v161_v49 = vmul.f32 %v2181_v13, %v67_v38 }
  0xa5   :  { %v164_v50 = vmul.f32 %v2181_v13, %v70_v1  ;;  %v439_v51 = vmax.f32 %v1634_v48, 0.0  ;;  %v1665_v29 = vor.u32 %v1664_v30, %v1663_v27  ;;  %v1687_v54 = vand.u32 2147483647, %v1686_v44 }
  0xa6   :  { %v529_v52 = vmin.f32 %v436_v43, 255.0  ;;  %v2035_v56 = vand.u32 2147483647, %v304_v47  ;;  %v2037_v59 = vcvt.f32.s32 %v304_v47  ;;  %v2040_v53 = vand.u32 2147483648, %v304_v47 }
  0xa7   :  { %v2059_v61 = vand.u32 2147483647, %v307_v31  ;;  %v532_v62 = vmin.f32 %v439_v51, 255.0  ;;  %v1666_v63 = vsel %vm2860_vm3, %v1665_v29, %v2835_v55  ;;  %v1689_v46 = vor.u32 %v1688_v37, %v1687_v54  ;;  %v71_v55 = vld [vmem:[%s3548_s1 + $0x140] sm:$0xff] }
  0xa8   :  { %v2061_v45 = vcvt.f32.s32 %v307_v31  ;;  %v443_v2 = vmax.f32 %v1666_v63, 0.0  ;;  %vm2886_vm5 = vcmp.lt.f32.partialorder %v2035_v56, 8388608.0  ;;  %v2038_v39 = vcvt.s32.f32 %v2037_v59  ;;  %v81_v63 = vld [vmem:[%s3548_s1 + $0x190] sm:$0xff] }
  0xa9   :  { %vm2890_vm7 = vcmp.lt.f32.partialorder %v2059_v61, 8388608.0  ;;  %v607_v60 = vpack.c.bf16 %v532_v62, %v529_v52  ;;  %v1690_v6 = vsel %vm2872_vm4, %v1689_v46, %v260_v25  ;;  %v2064_v7 = vand.u32 2147483648, %v307_v31  ;;  %v78_v52 = vld [vmem:[%s3548_s1 + $0x178] sm:$0xff] }
  0xaa   :  { %v2062_v11 = vcvt.s32.f32 %v2061_v45  ;;  %v446_v4 = vmax.f32 %v1690_v6, 0.0  ;;  %v536_v14 = vmin.f32 %v443_v2, 255.0  ;;  %v2039_v15 = vand.u32 2147483647, %v2038_v39  ;;  %v73_v45 = vld [vmem:[%s3548_s1 + $0x150] sm:$0xff] }
  0xab   :  { %v255_v18 = vadd.f32 %v2185_v16, %v161_v49  ;;  %993 = vmatmul.bf16.gmra.mxu1 %v607_v60  ;;  %v258_v58 = vadd.f32 %v2185_v16, %v164_v50  ;;  %v162_v22 = vmul.f32 %v2181_v13, %v68_v9  ;;  %v165_v10 = vmul.f32 %v2181_v13, %v71_v55 }
  0xac   :  { %v2063_v19 = vand.u32 2147483647, %v2062_v11  ;;  %v539_v0 = vmin.f32 %v446_v4, 255.0  ;;  %v2041_v24 = vor.u32 %v2040_v53, %v2039_v15  ;;  %v169_v43 = vmul.f32 %v2181_v13, %v75_v17  ;;  %v122_v53 = vld [vmem:[%s3548_s1 + $0x2d8] sm:$0x3] }
  0xad   :  { %v1643_v12 = vand.u32 2147483647, %v255_v18  ;;  %v1645_v8 = vcvt.f32.s32 %v255_v18  ;;  %v1648_v20 = vand.u32 2147483648, %v255_v18  ;;  %v1667_v26 = vand.u32 2147483647, %v258_v58 }
  0xae   :  { %v2065_v25 = vor.u32 %v2064_v7, %v2063_v19  ;;  %v1669_v30 = vcvt.f32.s32 %v258_v58  ;;  %v611_v21 = vpack.c.bf16 %v539_v0, %v536_v14  ;;  %v2042_v57 = vsel %vm2886_vm5, %v2041_v24, %v304_v47 }
  0xaf   :  { %vm2908_vm8 = vcmp.lt.f32.partialorder %v1643_v12, 8388608.0  ;;  %v1646_v32 = vcvt.s32.f32 %v1645_v8  ;;  %v490_v34 = vmax.f32 %v2042_v57, 0.0  ;;  %vm2917_vm9 = vcmp.lt.f32.partialorder %v1667_v26, 8388608.0  ;;  %v76_v12 = vld [vmem:[%s3548_s1 + $0x168] sm:$0xff] }
  0xb0   :  { %v2066_v33 = vsel %vm2890_vm7, %v2065_v25, %v307_v31  ;;  %v1670_v36 = vcvt.s32.f32 %v1669_v30  ;;  %1300 = vmatmul.msk.bf16.gmra.mxu2 %vm819_vm6, %v611_v21  ;;  %v1672_v1 = vand.u32 2147483648, %v258_v58  ;;  %v256_v40 = vadd.f32 %v2185_v16, %v162_v22  ;;  %v74_v30 = vld [vmem:[%s3548_s1 + $0x158] sm:$0xff] }
  0xb1   :  { %v493_v37 = vmax.f32 %v2066_v33, 0.0  ;;  %v1647_v38 = vand.u32 2147483647, %v1646_v32  ;;  %v583_v41 = vmin.f32 %v490_v34, 255.0  ;;  %v259_v23 = vadd.f32 %v2185_v16, %v165_v10 }
  0xb2   :  { %v1671_v42 = vand.u32 2147483647, %v1670_v36  ;;  %v1651_v47 = vand.u32 2147483647, %v256_v40  ;;  %v1653_v48 = vcvt.f32.s32 %v256_v40  ;;  %v1656_v49 = vand.u32 2147483648, %v256_v40 }
  0xb3   :  { %v586_v27 = vmin.f32 %v493_v37, 255.0  ;;  %v1649_v44 = vor.u32 %v1648_v20, %v1647_v38  ;;  %v1675_v50 = vand.u32 2147483647, %v259_v23  ;;  %v1677_v51 = vcvt.f32.s32 %v259_v23 }
  0xb4   :  { %v1673_v31 = vor.u32 %v1672_v1, %v1671_v42  ;;  %vm2930_vm10 = vcmp.lt.f32.partialorder %v1651_v47, 8388608.0  ;;  %v1654_v59 = vcvt.s32.f32 %v1653_v48  ;;  %v1680_v39 = vand.u32 2147483648, %v259_v23 }
  0xb5   :  { %v634_v29 = vpack.c.bf16 %v586_v27, %v583_v41  ;;  %v1650_v54 = vsel %vm2908_vm8, %v1649_v44, %v255_v18  ;;  %vm2939_vm11 = vcmp.lt.f32.partialorder %v1675_v50, 8388608.0  ;;  %v1678_v46 = vcvt.s32.f32 %v1677_v51  ;;  %v77_v51 = vld [vmem:[%s3548_s1 + $0x170] sm:$0xff] }
  0xb6   :  { %v1674_v61 = vsel %vm2917_vm9, %v1673_v31, %v258_v58  ;;  %v441_v62 = vmax.f32 %v1650_v54, 0.0  ;;  %v1655_v3 = vand.u32 2147483647, %v1654_v59  ;;  %v172_v5 = vmul.f32 %v2181_v13, %v78_v52  ;;  %v111_v54 = vld [vmem:[%s3548_s1 + $0x280] sm:$0xff] }
  0xb7   :  { %1038 = vmatmul.bf16.gmra.mxu3 %v634_v29  ;;  %v444_v2 = vmax.f32 %v1674_v61, 0.0  ;;  %v1679_v55 = vand.u32 2147483647, %v1678_v46  ;;  %v263_v60 = vadd.f32 %v2185_v16, %v169_v43  ;;  %v216_v6 = vmul.f32 %v2181_v13, %v122_v53 }
  0xb8   :  { %v534_v9 = vmin.f32 %v441_v62, 255.0  ;;  %v1657_v7 = vor.u32 %v1656_v49, %v1655_v3  ;;  %v266_v4 = vadd.f32 %v2185_v16, %v172_v5  ;;  %v167_v14 = vmul.f32 %v2181_v13, %v73_v45 }
  0xb9   :  { %v537_v11 = vmin.f32 %v444_v2, 255.0  ;;  %v1681_v15 = vor.u32 %v1680_v39, %v1679_v55  ;;  %v1707_v18 = vand.u32 2147483647, %v263_v60  ;;  %v1709_v19 = vcvt.f32.s32 %v263_v60  ;;  %v84_v39 = vld [vmem:[%s3548_s1 + $0x1a8] sm:$0xff] }
  0xba   :  { %v1712_v58 = vand.u32 2147483648, %v263_v60  ;;  %v1658_v10 = vsel %vm2930_vm10, %v1657_v7, %v256_v40  ;;  %v1731_v0 = vand.u32 2147483647, %v266_v4  ;;  %v1733_v24 = vcvt.f32.s32 %v266_v4 }
  0xbb   :  { %v609_v22 = vpack.c.bf16 %v537_v11, %v534_v9  ;;  %v1682_v8 = vsel %vm2939_vm11, %v1681_v15, %v259_v23  ;;  %v442_v25 = vmax.f32 %v1658_v10, 0.0  ;;  %vm2958_vm12 = vcmp.lt.f32.partialorder %v1707_v18, 8388608.0 }
  0xbc   :  { %v1710_v26 = vcvt.s32.f32 %v1709_v19  ;;  %v445_v21 = vmax.f32 %v1682_v8, 0.0  ;;  %vm2965_vm13 = vcmp.lt.f32.partialorder %v1731_v0, 8388608.0  ;;  %v1734_v28 = vcvt.s32.f32 %v1733_v24 }
  0xbd   :  { %910 = vmatmul.bf16.gmra.mxu0 %v609_v22  ;;  %v1736_v32 = vand.u32 2147483648, %v266_v4  ;;  %v535_v17 = vmin.f32 %v442_v25, 255.0  ;;  %v310_v34 = vadd.f32 %v2185_v16, %v216_v6  ;;  %v170_v35 = vmul.f32 %v2181_v13, %v76_v12 }
  0xbe   :  { %v1711_v33 = vand.u32 2147483647, %v1710_v26  ;;  %v538_v36 = vmin.f32 %v445_v21, 255.0  ;;  %v1735_v37 = vand.u32 2147483647, %v1734_v28  ;;  %v261_v38 = vadd.f32 %v2185_v16, %v167_v14  ;;  %v3064_v28 = vpop.f32.mrf.mxu3 }
  0xbf   :  { %v168_v1 = vmul.f32 %v2181_v13, %v74_v30  ;;  %v2083_v41 = vand.u32 2147483647, %v310_v34  ;;  %v2085_v42 = vcvt.f32.s32 %v310_v34  ;;  %v2088_v23 = vand.u32 2147483648, %v310_v34 }
  0xc0   :  { %v1713_v40 = vor.u32 %v1712_v58, %v1711_v33  ;;  %v610_v43 = vpack.c.bf16 %v538_v36, %v535_v17  ;;  %v1737_v27 = vor.u32 %v1736_v32, %v1735_v37  ;;  %v264_v44 = vadd.f32 %v2185_v16, %v170_v35  ;;  %v881_v33 = vpop.f32.mrf.mxu0 }
  0xc1   :  { %v1691_v47 = vand.u32 2147483647, %v261_v38  ;;  %vm2976_vm14 = vcmp.lt.f32.partialorder %v2083_v41, 8388608.0  ;;  %v2086_v49 = vcvt.s32.f32 %v2085_v42  ;;  %v1693_v50 = vcvt.f32.s32 %v261_v38 }
  0xc2   :  { %v1714_v48 = vsel %vm2958_vm12, %v1713_v40, %v263_v60  ;;  %998 = vmatmul.bf16.gmra.mxu1 %v610_v43  ;;  %v1738_v52 = vsel %vm2965_vm13, %v1737_v27, %v266_v4  ;;  %v1696_v56 = vand.u32 2147483648, %v261_v38  ;;  %v1715_v62 = vand.u32 2147483647, %v264_v44 }
  0xc3   :  { %v449_v29 = vmax.f32 %v1714_v48, 0.0  ;;  %vm2985_vm15 = vcmp.lt.f32.partialorder %v1691_v47, 8388608.0  ;;  %v452_v59 = vmax.f32 %v1738_v52, 0.0  ;;  %v2087_v53 = vand.u32 2147483647, %v2086_v49 }
  0xc4   :  { %v1694_v61 = vcvt.s32.f32 %v1693_v50  ;;  %v1717_v45 = vcvt.f32.s32 %v264_v44  ;;  %v1720_v2 = vand.u32 2147483648, %v264_v44  ;;  %v171_v3 = vmul.f32 %v2181_v13, %v77_v51 }
  0xc5   :  { %v542_v46 = vmin.f32 %v449_v29, 255.0  ;;  %v545_v5 = vmin.f32 %v452_v59, 255.0  ;;  %v2089_v9 = vor.u32 %v2088_v23, %v2087_v53  ;;  %vm2996_vm0 = vcmp.lt.f32.partialorder %v1715_v62, 8388608.0  ;;  %v1057_v59 = vpop.f32.mrf.mxu2 }
  0xc6   :  { %v1695_v55 = vand.u32 2147483647, %v1694_v61  ;;  %v1718_v6 = vcvt.s32.f32 %v1717_v45  ;;  %v262_v11 = vadd.f32 %v2185_v16, %v168_v1  ;;  %v265_v7 = vadd.f32 %v2185_v16, %v171_v3 }
  0xc7   :  { %v175_v4 = vmul.f32 %v2181_v13, %v81_v63  ;;  %v614_v14 = vpack.c.bf16 %v545_v5, %v542_v46  ;;  %v2090_v15 = vsel %vm2976_vm14, %v2089_v9, %v310_v34  ;;  %v178_v19 = vmul.f32 %v2181_v13, %v84_v39  ;;  %v969_v34 = vpop.f32.mrf.mxu1  ;;  %v79_v39 = vld [vmem:[%s3548_s1 + $0x180] sm:$0xff] }
  0xc8   :  { %v1697_v18 = vor.u32 %v1696_v56, %v1695_v55  ;;  %v496_v58 = vmax.f32 %v2090_v15, 0.0  ;;  %v1719_v22 = vand.u32 2147483647, %v1718_v6  ;;  %v1699_v10 = vand.u32 2147483647, %v262_v11  ;;  %v114_v56 = vld [vmem:[%s3548_s1 + $0x298] sm:$0xff] }
  0xc9   :  { %v1701_v0 = vcvt.f32.s32 %v262_v11  ;;  %1301 = vmatmul.msk.bf16.gmra.mxu2 %vm819_vm6, %v614_v14  ;;  %v1704_v12 = vand.u32 2147483648, %v262_v11  ;;  %v1723_v8 = vand.u32 2147483647, %v265_v7  ;;  %v1725_v25 = vcvt.f32.s32 %v265_v7  ;;  %v82_v6 = vld [vmem:[%s3548_s1 + $0x198] sm:$0xff] }
  0xca   :  { %v1698_v24 = vsel %vm2985_vm15, %v1697_v18, %v261_v38  ;;  %v589_v20 = vmin.f32 %v496_v58, 255.0  ;;  %v1721_v26 = vor.u32 %v1720_v2, %v1719_v22  ;;  %vm3009_vm1 = vcmp.lt.f32.partialorder %v1699_v10, 8388608.0 }
  0xcb   :  { %v447_v30 = vmax.f32 %v1698_v24, 0.0  ;;  %v1702_v57 = vcvt.s32.f32 %v1701_v0  ;;  %vm3013_vm2 = vcmp.lt.f32.partialorder %v1723_v8, 8388608.0  ;;  %v1726_v32 = vcvt.s32.f32 %v1725_v25 }
  0xcc   :  { %v1728_v17 = vand.u32 2147483648, %v265_v7  ;;  %v637_v35 = vpack.c.bf16 %v589_v20, %v589_v20  ;;  %v1722_v36 = vsel %vm2996_vm0, %v1721_v26, %v264_v44  ;;  %v269_v38 = vadd.f32 %v2185_v16, %v175_v4 }
  0xcd   :  { %v540_v37 = vmin.f32 %v447_v30, 255.0  ;;  %v450_v1 = vmax.f32 %v1722_v36, 0.0  ;;  %v1703_v40 = vand.u32 2147483647, %v1702_v57  ;;  %v1727_v41 = vand.u32 2147483647, %v1726_v32 }
  0xce   :  { %v272_v42 = vadd.f32 %v2185_v16, %v178_v19  ;;  %1043 = vmatmul.bf16.gmra.mxu3 %v637_v35  ;;  %v1755_v23 = vand.u32 2147483647, %v269_v38  ;;  %v1757_v43 = vcvt.f32.s32 %v269_v38  ;;  %v1760_v27 = vand.u32 2147483648, %v269_v38  ;;  %v80_v32 = vld [vmem:[%s3548_s1 + $0x188] sm:$0xff] }
  0xcf   :  { %v970_v47 = vadd.f32 %v969_v34, %v881_v33  ;;  %v543_v48 = vmin.f32 %v450_v1, 255.0  ;;  %v1705_v31 = vor.u32 %v1704_v12, %v1703_v40  ;;  %v1729_v49 = vor.u32 %v1728_v17, %v1727_v41  ;;  %v83_v17 = vld [vmem:[%s3548_s1 + $0x1a0] sm:$0xff]  ;;  %v883_v41 = vpop.f32.mrf.mxu0 }
  0xd0   :  { %v1779_v50 = vand.u32 2147483647, %v272_v42  ;;  %vm3023_vm3 = vcmp.lt.f32.partialorder %v1755_v23, 8388608.0  ;;  %v1758_v44 = vcvt.s32.f32 %v1757_v43  ;;  %v1781_v52 = vcvt.f32.s32 %v272_v42 }
  0xd1   :  { %v1784_v29 = vand.u32 2147483648, %v272_v42  ;;  %v612_v53 = vpack.c.bf16 %v543_v48, %v540_v37  ;;  %v1706_v61 = vsel %vm3009_vm1, %v1705_v31, %v262_v11  ;;  %v1730_v62 = vsel %vm3013_vm2, %v1729_v49, %v265_v7  ;;  %v117_v37 = vld [vmem:[%s3548_s1 + $0x2b0] sm:$0xff] }
  0xd2   :  { %vm3037_vm4 = vcmp.lt.f32.partialorder %v1779_v50, 8388608.0  ;;  %v448_v46 = vmax.f32 %v1706_v61, 0.0  ;;  %v451_v45 = vmax.f32 %v1730_v62, 0.0  ;;  %v1759_v2 = vand.u32 2147483647, %v1758_v44  ;;  %v1059_v61 = vpop.f32.mrf.mxu2 }
  0xd3   :  { %v1782_v3 = vcvt.s32.f32 %v1781_v52  ;;  %915 = vmatmul.bf16.gmra.mxu0 %v612_v53  ;;  %v205_v5 = vmul.f32 %v2181_v13, %v111_v54  ;;  %v208_v9 = vmul.f32 %v2181_v13, %v114_v56  ;;  %v1058_v55 = vadd.f32 %v1057_v59, %v970_v47 }
  0xd4   :  { %v3047_v60 = vstv %s3017_s20  ;;  %v541_v11 = vmin.f32 %v448_v46, 255.0  ;;  %v544_v7 = vmin.f32 %v451_v45, 255.0  ;;  %v1761_v4 = vor.u32 %v1760_v27, %v1759_v2 }
  0xd5   :  { %v1783_v14 = vand.u32 2147483647, %v1782_v3  ;;  %v299_v15 = vadd.f32 %v2185_v16, %v205_v5  ;;  %v302_v18 = vadd.f32 %v2185_v16, %v208_v9  ;;  %v1137_v19 = vmul.f32 %v3047_v60, %v1058_v55 }
  0xd6   :  { %v173_v58 = vmul.f32 %v2181_v13, %v79_v39  ;;  %v613_v22 = vpack.c.bf16 %v544_v7, %v541_v11  ;;  %v1762_v10 = vsel %vm3023_vm3, %v1761_v4, %v269_v38  ;;  %v176_v24 = vmul.f32 %v2181_v13, %v82_v6 }
  0xd7   :  { %v1785_v0 = vor.u32 %v1784_v29, %v1783_v14  ;;  %v455_v12 = vmax.f32 %v1762_v10, 0.0  ;;  %v1995_v8 = vand.u32 2147483647, %v299_v15  ;;  %v1997_v25 = vcvt.f32.s32 %v299_v15  ;;  %1168 = vst [vmem:[%s3550_s3] sm:$0xff] %v1137_v19  ;;  %v3102_v19 = vpop.f32.mrf.mxu3 }
  0xd8   :  { %v2000_v20 = vand.u32 2147483648, %v299_v15  ;;  %1003 = vmatmul.bf16.gmra.mxu1 %v613_v22  ;;  %v2019_v30 = vand.u32 2147483647, %v302_v18  ;;  %v2021_v21 = vcvt.f32.s32 %v302_v18  ;;  %v2024_v57 = vand.u32 2147483648, %v302_v18 }
  0xd9   :  { %v1786_v26 = vsel %vm3037_vm4, %v1785_v0, %v272_v42  ;;  %v548_v34 = vmin.f32 %v455_v12, 255.0  ;;  %vm3072_vm5 = vcmp.lt.f32.partialorder %v1995_v8, 8388608.0  ;;  %v1998_v36 = vcvt.s32.f32 %v1997_v25  ;;  %v971_v42 = vpop.f32.mrf.mxu1  ;;  %v87_v0 = vld [vmem:[%s3548_s1 + $0x1c0] sm:$0xff] }
  0xda   :  { %v458_v33 = vmax.f32 %v1786_v26, 0.0  ;;  %vm3076_vm7 = vcmp.lt.f32.partialorder %v2019_v30, 8388608.0  ;;  %v2022_v38 = vcvt.s32.f32 %v2021_v21  ;;  %v267_v1 = vadd.f32 %v2185_v16, %v173_v58  ;;  %v886_v26 = vpop.f32.mrf.mxu0 }
  0xdb   :  { %v270_v40 = vadd.f32 %v2185_v16, %v176_v24  ;;  %v1999_v43 = vand.u32 2147483647, %v1998_v36  ;;  %v174_v27 = vmul.f32 %v2181_v13, %v80_v32  ;;  %v177_v47 = vmul.f32 %v2181_v13, %v83_v17 }
  0xdc   :  { %v551_v23 = vmin.f32 %v458_v33, 255.0  ;;  %v2023_v48 = vand.u32 2147483647, %v2022_v38  ;;  %v1739_v31 = vand.u32 2147483647, %v267_v1  ;;  %v1741_v49 = vcvt.f32.s32 %v267_v1  ;;  %v120_v38 = vld [vmem:[%s3548_s1 + $0x2c8] sm:$0xff] }
  0xdd   :  { %v1744_v50 = vand.u32 2147483648, %v267_v1  ;;  %v2001_v44 = vor.u32 %v2000_v20, %v1999_v43  ;;  %v1763_v52 = vand.u32 2147483647, %v270_v40  ;;  %v1765_v29 = vcvt.f32.s32 %v270_v40  ;;  %v90_v20 = vld [vmem:[%s3548_s1 + $0x1d8] sm:$0xff] }
  0xde   :  { %v617_v51 = vpack.c.bf16 %v551_v23, %v548_v34  ;;  %v2025_v54 = vor.u32 %v2024_v57, %v2023_v48  ;;  %vm3084_vm8 = vcmp.lt.f32.partialorder %v1739_v31, 8388608.0  ;;  %v1742_v59 = vcvt.s32.f32 %v1741_v49  ;;  %v1062_v48 = vpop.f32.mrf.mxu2 }
  0xdf   :  { %v1768_v53 = vand.u32 2147483648, %v270_v40  ;;  %v2002_v62 = vsel %vm3072_vm5, %v2001_v44, %v299_v15  ;;  %vm3091_vm9 = vcmp.lt.f32.partialorder %v1763_v52, 8388608.0  ;;  %v1766_v46 = vcvt.s32.f32 %v1765_v29 }
  0xe0   :  { %1302 = vmatmul.msk.bf16.gmra.mxu2 %vm819_vm6, %v617_v51  ;;  %v268_v45 = vadd.f32 %v2185_v16, %v174_v27  ;;  %v2026_v2 = vsel %vm3076_vm7, %v2025_v54, %v302_v18  ;;  %v485_v3 = vmax.f32 %v2002_v62, 0.0  ;;  %v1743_v39 = vand.u32 2147483647, %v1742_v59 }
  0xe1   :  { %v3099_v5 = vadd.f32 %v2185_v16, %v177_v47  ;;  %v488_v9 = vmax.f32 %v2026_v2, 0.0  ;;  %v1767_v55 = vand.u32 2147483647, %v1766_v46  ;;  %v974_v30 = vpop.f32.mrf.mxu1  ;;  %v972_v35 = vadd.f32 %v971_v42, %v883_v41  ;;  %v85_v2 = vld [vmem:[%s3548_s1 + $0x1b0] sm:$0xff] }
  0xe2   :  { %v1747_v6 = vand.u32 2147483647, %v268_v45  ;;  %v1749_v11 = vcvt.f32.s32 %v268_v45  ;;  %v578_v7 = vmin.f32 %v485_v3, 255.0  ;;  %v1745_v4 = vor.u32 %v1744_v50, %v1743_v39  ;;  %v88_v3 = vld [vmem:[%s3548_s1 + $0x1c8] sm:$0xff]  ;;  %v3152_v39 = vpop.f32.mrf.mxu3 }
  0xe3   :  { %v1752_v14 = vand.u32 2147483648, %v268_v45  ;;  %v1771_v15 = vand.u32 2147483647, %v3099_v5  ;;  %v581_v58 = vmin.f32 %v488_v9, 255.0  ;;  %v1769_v22 = vor.u32 %v1768_v53, %v1767_v55 }
  0xe4   :  { %vm3104_vm10 = vcmp.lt.f32.partialorder %v1747_v6, 8388608.0  ;;  %v1750_v10 = vcvt.s32.f32 %v1749_v11  ;;  %v1746_v24 = vsel %vm3084_vm8, %v1745_v4, %v267_v1  ;;  %v1773_v8 = vcvt.f32.s32 %v3099_v5 }
  0xe5   :  { %vm3113_vm11 = vcmp.lt.f32.partialorder %v1771_v15, 8388608.0  ;;  %v1776_v25 = vand.u32 2147483648, %v3099_v5  ;;  %v632_v21 = vpack.c.bf16 %v581_v58, %v578_v7  ;;  %v1770_v57 = vsel %vm3091_vm9, %v1769_v22, %v270_v40 }
  0xe6   :  { %v453_v32 = vmax.f32 %v1746_v24, 0.0  ;;  %v1751_v17 = vand.u32 2147483647, %v1750_v10  ;;  %v456_v33 = vmax.f32 %v1770_v57, 0.0  ;;  %v1774_v34 = vcvt.s32.f32 %v1773_v8 }
  0xe7   :  { %v181_v36 = vmul.f32 %v2181_v13, %v87_v0  ;;  %1307 = vmatmul.msk.bf16.vlgmr.msra.gmra.mxu3 %vm819_vm6, %v632_v21  ;;  %v184_v40 = vmul.f32 %v2181_v13, %v90_v20  ;;  %v975_v43 = vadd.f32 %v974_v30, %v886_v26  ;;  %v1060_v41 = vadd.f32 %v1059_v61, %v972_v35  ;;  %v888_v30 = vpop.f32.mrf.mxu0  ;;  %v1064_v35 = vpop.f32.mrf.mxu2 }
  0xe8   :  { %v546_v1 = vmin.f32 %v453_v32, 255.0  ;;  %v1753_v23 = vor.u32 %v1752_v14, %v1751_v17  ;;  %v549_v27 = vmin.f32 %v456_v33, 255.0  ;;  %v1775_v47 = vand.u32 2147483647, %v1774_v34  ;;  %v86_v34 = vld [vmem:[%s3548_s1 + $0x1b8] sm:$0xff] }
  0xe9   :  { %v275_v42 = vadd.f32 %v2185_v16, %v181_v36  ;;  %v278_v49 = vadd.f32 %v2185_v16, %v184_v40  ;;  %v211_v50 = vmul.f32 %v2181_v13, %v117_v37  ;;  %v214_v51 = vmul.f32 %v2181_v13, %v120_v38  ;;  %v976_v21 = vpop.f32.mrf.mxu1  ;;  %v96_v37 = vld [vmem:[%s3548_s1 + $0x208] sm:$0xff] }
  0xea   :  { %v1754_v31 = vsel %vm3104_vm10, %v1753_v23, %v268_v45  ;;  %v615_v44 = vpack.c.bf16 %v549_v27, %v546_v1  ;;  %v1777_v52 = vor.u32 %v1776_v25, %v1775_v47  ;;  %v1138_v54 = vmul.f32 %v3047_v60, %v1060_v41 }
  0xeb   :  { %v454_v29 = vmax.f32 %v1754_v31, 0.0  ;;  %v1803_v56 = vand.u32 2147483647, %v275_v42  ;;  %v1805_v59 = vcvt.f32.s32 %v275_v42  ;;  %v1808_v53 = vand.u32 2147483648, %v275_v42 }
  0xec   :  { %v1827_v61 = vand.u32 2147483647, %v278_v49  ;;  %920 = vmatmul.bf16.gmra.mxu0 %v615_v44  ;;  %v1778_v62 = vsel %vm3113_vm11, %v1777_v52, %v3099_v5  ;;  %1169 = vst [vmem:[%s3550_s3 + $0x8] sm:$0xff] %v1138_v54  ;;  %v1829_v46 = vcvt.f32.s32 %v278_v49  ;;  %v1832_v45 = vand.u32 2147483648, %v278_v49  ;;  %v3188_v52 = vpop.f32.mrf.mxu3 }
  0xed   :  { %v547_v63 = vmin.f32 %v454_v29, 255.0  ;;  %v457_v9 = vmax.f32 %v1778_v62, 0.0  ;;  %vm3154_vm12 = vcmp.lt.f32.partialorder %v1803_v56, 8388608.0  ;;  %v1806_v55 = vcvt.s32.f32 %v1805_v59 }
  0xee   :  { %vm3158_vm13 = vcmp.lt.f32.partialorder %v1827_v61, 8388608.0  ;;  %v1830_v11 = vcvt.s32.f32 %v1829_v46  ;;  %v305_v7 = vadd.f32 %v2185_v16, %v211_v50  ;;  %v308_v4 = vadd.f32 %v2185_v16, %v214_v51 }
  0xef   :  { %v1063_v14 = vadd.f32 %v1062_v48, %v975_v43  ;;  %v550_v15 = vmin.f32 %v457_v9, 255.0  ;;  %v1807_v58 = vand.u32 2147483647, %v1806_v55  ;;  %v179_v22 = vmul.f32 %v2181_v13, %v85_v2  ;;  %v93_v9 = vld [vmem:[%s3548_s1 + $0x1f0] sm:$0xff] }
  0xf0   :  { %v182_v18 = vmul.f32 %v2181_v13, %v88_v3  ;;  %v1831_v10 = vand.u32 2147483647, %v1830_v11  ;;  %v2043_v0 = vand.u32 2147483647, %v305_v7  ;;  %v2045_v24 = vcvt.f32.s32 %v305_v7 }
  0xf1   :  { %v2048_v12 = vand.u32 2147483648, %v305_v7  ;;  %v616_v8 = vpack.c.bf16 %v550_v15, %v547_v63  ;;  %v1809_v25 = vor.u32 %v1808_v53, %v1807_v58  ;;  %v2067_v20 = vand.u32 2147483647, %v308_v4  ;;  %v89_v63 = vld [vmem:[%s3548_s1 + $0x1d0] sm:$0xff]  ;;  %v891_v58 = vpop.f32.mrf.mxu0 }
  0xf2   :  { %v2069_v26 = vcvt.f32.s32 %v308_v4  ;;  %v1833_v57 = vor.u32 %v1832_v45, %v1831_v10  ;;  %vm3166_vm14 = vcmp.lt.f32.partialorder %v2043_v0, 8388608.0  ;;  %v2046_v17 = vcvt.s32.f32 %v2045_v24 }
  0xf3   :  { %v2072_v33 = vand.u32 2147483648, %v308_v4  ;;  %1008 = vmatmul.bf16.gmra.mxu1 %v616_v8  ;;  %v1810_v36 = vsel %vm3154_vm12, %v1809_v25, %v275_v42  ;;  %vm3175_vm15 = vcmp.lt.f32.partialorder %v2067_v20, 8388608.0  ;;  %v1139_v1 = vmul.f32 %v3047_v60, %v1063_v14 }
  0xf4   :  { %v2070_v38 = vcvt.s32.f32 %v2069_v26  ;;  %v1834_v23 = vsel %vm3158_vm13, %v1833_v57, %v278_v49  ;;  %v461_v40 = vmax.f32 %v1810_v36, 0.0  ;;  %v2047_v43 = vand.u32 2147483647, %v2046_v17 }
  0xf5   :  { %v273_v27 = vadd.f32 %v2185_v16, %v179_v22  ;;  %v464_v47 = vmax.f32 %v1834_v23, 0.0  ;;  %1170 = vst [vmem:[%s3550_s3 + $0x10] sm:$0xff] %v1139_v1  ;;  %v276_v42 = vadd.f32 %v2185_v16, %v182_v18  ;;  %v180_v48 = vmul.f32 %v2181_v13, %v86_v34  ;;  %v979_v22 = vpop.f32.mrf.mxu1 }
  0xf6   :  { %v2071_v41 = vand.u32 2147483647, %v2070_v38  ;;  %v554_v31 = vmin.f32 %v461_v40, 255.0  ;;  %v2049_v50 = vor.u32 %v2048_v12, %v2047_v43  ;;  %v183_v14 = vmul.f32 %v2181_v13, %v89_v63  ;;  %v3212_v12 = vpop.f32.mrf.mxu2  ;;  %v123_v40 = vld [vmem:[%s3548_s1 + $0x2e0] sm:$0x3] }
  0xf7   :  { %v1787_v51 = vand.u32 2147483647, %v273_v27  ;;  %v1789_v44 = vcvt.f32.s32 %v273_v27  ;;  %v557_v49 = vmin.f32 %v464_v47, 255.0  ;;  %v1792_v54 = vand.u32 2147483648, %v273_v27  ;;  %v91_v43 = vld [vmem:[%s3548_s1 + $0x1e0] sm:$0xff] }
  0xf8   :  { %v2073_v29 = vor.u32 %v2072_v33, %v2071_v41  ;;  %v1811_v56 = vand.u32 2147483647, %v276_v42  ;;  %v2050_v59 = vsel %vm3166_vm14, %v2049_v50, %v305_v7  ;;  %v1813_v62 = vcvt.f32.s32 %v276_v42 }
  0xf9   :  { %vm3192_vm0 = vcmp.lt.f32.partialorder %v1787_v51, 8388608.0  ;;  %v1790_v61 = vcvt.s32.f32 %v1789_v44  ;;  %v620_v46 = vpack.c.bf16 %v557_v49, %v554_v31  ;;  %v491_v2 = vmax.f32 %v2050_v59, 0.0  ;;  %v3251_v3 = vpop.f32.mrf.mxu0 }
  0xfa   :  { %v2074_v45 = vsel %vm3175_vm15, %v2073_v29, %v308_v4  ;;  %vm3201_vm1 = vcmp.lt.f32.partialorder %v1811_v56, 8388608.0  ;;  %v1814_v6 = vcvt.s32.f32 %v1813_v62  ;;  %v1816_v11 = vand.u32 2147483648, %v276_v42 }
  0xfb   :  { %v494_v5 = vmax.f32 %v2074_v45, 0.0  ;;  %v1791_v55 = vand.u32 2147483647, %v1790_v61  ;;  %1303 = vmatmul.msk.bf16.gmra.mxu2 %vm819_vm6, %v620_v46  ;;  %v584_v7 = vmin.f32 %v491_v2, 255.0  ;;  %v274_v4 = vadd.f32 %v2185_v16, %v180_v48 }
  0xfc   :  { %v977_v15 = vadd.f32 %v976_v21, %v888_v30  ;;  %v1815_v0 = vand.u32 2147483647, %v1814_v6  ;;  %v187_v24 = vmul.f32 %v2181_v13, %v93_v9  ;;  %v277_v8 = vadd.f32 %v2185_v16, %v183_v14 }
  0xfd   :  { %v587_v18 = vmin.f32 %v494_v5, 255.0  ;;  %v1793_v10 = vor.u32 %v1792_v54, %v1791_v55  ;;  %v1795_v25 = vand.u32 2147483647, %v274_v4  ;;  %v1797_v20 = vcvt.f32.s32 %v274_v4  ;;  %v3253_v9 = vpop.f32.mrf.mxu1 }
  0xfe   :  { %v1800_v26 = vand.u32 2147483648, %v274_v4  ;;  %v1817_v17 = vor.u32 %v1816_v11, %v1815_v0  ;;  %v1065_v30 = vadd.f32 %v1064_v35, %v977_v15  ;;  %v1819_v36 = vand.u32 2147483647, %v277_v8 }
  0xff   :  { %v635_v57 = vpack.c.bf16 %v587_v18, %v584_v7  ;;  %v1794_v32 = vsel %vm3192_vm0, %v1793_v10, %v273_v27  ;;  %vm3217_vm2 = vcmp.lt.f32.partialorder %v1795_v25, 8388608.0  ;;  %v1798_v34 = vcvt.s32.f32 %v1797_v20  ;;  %v3234_v27 = vpop.f32.mrf.mxu3  ;;  %v3259_v7 = vpop.f32.mrf.mxu2 }
 0x100   :  { %v459_v21 = vmax.f32 %v1794_v32, 0.0  ;;  %v1818_v38 = vsel %vm3201_vm1, %v1817_v17, %v276_v42  ;;  %v1821_v1 = vcvt.f32.s32 %v277_v8  ;;  %v1824_v23 = vand.u32 2147483648, %v277_v8 }
 0x101   :  { %1308 = vmatmul.msk.bf16.gmra.mxu3 %vm819_vm6, %v635_v57  ;;  %v1140_v35 = vmul.f32 %v3047_v60, %v1065_v30  ;;  %v462_v47 = vmax.f32 %v1818_v38, 0.0  ;;  %v1799_v48 = vand.u32 2147483647, %v1798_v34  ;;  %vm3236_vm3 = vcmp.lt.f32.partialorder %v1819_v36, 8388608.0 }
 0x102   :  { %v552_v41 = vmin.f32 %v459_v21, 255.0  ;;  %v1822_v42 = vcvt.s32.f32 %v1821_v1  ;;  %v190_v50 = vmul.f32 %v2181_v13, %v96_v37  ;;  %v281_v51 = vadd.f32 %v2185_v16, %v187_v24  ;;  %v94_v24 = vld [vmem:[%s3548_s1 + $0x1f8] sm:$0xff] }
 0x103   :  { %1171 = vst [vmem:[%s3550_s3 + $0x18] sm:$0xff] %v1140_v35  ;;  %v980_v44 = vadd.f32 %v979_v22, %v891_v58  ;;  %v555_v49 = vmin.f32 %v462_v47, 255.0  ;;  %v1801_v29 = vor.u32 %v1800_v26, %v1799_v48  ;;  %v217_v54 = vmul.f32 %v2181_v13, %v123_v40 }
 0x104   :  { %v185_v56 = vmul.f32 %v2181_v13, %v91_v43  ;;  %v1823_v59 = vand.u32 2147483647, %v1822_v42  ;;  %v284_v53 = vadd.f32 %v2185_v16, %v190_v50  ;;  %v1851_v61 = vand.u32 2147483647, %v281_v51 }
 0x105   :  { %v1853_v62 = vcvt.f32.s32 %v281_v51  ;;  %v618_v63 = vpack.c.bf16 %v555_v49, %v552_v41  ;;  %v1802_v46 = vsel %vm3217_vm2, %v1801_v29, %v274_v4  ;;  %v1856_v45 = vand.u32 2147483648, %v281_v51 }
 0x106   :  { %v311_v2 = vadd.f32 %v2185_v16, %v217_v54  ;;  %v1825_v5 = vor.u32 %v1824_v23, %v1823_v59  ;;  %v460_v55 = vmax.f32 %v1802_v46, 0.0  ;;  %vm3255_vm4 = vcmp.lt.f32.partialorder %v1851_v61, 8388608.0  ;;  %v95_v59 = vld [vmem:[%s3548_s1 + $0x200] sm:$0xff] }
 0x107   :  { %v1854_v11 = vcvt.s32.f32 %v1853_v62  ;;  %925 = vmatmul.bf16.gmra.mxu0 %v618_v63  ;;  %v1875_v14 = vand.u32 2147483647, %v284_v53  ;;  %v1877_v15 = vcvt.f32.s32 %v284_v53  ;;  %v1880_v4 = vand.u32 2147483648, %v284_v53  ;;  %v3278_v33 = vpop.f32.mrf.mxu3  ;;  %v1072_v61 = vpop.f32.mrf.mxu2 }
 0x108   :  { %v2091_v58 = vand.u32 2147483647, %v311_v2  ;;  %v1826_v22 = vsel %vm3236_vm3, %v1825_v5, %v277_v8  ;;  %v553_v18 = vmin.f32 %v460_v55, 255.0  ;;  %v2093_v0 = vcvt.f32.s32 %v311_v2  ;;  %v92_v8 = vld [vmem:[%s3548_s1 + $0x1e8] sm:$0xff] }
 0x109   :  { %v1855_v10 = vand.u32 2147483647, %v1854_v11  ;;  %v463_v25 = vmax.f32 %v1826_v22, 0.0  ;;  %vm3266_vm5 = vcmp.lt.f32.partialorder %v1875_v14, 8388608.0  ;;  %v1878_v26 = vcvt.s32.f32 %v1877_v15 }
 0x10a   :  { %vm3270_vm7 = vcmp.lt.f32.partialorder %v2091_v58, 8388608.0  ;;  %v2094_v17 = vcvt.s32.f32 %v2093_v0  ;;  %v2096_v30 = vand.u32 2147483648, %v311_v2  ;;  %v1068_v21 = vadd.f32 %v3212_v12, %v980_v44  ;;  %v896_v44 = vpop.f32.mrf.mxu0 }
 0x10b   :  { %v1857_v32 = vor.u32 %v1856_v45, %v1855_v10  ;;  %v556_v34 = vmin.f32 %v463_v25, 255.0  ;;  %v1879_v36 = vand.u32 2147483647, %v1878_v26  ;;  %v188_v37 = vmul.f32 %v2181_v13, %v94_v24 }
 0x10c   :  { %v279_v38 = vadd.f32 %v2185_v16, %v185_v56  ;;  %v2095_v23 = vand.u32 2147483647, %v2094_v17  ;;  %v1141_v35 = vmul.f32 %v3047_v60, %v1068_v21  ;;  %v186_v40 = vmul.f32 %v2181_v13, %v92_v8 }
 0x10d   :  { %v1858_v1 = vsel %vm3255_vm4, %v1857_v32, %v281_v51  ;;  %v619_v43 = vpack.c.bf16 %v556_v34, %v553_v18  ;;  %v1881_v47 = vor.u32 %v1880_v4, %v1879_v36  ;;  %v282_v12 = vadd.f32 %v2185_v16, %v188_v37  ;;  %v984_v51 = vpop.f32.mrf.mxu1  ;;  %v102_v34 = vld [vmem:[%s3548_s1 + $0x238] sm:$0xff] }
 0x10e   :  { %v467_v41 = vmax.f32 %v1858_v1, 0.0  ;;  %v2097_v48 = vor.u32 %v2096_v30, %v2095_v23  ;;  %1172 = vst [vmem:[%s3550_s3 + $0x20] sm:$0xff] %v1141_v35  ;;  %v1835_v31 = vand.u32 2147483647, %v279_v38  ;;  %v1837_v42 = vcvt.f32.s32 %v279_v38 }
 0x10f   :  { %v1840_v50 = vand.u32 2147483648, %v279_v38  ;;  %1013 = vmatmul.bf16.gmra.mxu1 %v619_v43  ;;  %v1882_v49 = vsel %vm3266_vm5, %v1881_v47, %v284_v53  ;;  %v1859_v54 = vand.u32 2147483647, %v282_v12  ;;  %v1861_v56 = vcvt.f32.s32 %v282_v12  ;;  %v99_v53 = vld [vmem:[%s3548_s1 + $0x220] sm:$0xff]  ;;  %v3314_v26 = vpop.f32.mrf.mxu3 }
 0x110   :  { %v560_v29 = vmin.f32 %v467_v41, 255.0  ;;  %v470_v62 = vmax.f32 %v1882_v49, 0.0  ;;  %v2098_v63 = vsel %vm3270_vm7, %v2097_v48, %v311_v2  ;;  %vm3297_vm8 = vcmp.lt.f32.partialorder %v1835_v31, 8388608.0 }
 0x111   :  { %v1838_v45 = vcvt.s32.f32 %v1837_v42  ;;  %v497_v5 = vmax.f32 %v2098_v63, 0.0  ;;  %vm3304_vm9 = vcmp.lt.f32.partialorder %v1859_v54, 8388608.0  ;;  %v1862_v6 = vcvt.s32.f32 %v1861_v56 }
 0x112   :  { %v1864_v11 = vand.u32 2147483648, %v282_v12  ;;  %v563_v14 = vmin.f32 %v470_v62, 255.0  ;;  %v189_v2 = vmul.f32 %v2181_v13, %v95_v59  ;;  %v280_v4 = vadd.f32 %v2185_v16, %v186_v40  ;;  %v898_v47 = vpop.f32.mrf.mxu0 }
 0x113   :  { %v1839_v15 = vand.u32 2147483647, %v1838_v45  ;;  %v590_v58 = vmin.f32 %v497_v5, 255.0  ;;  %v1863_v22 = vand.u32 2147483647, %v1862_v6  ;;  %v982_v18 = vadd.f32 %v3253_v9, %v3251_v3 }
 0x114   :  { %v193_v10 = vmul.f32 %v2181_v13, %v99_v53  ;;  %v623_v0 = vpack.c.bf16 %v563_v14, %v560_v29  ;;  %v283_v25 = vadd.f32 %v2185_v16, %v189_v2  ;;  %v1843_v20 = vand.u32 2147483647, %v280_v4  ;;  %v100_v14 = vld [vmem:[%s3548_s1 + $0x228] sm:$0xff] }
 0x115   :  { %v1841_v24 = vor.u32 %v1840_v50, %v1839_v15  ;;  %v638_v57 = vpack.c.bf16 %v590_v58, %v590_v58  ;;  %v1865_v8 = vor.u32 %v1864_v11, %v1863_v22  ;;  %v1845_v32 = vcvt.f32.s32 %v280_v4  ;;  %v986_v41 = vpop.f32.mrf.mxu1  ;;  %v97_v11 = vld [vmem:[%s3548_s1 + $0x210] sm:$0xff]  ;;  %v98_v58 = vld [vmem:[%s3548_s1 + $0x218] sm:$0xff] }
 0x116   :  { %v1848_v17 = vand.u32 2147483648, %v280_v4  ;;  %1304 = vmatmul.msk.bf16.gmra.mxu2 %vm819_vm6, %v623_v0  ;;  %vm3319_vm10 = vcmp.lt.f32.partialorder %v1843_v20, 8388608.0  ;;  %v1867_v9 = vand.u32 2147483647, %v283_v25  ;;  %v1869_v21 = vcvt.f32.s32 %v283_v25  ;;  %v101_v22 = vld [vmem:[%s3548_s1 + $0x230] sm:$0xff] }
 0x117   :  { %v1842_v30 = vsel %vm3297_vm8, %v1841_v24, %v279_v38  ;;  %1309 = vmatmul.msk.bf16.gmra.mxu3 %vm819_vm6, %v638_v57  ;;  %v1866_v36 = vsel %vm3304_vm9, %v1865_v8, %v282_v12  ;;  %v1846_v1 = vcvt.s32.f32 %v1845_v32  ;;  %v1872_v23 = vand.u32 2147483648, %v283_v25  ;;  %v3336_v12 = vpop.f32.mrf.mxu2  ;;  %v958_v5 = vpop.f32.mrf.mxu3 }
 0x118   :  { %v465_v37 = vmax.f32 %v1842_v30, 0.0  ;;  %v468_v35 = vmax.f32 %v1866_v36, 0.0  ;;  %vm3329_vm11 = vcmp.lt.f32.partialorder %v1867_v9, 8388608.0  ;;  %v1870_v40 = vcvt.s32.f32 %v1869_v21 }
 0x119   :  { %v1070_v43 = vadd.f32 %v3259_v7, %v982_v18  ;;  %v1847_v31 = vand.u32 2147483647, %v1846_v1  ;;  %v196_v42 = vmul.f32 %v2181_v13, %v102_v34  ;;  %v287_v50 = vadd.f32 %v2185_v16, %v193_v10 }
 0x11a   :  { %v558_v48 = vmin.f32 %v465_v37, 255.0  ;;  %v561_v49 = vmin.f32 %v468_v35, 255.0  ;;  %v1871_v29 = vand.u32 2147483647, %v1870_v40  ;;  %v985_v56 = vadd.f32 %v984_v51, %v896_v44  ;;  %v3377_v37 = vpop.f32.mrf.mxu0 }
 0x11b   :  { %v1142_v54 = vmul.f32 %v3047_v60, %v1070_v43  ;;  %v1849_v59 = vor.u32 %v1848_v17, %v1847_v31  ;;  %v290_v62 = vadd.f32 %v2185_v16, %v196_v42  ;;  %v1899_v63 = vand.u32 2147483647, %v287_v50 }
 0x11c   :  { %v1901_v7 = vcvt.f32.s32 %v287_v50  ;;  %v621_v46 = vpack.c.bf16 %v561_v49, %v558_v48  ;;  %v1873_v45 = vor.u32 %v1872_v23, %v1871_v29  ;;  %v1073_v53 = vadd.f32 %v1072_v61, %v985_v56 }
 0x11d   :  { %1173 = vst [vmem:[%s3550_s3 + $0x28] sm:$0xff] %v1142_v54  ;;  %v1850_v55 = vsel %vm3319_vm10, %v1849_v59, %v280_v4  ;;  %vm3345_vm12 = vcmp.lt.f32.partialorder %v1899_v63, 8388608.0  ;;  %v1904_v51 = vand.u32 2147483648, %v287_v50  ;;  %v1923_v2 = vand.u32 2147483647, %v290_v62  ;;  %v3379_v1 = vpop.f32.mrf.mxu1 }
 0x11e   :  { %v1902_v44 = vcvt.s32.f32 %v1901_v7  ;;  %930 = vmatmul.bf16.gmra.mxu0 %v621_v46  ;;  %v1874_v61 = vsel %vm3329_vm11, %v1873_v45, %v283_v25  ;;  %v466_v15 = vmax.f32 %v1850_v55, 0.0  ;;  %v1925_v4 = vcvt.f32.s32 %v290_v62 }
 0x11f   :  { %v469_v18 = vmax.f32 %v1874_v61, 0.0  ;;  %v1928_v0 = vand.u32 2147483648, %v290_v62  ;;  %v1143_v24 = vmul.f32 %v3047_v60, %v1073_v53  ;;  %v191_v25 = vmul.f32 %v2181_v13, %v97_v11  ;;  %v3386_v43 = vpop.f32.mrf.mxu2  ;;  %v3388_v29 = vpop.f32.mrf.mxu3 }
 0x120   :  { %v1903_v10 = vand.u32 2147483647, %v1902_v44  ;;  %v559_v20 = vmin.f32 %v466_v15, 255.0  ;;  %v1926_v57 = vcvt.s32.f32 %v1925_v4  ;;  %v194_v8 = vmul.f32 %v2181_v13, %v100_v14 }
 0x121   :  { %v562_v32 = vmin.f32 %v469_v18, 255.0  ;;  %1174 = vst [vmem:[%s3550_s3 + $0x30] sm:$0xff] %v1143_v24  ;;  %v192_v30 = vmul.f32 %v2181_v13, %v98_v58  ;;  %v195_v3 = vmul.f32 %v2181_v13, %v101_v22  ;;  %vm3371_vm13 = vcmp.lt.f32.partialorder %v1923_v2, 8388608.0  ;;  %v108_v2 = vld [vmem:[%s3548_s1 + $0x268] sm:$0xff] }
 0x122   :  { %v1905_v17 = vor.u32 %v1904_v51, %v1903_v10  ;;  %v1927_v21 = vand.u32 2147483647, %v1926_v57  ;;  %v285_v34 = vadd.f32 %v2185_v16, %v191_v25  ;;  %v288_v36 = vadd.f32 %v2185_v16, %v194_v8  ;;  %v105_v51 = vld [vmem:[%s3548_s1 + $0x250] sm:$0xff]  ;;  %v903_v10 = vpop.f32.mrf.mxu0 }
 0x123   :  { %v622_v23 = vpack.c.bf16 %v562_v32, %v559_v20  ;;  %v3384_v38 = vadd.f32 %v2185_v16, %v192_v30  ;;  %v987_v40 = vadd.f32 %v986_v41, %v898_v47  ;;  %v289_v63 = vadd.f32 %v2185_v16, %v195_v3 }
 0x124   :  { %v1906_v35 = vsel %vm3345_vm12, %v1905_v17, %v287_v50  ;;  %v1929_v48 = vor.u32 %v1928_v0, %v1927_v21  ;;  %v1883_v42 = vand.u32 2147483647, %v285_v34  ;;  %v1885_v49 = vcvt.f32.s32 %v285_v34 }
 0x125   :  { %v473_v31 = vmax.f32 %v1906_v35, 0.0  ;;  %1018 = vmatmul.bf16.gmra.mxu1 %v622_v23  ;;  %v1888_v54 = vand.u32 2147483648, %v285_v34  ;;  %v1907_v56 = vand.u32 2147483647, %v288_v36  ;;  %v1909_v59 = vcvt.f32.s32 %v288_v36  ;;  %v991_v0 = vpop.f32.mrf.mxu1 }
 0x126   :  { %v1930_v50 = vsel %vm3371_vm13, %v1929_v48, %v290_v62  ;;  %v1886_v46 = vcvt.s32.f32 %v1885_v49  ;;  %v1912_v47 = vand.u32 2147483648, %v288_v36  ;;  %vm3393_vm14 = vcmp.lt.f32.partialorder %v1883_v42, 8388608.0 }
 0x127   :  { %v566_v7 = vmin.f32 %v473_v31, 255.0  ;;  %v476_v41 = vmax.f32 %v1930_v50, 0.0  ;;  %v1910_v53 = vcvt.s32.f32 %v1909_v59  ;;  %v1891_v5 = vand.u32 2147483647, %v3384_v38  ;;  %v1079_v8 = vpop.f32.mrf.mxu2  ;;  %v3419_v9 = vpop.f32.mrf.mxu3 }
 0x128   :  { %v1887_v55 = vand.u32 2147483647, %v1886_v46  ;;  %vm3398_vm15 = vcmp.lt.f32.partialorder %v1907_v56, 8388608.0  ;;  %v1893_v44 = vcvt.f32.s32 %v3384_v38  ;;  %v1896_v62 = vand.u32 2147483648, %v3384_v38 }
 0x129   :  { %v569_v11 = vmin.f32 %v476_v41, 255.0  ;;  %v1911_v14 = vand.u32 2147483647, %v1910_v53  ;;  %v1915_v61 = vand.u32 2147483647, %v289_v63  ;;  %v1917_v15 = vcvt.f32.s32 %v289_v63 }
 0x12a   :  { %v1889_v4 = vor.u32 %v1888_v54, %v1887_v55  ;;  %vm3410_vm0 = vcmp.lt.f32.partialorder %v1891_v5, 8388608.0  ;;  %v1894_v22 = vcvt.s32.f32 %v1893_v44  ;;  %v1920_v18 = vand.u32 2147483648, %v289_v63  ;;  %v906_v53 = vpop.f32.mrf.mxu0 }
 0x12b   :  { %v626_v24 = vpack.c.bf16 %v569_v11, %v566_v7  ;;  %v1913_v20 = vor.u32 %v1912_v47, %v1911_v14  ;;  %v1918_v57 = vcvt.s32.f32 %v1917_v15  ;;  %v1075_v25 = vadd.f32 %v3336_v12, %v987_v40 }
 0x12c   :  { %v1890_v32 = vsel %vm3393_vm14, %v1889_v4, %v285_v34  ;;  %v1895_v17 = vand.u32 2147483647, %v1894_v22  ;;  %v199_v30 = vmul.f32 %v2181_v13, %v105_v51  ;;  %v202_v3 = vmul.f32 %v2181_v13, %v108_v2 }
 0x12d   :  { %1305 = vmatmul.msk.bf16.gmra.mxu2 %vm819_vm6, %v626_v24  ;;  %v1914_v21 = vsel %vm3398_vm15, %v1913_v20, %v288_v36  ;;  %v471_v23 = vmax.f32 %v1890_v32, 0.0  ;;  %v1919_v35 = vand.u32 2147483647, %v1918_v57  ;;  %v1144_v12 = vmul.f32 %v3047_v60, %v1075_v25  ;;  %v994_v5 = vpop.f32.mrf.mxu1 }
 0x12e   :  { %v474_v40 = vmax.f32 %v1914_v21, 0.0  ;;  %v1897_v48 = vor.u32 %v1896_v62, %v1895_v17  ;;  %vm1916_vm1 = vcmp.lt.f32.partialorder %v1915_v61, 8388608.0  ;;  %v293_v34 = vadd.f32 %v2185_v16, %v199_v30 }
 0x12f   :  { %v564_v31 = vmin.f32 %v471_v23, 255.0  ;;  %v1921_v42 = vor.u32 %v1920_v18, %v1919_v35  ;;  %1175 = vst [vmem:[%s3550_s3 + $0x38] sm:$0xff] %v1144_v12  ;;  %v296_v13 = vadd.f32 %v2185_v16, %v202_v3  ;;  %v990_v56 = vadd.f32 %v3379_v1, %v3377_v37  ;;  %v1082_v44 = vpop.f32.mrf.mxu2  ;;  %v3436_v37 = vpop.f32.mrf.mxu3 }
 0x130   :  { %v567_v49 = vmin.f32 %v474_v40, 255.0  ;;  %v1898_v36 = vsel %vm3410_vm0, %v1897_v48, %v3384_v38  ;;  %v1949_v54 = vcvt.f32.s32 %v293_v34  ;;  %v1947_v7 = vand.u32 2147483647, %v293_v34 }
 0x131   :  { %v1922_v59 = vsel %vm1916_vm1, %v1921_v42, %v289_v63  ;;  %v472_v50 = vmax.f32 %v1898_v36, 0.0  ;;  %v1952_v45 = vand.u32 2147483648, %v293_v34  ;;  %v1971_v16 = vand.u32 2147483647, %v296_v13 }
 0x132   :  { %v624_v46 = vpack.c.bf16 %v567_v49, %v564_v31  ;;  %v475_v47 = vmax.f32 %v1922_v59, 0.0  ;;  %v1950_v41 = vcvt.s32.f32 %v1949_v54  ;;  %v1973_v6 = vcvt.f32.s32 %v296_v13  ;;  %v908_v57 = vpop.f32.mrf.mxu0 }
 0x133   :  { %v565_v55 = vmin.f32 %v472_v50, 255.0  ;;  %v1078_v51 = vadd.f32 %v3386_v43, %v990_v56  ;;  %v992_v11 = vadd.f32 %v991_v0, %v903_v10  ;;  %vm3438_vm2 = vcmp.lt.f32.partialorder %v1947_v7, 8388608.0 }
 0x134   :  { %935 = vmatmul.bf16.gmra.mxu0 %v624_v46  ;;  %v568_v62 = vmin.f32 %v475_v47, 255.0  ;;  %v1951_v38 = vand.u32 2147483647, %v1950_v41  ;;  %v1974_v63 = vcvt.s32.f32 %v1973_v6  ;;  %v1976_v14 = vand.u32 2147483648, %v296_v13 }
 0x135   :  { %v995_v61 = vadd.f32 %v994_v5, %v906_v53  ;;  %v1145_v4 = vmul.f32 %v3047_v60, %v1078_v51  ;;  %v1080_v58 = vadd.f32 %v1079_v8, %v992_v11  ;;  %vm1972_vm3 = vcmp.lt.f32.partialorder %v1971_v16, 8388608.0  ;;  %v996_v25 = vpop.f32.mrf.mxu1 }
 0x136   :  { %v625_v15 = vpack.c.bf16 %v568_v62, %v565_v55  ;;  %v1953_v2 = vor.u32 %v1952_v45, %v1951_v38  ;;  %v1975_v22 = vand.u32 2147483647, %v1974_v63  ;;  %v997_v32 = vadd.f32 %v996_v25, %v908_v57 }
 0x137   :  { %v1083_v18 = vadd.f32 %v1082_v44, %v995_v61  ;;  %1176 = vst [vmem:[%s3550_s3 + $0x40] sm:$0xff] %v1145_v4  ;;  %v1146_v10 = vmul.f32 %v3047_v60, %v1080_v58  ;;  %v1084_v17 = vpop.f32.mrf.mxu2  ;;  %v1036_v21 = vpop.f32.mrf.mxu3 }
 0x138   :  { %1023 = vmatmul.bf16.gmra.mxu1 %v625_v15  ;;  %v1954_v43 = vsel %vm3438_vm2, %v1953_v2, %v293_v34  ;;  %v1977_v0 = vor.u32 %v1976_v14, %v1975_v22  ;;  %v1085_v23 = vadd.f32 %v1084_v17, %v997_v32 }
 0x139   :  { %v479_v24 = vmax.f32 %v1954_v43, 0.0  ;;  %v1147_v20 = vmul.f32 %v3047_v60, %v1083_v18  ;;  %1177 = vst [vmem:[%s3550_s3 + $0x48] sm:$0xff] %v1146_v10  ;;  %v1037_v18 = vadd.f32 %v1036_v21, %v3188_v52 }
 0x13a   :  { %v1978_v8 = vsel %vm1972_vm3, %v1977_v0, %v296_v13  ;;  %v1148_v12 = vmul.f32 %v3047_v60, %v1085_v23  ;;  %v911_v48 = vpop.f32.mrf.mxu0 }
 0x13b   :  { %1178 = vst [vmem:[%s3550_s3 + $0x50] sm:$0xff] %v1147_v20  ;;  %v482_v30 = vmax.f32 %v1978_v8, 0.0  ;;  %v572_v3 = vmin.f32 %v479_v24, 255.0 }
 0x13c   :  { %1179 = vst [vmem:[%s3550_s3 + $0x58] sm:$0xff] %v1148_v12 }
 0x13d   :  { %v575_v35 = vmin.f32 %v482_v30, 255.0 }
 0x13f   :  { %v629_v40 = vpack.c.bf16 %v575_v35, %v572_v3  ;;  %v999_v34 = vpop.f32.mrf.mxu1  ;;  %v1087_v42 = vpop.f32.mrf.mxu2 }
 0x140   :  { %v1000_v31 = vadd.f32 %v999_v34, %v911_v48  ;;  %v1039_v13 = vpop.f32.mrf.mxu3 }
 0x141   :  { %1306 = vmatmul.msk.bf16.gmra.mxu2 %vm819_vm6, %v629_v40  ;;  %v1040_v17 = vadd.f32 %v1039_v13, %v3234_v27 }
 0x142   :  { %v1088_v49 = vadd.f32 %v1087_v42, %v1000_v31  ;;  %v913_v54 = vpop.f32.mrf.mxu0 }
 0x144   :  { %v1149_v36 = vmul.f32 %v3047_v60, %v1088_v49 }
 0x146   :  { %1180 = vst [vmem:[%s3550_s3 + $0x60] sm:$0xff] %v1149_v36 }
 0x147   :  { %v1001_v56 = vpop.f32.mrf.mxu1  ;;  %v1089_v50 = vpop.f32.mrf.mxu2 }
 0x148   :  { %v1002_v59 = vadd.f32 %v1001_v56, %v913_v54  ;;  %v1041_v7 = vpop.f32.mrf.mxu3 }
 0x149   :  { %v1042_v12 = vadd.f32 %v1041_v7, %v3278_v33 }
 0x14a   :  { %v1090_v46 = vadd.f32 %v1089_v50, %v1002_v59 }
 0x14c   :  { %v1150_v47 = vmul.f32 %v3047_v60, %v1090_v46 }
 0x14e   :  { %1181 = vst [vmem:[%s3550_s3 + $0x68] sm:$0xff] %v1150_v47 }
 0x14f   :  { %v1092_v45 = vpop.f32.mrf.mxu2 }
 0x150   :  { %v916_v41 = vpop.f32.mrf.mxu0 }
 0x151   :  { %v1044_v53 = vpop.f32.mrf.mxu3 }
 0x152   :  { %v1045_v55 = vadd.f32 %v1044_v53, %v3314_v26  ;;  %v1035_v26 = vadd.f32 %v3436_v37, %v3152_v39 }
 0x155   :  { %v1004_v5 = vpop.f32.mrf.mxu1 }
 0x156   :  { %v1005_v16 = vadd.f32 %v1004_v5, %v916_v41 }
 0x157   :  { %v1094_v11 = vpop.f32.mrf.mxu2 }
 0x158   :  { %v1093_v6 = vadd.f32 %v1092_v45, %v1005_v16  ;;  %v918_v62 = vpop.f32.mrf.mxu0 }
 0x159   :  { %v1046_v38 = vpop.f32.mrf.mxu3 }
 0x15a   :  { %v1151_v44 = vmul.f32 %v3047_v60, %v1093_v6 }
 0x15c   :  { %1182 = vst [vmem:[%s3550_s3 + $0x70] sm:$0xff] %v1151_v44 }
 0x15d   :  { %v1006_v51 = vpop.f32.mrf.mxu1 }
 0x15e   :  { %v1007_v1 = vadd.f32 %v1006_v51, %v918_v62 }
 0x160   :  { %v1095_v63 = vadd.f32 %v1094_v11, %v1007_v1 }
 0x162   :  { %v1152_v14 = vmul.f32 %v3047_v60, %v1095_v63 }
 0x163   :  { %v1097_v58 = vpop.f32.mrf.mxu2 }
 0x164   :  { %1183 = vst [vmem:[%s3550_s3 + $0x78] sm:$0xff] %v1152_v14 }
 0x169   :  { %v921_v2 = vpop.f32.mrf.mxu0 }
 0x16a   :  { %v1122_v61 = vpop.f32.mrf.mxu3 }
 0x16b   :  { %v1123_v15 = vadd.f32 %v1122_v61, %v1035_v26  ;;  %v1099_v25 = vpop.f32.mrf.mxu2 }
 0x16d   :  { %v1163_v4 = vmul.f32 %v3047_v60, %v1123_v15 }
 0x16f   :  { %1194 = vst [vmem:[%s3550_s3 + $0xd0] sm:$0xff] %v1163_v4 }
 0x170   :  { %v1009_v22 = vpop.f32.mrf.mxu1 }
 0x171   :  { %v1010_v43 = vadd.f32 %v1009_v22, %v921_v2  ;;  %v923_v37 = vpop.f32.mrf.mxu0 }
 0x172   :  { %v1124_v10 = vpop.f32.mrf.mxu3 }
 0x173   :  { %v1098_v0 = vadd.f32 %v1097_v58, %v1010_v43  ;;  %v1125_v24 = vadd.f32 %v1124_v10, %v1037_v18  ;;  %v1030_v10 = vadd.f32 %v3388_v29, %v3064_v28 }
 0x175   :  { %v1153_v20 = vmul.f32 %v3047_v60, %v1098_v0  ;;  %v1164_v39 = vmul.f32 %v3047_v60, %v1125_v24 }
 0x177   :  { %1184 = vst [vmem:[%s3550_s3 + $0x80] sm:$0xff] %v1153_v20 }
 0x178   :  { %v1011_v57 = vpop.f32.mrf.mxu1  ;;  %1195 = vst [vmem:[%s3550_s3 + $0xd8] sm:$0xff] %v1164_v39  ;;  %v1032_v39 = vadd.f32 %v3419_v9, %v3102_v19 }
 0x179   :  { %v1012_v52 = vadd.f32 %v1011_v57, %v923_v37 }
 0x17b   :  { %v1100_v8 = vadd.f32 %v1099_v25, %v1012_v52 }
 0x17d   :  { %v1154_v32 = vmul.f32 %v3047_v60, %v1100_v8 }
 0x17e   :  { %v1102_v35 = vpop.f32.mrf.mxu2 }
 0x17f   :  { %1185 = vst [vmem:[%s3550_s3 + $0x88] sm:$0xff] %v1154_v32 }
 0x184   :  { %v1127_v30 = vpop.f32.mrf.mxu3  ;;  %v926_v23 = vpop.f32.mrf.mxu0 }
 0x185   :  { %v1128_v3 = vadd.f32 %v1127_v30, %v1040_v17 }
 0x186   :  { %v1104_v36 = vpop.f32.mrf.mxu2 }
 0x187   :  { %v1165_v21 = vmul.f32 %v3047_v60, %v1128_v3 }
 0x189   :  { %1196 = vst [vmem:[%s3550_s3 + $0xe0] sm:$0xff] %v1165_v21 }
 0x18c   :  { %v1129_v40 = vpop.f32.mrf.mxu3  ;;  %v1014_v48 = vpop.f32.mrf.mxu1 }
 0x18d   :  { %v1130_v34 = vadd.f32 %v1129_v40, %v1042_v12  ;;  %v1015_v31 = vadd.f32 %v1014_v48, %v926_v23  ;;  %v928_v13 = vpop.f32.mrf.mxu0 }
 0x18f   :  { %v1166_v42 = vmul.f32 %v3047_v60, %v1130_v34  ;;  %v1103_v49 = vadd.f32 %v1102_v35, %v1015_v31 }
 0x191   :  { %1197 = vst [vmem:[%s3550_s3 + $0xe8] sm:$0xff] %v1166_v42  ;;  %v1155_v27 = vmul.f32 %v3047_v60, %v1103_v49 }
 0x193   :  { %1186 = vst [vmem:[%s3550_s3 + $0x90] sm:$0xff] %v1155_v27 }
 0x194   :  { %v1016_v33 = vpop.f32.mrf.mxu1 }
 0x195   :  { %v1017_v54 = vadd.f32 %v1016_v33, %v928_v13 }
 0x197   :  { %v1105_v56 = vadd.f32 %v1104_v36, %v1017_v54 }
 0x199   :  { %v1156_v59 = vmul.f32 %v3047_v60, %v1105_v56  ;;  %v1107_v47 = vpop.f32.mrf.mxu2 }
 0x19a   :  { %v1132_v50 = vpop.f32.mrf.mxu3 }
 0x19b   :  { %1187 = vst [vmem:[%s3550_s3 + $0x98] sm:$0xff] %v1156_v59  ;;  %v1133_v7 = vadd.f32 %v1132_v50, %v1045_v55  ;;  %v931_v46 = vpop.f32.mrf.mxu0 }
 0x19d   :  { %v1167_v41 = vmul.f32 %v3047_v60, %v1133_v7 }
 0x19f   :  { %1198 = vst [vmem:[%s3550_s3 + $0xf0] sm:$0x3] %v1167_v41 }
 0x1a1   :  { %v1109_v62 = vpop.f32.mrf.mxu2 }
 0x1a2   :  { %v1019_v45 = vpop.f32.mrf.mxu1  ;;  %v1134_v53 = vpop.f32.mrf.mxu3 }
 0x1a3   :  { %v1020_v5 = vadd.f32 %v1019_v45, %v931_v46  ;;  %v933_v44 = vpop.f32.mrf.mxu0 }
 0x1a5   :  { %v1108_v16 = vadd.f32 %v1107_v47, %v1020_v5 }
 0x1a7   :  { %v1157_v6 = vmul.f32 %v3047_v60, %v1108_v16 }
 0x1a9   :  { %1188 = vst [vmem:[%s3550_s3 + $0xa0] sm:$0xff] %v1157_v6 }
 0x1aa   :  { %v1021_v55 = vpop.f32.mrf.mxu1 }
 0x1ab   :  { %v1022_v38 = vadd.f32 %v1021_v55, %v933_v44 }
 0x1ad   :  { %v1110_v51 = vadd.f32 %v1109_v62, %v1022_v38 }
 0x1af   :  { %v1158_v11 = vmul.f32 %v3047_v60, %v1110_v51 }
 0x1b0   :  { %v1112_v63 = vpop.f32.mrf.mxu2 }
 0x1b1   :  { %1189 = vst [vmem:[%s3550_s3 + $0xa8] sm:$0xff] %v1158_v11  ;;  %v936_v1 = vpop.f32.mrf.mxu0 }
 0x1b5   :  { %v1024_v14 = vpop.f32.mrf.mxu1 }
 0x1b6   :  { %v1025_v26 = vadd.f32 %v1024_v14, %v936_v1 }
 0x1b8   :  { %v1113_v61 = vadd.f32 %v1112_v63, %v1025_v26  ;;  %v1114_v4 = vpop.f32.mrf.mxu2 }
 0x1b9   :  { %v938_v2 = vpop.f32.mrf.mxu0 }
 0x1ba   :  { %v1159_v15 = vmul.f32 %v3047_v60, %v1113_v61 }
 0x1bc   :  { %1190 = vst [vmem:[%s3550_s3 + $0xb0] sm:$0xff] %v1159_v15 }
 0x1bd   :  { %v1026_v58 = vpop.f32.mrf.mxu1 }
 0x1be   :  { %v1027_v22 = vadd.f32 %v1026_v58, %v938_v2 }
 0x1c0   :  { %v1115_v18 = vadd.f32 %v1114_v4, %v1027_v22 }
 0x1c2   :  { %v1160_v43 = vmul.f32 %v3047_v60, %v1115_v18 }
 0x1c4   :  { %1191 = vst [vmem:[%s3550_s3 + $0xb8] sm:$0xff] %v1160_v43  ;;  %v1117_v0 = vpop.f32.mrf.mxu2 }
 0x1c5   :  { %v1118_v24 = vadd.f32 %v1117_v0, %v1030_v10 }
 0x1c7   :  { %v1161_v20 = vmul.f32 %v3047_v60, %v1118_v24 }
 0x1c9   :  { %1192 = vst [vmem:[%s3550_s3 + $0xc0] sm:$0xff] %v1161_v20 }
 0x1cc   :  { %v1119_v37 = vpop.f32.mrf.mxu2 }
 0x1cd   :  { %v1120_v57 = vadd.f32 %v1119_v37, %v1032_v39 }
 0x1cf   :  { %v1162_v25 = vmul.f32 %v3047_v60, %v1120_v57 }
 0x1d1   :  { %1193 = vst [vmem:[%s3550_s3 + $0xc8] sm:$0xff] %v1162_v25 }
 0x1d2   :  { %1203 = vsyncpa [#allocation3], 1 }

// kernel: net_forward.9
= control target key start
LH: loop header
LB: loop body
LE: loop exit
PB: predicated region body
PF: predicated region fallthrough
CT: control target
= control target key end

     0   :  { %7 = vsyncpa [#allocation3], 0  ;;  %s676_s20 = smov [#allocation2]   ;;  %s1117_s0 = inlined_call_operand.vmem [shape: f32[3], index: 0, kind: input, shape index: {}]   ;;  %s1118_s1 = inlined_call_operand.vmem [shape: f32[2,11,11,128], index: 1, kind: input, shape index: {}]   ;;  %s1119_s2 = inlined_call_operand.vmem [shape: f32[2,5,11,128], index: 2, kind: output, shape index: {}]  }
   0x1   :  { %s13_s11 = sshll.u32 %s1117_s0, 4  ;;  %v125_v0 = vld [vmem:[%s1118_s1] sm:$0xff]  ;;  %v127_v1 = vld [vmem:[%s1118_s1 + $0x8] sm:$0xff]  ;;  %v129_v2 = vld [vmem:[%s1118_s1 + $0x10] sm:$0xff]  ;;  %s14_s11 = int_to_ptr.vmem [resolvable:$true] %s13_s11 }
   0x2   :  { %126 = vst [vmem:[#allocation4 + $0xb0] sm:$0xff] %v125_v0  ;;  %v131_v3 = vld [vmem:[%s1118_s1 + $0x18] sm:$0xff]  ;;  %16 = dma.vmem_to_smem %s14_s11, 16, %s676_s20, [#allocation3]   ;;  %v133_v4 = vld [vmem:[%s1118_s1 + $0x20] sm:$0xff]  ;;  %v135_v5 = vld [vmem:[%s1118_s1 + $0x28] sm:$0xff] }
   0x3   :  { %128 = vst [vmem:[#allocation4 + $0xd0] sm:$0xff] %v127_v1  ;;  %v137_v6 = vld [vmem:[%s1118_s1 + $0x30] sm:$0xff]  ;;  %v139_v7 = vld [vmem:[%s1118_s1 + $0x38] sm:$0xff]  ;;  %v141_v8 = vld [vmem:[%s1118_s1 + $0x40] sm:$0xff] }
   0x4   :  { %130 = vst [vmem:[#allocation4 + $0x10] sm:$0xff] %v129_v2  ;;  %v143_v9 = vld [vmem:[%s1118_s1 + $0x48] sm:$0xff]  ;;  %v145_v10 = vld [vmem:[%s1118_s1 + $0x50] sm:$0xff]  ;;  %v147_v11 = vld [vmem:[%s1118_s1 + $0x58] sm:$0xff] }
   0x5   :  { %132 = vst [vmem:[#allocation4 + $0x48] sm:$0xff] %v131_v3  ;;  %v149_v12 = vld [vmem:[%s1118_s1 + $0x60] sm:$0xff]  ;;  %v151_v13 = vld [vmem:[%s1118_s1 + $0x68] sm:$0xff]  ;;  %v153_v14 = vld [vmem:[%s1118_s1 + $0x70] sm:$0xff] }
   0x6   :  { %134 = vst [vmem:[#allocation4 + $0x120] sm:$0xff] %v133_v4  ;;  %v155_v15 = vld [vmem:[%s1118_s1 + $0x78] sm:$0xff]  ;;  %v157_v16 = vld [vmem:[%s1118_s1 + $0x80] sm:$0xff]  ;;  %v159_v17 = vld [vmem:[%s1118_s1 + $0x88] sm:$0xff] }
   0x7   :  { %136 = vst [vmem:[#allocation4 + $0x38] sm:$0xff] %v135_v5  ;;  %v161_v18 = vld [vmem:[%s1118_s1 + $0x90] sm:$0xff]  ;;  %v163_v19 = vld [vmem:[%s1118_s1 + $0x98] sm:$0xff]  ;;  %v169_v22 = vld [vmem:[%s1118_s1 + $0xc0] sm:$0xff] }
   0x8   :  { %138 = vst [vmem:[#allocation4 + $0xf8] sm:$0xff] %v137_v6  ;;  %v165_v20 = vld [vmem:[%s1118_s1 + $0xb0] sm:$0xff]  ;;  %v167_v21 = vld [vmem:[%s1118_s1 + $0xb8] sm:$0xff]  ;;  %v171_v23 = vld [vmem:[%s1118_s1 + $0xc8] sm:$0xff] }
   0x9   :  { %140 = vst [vmem:[#allocation4 + $0x100] sm:$0xff] %v139_v7  ;;  %v173_v24 = vld [vmem:[%s1118_s1 + $0xd0] sm:$0xff]  ;;  %v175_v25 = vld [vmem:[%s1118_s1 + $0xd8] sm:$0xff]  ;;  %v177_v26 = vld [vmem:[%s1118_s1 + $0xe0] sm:$0xff] }
   0xa   :  { %142 = vst [vmem:[#allocation4 + $0x80] sm:$0xff] %v141_v8  ;;  %v179_v27 = vld [vmem:[%s1118_s1 + $0xe8] sm:$0xff]  ;;  %v181_v28 = vld [vmem:[%s1118_s1 + $0xf0] sm:$0xff]  ;;  %v183_v29 = vld [vmem:[%s1118_s1 + $0xf8] sm:$0xff] }
   0xb   :  { %144 = vst [vmem:[#allocation4 + $0x108] sm:$0xff] %v143_v9  ;;  %v185_v30 = vld [vmem:[%s1118_s1 + $0x100] sm:$0xff]  ;;  %v187_v31 = vld [vmem:[%s1118_s1 + $0x108] sm:$0xff]  ;;  %v189_v32 = vld [vmem:[%s1118_s1 + $0x110] sm:$0xff] }
   0xc   :  { %146 = vst [vmem:[#allocation4 + $0x138] sm:$0xff] %v145_v10  ;;  %v191_v33 = vld [vmem:[%s1118_s1 + $0x118] sm:$0xff]  ;;  %v193_v34 = vld [vmem:[%s1118_s1 + $0x120] sm:$0xff]  ;;  %v195_v35 = vld [vmem:[%s1118_s1 + $0x128] sm:$0xff] }
   0xd   :  { %148 = vst [vmem:[#allocation4 + $0xf0] sm:$0xff] %v147_v11  ;;  %v197_v36 = vld [vmem:[%s1118_s1 + $0x130] sm:$0xff]  ;;  %v199_v37 = vld [vmem:[%s1118_s1 + $0x138] sm:$0xff]  ;;  %v201_v38 = vld [vmem:[%s1118_s1 + $0x140] sm:$0xff] }
   0xe   :  { %150 = vst [vmem:[#allocation4 + $0x18] sm:$0xff] %v149_v12  ;;  %v203_v39 = vld [vmem:[%s1118_s1 + $0x148] sm:$0xff] }
   0xf   :  { %152 = vst [vmem:[#allocation4 + $0xc8] sm:$0xff] %v151_v13 }
  0x10   :  { %154 = vst [vmem:[#allocation4 + $0x70] sm:$0xff] %v153_v14 }
  0x11   :  { %156 = vst [vmem:[#allocation4 + $0x20] sm:$0xff] %v155_v15 }
  0x12   :  { %158 = vst [vmem:[#allocation4 + $0x128] sm:$0xff] %v157_v16 }
  0x13   :  { %160 = vst [vmem:[#allocation4 + $0x110] sm:$0xff] %v159_v17 }
  0x14   :  { %162 = vst [vmem:[#allocation4 + $0x8] sm:$0xff] %v161_v18 }
  0x15   :  { %164 = vst [vmem:[#allocation4 + $0x98] sm:$0xff] %v163_v19 }
  0x16   :  { %166 = vst [vmem:[#allocation4 + $0xa8] sm:$0xff] %v165_v20 }
  0x17   :  { %168 = vst [vmem:[#allocation4 + $0x90] sm:$0xff] %v167_v21 }
  0x18   :  { %170 = vst [vmem:[#allocation4 + $0xe0] sm:$0xff] %v169_v22 }
  0x19   :  { %172 = vst [vmem:[#allocation4 + $0x88] sm:$0xff] %v171_v23 }
  0x1a   :  { %174 = vst [vmem:[#allocation4 + $0xc0] sm:$0xff] %v173_v24 }
  0x1b   :  { %176 = vst [vmem:[#allocation4 + $0x118] sm:$0xff] %v175_v25 }
  0x1c   :  { %178 = vst [vmem:[#allocation4 + $0xd8] sm:$0xff] %v177_v26 }
  0x1d   :  { %180 = vst [vmem:[#allocation4 + $0xa0] sm:$0xff] %v179_v27 }
  0x1e   :  { %182 = vst [vmem:[#allocation4 + $0x68] sm:$0xff] %v181_v28 }
  0x1f   :  { %184 = vst [vmem:[#allocation4 + $0x130] sm:$0xff] %v183_v29 }
  0x20   :  { %186 = vst [vmem:[#allocation4 + $0x50] sm:$0xff] %v185_v30 }
  0x21   :  { %188 = vst [vmem:[#allocation4 + $0xe8] sm:$0xff] %v187_v31 }
  0x22   :  { %190 = vst [vmem:[#allocation4 + $0x58] sm:$0xff] %v189_v32 }
  0x23   :  { %192 = vst [vmem:[#allocation4 + $0x78] sm:$0xff] %v191_v33 }
  0x24   :  { %194 = vst [vmem:[#allocation4 + $0x30] sm:$0xff] %v193_v34 }
  0x25   :  { %196 = vst [vmem:[#allocation4 + $0x40] sm:$0xff] %v195_v35 }
  0x26   :  { %198 = vst [vmem:[#allocation4 + $0x28] sm:$0xff] %v197_v36 }
  0x27   :  { %200 = vst [vmem:[#allocation4] sm:$0xff] %v199_v37 }
  0x28   :  { %202 = vst [vmem:[#allocation4 + $0xb8] sm:$0xff] %v201_v38 }
  0x29   :  { %204 = vst [vmem:[#allocation4 + $0x60] sm:$0xff] %v203_v39 }
  0x2a   :  { %674 = dma.done.wait [#allocation3], 16  }
  0x2b   :  { %675 = vsyncadd [#allocation3], 4294967280 }
  0x2c   :  { %214 = sfence }
  0x2d   :  { %s815_s6 = sld [smem:[#allocation2]]  ;;  %v218_v40 = vld [vmem:[#allocation4 + $0xb0] sm:$0xff]  ;;  %v224_v43 = vld [vmem:[#allocation4 + $0x48] sm:$0x7]  ;;  %v225_v45 = vld [vmem:[#allocation4 + $0xe0] sm:$0xff] }
  0x2e   :  { %v223_v41 = vld [vmem:[#allocation4 + $0x10] sm:$0xff]  ;;  %s483_s7 = sld [smem:[#allocation2 + $0x1]]  ;;  %v220_v44 = vld [vmem:[#allocation4 + $0xa8] sm:$0xff]  ;;  %v271_v48 = vld [vmem:[#allocation4 + $0x120] sm:$0xff] }
  0x2f   :  { %v219_v42 = vld [vmem:[#allocation4 + $0xd0] sm:$0x7]  ;;  %s484_s8 = sld [smem:[#allocation2 + $0x2]]  ;;  %v226_v47 = vld [vmem:[#allocation4 + $0x88] sm:$0x7]  ;;  %v276_v49 = vld [vmem:[#allocation4 + $0xf8] sm:$0xff]  ;;  %v227_v54 = vmax.f32 %v218_v40, %v223_v41  ;;  %v229_v56 = vmax.f32 %v220_v44, %v225_v45 }
  0x30   :  { %v221_v46 = vld [vmem:[#allocation4 + $0x90] sm:$0x7]  ;;  %v272_v50 = vld [vmem:[#allocation4 + $0x38] sm:$0x7]  ;;  %v277_v51 = vld [vmem:[#allocation4 + $0x100] sm:$0x7]  ;;  %v228_v55 = vmax.f32 %v219_v42, %v224_v43  ;;  %v280_v61 = vmax.f32 %v271_v48, %v276_v49 }
  0x31   :  { %v273_v52 = vld [vmem:[#allocation4 + $0xc0] sm:$0xff]  ;;  %v278_v53 = vld [vmem:[#allocation4 + $0xd8] sm:$0xff]  ;;  %v230_v57 = vmax.f32 %v221_v46, %v226_v47  ;;  %v281_v62 = vmax.f32 %v272_v50, %v277_v51  ;;  %v821_v2 = vld [vmem:[#allocation4 + $0x108] sm:$0x7] }
  0x32   :  { %v274_v58 = vld [vmem:[#allocation4 + $0x118] sm:$0x7]  ;;  %v279_v59 = vld [vmem:[#allocation4 + $0xa0] sm:$0x7]  ;;  %v282_v63 = vmax.f32 %v273_v52, %v278_v53  ;;  %v823_v3 = vld [vmem:[#allocation4 + $0xf0] sm:$0x7] }
  0x33   :  { %v817_v60 = vld [vmem:[#allocation4 + $0x80] sm:$0xff]  ;;  %v283_v0 = vmax.f32 %v274_v58, %v279_v59  ;;  %v819_v1 = vld [vmem:[#allocation4 + $0x138] sm:$0xff]  ;;  %v828_v5 = vstv %s815_s6  ;;  %v830_v6 = vld [vmem:[#allocation4 + $0x68] sm:$0xff]  ;;  %v332_v10 = vmax.f32 %v821_v2, %v823_v3 }
  0x34   :  { %v825_v4 = vstv %s483_s7  ;;  %v832_v7 = vld [vmem:[#allocation4 + $0x50] sm:$0xff]  ;;  %v331_v9 = vmax.f32 %v817_v60, %v819_v1 }
  0x35   :  { %v834_v8 = vstv %s484_s8  ;;  %v333_v11 = vmax.f32 %v830_v6, %v832_v7 }
  0x36   :  { %v232_v12 = vmul.f32 %v834_v8, %v227_v54  ;;  %v233_v13 = vmul.f32 %v834_v8, %v228_v55  ;;  %v234_v14 = vmul.f32 %v834_v8, %v229_v56  ;;  %v235_v15 = vmul.f32 %v834_v8, %v230_v57 }
  0x37   :  { %v284_v16 = vmul.f32 %v280_v61, %v834_v8  ;;  %v285_v17 = vmul.f32 %v281_v62, %v834_v8  ;;  %v286_v18 = vmul.f32 %v282_v63, %v834_v8  ;;  %v287_v19 = vmul.f32 %v283_v0, %v834_v8 }
  0x38   :  { %v237_v20 = vadd.f32 %v825_v4, %v232_v12  ;;  %v238_v21 = vadd.f32 %v825_v4, %v233_v13  ;;  %v239_v22 = vadd.f32 %v825_v4, %v234_v14  ;;  %v240_v23 = vadd.f32 %v825_v4, %v235_v15 }
  0x39   :  { %v288_v24 = vadd.f32 %v284_v16, %v825_v4  ;;  %v856_v25 = vadd.f32 %v285_v17, %v825_v4  ;;  %v859_v26 = vadd.f32 %v286_v18, %v825_v4  ;;  %v862_v27 = vadd.f32 %v287_v19, %v825_v4 }
  0x3a   :  { %v501_v28 = vand.u32 2147483647, %v237_v20  ;;  %v503_v29 = vcvt.f32.s32 %v237_v20  ;;  %v506_v30 = vand.u32 2147483648, %v237_v20  ;;  %v509_v31 = vand.u32 2147483647, %v238_v21 }
  0x3b   :  { %v511_v32 = vcvt.f32.s32 %v238_v21  ;;  %v514_v33 = vand.u32 2147483648, %v238_v21  ;;  %v517_v34 = vand.u32 2147483647, %v239_v22  ;;  %v519_v35 = vcvt.f32.s32 %v239_v22 }
  0x3c   :  { %vm864_vm0 = vcmp.lt.f32.partialorder %v501_v28, 8388608.0  ;;  %v504_v37 = vcvt.s32.f32 %v503_v29  ;;  %vm868_vm1 = vcmp.lt.f32.partialorder %v509_v31, 8388608.0  ;;  %v522_v39 = vand.u32 2147483648, %v239_v22 }
  0x3d   :  { %v512_v40 = vcvt.s32.f32 %v511_v32  ;;  %vm872_vm2 = vcmp.lt.f32.partialorder %v517_v34, 8388608.0  ;;  %v520_v42 = vcvt.s32.f32 %v519_v35  ;;  %v525_v43 = vand.u32 2147483647, %v240_v23 }
  0x3e   :  { %v505_v44 = vand.u32 2147483647, %v504_v37  ;;  %v527_v45 = vcvt.f32.s32 %v240_v23  ;;  %v530_v46 = vand.u32 2147483648, %v240_v23  ;;  %v533_v47 = vand.u32 2147483647, %v288_v24 }
  0x3f   :  { %v513_v48 = vand.u32 2147483647, %v512_v40  ;;  %v521_v49 = vand.u32 2147483647, %v520_v42  ;;  %vm876_vm3 = vcmp.lt.f32.partialorder %v525_v43, 8388608.0  ;;  %v535_v51 = vcvt.f32.s32 %v288_v24 }
  0x40   :  { %v507_v52 = vor.u32 %v506_v30, %v505_v44  ;;  %v528_v53 = vcvt.s32.f32 %v527_v45  ;;  %vm880_vm4 = vcmp.lt.f32.partialorder %v533_v47, 8388608.0  ;;  %v538_v55 = vand.u32 2147483648, %v288_v24 }
  0x41   :  { %v515_v56 = vor.u32 %v514_v33, %v513_v48  ;;  %v523_v57 = vor.u32 %v522_v39, %v521_v49  ;;  %v536_v58 = vcvt.s32.f32 %v535_v51  ;;  %v541_v59 = vand.u32 2147483647, %v856_v25 }
  0x42   :  { %v508_v61 = vsel %vm864_vm0, %v507_v52, %v237_v20  ;;  %v529_v62 = vand.u32 2147483647, %v528_v53  ;;  %v543_v63 = vcvt.f32.s32 %v856_v25  ;;  %v546_v0 = vand.u32 2147483648, %v856_v25 }
  0x43   :  { %v245_v12 = vmax.f32 %v508_v61, 0.0  ;;  %v516_v13 = vsel %vm868_vm1, %v515_v56, %v238_v21  ;;  %v524_v14 = vsel %vm872_vm2, %v523_v57, %v239_v22  ;;  %v537_v15 = vand.u32 2147483647, %v536_v58 }
  0x44   :  { %v246_v16 = vmax.f32 %v516_v13, 0.0  ;;  %v247_v17 = vmax.f32 %v524_v14, 0.0  ;;  %v531_v18 = vor.u32 %v530_v46, %v529_v62  ;;  %vm893_vm5 = vcmp.lt.f32.partialorder %v541_v59, 8388608.0  ;;  %v325_v59 = vld [vmem:[#allocation4 + $0x130] sm:$0x7] }
  0x45   :  { %v249_v20 = vmin.f32 %v245_v12, 255.0  ;;  %v539_v28 = vor.u32 %v538_v55, %v537_v15  ;;  %v544_v29 = vcvt.s32.f32 %v543_v63  ;;  %v549_v30 = vand.u32 2147483647, %v859_v26 }
  0x46   :  { %v250_v31 = vmin.f32 %v246_v16, 255.0  ;;  %v251_v32 = vmin.f32 %v247_v17, 255.0  ;;  %v532_v21 = vsel %vm876_vm3, %v531_v18, %v240_v23  ;;  %v551_v22 = vcvt.f32.s32 %v859_v26 }
  0x47   :  { %v253_v33 = vsub.f32 %v249_v20, %v825_v4  ;;  %v248_v34 = vmax.f32 %v532_v21, 0.0  ;;  %v540_v35 = vsel %vm880_vm4, %v539_v28, %v288_v24  ;;  %v545_v36 = vand.u32 2147483647, %v544_v29 }
  0x48   :  { %v254_v37 = vsub.f32 %v250_v31, %v825_v4  ;;  %v255_v38 = vsub.f32 %v251_v32, %v825_v4  ;;  %v296_v39 = vmax.f32 %v540_v35, 0.0  ;;  %vm906_vm6 = vcmp.lt.f32.partialorder %v549_v30, 8388608.0  ;;  %v373_v35 = vld [vmem:[#allocation4 + $0x18] sm:$0xff] }
  0x49   :  { %v258_v23 = vmul.f32 %v828_v5, %v253_v33  ;;  %v252_v41 = vmin.f32 %v248_v34, 255.0  ;;  %v547_v42 = vor.u32 %v546_v0, %v545_v36  ;;  %v552_v43 = vcvt.s32.f32 %v551_v22  ;;  %v330_v0 = vld [vmem:[#allocation4 + $0xe8] sm:$0x7] }
  0x4a   :  { %v259_v44 = vmul.f32 %v828_v5, %v254_v37  ;;  %v260_v45 = vmul.f32 %v828_v5, %v255_v38  ;;  %v300_v24 = vmin.f32 %v296_v39, 255.0  ;;  %v554_v46 = vand.u32 2147483648, %v859_v26  ;;  %v374_v36 = vld [vmem:[#allocation4 + $0xc8] sm:$0x7] }
  0x4b   :  { %v262_v47 = vmax.f32 %v258_v23, 0.0  ;;  %v256_v48 = vsub.f32 %v252_v41, %v825_v4  ;;  %v548_v49 = vsel %vm893_vm5, %v547_v42, %v856_v25  ;;  %v553_v50 = vand.u32 2147483647, %v552_v43  ;;  %v378_v23 = vld [vmem:[#allocation4 + $0x70] sm:$0xff]  ;;  %v429_v41 = vld [vmem:[#allocation4 + $0x8] sm:$0xff] }
  0x4c   :  { %v263_v51 = vmax.f32 %v259_v44, 0.0  ;;  %v264_v52 = vmax.f32 %v260_v45, 0.0  ;;  %v304_v53 = vsub.f32 %v300_v24, %v825_v4  ;;  %v297_v54 = vmax.f32 %v548_v49, 0.0  ;;  %v379_v44 = vld [vmem:[#allocation4 + $0x20] sm:$0x7] }
  0x4d   :  { %266 = vst [vmem:[%s1119_s2] sm:$0xff] %v262_v47  ;;  %v261_v55 = vmul.f32 %v828_v5, %v256_v48  ;;  %v555_v56 = vor.u32 %v554_v46, %v553_v50  ;;  %v557_v57 = vand.u32 2147483647, %v862_v27  ;;  %v559_v58 = vcvt.f32.s32 %v862_v27  ;;  %v430_v49 = vld [vmem:[#allocation4 + $0x98] sm:$0x7] }
  0x4e   :  { %267 = vst [vmem:[%s1119_s2 + $0x8] sm:$0x7] %v263_v51  ;;  %v308_v25 = vmul.f32 %v304_v53, %v828_v5  ;;  %v301_v61 = vmin.f32 %v297_v54, 255.0  ;;  %v562_v62 = vand.u32 2147483648, %v862_v27  ;;  %v335_v63 = vmul.f32 %v331_v9, %v834_v8  ;;  %v380_v53 = vld [vmem:[#allocation4 + $0x30] sm:$0xff] }
  0x4f   :  { %268 = vst [vmem:[%s1119_s2 + $0x50] sm:$0xff] %v264_v52  ;;  %v265_v12 = vmax.f32 %v261_v55, 0.0  ;;  %v556_v13 = vsel %vm906_vm6, %v555_v56, %v859_v26  ;;  %vm940_vm7 = vcmp.lt.f32.partialorder %v557_v57, 8388608.0  ;;  %v560_v15 = vcvt.s32.f32 %v559_v58  ;;  %v375_v52 = vld [vmem:[#allocation4 + $0x58] sm:$0xff] }
  0x50   :  { %v312_v16 = vmax.f32 %v308_v25, 0.0  ;;  %v305_v17 = vsub.f32 %v301_v61, %v825_v4  ;;  %v298_v60 = vmax.f32 %v556_v13, 0.0  ;;  %v339_v1 = vadd.f32 %v335_v63, %v825_v4 }
  0x51   :  { %269 = vst [vmem:[%s1119_s2 + $0x58] sm:$0x7] %v265_v12  ;;  %v561_v9 = vand.u32 2147483647, %v560_v15  ;;  %v336_v26 = vmul.f32 %v332_v10, %v834_v8  ;;  %v337_v18 = vmul.f32 %v333_v11, %v834_v8  ;;  %v334_v19 = vmax.f32 %v325_v59, %v330_v0 }
  0x52   :  { %485 = vst [vmem:[%s1119_s2 + $0x10] sm:$0xff] %v312_v16  ;;  %v309_v20 = vmul.f32 %v305_v17, %v828_v5  ;;  %v302_v28 = vmin.f32 %v298_v60, 255.0  ;;  %v565_v29 = vand.u32 2147483647, %v339_v1  ;;  %v567_v30 = vcvt.f32.s32 %v339_v1 }
  0x53   :  { %v563_v31 = vor.u32 %v562_v62, %v561_v9  ;;  %v570_v32 = vand.u32 2147483648, %v339_v1  ;;  %v340_v2 = vadd.f32 %v336_v26, %v825_v4  ;;  %v341_v3 = vadd.f32 %v337_v18, %v825_v4 }
  0x54   :  { %v313_v10 = vmax.f32 %v309_v20, 0.0  ;;  %v306_v6 = vsub.f32 %v302_v28, %v825_v4  ;;  %vm964_vm8 = vcmp.lt.f32.partialorder %v565_v29, 8388608.0  ;;  %v568_v11 = vcvt.s32.f32 %v567_v30  ;;  %v376_v20 = vld [vmem:[#allocation4 + $0x78] sm:$0x7]  ;;  %v381_v28 = vld [vmem:[#allocation4 + $0x40] sm:$0x7] }
  0x55   :  { %v564_v21 = vsel %vm940_vm7, %v563_v31, %v862_v27  ;;  %v573_v22 = vand.u32 2147483647, %v340_v2  ;;  %v575_v33 = vcvt.f32.s32 %v340_v2  ;;  %v578_v34 = vand.u32 2147483648, %v340_v2 }
  0x56   :  { %486 = vst [vmem:[%s1119_s2 + $0x18] sm:$0x7] %v313_v10  ;;  %v310_v37 = vmul.f32 %v306_v6, %v828_v5  ;;  %v299_v38 = vmax.f32 %v564_v21, 0.0  ;;  %v569_v39 = vand.u32 2147483647, %v568_v11  ;;  %v583_v40 = vcvt.f32.s32 %v341_v3 }
  0x57   :  { %vm975_vm9 = vcmp.lt.f32.partialorder %v573_v22, 8388608.0  ;;  %v576_v27 = vcvt.s32.f32 %v575_v33  ;;  %v581_v42 = vand.u32 2147483647, %v341_v3  ;;  %v586_v43 = vand.u32 2147483648, %v341_v3 }
  0x58   :  { %v314_v45 = vmax.f32 %v310_v37, 0.0  ;;  %v303_v24 = vmin.f32 %v299_v38, 255.0  ;;  %v571_v46 = vor.u32 %v570_v32, %v569_v39  ;;  %v584_v47 = vcvt.s32.f32 %v583_v40 }
  0x59   :  { %v577_v48 = vand.u32 2147483647, %v576_v27  ;;  %vm979_vm10 = vcmp.lt.f32.partialorder %v581_v42, 8388608.0  ;;  %v338_v50 = vmul.f32 %v334_v19, %v834_v8  ;;  %v382_v51 = vmax.f32 %v373_v35, %v378_v23  ;;  %v424_v23 = vld [vmem:[#allocation4 + $0x128] sm:$0xff] }
  0x5a   :  { %487 = vst [vmem:[%s1119_s2 + $0x60] sm:$0xff] %v314_v45  ;;  %v307_v54 = vsub.f32 %v303_v24, %v825_v4  ;;  %v572_v55 = vsel %vm964_vm8, %v571_v46, %v339_v1  ;;  %v585_v56 = vand.u32 2147483647, %v584_v47  ;;  %v383_v57 = vmax.f32 %v374_v36, %v379_v44  ;;  %v425_v45 = vld [vmem:[#allocation4 + $0x110] sm:$0x7] }
  0x5b   :  { %v347_v58 = vmax.f32 %v572_v55, 0.0  ;;  %v579_v59 = vor.u32 %v578_v34, %v577_v48  ;;  %v342_v25 = vadd.f32 %v338_v50, %v825_v4  ;;  %v386_v61 = vmul.f32 %v382_v51, %v834_v8 }
  0x5c   :  { %v311_v62 = vmul.f32 %v307_v54, %v828_v5  ;;  %v587_v63 = vor.u32 %v586_v43, %v585_v56  ;;  %v387_v0 = vmul.f32 %v383_v57, %v834_v8  ;;  %v384_v12 = vmax.f32 %v375_v52, %v380_v53 }
  0x5d   :  { %v351_v13 = vmin.f32 %v347_v58, 255.0  ;;  %v580_v14 = vsel %vm975_vm9, %v579_v59, %v340_v2  ;;  %v589_v15 = vand.u32 2147483647, %v342_v25  ;;  %v591_v16 = vcvt.f32.s32 %v342_v25 }
  0x5e   :  { %v315_v17 = vmax.f32 %v311_v62, 0.0  ;;  %v348_v60 = vmax.f32 %v580_v14, 0.0  ;;  %v588_v1 = vsel %vm979_vm10, %v587_v63, %v341_v3  ;;  %v594_v19 = vand.u32 2147483648, %v342_v25 }
  0x5f   :  { %v355_v9 = vsub.f32 %v351_v13, %v825_v4  ;;  %v349_v26 = vmax.f32 %v588_v1, 0.0  ;;  %v592_v18 = vcvt.s32.f32 %v591_v16  ;;  %vm1002_vm11 = vcmp.lt.f32.partialorder %v589_v15, 8388608.0 }
  0x60   :  { %488 = vst [vmem:[%s1119_s2 + $0x68] sm:$0x7] %v315_v17  ;;  %v352_v29 = vmin.f32 %v348_v60, 255.0  ;;  %v390_v31 = vadd.f32 %v386_v61, %v825_v4  ;;  %v391_v32 = vadd.f32 %v387_v0, %v825_v4  ;;  %v388_v6 = vmul.f32 %v384_v12, %v834_v8 }
  0x61   :  { %v359_v2 = vmul.f32 %v355_v9, %v828_v5  ;;  %v353_v3 = vmin.f32 %v349_v26, 255.0  ;;  %v593_v10 = vand.u32 2147483647, %v592_v18  ;;  %v385_v22 = vmax.f32 %v376_v20, %v381_v28 }
  0x62   :  { %v356_v7 = vsub.f32 %v352_v29, %v825_v4  ;;  %v597_v11 = vand.u32 2147483647, %v390_v31  ;;  %v599_v21 = vcvt.f32.s32 %v390_v31  ;;  %v602_v36 = vand.u32 2147483648, %v390_v31 }
  0x63   :  { %v363_v33 = vmax.f32 %v359_v2, 0.0  ;;  %v357_v34 = vsub.f32 %v353_v3, %v825_v4  ;;  %v595_v35 = vor.u32 %v594_v19, %v593_v10  ;;  %v605_v39 = vand.u32 2147483647, %v391_v32  ;;  %v426_v2 = vld [vmem:[#allocation4 + $0x28] sm:$0xff]  ;;  %v431_v3 = vld [vmem:[#allocation4 + $0xb8] sm:$0xff] }
  0x64   :  { %v360_v37 = vmul.f32 %v356_v7, %v828_v5  ;;  %v600_v38 = vcvt.s32.f32 %v599_v21  ;;  %v607_v40 = vcvt.f32.s32 %v391_v32  ;;  %vm1019_vm12 = vcmp.lt.f32.partialorder %v597_v11, 8388608.0 }
  0x65   :  { %489 = vst [vmem:[%s1119_s2 + $0x20] sm:$0xff] %v363_v33  ;;  %v361_v27 = vmul.f32 %v357_v34, %v828_v5  ;;  %v596_v42 = vsel %vm1002_vm11, %v595_v35, %v342_v25  ;;  %v610_v44 = vand.u32 2147483648, %v391_v32  ;;  %v392_v51 = vadd.f32 %v388_v6, %v825_v4 }
  0x66   :  { %v364_v24 = vmax.f32 %v360_v37, 0.0  ;;  %v350_v46 = vmax.f32 %v596_v42, 0.0  ;;  %v601_v47 = vand.u32 2147483647, %v600_v38  ;;  %v608_v48 = vcvt.s32.f32 %v607_v40 }
  0x67   :  { %v365_v50 = vmax.f32 %v361_v27, 0.0  ;;  %v389_v52 = vmul.f32 %v385_v22, %v834_v8  ;;  %v433_v53 = vmax.f32 %v424_v23, %v429_v41  ;;  %vm1028_vm13 = vcmp.lt.f32.partialorder %v605_v39, 8388608.0  ;;  %v427_v41 = vld [vmem:[#allocation4] sm:$0x7] }
  0x68   :  { %490 = vst [vmem:[%s1119_s2 + $0x28] sm:$0x7] %v364_v24  ;;  %v354_v54 = vmin.f32 %v350_v46, 255.0  ;;  %v603_v55 = vor.u32 %v602_v36, %v601_v47  ;;  %v609_v57 = vand.u32 2147483647, %v608_v48  ;;  %v615_v59 = vcvt.f32.s32 %v392_v51 }
  0x69   :  { %491 = vst [vmem:[%s1119_s2 + $0x70] sm:$0xff] %v365_v50  ;;  %v613_v58 = vand.u32 2147483647, %v392_v51  ;;  %v393_v25 = vadd.f32 %v389_v52, %v825_v4  ;;  %v434_v61 = vmax.f32 %v425_v45, %v430_v49  ;;  %v437_v12 = vmul.f32 %v433_v53, %v834_v8  ;;  %v432_v45 = vld [vmem:[#allocation4 + $0x60] sm:$0x7] }
  0x6a   :  { %v358_v62 = vsub.f32 %v354_v54, %v825_v4  ;;  %v604_v63 = vsel %vm1019_vm12, %v603_v55, %v390_v31  ;;  %v611_v0 = vor.u32 %v610_v44, %v609_v57  ;;  %v616_v14 = vcvt.s32.f32 %v615_v59 }
  0x6b   :  { %v398_v13 = vmax.f32 %v604_v63, 0.0  ;;  %v618_v15 = vand.u32 2147483648, %v392_v51  ;;  %v621_v16 = vand.u32 2147483647, %v393_v25  ;;  %vm1043_vm14 = vcmp.lt.f32.partialorder %v613_v58, 8388608.0 }
  0x6c   :  { %v362_v17 = vmul.f32 %v358_v62, %v828_v5  ;;  %v612_v60 = vsel %vm1028_vm13, %v611_v0, %v391_v32  ;;  %v623_v9 = vcvt.f32.s32 %v393_v25  ;;  %v617_v19 = vand.u32 2147483647, %v616_v14 }
  0x6d   :  { %v402_v26 = vmin.f32 %v398_v13, 255.0  ;;  %v399_v18 = vmax.f32 %v612_v60, 0.0  ;;  %v626_v20 = vand.u32 2147483648, %v393_v25  ;;  %v441_v30 = vadd.f32 %v437_v12, %v825_v4 }
  0x6e   :  { %v366_v28 = vmax.f32 %v362_v17, 0.0  ;;  %v624_v29 = vcvt.s32.f32 %v623_v9  ;;  %v438_v31 = vmul.f32 %v434_v61, %v834_v8  ;;  %v619_v6 = vor.u32 %v618_v15, %v617_v19 }
  0x6f   :  { %v406_v10 = vsub.f32 %v402_v26, %v825_v4  ;;  %v403_v32 = vmin.f32 %v399_v18, 255.0  ;;  %vm1050_vm15 = vcmp.lt.f32.partialorder %v621_v16, 8388608.0  ;;  %v629_v21 = vand.u32 2147483647, %v441_v30 }
  0x70   :  { %492 = vst [vmem:[%s1119_s2 + $0x78] sm:$0x7] %v366_v28  ;;  %v625_v11 = vand.u32 2147483647, %v624_v29  ;;  %v631_v22 = vcvt.f32.s32 %v441_v30  ;;  %v442_v33 = vadd.f32 %v438_v31, %v825_v4  ;;  %v620_v36 = vsel %vm1043_vm14, %v619_v6, %v392_v51 }
  0x71   :  { %v410_v34 = vmul.f32 %v406_v10, %v828_v5  ;;  %v407_v35 = vsub.f32 %v403_v32, %v825_v4  ;;  %v435_v37 = vmax.f32 %v426_v2, %v431_v3  ;;  %v400_v38 = vmax.f32 %v620_v36, 0.0 }
  0x72   :  { %v627_v39 = vor.u32 %v626_v20, %v625_v11  ;;  %v632_v40 = vcvt.s32.f32 %v631_v22  ;;  %v634_v23 = vand.u32 2147483648, %v441_v30  ;;  %v637_v43 = vand.u32 2147483647, %v442_v33 }
  0x73   :  { %v414_v27 = vmax.f32 %v410_v34, 0.0  ;;  %v411_v42 = vmul.f32 %v407_v35, %v828_v5  ;;  %v639_v44 = vcvt.f32.s32 %v442_v33  ;;  %v404_v24 = vmin.f32 %v400_v38, 255.0 }
  0x74   :  { %v628_v46 = vsel %vm1050_vm15, %v627_v39, %v393_v25  ;;  %vm1065_vm0 = vcmp.lt.f32.partialorder %v629_v21, 8388608.0  ;;  %v633_v48 = vand.u32 2147483647, %v632_v40  ;;  %v642_v52 = vand.u32 2147483648, %v442_v33 }
  0x75   :  { %493 = vst [vmem:[%s1119_s2 + $0x30] sm:$0xff] %v414_v27  ;;  %v415_v49 = vmax.f32 %v411_v42, 0.0  ;;  %v401_v50 = vmax.f32 %v628_v46, 0.0  ;;  %v640_v51 = vcvt.s32.f32 %v639_v44  ;;  %v408_v53 = vsub.f32 %v404_v24, %v825_v4 }
  0x76   :  { %v635_v54 = vor.u32 %v634_v23, %v633_v48  ;;  %v439_v55 = vmul.f32 %v435_v37, %v834_v8  ;;  %v436_v56 = vmax.f32 %v427_v41, %v432_v45  ;;  %vm1077_vm1 = vcmp.lt.f32.partialorder %v637_v43, 8388608.0 }
  0x77   :  { %494 = vst [vmem:[%s1119_s2 + $0x38] sm:$0x7] %v415_v49  ;;  %v405_v57 = vmin.f32 %v401_v50, 255.0  ;;  %v641_v59 = vand.u32 2147483647, %v640_v51  ;;  %v412_v25 = vmul.f32 %v408_v53, %v828_v5 }
  0x78   :  { %v636_v61 = vsel %vm1065_vm0, %v635_v54, %v441_v30  ;;  %v443_v62 = vadd.f32 %v439_v55, %v825_v4  ;;  %v440_v63 = vmul.f32 %v436_v56, %v834_v8 }
  0x79   :  { %v409_v0 = vsub.f32 %v405_v57, %v825_v4  ;;  %v449_v12 = vmax.f32 %v636_v61, 0.0  ;;  %v643_v13 = vor.u32 %v642_v52, %v641_v59  ;;  %v416_v14 = vmax.f32 %v412_v25, 0.0 }
  0x7a   :  { %v645_v15 = vand.u32 2147483647, %v443_v62  ;;  %v647_v16 = vcvt.f32.s32 %v443_v62  ;;  %v444_v9 = vadd.f32 %v440_v63, %v825_v4  ;;  %v650_v18 = vand.u32 2147483648, %v443_v62 }
  0x7b   :  { %v413_v17 = vmul.f32 %v409_v0, %v828_v5  ;;  %v453_v60 = vmin.f32 %v449_v12, 255.0  ;;  %v644_v1 = vsel %vm1077_vm1, %v643_v13, %v442_v33  ;;  %495 = vst [vmem:[%s1119_s2 + $0x80] sm:$0xff] %v416_v14 }
  0x7c   :  { %v450_v8 = vmax.f32 %v644_v1, 0.0  ;;  %v648_v26 = vcvt.s32.f32 %v647_v16  ;;  %v655_v28 = vcvt.f32.s32 %v444_v9  ;;  %v653_v31 = vand.u32 2147483647, %v444_v9 }
  0x7d   :  { %v417_v19 = vmax.f32 %v413_v17, 0.0  ;;  %v457_v20 = vsub.f32 %v453_v60, %v825_v4  ;;  %vm646_vm2 = vcmp.lt.f32.partialorder %v645_v15, 8388608.0  ;;  %v658_v10 = vand.u32 2147483648, %v444_v9 }
  0x7e   :  { %v454_v29 = vmin.f32 %v450_v8, 255.0  ;;  %v649_v30 = vand.u32 2147483647, %v648_v26  ;;  %v656_v3 = vcvt.s32.f32 %v655_v28  ;;  %vm654_vm3 = vcmp.lt.f32.partialorder %v653_v31, 8388608.0 }
  0x7f   :  { %496 = vst [vmem:[%s1119_s2 + $0x88] sm:$0x7] %v417_v19  ;;  %v461_v2 = vmul.f32 %v457_v20, %v828_v5 }
  0x80   :  { %v458_v32 = vsub.f32 %v454_v29, %v825_v4  ;;  %v651_v6 = vor.u32 %v650_v18, %v649_v30  ;;  %v657_v11 = vand.u32 2147483647, %v656_v3 }
  0x81   :  { %v465_v7 = vmax.f32 %v461_v2, 0.0 }
  0x82   :  { %v462_v21 = vmul.f32 %v458_v32, %v828_v5  ;;  %v652_v22 = vsel %vm646_vm2, %v651_v6, %v443_v62  ;;  %v659_v34 = vor.u32 %v658_v10, %v657_v11 }
  0x83   :  { %497 = vst [vmem:[%s1119_s2 + $0x40] sm:$0xff] %v465_v7  ;;  %v451_v33 = vmax.f32 %v652_v22, 0.0 }
  0x84   :  { %v466_v35 = vmax.f32 %v462_v21, 0.0  ;;  %v660_v37 = vsel %vm654_vm3, %v659_v34, %v444_v9 }
  0x85   :  { %v455_v36 = vmin.f32 %v451_v33, 255.0  ;;  %v452_v38 = vmax.f32 %v660_v37, 0.0 }
  0x86   :  { %498 = vst [vmem:[%s1119_s2 + $0x48] sm:$0x7] %v466_v35 }
  0x87   :  { %v459_v39 = vsub.f32 %v455_v36, %v825_v4  ;;  %v456_v40 = vmin.f32 %v452_v38, 255.0 }
  0x89   :  { %v463_v23 = vmul.f32 %v459_v39, %v828_v5  ;;  %v460_v41 = vsub.f32 %v456_v40, %v825_v4 }
  0x8b   :  { %v467_v27 = vmax.f32 %v463_v23, 0.0  ;;  %v464_v42 = vmul.f32 %v460_v41, %v828_v5 }
  0x8d   :  { %499 = vst [vmem:[%s1119_s2 + $0x90] sm:$0xff] %v467_v27  ;;  %v468_v43 = vmax.f32 %v464_v42, 0.0 }
  0x8f   :  { %500 = vst [vmem:[%s1119_s2 + $0x98] sm:$0x7] %v468_v43 }
  0x90   :  { %478 = vsyncpa [#allocation3], 1 }

// kernel: net_forward.11
= control target key start
LH: loop header
LB: loop body
LE: loop exit
PB: predicated region body
PF: predicated region fallthrough
CT: control target
= control target key end

     0   :  { %7 = vsyncpa [#allocation4], 0  ;;  %s135_s0 = inlined_call_operand.vmem [shape: f32[3], index: 0, kind: input, shape index: {}]   ;;  %s136_s1 = inlined_call_operand.vmem [shape: f32[2,128], index: 1, kind: input, shape index: {}]   ;;  %s137_s2 = inlined_call_operand.hbm [shape: f32[2,128], index: 2, kind: output, shape index: {}]  }
   0x1   :  { %8 = vsyncpa [#allocation3], 0  ;;  %s14_s11 = sshll.u32 %s135_s0, 4  ;;  %s109_s12 = smov [#allocation2]   ;;  %s15_s11 = int_to_ptr.vmem [resolvable:$true] %s14_s11 }
   0x2   :  { %17 = dma.vmem_to_smem %s15_s11, 16, %s109_s12, [#allocation4]  }
   0x3   :  { %105 = dma.done.wait [#allocation4], 16  }
   0x4   :  { %106 = vsyncadd [#allocation4], 4294967280 }
   0x5   :  { %24 = sfence }
   0x6   :  { %s57_s13 = sld [smem:[#allocation2 + $0x1]]  ;;  %v28_v0 = vld [vmem:[%s136_s1] sm:$0x3]  ;;  %s110_s17 = smov [#allocation5]  }
   0x7   :  { %s58_s14 = sld [smem:[#allocation2 + $0x2]]  ;;  %s45_s18 = sshll.u32 %s110_s17, 4  ;;  %s46_s18 = int_to_ptr.vmem [resolvable:$true] %s45_s18 }
   0x8   :  { %s25_s0 = sld [smem:[#allocation2]]  ;;  %s47_s20 = sshll.u32 %s137_s2, 4  ;;  %s48_s20 = int_to_ptr.hbm [resolvable:$true] %s47_s20 }
   0xc   :  { %v31_v2 = vstv %s57_s13 }
   0xd   :  { %v29_v1 = vstv %s58_s14 }
   0xe   :  { %v30_v3 = vmul.f32 %v29_v1, %v28_v0  ;;  %v37_v14 = vstv %s25_s0 }
  0x10   :  { %v32_v4 = vadd.f32 %v31_v2, %v30_v3 }
  0x12   :  { %v61_v5 = vcvt.f32.s32 %v32_v4  ;;  %v59_v6 = vand.u32 2147483647, %v32_v4  ;;  %v64_v8 = vand.u32 2147483648, %v32_v4 }
  0x14   :  { %v62_v7 = vcvt.s32.f32 %v61_v5  ;;  %vm60_vm0 = vcmp.lt.f32.partialorder %v59_v6, 8388608.0 }
  0x16   :  { %v63_v9 = vand.u32 2147483647, %v62_v7 }
  0x18   :  { %v65_v10 = vor.u32 %v64_v8, %v63_v9 }
  0x1a   :  { %v66_v11 = vsel %vm60_vm0, %v65_v10, %v32_v4 }
  0x1b   :  { %v34_v12 = vmax.f32 %v66_v11, 0.0 }
  0x1d   :  { %v35_v13 = vmin.f32 %v34_v12, 255.0 }
  0x1f   :  { %v36_v15 = vsub.f32 %v35_v13, %v31_v2 }
  0x21   :  { %v38_v16 = vmul.f32 %v37_v14, %v36_v15 }
  0x23   :  { %39 = vst [vmem:[#allocation5] sm:$0x3] %v38_v16 }
  0x24   :  { %50 = dma.vmem_to_hbm [thread:$0]  %s46_s18, 32, %s48_s20, [#allocation3]  }
  0x25   :  { %107 = dma.done.wait [#allocation3], 32  }
  0x26   :  { %108 = vsyncadd [#allocation3], 4294967264 }
  0x27   :  { %55 = vsyncpa [#allocation3], 1 }
  0x28   :  { %56 = vsyncpa [#allocation4], 1 }

// kernel: net_forward.10
= control target key start
LH: loop header
LB: loop body
LE: loop exit
PB: predicated region body
PF: predicated region fallthrough
CT: control target
= control target key end

     0   :  { %8 = vsyncpa [#allocation3], 0  ;;  %s1038_s15 = smov [#allocation2]   ;;  %s1275_s0 = inlined_call_operand.vmem [shape: f32[3], index: 0, kind: input, shape index: {}]   ;;  %s1276_s1 = inlined_call_operand.vmem [shape: f32[2,1000], index: 1, kind: input, shape index: {}]   ;;  %s1277_s2 = inlined_call_operand.vmem [shape: bf16[1000,128], index: 2, kind: input, shape index: {}]   ;;  %s1278_s3 = inlined_call_operand.vmem [shape: f32[2,128], index: 3, kind: output, shape index: {}]  }
   0x1   :  { %s14_s14 = sshll.u32 %s1275_s0, 4  ;;  %s15_s14 = int_to_ptr.vmem [resolvable:$true] %s14_s14 }
   0x2   :  { %17 = dma.vmem_to_smem %s15_s14, 16, %s1038_s15, [#allocation3]  }
   0x3   :  { %1036 = dma.done.wait [#allocation3], 16  }
   0x4   :  { %1037 = vsyncadd [#allocation3], 4294967280 }
   0x5   :  { %26 = sfence }
   0x6   :  { %v952_v0 = vld [vmem:[%s1277_s2 + $0x38] sm:$0xff]  ;;  %v951_v4 = vld [vmem:[%s1277_s2 + $0x30] sm:$0xff]  ;;  %s28_s4 = sld [smem:[#allocation2]]  ;;  %v950_v8 = vld [vmem:[%s1277_s2 + $0x28] sm:$0xff]  ;;  %vm578_vm2 = vcmask 1043456   ;;  %vm574_vm3 = vcmask 850944  }
   0x7   :  { %v960_v1 = vld [vmem:[%s1277_s2 + $0x78] sm:$0xff]  ;;  %582 = vmatpush.bf16.msra.mxu0 %v952_v0  ;;  %v959_v5 = vld [vmem:[%s1277_s2 + $0x70] sm:$0xff]  ;;  %s1086_s5 = sld [smem:[#allocation2 + $0x1]]  ;;  %v958_v9 = vld [vmem:[%s1277_s2 + $0x68] sm:$0xff] }
   0x8   :  { %v968_v2 = vld [vmem:[%s1277_s2 + $0xb8] sm:$0xff]  ;;  %595 = vmatpush.bf16.msra.mxu1 %v960_v1  ;;  %v967_v6 = vld [vmem:[%s1277_s2 + $0xb0] sm:$0xff]  ;;  %v966_v10 = vld [vmem:[%s1277_s2 + $0xa8] sm:$0xff] }
   0x9   :  { %v976_v3 = vld [vmem:[%s1277_s2 + $0xf8] sm:$0xff]  ;;  %608 = vmatpush.bf16.msra.mxu2 %v968_v2  ;;  %v975_v7 = vld [vmem:[%s1277_s2 + $0xf0] sm:$0xff]  ;;  %v974_v11 = vld [vmem:[%s1277_s2 + $0xe8] sm:$0xff] }
   0xa   :  { %621 = vmatpush.bf16.msra.mxu3 %v976_v3  ;;  %v949_v12 = vld [vmem:[%s1277_s2 + $0x20] sm:$0xff]  ;;  %v32_v18 = vld [vmem:[%s1276_s1 + $0x8] sm:$0xff]  ;;  %v948_v20 = vld [vmem:[%s1277_s2 + $0x18] sm:$0xff] }
   0xb   :  { %583 = vmatpush.bf16.msra.mxu0 %v951_v4  ;;  %v957_v13 = vld [vmem:[%s1277_s2 + $0x60] sm:$0xff]  ;;  %v956_v21 = vld [vmem:[%s1277_s2 + $0x58] sm:$0xff]  ;;  %v947_v28 = vld [vmem:[%s1277_s2 + $0x10] sm:$0xff] }
   0xc   :  { %596 = vmatpush.bf16.msra.mxu1 %v959_v5  ;;  %v965_v14 = vld [vmem:[%s1277_s2 + $0xa0] sm:$0xff]  ;;  %v33_v16 = vstv %s28_s4  ;;  %v964_v24 = vld [vmem:[%s1277_s2 + $0x98] sm:$0xff]  ;;  %v955_v29 = vld [vmem:[%s1277_s2 + $0x50] sm:$0xff] }
   0xd   :  { %609 = vmatpush.bf16.msra.mxu2 %v967_v6  ;;  %v973_v15 = vld [vmem:[%s1277_s2 + $0xe0] sm:$0xff]  ;;  %v36_v19 = vstv %s1086_s5  ;;  %v35_v23 = vmul.f32 %v33_v16, %v32_v18  ;;  %v972_v25 = vld [vmem:[%s1277_s2 + $0xd8] sm:$0xff]  ;;  %v963_v31 = vld [vmem:[%s1277_s2 + $0x90] sm:$0xff] }
   0xe   :  { %622 = vmatpush.bf16.msra.mxu3 %v975_v7  ;;  %v31_v17 = vld [vmem:[%s1276_s1] sm:$0xff]  ;;  %v971_v32 = vld [vmem:[%s1277_s2 + $0xd0] sm:$0xff]  ;;  %v946_v41 = vld [vmem:[%s1277_s2 + $0x8] sm:$0xff] }
   0xf   :  { %584 = vmatpush.bf16.msra.mxu0 %v950_v8  ;;  %v34_v22 = vmul.f32 %v33_v16, %v31_v17  ;;  %v38_v27 = vadd.f32 %v36_v19, %v35_v23  ;;  %v198_v33 = vld [vmem:[%s1277_s2 + $0x1f0] sm:$0xf]  ;;  %v954_v42 = vld [vmem:[%s1277_s2 + $0x48] sm:$0xff]  ;;  %v945_v52 = vld [vmem:[%s1277_s2] sm:$0xff] }
  0x10   :  { %597 = vmatpush.bf16.msra.mxu1 %v958_v9  ;;  %v448_v43 = vunpack.c.l.b16 %v198_v33  ;;  %v962_v45 = vld [vmem:[%s1277_s2 + $0x88] sm:$0xff]  ;;  %v953_v53 = vld [vmem:[%s1277_s2 + $0x40] sm:$0xff]  ;;  %v984_v60 = vld [vmem:[%s1277_s2 + $0x138] sm:$0xff] }
  0x11   :  { %610 = vmatpush.bf16.msra.mxu2 %v966_v10  ;;  %v37_v26 = vadd.f32 %v36_v19, %v34_v22  ;;  %v1017_v35 = vcvt.f32.s32 %v38_v27  ;;  %v1015_v38 = vand.u32 2147483647, %v38_v27  ;;  %v1020_v40 = vand.u32 2147483648, %v38_v27  ;;  %v970_v46 = vld [vmem:[%s1277_s2 + $0xc8] sm:$0xff]  ;;  %v961_v56 = vld [vmem:[%s1277_s2 + $0x80] sm:$0xff]  ;;  %v992_v61 = vld [vmem:[%s1277_s2 + $0x178] sm:$0xff] }
  0x12   :  { %623 = vmatpush.bf16.msra.mxu3 %v974_v11  ;;  %v511_v54 = vpack.c.b16 %v448_v43, %v448_v43  ;;  %v969_v57 = vld [vmem:[%s1277_s2 + $0xc0] sm:$0xff]  ;;  %v1000_v63 = vld [vmem:[%s1277_s2 + $0x1b8] sm:$0xff]  ;;  %v983_v3 = vld [vmem:[%s1277_s2 + $0x130] sm:$0xff] }
  0x13   :  { %585 = vmatpush.bf16.msra.mxu0 %v949_v12  ;;  %v1009_v30 = vcvt.f32.s32 %v37_v26  ;;  %v1007_v34 = vand.u32 2147483647, %v37_v26  ;;  %v1012_v37 = vand.u32 2147483648, %v37_v26  ;;  %v1018_v39 = vcvt.s32.f32 %v1017_v35  ;;  %v991_v4 = vld [vmem:[%s1277_s2 + $0x170] sm:$0xff]  ;;  %v1006_v6 = vld [vmem:[%s1277_s2 + $0x1e8] sm:$0xff]  ;;  %v1005_v10 = vld [vmem:[%s1277_s2 + $0x1e0] sm:$0xff] }
  0x14   :  { %598 = vmatpush.bf16.msra.mxu1 %v957_v13  ;;  %vm1162_vm1 = vcmp.lt.f32.partialorder %v1015_v38, 8388608.0  ;;  %v580_v1 = vsel %vm578_vm2, %v511_v54, 0  ;;  %v999_v5 = vld [vmem:[%s1277_s2 + $0x1b0] sm:$0xff]  ;;  %v982_v7 = vld [vmem:[%s1277_s2 + $0x128] sm:$0xff]  ;;  %v981_v19 = vld [vmem:[%s1277_s2 + $0x120] sm:$0xff] }
  0x15   :  { %611 = vmatpush.bf16.msra.mxu2 %v965_v14  ;;  %v1010_v36 = vcvt.s32.f32 %v1009_v30  ;;  %vm1158_vm0 = vcmp.lt.f32.partialorder %v1007_v34, 8388608.0  ;;  %v1019_v48 = vand.u32 2147483647, %v1018_v39  ;;  %v990_v8 = vld [vmem:[%s1277_s2 + $0x168] sm:$0xff]  ;;  %v1004_v22 = vld [vmem:[%s1277_s2 + $0x1d8] sm:$0xff]  ;;  %v1001_v34 = vld [vmem:[%s1277_s2 + $0x1c0] sm:$0xff] }
  0x16   :  { %624 = vmatpush.bf16.msra.mxu3 %v973_v15  ;;  %v998_v9 = vld [vmem:[%s1277_s2 + $0x1a8] sm:$0xff]  ;;  %v980_v23 = vld [vmem:[%s1277_s2 + $0x118] sm:$0xff] }
  0x17   :  { %586 = vmatpush.bf16.msra.mxu0 %v948_v20  ;;  %v1011_v44 = vand.u32 2147483647, %v1010_v36  ;;  %v1021_v51 = vor.u32 %v1020_v40, %v1019_v48  ;;  %v989_v20 = vld [vmem:[%s1277_s2 + $0x160] sm:$0xff]  ;;  %v1002_v30 = vld [vmem:[%s1277_s2 + $0x1c8] sm:$0xff] }
  0x18   :  { %599 = vmatpush.bf16.msra.mxu1 %v956_v21  ;;  %v997_v21 = vld [vmem:[%s1277_s2 + $0x1a0] sm:$0xff]  ;;  %v994_v33 = vld [vmem:[%s1277_s2 + $0x188] sm:$0xff] }
  0x19   :  { %612 = vmatpush.bf16.msra.mxu2 %v964_v24  ;;  %v1013_v49 = vor.u32 %v1012_v37, %v1011_v44  ;;  %v1022_v59 = vsel %vm1162_vm1, %v1021_v51, %v38_v27  ;;  %v988_v24 = vld [vmem:[%s1277_s2 + $0x158] sm:$0xff]  ;;  %v979_v27 = vld [vmem:[%s1277_s2 + $0x110] sm:$0xff]  ;;  %v977_v36 = vld [vmem:[%s1277_s2 + $0x100] sm:$0xff] }
  0x1a   :  { %625 = vmatpush.bf16.msra.mxu3 %v972_v25  ;;  %v42_v62 = vmax.f32 %v1022_v59, 0.0  ;;  %v996_v25 = vld [vmem:[%s1277_s2 + $0x198] sm:$0xff]  ;;  %v985_v37 = vld [vmem:[%s1277_s2 + $0x140] sm:$0xff] }
  0x1b   :  { %587 = vmatpush.bf16.msra.mxu0 %v947_v28  ;;  %v1014_v55 = vsel %vm1158_vm0, %v1013_v49, %v37_v26  ;;  %v1003_v26 = vld [vmem:[%s1277_s2 + $0x1d0] sm:$0xff] }
  0x1c   :  { %600 = vmatpush.bf16.msra.mxu1 %v955_v29  ;;  %v41_v58 = vmax.f32 %v1014_v55, 0.0  ;;  %v44_v2 = vmin.f32 %v42_v62, 255.0  ;;  %v987_v28 = vld [vmem:[%s1277_s2 + $0x150] sm:$0xff] }
  0x1d   :  { %613 = vmatpush.bf16.msra.mxu2 %v963_v31  ;;  %v995_v29 = vld [vmem:[%s1277_s2 + $0x190] sm:$0xff]  ;;  %v978_v31 = vld [vmem:[%s1277_s2 + $0x108] sm:$0xff] }
  0x1e   :  { %626 = vmatpush.bf16.msra.mxu3 %v971_v32  ;;  %v43_v0 = vmin.f32 %v41_v58, 255.0  ;;  %49 = vst [vmem:[#allocation1 + $0x20] ss:$4 sm:$0xff] %v44_v2  ;;  %v986_v32 = vld [vmem:[%s1277_s2 + $0x148] sm:$0xff] }
  0x1f   :  { %588 = vmatpush.bf16.msra.mxu0 %v946_v41  ;;  %v993_v41 = vld [vmem:[%s1277_s2 + $0x180] sm:$0xff]  ;;  %s695_s2 = sld [smem:[#allocation2 + $0x2]] }
  0x20   :  { %601 = vmatpush.bf16.msra.mxu1 %v954_v42  ;;  %47 = vst [vmem:[#allocation1] ss:$4 sm:$0xff] %v43_v0 }
  0x21   :  { %614 = vmatpush.bf16.msra.mxu2 %v962_v45 }
  0x22   :  { %627 = vmatpush.bf16.msra.mxu3 %v970_v46 }
  0x23   :  { %589 = vmatpush.bf16.msra.mxu0 %v945_v52 }
  0x24   :  { %602 = vmatpush.bf16.msra.mxu1 %v953_v53 }
  0x25   :  { %615 = vmatpush.bf16.msra.mxu2 %v961_v56  ;;  %v57_v35 = vld.sshfl [vmem:[#allocation1 + $0x38] sm:$0xff pattern:$0x73625140]  ;;  %v54_v38 = vld.sshfl [vmem:[#allocation1 + $0x20] sm:$0xff pattern:$0x73625140]  ;;  %v686_v2 = vstv %s695_s2 }
  0x26   :  { %628 = vmatpush.bf16.msra.mxu3 %v969_v57  ;;  %v55_v39 = vld.sshfl [vmem:[#allocation1 + $0x28] sm:$0xff pattern:$0x73625140]  ;;  %v73_v40 = vpack.c.bf16 %v57_v35, %v57_v35  ;;  %v56_v42 = vld.sshfl [vmem:[#allocation1 + $0x30] sm:$0xff pattern:$0x73625140]  ;;  %v70_v43 = vpack.c.bf16 %v54_v38, %v54_v38 }
  0x27   :  { %634 = vmatpush.bf16.msrb.mxu0 %v984_v60  ;;  %v52_v11 = vld.sshfl [vmem:[#allocation1 + $0x10] sm:$0xff pattern:$0x73625140]  ;;  %v53_v12 = vld.sshfl [vmem:[#allocation1 + $0x18] sm:$0xff pattern:$0x73625140]  ;;  %v71_v44 = vpack.c.bf16 %v55_v39, %v55_v39  ;;  %v72_v45 = vpack.c.bf16 %v56_v42, %v56_v42 }
  0x28   :  { %647 = vmatpush.bf16.msrb.mxu1 %v992_v61  ;;  %v68_v13 = vpack.c.bf16 %v52_v11, %v52_v11  ;;  %v69_v14 = vpack.c.bf16 %v53_v12, %v53_v12  ;;  %v50_v15 = vld.sshfl [vmem:[#allocation1] sm:$0xff pattern:$0x73625140]  ;;  %v51_v16 = vld.sshfl [vmem:[#allocation1 + $0x8] sm:$0xff pattern:$0x73625140] }
  0x29   :  { %660 = vmatpush.bf16.msrb.mxu2 %v1000_v63  ;;  %v66_v17 = vpack.c.bf16 %v50_v15, %v50_v15  ;;  %v67_v18 = vpack.c.bf16 %v51_v16, %v51_v16 }
  0x2a   :  { %674 = vmatpush.bf16.msrb.mxu3 %v580_v1  ;;  %616 = vmatmul.bf16.vlgmr.msra.gmra.mxu2 %v68_v13 }
  0x2b   :  { %635 = vmatpush.bf16.msrb.mxu0 %v983_v3  ;;  %629 = vmatmul.bf16.vlgmr.msra.gmra.mxu3 %v69_v14 }
  0x2c   :  { %648 = vmatpush.bf16.msrb.mxu1 %v991_v4  ;;  %590 = vmatmul.bf16.vlgmr.msra.gmra.mxu0 %v66_v17 }
  0x2d   :  { %661 = vmatpush.bf16.msrb.mxu2 %v999_v5  ;;  %603 = vmatmul.bf16.vlgmr.msra.gmra.mxu1 %v67_v18 }
  0x2e   :  { %675 = vmatpush.bf16.msrb.mxu3 %v1006_v6 }
  0x2f   :  { %636 = vmatpush.bf16.msrb.mxu0 %v982_v7 }
  0x30   :  { %649 = vmatpush.bf16.msrb.mxu1 %v990_v8 }
  0x31   :  { %662 = vmatpush.bf16.msrb.mxu2 %v998_v9 }
  0x32   :  { %676 = vmatpush.bf16.msrb.mxu3 %v1005_v10 }
  0x33   :  { %637 = vmatpush.bf16.msrb.mxu0 %v981_v19 }
  0x34   :  { %650 = vmatpush.bf16.msrb.mxu1 %v989_v20 }
  0x35   :  { %663 = vmatpush.bf16.msrb.mxu2 %v997_v21 }
  0x36   :  { %677 = vmatpush.bf16.msrb.mxu3 %v1004_v22 }
  0x37   :  { %638 = vmatpush.bf16.msrb.mxu0 %v980_v23 }
  0x38   :  { %651 = vmatpush.bf16.msrb.mxu1 %v988_v24 }
  0x39   :  { %664 = vmatpush.bf16.msrb.mxu2 %v996_v25 }
  0x3a   :  { %678 = vmatpush.bf16.msrb.mxu3 %v1003_v26 }
  0x3b   :  { %639 = vmatpush.bf16.msrb.mxu0 %v979_v27 }
  0x3c   :  { %652 = vmatpush.bf16.msrb.mxu1 %v987_v28 }
  0x3d   :  { %665 = vmatpush.bf16.msrb.mxu2 %v995_v29 }
  0x3e   :  { %679 = vmatpush.bf16.msrb.mxu3 %v1002_v30 }
  0x3f   :  { %640 = vmatpush.bf16.msrb.mxu0 %v978_v31 }
  0x40   :  { %653 = vmatpush.bf16.msrb.mxu1 %v986_v32 }
  0x41   :  { %666 = vmatpush.bf16.msrb.mxu2 %v994_v33 }
  0x42   :  { %680 = vmatpush.bf16.msrb.mxu3 %v1001_v34 }
  0x43   :  { %641 = vmatpush.bf16.msrb.mxu0 %v977_v36 }
  0x44   :  { %654 = vmatpush.bf16.msrb.mxu1 %v985_v37 }
  0x45   :  { %944 = vmatmul.msk.bf16.vlgmr.msrb.gmra.mxu3 %vm574_vm3, %v73_v40  ;;  %667 = vmatpush.bf16.msrb.mxu2 %v993_v41 }
  0x46   :  { %642 = vmatmul.bf16.vlgmr.msrb.gmra.mxu0 %v70_v43 }
  0x47   :  { %655 = vmatmul.bf16.vlgmr.msrb.gmra.mxu1 %v71_v44 }
  0x48   :  { %668 = vmatmul.bf16.vlgmr.msrb.gmra.mxu2 %v72_v45 }
  0xa9   :  { %v591_v46 = vpop.f32.mrf.mxu0 }
  0xaa   :  { %v604_v47 = vpop.f32.mrf.mxu1 }
  0xab   :  { %v605_v54 = vadd.f32 %v604_v47, %v591_v46 }
  0xad   :  { %v617_v48 = vpop.f32.mrf.mxu2 }
  0xae   :  { %v630_v49 = vpop.f32.mrf.mxu3  ;;  %v618_v55 = vadd.f32 %v617_v48, %v605_v54 }
  0xb0   :  { %v631_v58 = vadd.f32 %v630_v49, %v618_v55 }
  0xb1   :  { %v593_v50 = vpop.f32.mrf.mxu0 }
  0xb2   :  { %v606_v51 = vpop.f32.mrf.mxu1 }
  0xb5   :  { %v619_v52 = vpop.f32.mrf.mxu2 }
  0xb6   :  { %v632_v53 = vpop.f32.mrf.mxu3 }
  0xc3   :  { %v643_v56 = vpop.f32.mrf.mxu0 }
  0xc4   :  { %v656_v57 = vpop.f32.mrf.mxu1  ;;  %v644_v59 = vadd.f32 %v643_v56, %v631_v58 }
  0xc6   :  { %v657_v61 = vadd.f32 %v656_v57, %v644_v59 }
  0xc8   :  { %v682_v60 = vpop.f32.mrf.mxu3 }
  0xcb   :  { %v669_v62 = vpop.f32.mrf.mxu2  ;;  %v645_v63 = vpop.f32.mrf.mxu0 }
  0xcc   :  { %v670_v0 = vadd.f32 %v669_v62, %v657_v61  ;;  %v658_v1 = vpop.f32.mrf.mxu1 }
  0xce   :  { %v683_v3 = vadd.f32 %v682_v60, %v670_v0 }
  0xd0   :  { %v684_v4 = vpop.f32.mrf.mxu3  ;;  %v687_v5 = vmul.f32 %v686_v2, %v683_v3 }
  0xd2   :  { %688 = vst [vmem:[%s1278_s3] sm:$0x3] %v687_v5 }
  0xd3   :  { %v671_v6 = vpop.f32.mrf.mxu2 }
  0xd4   :  { %693 = vsyncpa [#allocation3], 1 }

</bundles_post_ra>
